<compile_context>
chip_gen: v5e
topology: v5e:2x2
jax: 0.10.0
libtpu: 0.0.40
codegen_flags: <defaults>
</compile_context>

<pallas_src>
import jax
import jax.numpy as jnp
import numpy as np
from jax.experimental import pallas as pl
from jax.experimental.pallas import tpu as pltpu

CLASS_NUM = 11
NUM_POS = 4
PAD = 128                       # lane-dense padded logit width per position


def _head_kernel(feat_ref,
                 w1_ref, s1_ref, b1_ref,
                 w2_ref, s2_ref, b2_ref,
                 wc_ref, bc_ref,
                 wd1_ref, bd1_ref,
                 wd2_ref, bd2_ref,
                 out_ref,
                 h1_ref, acc_ref):
    """neck -> fc_common -> 4 digit classifiers.

    Grid = (batch_tiles, k_blocks).  The k axis streams w2 in (tk, 1024)
    chunks; h1 lives in VMEM scratch across the k axis, h2 is accumulated in
    acc_ref, and the tail layers run on the last k step.
    """
    k = pl.program_id(1)
    nk, _, tk = h1_ref.shape                       # static scratch shape

    # ---- first k step: layer 1 (Linear + folded BN + SiLU), zero accumulator
    @pl.when(k == 0)
    def _():
        h = jnp.dot(feat_ref[...], w1_ref[...].astype(jnp.bfloat16),
                    preferred_element_type=jnp.float32)
        h = h * s1_ref[...] + b1_ref[...]          # int8 per-channel scale + bias
        h = h * jax.nn.sigmoid(h)                  # SiLU (f32, EUP)
        for j in range(nk):                        # static unroll: chunk h1
            h1_ref[j] = h[:, j * tk:(j + 1) * tk]
        acc_ref[...] = jnp.zeros_like(acc_ref)

    # ---- every k step: accumulate one K-chunk of layer 2
    acc_ref[...] += jnp.dot(h1_ref[k].astype(jnp.bfloat16),
                            w2_ref[...].astype(jnp.bfloat16),
                            preferred_element_type=jnp.float32)

    # ---- last k step: finish layer 2, fc_common, 4 digit classifiers
    @pl.when(k == nk - 1)
    def _():
        h = acc_ref[...] * s2_ref[...] + b2_ref[...]
        h = h * jax.nn.sigmoid(h)                  # SiLU

        # fc_common: Linear(1024, 256)
        common = jnp.dot(h.astype(jnp.bfloat16), wc_ref[...],
                         preferred_element_type=jnp.float32) + bc_ref[...]

        # digit classifiers, layer 1 fused into ONE wide matmul (BN + position
        # embedding folded host-side into wd1 / bd1).
        d = jnp.dot(common.astype(jnp.bfloat16), wd1_ref[...],
                    preferred_element_type=jnp.float32) + bd1_ref[...]
        d = jnp.maximum(d, 0.0)                    # ReLU

        wd2 = wd2_ref[...]                         # (4, 256, PAD) bf16
        bd2 = bd2_ref[...]                         # (4, PAD)      f32
        for i in range(NUM_POS):                   # static unroll, lane-dense stores
            di = d[:, i * 256:(i + 1) * 256]
            logits = jnp.dot(di.astype(jnp.bfloat16), wd2[i],
                             preferred_element_type=jnp.float32) + bd2[i:i + 1, :]
            out_ref[:, i * PAD:(i + 1) * PAD] = logits


def improved_model_head(feat, kp, *, bt=None, tk=512):
    """feat: (B, feature_dim) f32  ->  tuple of 4 logits arrays (B, CLASS_NUM)."""
    B, F = feat.shape
    if bt is None:
        bt = B if B <= 256 else 256                # fill MXU rows for big batches
    assert B % bt == 0, "batch must be a multiple of the batch tile"
    assert bt == B or bt % 16 == 0, "batch tile must be full batch or multiple of 16"

    K1 = kp["w2q"].shape[0]                        # 1536
    assert K1 % tk == 0
    nk = K1 // tk
    n_out = kp["w2q"].shape[1]                     # 1024

    feat = feat.astype(jnp.bfloat16)               # halve activation input bytes

    names = ("w1q", "s1", "b1", "w2q", "s2", "b2",
             "wc", "bc", "wd1", "bd1", "wd2", "bd2")
    ordered = [kp[n] for n in names]

    def const_spec(p):
        nd = p.ndim
        return pl.BlockSpec(p.shape, lambda i, k, _nd=nd: (0,) * _nd)

    in_specs = [pl.BlockSpec((bt, F), lambda i, k: (i, 0))]
    for name, p in zip(names, ordered):
        if name == "w2q":                          # streamed over the k axis
            in_specs.append(pl.BlockSpec((tk, n_out), lambda i, k: (k, 0)))
        else:                                      # constant across the grid
            in_specs.append(const_spec(p))

    out_spec = pl.BlockSpec((bt, NUM_POS * PAD), lambda i, k: (i, 0))
    out_shape = jax.ShapeDtypeStruct((B, NUM_POS * PAD), jnp.float32)

    padded = pl.pallas_call(
        _head_kernel,
        grid=(B // bt, nk),
        in_specs=in_specs,
        out_specs=out_spec,
        out_shape=out_shape,
        scratch_shapes=[pltpu.VMEM((nk, bt, tk), jnp.float32),   # h1 chunks
                        pltpu.VMEM((bt, n_out), jnp.float32)],   # h2 accumulator
        compiler_params=pltpu.CompilerParams(
            dimension_semantics=("parallel", "arbitrary"),
            vmem_limit_bytes=32 * 1024 * 1024),
    )(feat, *ordered)

    # slice the padded lane-dense output back to CLASS_NUM per position
    return tuple(padded[:, i * PAD:i * PAD + CLASS_NUM] for i in range(NUM_POS))


# ---------------------------------------------------------------------------
# Parameter construction (PyTorch-like raw params) and host-side folding.
# ---------------------------------------------------------------------------
def init_raw_params(key, feature_dim, class_num=CLASS_NUM):
    ks = list(jax.random.split(key, 64))
    it = iter(ks)

    def lin(fan_in, fan_out):
        w = jax.random.normal(next(it), (fan_in, fan_out), jnp.float32) / np.sqrt(fan_in)
        b = 0.1 * jax.random.normal(next(it), (fan_out,), jnp.float32)
        return w, b

    def bn(n):
        gamma = 1.0 + 0.1 * jax.random.normal(next(it), (n,), jnp.float32)
        beta = 0.1 * jax.random.normal(next(it), (n,), jnp.float32)
        mean = 0.1 * jax.random.normal(next(it), (n,), jnp.float32)
        var = jax.random.uniform(next(it), (n,), jnp.float32, minval=0.5, maxval=1.5)
        return gamma, beta, mean, var

    r = {}
    r["w1"], r["b1"] = lin(feature_dim, 1536)
    r["bn1"] = bn(1536)
    r["w2"], r["b2"] = lin(1536, 1024)
    r["bn2"] = bn(1024)
    r["wc"], r["bc"] = lin(1024, 256)
    r["pos"] = jax.random.normal(next(it), (NUM_POS, 256), jnp.float32)

    wd1, bd1, g_, b_, m_, v_, wd2, bd2 = [], [], [], [], [], [], [], []
    for _ in range(NUM_POS):
        w_a, b_a = lin(256, 256)
        g, bb, m, v = bn(256)
        w_b, b_b = lin(256, class_num)
        wd1.append(w_a); bd1.append(b_a)
        g_.append(g); b_.append(bb); m_.append(m); v_.append(v)
        wd2.append(w_b); bd2.append(b_b)
    r["wd1"] = jnp.stack(wd1)                           # (4, 256, 256)
    r["bd1"] = jnp.stack(bd1)                           # (4, 256)
    r["bnd"] = (jnp.stack(g_), jnp.stack(b_), jnp.stack(m_), jnp.stack(v_))
    r["wd2"] = jnp.stack(wd2)                           # (4, 256, 11)
    r["bd2"] = jnp.stack(bd2)                           # (4, 11)
    return r


def _quantize_int8_cols(w):
    """Symmetric per-output-channel int8 quantization. Returns (q, scale[1,N])."""
    absmax = jnp.max(jnp.abs(w), axis=0)
    scale = jnp.maximum(absmax, 1e-8) / 127.0
    q = jnp.clip(jnp.round(w / scale[None, :]), -127.0, 127.0).astype(jnp.int8)
    return q, scale.reshape(1, -1).astype(jnp.float32)


def fold_params(raw, eps=1e-5):
    """Fold BN + position embedding into weights/biases; int8-quantize w1/w2."""
    def bn_fold(stats):
        g, b, m, v = stats
        s = g / jnp.sqrt(v + eps)
        return s, b - m * s

    kp = {}
    sc1, t1 = bn_fold(raw["bn1"])
    w1_f = raw["w1"] * sc1[None, :]
    kp["w1q"], kp["s1"] = _quantize_int8_cols(w1_f)
    kp["b1"] = (raw["b1"] * sc1 + t1).reshape(1, -1)

    sc2, t2 = bn_fold(raw["bn2"])
    w2_f = raw["w2"] * sc2[None, :]
    kp["w2q"], kp["s2"] = _quantize_int8_cols(w2_f)
    kp["b2"] = (raw["b2"] * sc2 + t2).reshape(1, -1)

    kp["wc"] = raw["wc"].astype(jnp.bfloat16)
    kp["bc"] = raw["bc"].reshape(1, -1)

    # digit layer 1: fold BN, then fold pos-embedding into the bias, then
    # concatenate the 4 (256,256) matrices along N -> (256, 1024).
    gd, bd_, md, vd = raw["bnd"]                        # each (4, 256)
    sd = gd / jnp.sqrt(vd + eps)
    td = bd_ - md * sd
    wd1_f = raw["wd1"] * sd[:, None, :]                 # (4, 256, 256)
    bd1_f = raw["bd1"] * sd + td                        # (4, 256)
    bd1_f = bd1_f + jnp.einsum("pk,pkn->pn", raw["pos"], wd1_f)
    kp["wd1"] = jnp.transpose(wd1_f, (1, 0, 2)).reshape(256, NUM_POS * 256) \
                   .astype(jnp.bfloat16)                # (256, 1024)
    kp["bd1"] = bd1_f.reshape(1, NUM_POS * 256)         # (1, 1024)

    # digit layer 2: zero-pad N from CLASS_NUM to PAD for lane-dense stores.
    wd2_pad = jnp.zeros((NUM_POS, 256, PAD), jnp.float32).at[:, :, :CLASS_NUM] \
                 .set(raw["wd2"])
    bd2_pad = jnp.zeros((NUM_POS, PAD), jnp.float32).at[:, :CLASS_NUM].set(raw["bd2"])
    kp["wd2"] = wd2_pad.astype(jnp.bfloat16)
    kp["bd2"] = bd2_pad
    return kp


def head_reference(feat, r, eps=1e-5):
    """Pure-JAX f32 reference of the original (unfolded) head in eval mode."""
    silu = lambda v: v * jax.nn.sigmoid(v)

    def bn(v, stats):
        g, b, m, var = stats
        return (v - m) / jnp.sqrt(var + eps) * g + b

    h = silu(bn(feat @ r["w1"] + r["b1"], r["bn1"]))
    h = silu(bn(h @ r["w2"] + r["b2"], r["bn2"]))
    common = h @ r["wc"] + r["bc"]

    gd, bd_, md, vd = r["bnd"]
    outs = []
    for i in range(NUM_POS):
        pf = common + r["pos"][i]
        d = (pf @ r["wd1"][i] + r["bd1"][i] - md[i]) / jnp.sqrt(vd[i] + eps) * gd[i] + bd_[i]
        d = jnp.maximum(d, 0.0)
        outs.append(d @ r["wd2"][i] + r["bd2"][i])
    return tuple(outs)


if __name__ == "__main__":
    key = jax.random.PRNGKey(0)
    k_img, k_bb, k_params = jax.random.split(key, 3)

    B, C, H, W = 16, 4, 16, 16          # NCHW, small shapes
    feature_dim = 256                   # synthetic backbone feature width

    x = jax.random.normal(k_img, (B, C, H, W), jnp.float32)

    # TODO(synk): timm efficientnet_b4 (pretrained) backbone has no in-script
    # equivalent; replaced with a deterministic GAP + linear-projection stub.
    wb = jax.random.normal(k_bb, (C, feature_dim), jnp.float32) / np.sqrt(C)
    feat = jnp.mean(x, axis=(2, 3)) @ wb                     # (B, feature_dim)

    raw = init_raw_params(k_params, feature_dim)
    kp = fold_params(raw)

    outs = improved_model_head(feat, kp)
    outs = jax.block_until_ready(outs)

    refs = head_reference(feat, raw)
    for o, ref in zip(outs, refs):
        assert o.shape == (B, CLASS_NUM)
        assert bool(jnp.all(jnp.isfinite(o)))
        np.testing.assert_allclose(np.asarray(o), np.asarray(ref), rtol=5e-2, atol=5e-2)

    print("KERNEL_OK")
</pallas_src>

<mosaic_0001>
module attributes {stable_mosaic.version = 11 : i64} {
  func.func @_head_kernel(%arg0: i32, %arg1: i32, %arg2: memref<16x256xbf16, #tpu.memory_space<vmem>>, %arg3: memref<256x1536xi8, #tpu.memory_space<vmem>>, %arg4: memref<1x1536xf32, #tpu.memory_space<vmem>>, %arg5: memref<1x1536xf32, #tpu.memory_space<vmem>>, %arg6: memref<512x1024xi8, #tpu.memory_space<vmem>>, %arg7: memref<1x1024xf32, #tpu.memory_space<vmem>>, %arg8: memref<1x1024xf32, #tpu.memory_space<vmem>>, %arg9: memref<1024x256xbf16, #tpu.memory_space<vmem>>, %arg10: memref<1x256xf32, #tpu.memory_space<vmem>>, %arg11: memref<256x1024xbf16, #tpu.memory_space<vmem>>, %arg12: memref<1x1024xf32, #tpu.memory_space<vmem>>, %arg13: memref<4x256x128xbf16, #tpu.memory_space<vmem>>, %arg14: memref<4x128xf32, #tpu.memory_space<vmem>>, %arg15: memref<16x512xf32, #tpu.memory_space<vmem>>, %arg16: memref<3x16x512xf32, #tpu.memory_space<vmem>>, %arg17: memref<16x1024xf32, #tpu.memory_space<vmem>>) attributes {dimension_semantics = [#tpu.dimension_semantics<parallel>, #tpu.dimension_semantics<arbitrary>], iteration_bounds = array<i64: 1, 3>, scalar_prefetch = 0 : i64, scratch_operands = 2 : i64, tpu.core_type = #tpu.core_type<tc>, window_params = [{transform_indices = @transform_0, window_bounds = array<i64: 16, 256>}, {pipeline_mode = #tpu.pipeline_mode<synchronous>, transform_indices = @transform_1, window_bounds = array<i64: 256, 1536>}, {pipeline_mode = #tpu.pipeline_mode<synchronous>, transform_indices = @transform_2, window_bounds = array<i64: 1, 1536>}, {pipeline_mode = #tpu.pipeline_mode<synchronous>, transform_indices = @transform_3, window_bounds = array<i64: 1, 1536>}, {transform_indices = @transform_4, window_bounds = array<i64: 512, 1024>}, {pipeline_mode = #tpu.pipeline_mode<synchronous>, transform_indices = @transform_5, window_bounds = array<i64: 1, 1024>}, {pipeline_mode = #tpu.pipeline_mode<synchronous>, transform_indices = @transform_6, window_bounds = array<i64: 1, 1024>}, {pipeline_mode = #tpu.pipeline_mode<synchronous>, transform_indices = @transform_7, window_bounds = array<i64: 1024, 256>}, {pipeline_mode = #tpu.pipeline_mode<synchronous>, transform_indices = @transform_8, window_bounds = array<i64: 1, 256>}, {pipeline_mode = #tpu.pipeline_mode<synchronous>, transform_indices = @transform_9, window_bounds = array<i64: 256, 1024>}, {pipeline_mode = #tpu.pipeline_mode<synchronous>, transform_indices = @transform_10, window_bounds = array<i64: 1, 1024>}, {pipeline_mode = #tpu.pipeline_mode<synchronous>, transform_indices = @transform_11, window_bounds = array<i64: 4, 256, 128>}, {pipeline_mode = #tpu.pipeline_mode<synchronous>, transform_indices = @transform_12, window_bounds = array<i64: 4, 128>}, {transform_indices = @transform_13, window_bounds = array<i64: 16, 512>}]} {
    %c0_i32 = arith.constant 0 : i32
    %0 = arith.cmpi eq, %arg1, %c0_i32 : i32
    %1 = arith.extui %0 : i1 to i32
    %c0_i32_0 = arith.constant 0 : i32
    %2 = arith.cmpi ne, %1, %c0_i32_0 : i32
    scf.if %2 {
      %c0_9 = arith.constant 0 : index
      %c0_10 = arith.constant 0 : index
      %16 = vector.load %arg2[%c0_9, %c0_10] : memref<16x256xbf16, #tpu.memory_space<vmem>>, vector<16x256xbf16>
      %c0_11 = arith.constant 0 : index
      %c0_12 = arith.constant 0 : index
      %17 = vector.load %arg3[%c0_11, %c0_12] : memref<256x1536xi8, #tpu.memory_space<vmem>>, vector<256x1536xi8>
      %18 = arith.sitofp %17 : vector<256x1536xi8> to vector<256x1536xbf16>
      %cst_13 = arith.constant dense<0.000000e+00> : vector<16x1536xf32>
      %19 = tpu.matmul %16, %18, %cst_13 {dimension_numbers = #tpu.dot_dimension_numbers<[1], [0], [0], [1], [0, 0, 1, 1], [], []>} : vector<16x256xbf16>, vector<256x1536xbf16>, vector<16x1536xf32> -> vector<16x1536xf32>
      %c0_14 = arith.constant 0 : index
      %c0_15 = arith.constant 0 : index
      %20 = vector.load %arg4[%c0_14, %c0_15] : memref<1x1536xf32, #tpu.memory_space<vmem>>, vector<1x1536xf32>
      %21 = vector.broadcast %20 : vector<1x1536xf32> to vector<16x1536xf32>
      %22 = arith.mulf %19, %21 : vector<16x1536xf32>
      %c0_16 = arith.constant 0 : index
      %c0_17 = arith.constant 0 : index
      %23 = vector.load %arg5[%c0_16, %c0_17] : memref<1x1536xf32, #tpu.memory_space<vmem>>, vector<1x1536xf32>
      %24 = vector.broadcast %23 : vector<1x1536xf32> to vector<16x1536xf32>
      %25 = arith.addf %22, %24 : vector<16x1536xf32>
      %26 = arith.negf %25 : vector<16x1536xf32>
      %27 = math.exp %26 : vector<16x1536xf32>
      %cst_18 = arith.constant 1.000000e+00 : f32
      %28 = vector.broadcast %cst_18 : f32 to vector<16x1536xf32>
      %29 = arith.addf %28, %27 : vector<16x1536xf32>
      %30 = arith.divf %28, %29 : vector<16x1536xf32>
      %31 = arith.mulf %25, %30 : vector<16x1536xf32>
      %32 = vector.extract_strided_slice %31 {offsets = [0, 0], sizes = [16, 512], strides = [1, 1]} : vector<16x1536xf32> to vector<16x512xf32>
      %c0_19 = arith.constant 0 : index
      %c0_20 = arith.constant 0 : index
      %c0_21 = arith.constant 0 : index
      %33 = vector.load %arg16[%c0_19, %c0_20, %c0_21] : memref<3x16x512xf32, #tpu.memory_space<vmem>>, vector<1x16x512xf32>
      %34 = vector.shape_cast %33 : vector<1x16x512xf32> to vector<16x512xf32>
      %35 = vector.shape_cast %32 : vector<16x512xf32> to vector<1x16x512xf32>
      tpu.vector_store %arg16[%c0_19, %c0_20, %c0_21], %35 {strides = array<i32>} : memref<3x16x512xf32, #tpu.memory_space<vmem>>, vector<1x16x512xf32>,
      %36 = vector.extract_strided_slice %31 {offsets = [0, 512], sizes = [16, 512], strides = [1, 1]} : vector<16x1536xf32> to vector<16x512xf32>
      %c1 = arith.constant 1 : index
      %c0_22 = arith.constant 0 : index
      %c0_23 = arith.constant 0 : index
      %37 = vector.load %arg16[%c1, %c0_22, %c0_23] : memref<3x16x512xf32, #tpu.memory_space<vmem>>, vector<1x16x512xf32>
      %38 = vector.shape_cast %37 : vector<1x16x512xf32> to vector<16x512xf32>
      %39 = vector.shape_cast %36 : vector<16x512xf32> to vector<1x16x512xf32>
      tpu.vector_store %arg16[%c1, %c0_22, %c0_23], %39 {strides = array<i32>} : memref<3x16x512xf32, #tpu.memory_space<vmem>>, vector<1x16x512xf32>,
      %40 = vector.extract_strided_slice %31 {offsets = [0, 1024], sizes = [16, 512], strides = [1, 1]} : vector<16x1536xf32> to vector<16x512xf32>
      %c2 = arith.constant 2 : index
      %c0_24 = arith.constant 0 : index
      %c0_25 = arith.constant 0 : index
      %41 = vector.load %arg16[%c2, %c0_24, %c0_25] : memref<3x16x512xf32, #tpu.memory_space<vmem>>, vector<1x16x512xf32>
      %42 = vector.shape_cast %41 : vector<1x16x512xf32> to vector<16x512xf32>
      %43 = vector.shape_cast %40 : vector<16x512xf32> to vector<1x16x512xf32>
      tpu.vector_store %arg16[%c2, %c0_24, %c0_25], %43 {strides = array<i32>} : memref<3x16x512xf32, #tpu.memory_space<vmem>>, vector<1x16x512xf32>,
      %cst_26 = arith.constant 0.000000e+00 : f32
      %44 = vector.broadcast %cst_26 : f32 to vector<16x1024xf32>
      %c0_27 = arith.constant 0 : index
      %c0_28 = arith.constant 0 : index
      %45 = vector.load %arg17[%c0_27, %c0_28] : memref<16x1024xf32, #tpu.memory_space<vmem>>, vector<16x1024xf32>
      tpu.vector_store %arg17[%c0_27, %c0_28], %44 {strides = array<i32>} : memref<16x1024xf32, #tpu.memory_space<vmem>>, vector<16x1024xf32>,
    } else {
    }
    %c0 = arith.constant 0 : index
    %c0_1 = arith.constant 0 : index
    %3 = vector.load %arg17[%c0, %c0_1] : memref<16x1024xf32, #tpu.memory_space<vmem>>, vector<16x1024xf32>
    %4 = arith.index_cast %arg1 : i32 to index
    %c0_2 = arith.constant 0 : index
    %c0_3 = arith.constant 0 : index
    %5 = vector.load %arg16[%4, %c0_2, %c0_3] : memref<3x16x512xf32, #tpu.memory_space<vmem>>, vector<1x16x512xf32>
    %6 = vector.shape_cast %5 : vector<1x16x512xf32> to vector<16x512xf32>
    %7 = arith.truncf %6 : vector<16x512xf32> to vector<16x512xbf16>
    %c0_4 = arith.constant 0 : index
    %c0_5 = arith.constant 0 : index
    %8 = vector.load %arg6[%c0_4, %c0_5] : memref<512x1024xi8, #tpu.memory_space<vmem>>, vector<512x1024xi8>
    %9 = arith.sitofp %8 : vector<512x1024xi8> to vector<512x1024xbf16>
    %cst = arith.constant dense<0.000000e+00> : vector<16x1024xf32>
    %10 = tpu.matmul %7, %9, %cst {dimension_numbers = #tpu.dot_dimension_numbers<[1], [0], [0], [1], [0, 0, 1, 1], [], []>} : vector<16x512xbf16>, vector<512x1024xbf16>, vector<16x1024xf32> -> vector<16x1024xf32>
    %11 = arith.addf %3, %10 : vector<16x1024xf32>
    %c0_6 = arith.constant 0 : index
    %c0_7 = arith.constant 0 : index
    %12 = vector.load %arg17[%c0_6, %c0_7] : memref<16x1024xf32, #tpu.memory_space<vmem>>, vector<16x1024xf32>
    tpu.vector_store %arg17[%c0_6, %c0_7], %11 {strides = array<i32>} : memref<16x1024xf32, #tpu.memory_space<vmem>>, vector<16x1024xf32>,
    %c2_i32 = arith.constant 2 : i32
    %13 = arith.cmpi eq, %arg1, %c2_i32 : i32
    %14 = arith.extui %13 : i1 to i32
    %c0_i32_8 = arith.constant 0 : i32
    %15 = arith.cmpi ne, %14, %c0_i32_8 : i32
    scf.if %15 {
      %c0_9 = arith.constant 0 : index
      %c0_10 = arith.constant 0 : index
      %16 = vector.load %arg17[%c0_9, %c0_10] : memref<16x1024xf32, #tpu.memory_space<vmem>>, vector<16x1024xf32>
      %c0_11 = arith.constant 0 : index
      %c0_12 = arith.constant 0 : index
      %17 = vector.load %arg7[%c0_11, %c0_12] : memref<1x1024xf32, #tpu.memory_space<vmem>>, vector<1x1024xf32>
      %18 = vector.broadcast %17 : vector<1x1024xf32> to vector<16x1024xf32>
      %19 = arith.mulf %16, %18 : vector<16x1024xf32>
      %c0_13 = arith.constant 0 : index
      %c0_14 = arith.constant 0 : index
      %20 = vector.load %arg8[%c0_13, %c0_14] : memref<1x1024xf32, #tpu.memory_space<vmem>>, vector<1x1024xf32>
      %21 = vector.broadcast %20 : vector<1x1024xf32> to vector<16x1024xf32>
      %22 = arith.addf %19, %21 : vector<16x1024xf32>
      %23 = arith.negf %22 : vector<16x1024xf32>
      %24 = math.exp %23 : vector<16x1024xf32>
      %cst_15 = arith.constant 1.000000e+00 : f32
      %25 = vector.broadcast %cst_15 : f32 to vector<16x1024xf32>
      %26 = arith.addf %25, %24 : vector<16x1024xf32>
      %27 = arith.divf %25, %26 : vector<16x1024xf32>
      %28 = arith.mulf %22, %27 : vector<16x1024xf32>
      %29 = arith.truncf %28 : vector<16x1024xf32> to vector<16x1024xbf16>
      %c0_16 = arith.constant 0 : index
      %c0_17 = arith.constant 0 : index
      %30 = vector.load %arg9[%c0_16, %c0_17] : memref<1024x256xbf16, #tpu.memory_space<vmem>>, vector<1024x256xbf16>
      %cst_18 = arith.constant dense<0.000000e+00> : vector<16x256xf32>
      %31 = tpu.matmul %29, %30, %cst_18 {dimension_numbers = #tpu.dot_dimension_numbers<[1], [0], [0], [1], [0, 0, 1, 1], [], []>} : vector<16x1024xbf16>, vector<1024x256xbf16>, vector<16x256xf32> -> vector<16x256xf32>
      %c0_19 = arith.constant 0 : index
      %c0_20 = arith.constant 0 : index
      %32 = vector.load %arg10[%c0_19, %c0_20] : memref<1x256xf32, #tpu.memory_space<vmem>>, vector<1x256xf32>
      %33 = vector.broadcast %32 : vector<1x256xf32> to vector<16x256xf32>
      %34 = arith.addf %31, %33 : vector<16x256xf32>
      %35 = arith.truncf %34 : vector<16x256xf32> to vector<16x256xbf16>
      %c0_21 = arith.constant 0 : index
      %c0_22 = arith.constant 0 : index
      %36 = vector.load %arg11[%c0_21, %c0_22] : memref<256x1024xbf16, #tpu.memory_space<vmem>>, vector<256x1024xbf16>
      %cst_23 = arith.constant dense<0.000000e+00> : vector<16x1024xf32>
      %37 = tpu.matmul %35, %36, %cst_23 {dimension_numbers = #tpu.dot_dimension_numbers<[1], [0], [0], [1], [0, 0, 1, 1], [], []>} : vector<16x256xbf16>, vector<256x1024xbf16>, vector<16x1024xf32> -> vector<16x1024xf32>
      %c0_24 = arith.constant 0 : index
      %c0_25 = arith.constant 0 : index
      %38 = vector.load %arg12[%c0_24, %c0_25] : memref<1x1024xf32, #tpu.memory_space<vmem>>, vector<1x1024xf32>
      %39 = vector.broadcast %38 : vector<1x1024xf32> to vector<16x1024xf32>
      %40 = arith.addf %37, %39 : vector<16x1024xf32>
      %cst_26 = arith.constant 0.000000e+00 : f32
      %41 = vector.broadcast %cst_26 : f32 to vector<16x1024xf32>
      %42 = arith.maximumf %40, %41 : vector<16x1024xf32>
      %c0_27 = arith.constant 0 : index
      %c0_28 = arith.constant 0 : index
      %c0_29 = arith.constant 0 : index
      %43 = vector.load %arg13[%c0_27, %c0_28, %c0_29] : memref<4x256x128xbf16, #tpu.memory_space<vmem>>, vector<4x256x128xbf16>
      %c0_30 = arith.constant 0 : index
      %c0_31 = arith.constant 0 : index
      %44 = vector.load %arg14[%c0_30, %c0_31] : memref<4x128xf32, #tpu.memory_space<vmem>>, vector<4x128xf32>
      %45 = vector.extract_strided_slice %42 {offsets = [0, 0], sizes = [16, 256], strides = [1, 1]} : vector<16x1024xf32> to vector<16x256xf32>
      %46 = arith.truncf %45 : vector<16x256xf32> to vector<16x256xbf16>
      %47 = vector.extract_strided_slice %43 {offsets = [0, 0, 0], sizes = [1, 256, 128], strides = [1, 1, 1]} : vector<4x256x128xbf16> to vector<1x256x128xbf16>
      %48 = vector.shape_cast %47 : vector<1x256x128xbf16> to vector<256x128xbf16>
      %cst_32 = arith.constant dense<0.000000e+00> : vector<16x128xf32>
      %49 = tpu.matmul %46, %48, %cst_32 {dimension_numbers = #tpu.dot_dimension_numbers<[1], [0], [0], [1], [0, 0, 1, 1], [], []>} : vector<16x256xbf16>, vector<256x128xbf16>, vector<16x128xf32> -> vector<16x128xf32>
      %50 = vector.extract_strided_slice %44 {offsets = [0, 0], sizes = [1, 128], strides = [1, 1]} : vector<4x128xf32> to vector<1x128xf32>
      %51 = vector.broadcast %50 : vector<1x128xf32> to vector<16x128xf32>
      %52 = arith.addf %49, %51 : vector<16x128xf32>
      %c0_33 = arith.constant 0 : index
      %c0_34 = arith.constant 0 : index
      %53 = vector.load %arg15[%c0_33, %c0_34] : memref<16x512xf32, #tpu.memory_space<vmem>>, vector<16x128xf32>
      tpu.vector_store %arg15[%c0_33, %c0_34], %52 {strides = array<i32>} : memref<16x512xf32, #tpu.memory_space<vmem>>, vector<16x128xf32>,
      %54 = vector.extract_strided_slice %42 {offsets = [0, 256], sizes = [16, 256], strides = [1, 1]} : vector<16x1024xf32> to vector<16x256xf32>
      %55 = arith.truncf %54 : vector<16x256xf32> to vector<16x256xbf16>
      %56 = vector.extract_strided_slice %43 {offsets = [1, 0, 0], sizes = [1, 256, 128], strides = [1, 1, 1]} : vector<4x256x128xbf16> to vector<1x256x128xbf16>
      %57 = vector.shape_cast %56 : vector<1x256x128xbf16> to vector<256x128xbf16>
      %cst_35 = arith.constant dense<0.000000e+00> : vector<16x128xf32>
      %58 = tpu.matmul %55, %57, %cst_35 {dimension_numbers = #tpu.dot_dimension_numbers<[1], [0], [0], [1], [0, 0, 1, 1], [], []>} : vector<16x256xbf16>, vector<256x128xbf16>, vector<16x128xf32> -> vector<16x128xf32>
      %59 = vector.extract_strided_slice %44 {offsets = [1, 0], sizes = [1, 128], strides = [1, 1]} : vector<4x128xf32> to vector<1x128xf32>
      %60 = vector.broadcast %59 : vector<1x128xf32> to vector<16x128xf32>
      %61 = arith.addf %58, %60 : vector<16x128xf32>
      %c0_36 = arith.constant 0 : index
      %c128 = arith.constant 128 : index
      %62 = vector.load %arg15[%c0_36, %c128] : memref<16x512xf32, #tpu.memory_space<vmem>>, vector<16x128xf32>
      tpu.vector_store %arg15[%c0_36, %c128], %61 {strides = array<i32>} : memref<16x512xf32, #tpu.memory_space<vmem>>, vector<16x128xf32>,
      %63 = vector.extract_strided_slice %42 {offsets = [0, 512], sizes = [16, 256], strides = [1, 1]} : vector<16x1024xf32> to vector<16x256xf32>
      %64 = arith.truncf %63 : vector<16x256xf32> to vector<16x256xbf16>
      %65 = vector.extract_strided_slice %43 {offsets = [2, 0, 0], sizes = [1, 256, 128], strides = [1, 1, 1]} : vector<4x256x128xbf16> to vector<1x256x128xbf16>
      %66 = vector.shape_cast %65 : vector<1x256x128xbf16> to vector<256x128xbf16>
      %cst_37 = arith.constant dense<0.000000e+00> : vector<16x128xf32>
      %67 = tpu.matmul %64, %66, %cst_37 {dimension_numbers = #tpu.dot_dimension_numbers<[1], [0], [0], [1], [0, 0, 1, 1], [], []>} : vector<16x256xbf16>, vector<256x128xbf16>, vector<16x128xf32> -> vector<16x128xf32>
      %68 = vector.extract_strided_slice %44 {offsets = [2, 0], sizes = [1, 128], strides = [1, 1]} : vector<4x128xf32> to vector<1x128xf32>
      %69 = vector.broadcast %68 : vector<1x128xf32> to vector<16x128xf32>
      %70 = arith.addf %67, %69 : vector<16x128xf32>
      %c0_38 = arith.constant 0 : index
      %c256 = arith.constant 256 : index
      %71 = vector.load %arg15[%c0_38, %c256] : memref<16x512xf32, #tpu.memory_space<vmem>>, vector<16x128xf32>
      tpu.vector_store %arg15[%c0_38, %c256], %70 {strides = array<i32>} : memref<16x512xf32, #tpu.memory_space<vmem>>, vector<16x128xf32>,
      %72 = vector.extract_strided_slice %42 {offsets = [0, 768], sizes = [16, 256], strides = [1, 1]} : vector<16x1024xf32> to vector<16x256xf32>
      %73 = arith.truncf %72 : vector<16x256xf32> to vector<16x256xbf16>
      %74 = vector.extract_strided_slice %43 {offsets = [3, 0, 0], sizes = [1, 256, 128], strides = [1, 1, 1]} : vector<4x256x128xbf16> to vector<1x256x128xbf16>
      %75 = vector.shape_cast %74 : vector<1x256x128xbf16> to vector<256x128xbf16>
      %cst_39 = arith.constant dense<0.000000e+00> : vector<16x128xf32>
      %76 = tpu.matmul %73, %75, %cst_39 {dimension_numbers = #tpu.dot_dimension_numbers<[1], [0], [0], [1], [0, 0, 1, 1], [], []>} : vector<16x256xbf16>, vector<256x128xbf16>, vector<16x128xf32> -> vector<16x128xf32>
      %77 = vector.extract_strided_slice %44 {offsets = [3, 0], sizes = [1, 128], strides = [1, 1]} : vector<4x128xf32> to vector<1x128xf32>
      %78 = vector.broadcast %77 : vector<1x128xf32> to vector<16x128xf32>
      %79 = arith.addf %76, %78 : vector<16x128xf32>
      %c0_40 = arith.constant 0 : index
      %c384 = arith.constant 384 : index
      %80 = vector.load %arg15[%c0_40, %c384] : memref<16x512xf32, #tpu.memory_space<vmem>>, vector<16x128xf32>
      tpu.vector_store %arg15[%c0_40, %c384], %79 {strides = array<i32>} : memref<16x512xf32, #tpu.memory_space<vmem>>, vector<16x128xf32>,
    } else {
    }
    return
  }
  func.func @transform_0(%arg0: i32, %arg1: i32) -> (i32, i32) {
    %c0_i32 = arith.constant 0 : i32
    %c0_i32_0 = arith.constant 0 : i32
    return %arg0, %c0_i32 : i32, i32
  }
  func.func @transform_1(%arg0: i32, %arg1: i32) -> (i32, i32) {
    %c0_i32 = arith.constant 0 : i32
    %c0_i32_0 = arith.constant 0 : i32
    %c0_i32_1 = arith.constant 0 : i32
    return %c0_i32, %c0_i32_0 : i32, i32
  }
  func.func @transform_2(%arg0: i32, %arg1: i32) -> (i32, i32) {
    %c0_i32 = arith.constant 0 : i32
    %c0_i32_0 = arith.constant 0 : i32
    %c0_i32_1 = arith.constant 0 : i32
    return %c0_i32, %c0_i32_0 : i32, i32
  }
  func.func @transform_3(%arg0: i32, %arg1: i32) -> (i32, i32) {
    %c0_i32 = arith.constant 0 : i32
    %c0_i32_0 = arith.constant 0 : i32
    %c0_i32_1 = arith.constant 0 : i32
    return %c0_i32, %c0_i32_0 : i32, i32
  }
  func.func @transform_4(%arg0: i32, %arg1: i32) -> (i32, i32) {
    %c0_i32 = arith.constant 0 : i32
    %c0_i32_0 = arith.constant 0 : i32
    return %arg1, %c0_i32 : i32, i32
  }
  func.func @transform_5(%arg0: i32, %arg1: i32) -> (i32, i32) {
    %c0_i32 = arith.constant 0 : i32
    %c0_i32_0 = arith.constant 0 : i32
    %c0_i32_1 = arith.constant 0 : i32
    return %c0_i32, %c0_i32_0 : i32, i32
  }
  func.func @transform_6(%arg0: i32, %arg1: i32) -> (i32, i32) {
    %c0_i32 = arith.constant 0 : i32
    %c0_i32_0 = arith.constant 0 : i32
    %c0_i32_1 = arith.constant 0 : i32
    return %c0_i32, %c0_i32_0 : i32, i32
  }
  func.func @transform_7(%arg0: i32, %arg1: i32) -> (i32, i32) {
    %c0_i32 = arith.constant 0 : i32
    %c0_i32_0 = arith.constant 0 : i32
    %c0_i32_1 = arith.constant 0 : i32
    return %c0_i32, %c0_i32_0 : i32, i32
  }
  func.func @transform_8(%arg0: i32, %arg1: i32) -> (i32, i32) {
    %c0_i32 = arith.constant 0 : i32
    %c0_i32_0 = arith.constant 0 : i32
    %c0_i32_1 = arith.constant 0 : i32
    return %c0_i32, %c0_i32_0 : i32, i32
  }
  func.func @transform_9(%arg0: i32, %arg1: i32) -> (i32, i32) {
    %c0_i32 = arith.constant 0 : i32
    %c0_i32_0 = arith.constant 0 : i32
    %c0_i32_1 = arith.constant 0 : i32
    return %c0_i32, %c0_i32_0 : i32, i32
  }
  func.func @transform_10(%arg0: i32, %arg1: i32) -> (i32, i32) {
    %c0_i32 = arith.constant 0 : i32
    %c0_i32_0 = arith.constant 0 : i32
    %c0_i32_1 = arith.constant 0 : i32
    return %c0_i32, %c0_i32_0 : i32, i32
  }
  func.func @transform_11(%arg0: i32, %arg1: i32) -> (i32, i32, i32) {
    %c0_i32 = arith.constant 0 : i32
    %c0_i32_0 = arith.constant 0 : i32
    %c0_i32_1 = arith.constant 0 : i32
    %c0_i32_2 = arith.constant 0 : i32
    return %c0_i32, %c0_i32_0, %c0_i32_1 : i32, i32, i32
  }
  func.func @transform_12(%arg0: i32, %arg1: i32) -> (i32, i32) {
    %c0_i32 = arith.constant 0 : i32
    %c0_i32_0 = arith.constant 0 : i32
    %c0_i32_1 = arith.constant 0 : i32
    return %c0_i32, %c0_i32_0 : i32, i32
  }
  func.func @transform_13(%arg0: i32, %arg1: i32) -> (i32, i32) {
    %c0_i32 = arith.constant 0 : i32
    %c0_i32_0 = arith.constant 0 : i32
    return %arg0, %c0_i32 : i32, i32
  }
}

</mosaic_0001>

<bundles_post_ra>
// kernel: tpu_custom_call.1
= control target key start
LH: loop header
LB: loop body
LE: loop exit
PB: predicated region body
PF: predicated region fallthrough
CT: control target
= control target key end

     0   :  { %s12173_s0 = inlined_call_operand.hbm [shape: bf16[16,256], index: 0, kind: input, shape index: {}]   ;;  %s12174_s1 = inlined_call_operand.hbm [shape: s8[256,1536], index: 1, kind: input, shape index: {}]   ;;  %s12175_s2 = inlined_call_operand.hbm [shape: f32[1,1536], index: 2, kind: input, shape index: {}]   ;;  %s12176_s3 = inlined_call_operand.hbm [shape: f32[1,1536], index: 3, kind: input, shape index: {}]   ;;  %s12177_s4 = inlined_call_operand.hbm [shape: s8[1536,1024], index: 4, kind: input, shape index: {}]   ;;  %s12178_s5 = inlined_call_operand.hbm [shape: f32[1,1024], index: 5, kind: input, shape index: {}]   ;;  %s12179_s6 = inlined_call_operand.hbm [shape: f32[1,1024], index: 6, kind: input, shape index: {}]   ;;  %s12180_s7 = inlined_call_operand.hbm [shape: bf16[1024,256], index: 7, kind: input, shape index: {}]   ;;  %s12181_s8 = inlined_call_operand.hbm [shape: f32[1,256], index: 8, kind: input, shape index: {}]   ;;  %s12182_s9 = inlined_call_operand.hbm [shape: bf16[256,1024], index: 9, kind: input, shape index: {}]   ;;  %s12183_s10 = inlined_call_operand.hbm [shape: f32[1,1024], index: 10, kind: input, shape index: {}]   ;;  %s12184_s11 = inlined_call_operand.hbm [shape: bf16[4,256,128], index: 11, kind: input, shape index: {}]   ;;  %s12185_s12 = inlined_call_operand.hbm [shape: f32[4,128], index: 12, kind: input, shape index: {}]   ;;  %s12186_s13 = inlined_call_operand.hbm [shape: f32[16,512], index: 13, kind: output, shape index: {}]  }
   0x1   :  { %12192 = sst [smem:[#allocation39_spill]] %s12173_s0 }
   0x2   :  { %12193 = sst [smem:[#allocation40_spill]] %s12174_s1 }
   0x3   :  { %12194 = sst [smem:[#allocation41_spill]] %s12175_s2 }
   0x4   :  { %12195 = sst [smem:[#allocation42_spill]] %s12176_s3 }
   0x5   :  { %12196 = sst [smem:[#allocation43_spill]] %s12177_s4 }
   0x6   :  { %12197 = sst [smem:[#allocation44_spill]] %s12186_s13 }
   0x7   :  { %18 = vsyncpa [#allocation5], 0 }
   0x8   :  { %19 = vsyncpa [#allocation8], 0 }
   0x9   :  { %20 = vsyncpa [#allocation11], 0 }
   0xa   :  { %21 = vsyncpa [#allocation16], 0 }
   0xb   :  { %22 = vsyncpa [#allocation19], 0 }
   0xc   :  { %23 = vsyncpa [#allocation22], 0 }
   0xd   :  { %24 = vsyncpa [#allocation6], 0  ;;  %s10543_s25 = smov 0   ;;  %s10545_s26 = smov 0  }
   0xe   :  { %s10547_s27 = smov 0   ;;  %s10549_s28 = smov 0  }
   0xf   :  { %s10551_s29 = smov 0   ;;  %s10553_s30 = smov 0  }
  0x10 LB: > { %12198 = sst [smem:[#allocation35_spill]] %s10426_s25  ;;  %s10577_s17 = sadd.s32 4294967295, %s10446_s30   ;;  %s10446_s30 = sphi %s10553_s30, %s30_s30   ;;  %s10442_s29 = sphi %s10551_s29, %s12339_s29   ;;  %s10438_s28 = sphi %s10549_s28, %s12338_s28   ;;  %s10434_s27 = sphi %s10547_s27, %s12337_s27   ;;  %s10430_s26 = sphi %s10545_s26, %s12336_s26   ;;  %s10426_s25 = sphi %s10543_s25, %s12335_s25  }
  0x11   : > { %12199 = sst [smem:[#allocation36_spill]] %s10438_s28  ;;  %p7894_p0 = scmp.ge.s32.totalorder %s10446_s30, 1 }
  0x12   : > { %s12200_s1 = sld [smem:[#allocation40_spill]]  ;;  %p152_p1 = scmp.eq.s32.totalorder %s10577_s17, 0 }
  0x13   : > { %12201 = sst [smem:[#allocation37_spill]] %s10577_s17  ;;  %p356_p2 = scmp.lt.s32.totalorder %s10446_s30, 4 }
  0x14   : > { %s10448_s19 = smov [#allocation7]   ;;  %s12205_s0 = sld [smem:[#allocation39_spill]] }
  0x15   : > { %p10582_p3 = pnand %p7894_p0, %p356_p2  ;;  %s387_s20 = sshll.u32 %s10448_s19, 4  ;;  %s388_s20 = int_to_ptr.vmem [resolvable:$true] %s387_s20 }
  0x16   : > { %s10449_s14 = smov 1536   ;;  %s10450_s15 = smov 96  }
  0x17   : > { %s12202_s18 = scalar_select %p10582_p3, 1, 0 }
  0x18   : > { %s385_s16 = sshll.u32 %s12200_s1, 4  ;;  %p9641_p4 = pneg %p10582_p3  ;;  %s386_s16 = int_to_ptr.hbm [resolvable:$true] %s385_s16 }
  0x19   : > { %12203 = sst [smem:[#allocation38_spill]] %s12202_s18  ;;  %s10451_s19 = smov [#allocation4]  }
  0x1a   : > { %p10590_p5 = pnand %p9641_p4, %p152_p1  ;;  %s371_s24 = sshll.u32 %s12205_s0, 4  ;;  %s372_s24 = int_to_ptr.hbm [resolvable:$true] %s371_s24 }
  0x1b   : > { %s373_s1 = sshll.u32 %s10451_s19, 4  ;;  %s10452_s13 = smov 128   ;;  %s374_s1 = int_to_ptr.vmem [resolvable:$true] %s373_s1 }
  0x1c   : > { %9647 = dma.hbm_to_vmem [thread:$0]  (!%p10590_p5), %s386_s16, 12288, %s388_s20, [#allocation8], %s10449_s14, %s10449_s14, %s10450_s15  }
  0x1d   : > { %s10453_s28 = smov 8   ;;  %s12206_s2 = sld [smem:[#allocation41_spill]] }
  0x1e   : > { %9644 = dma.hbm_to_vmem [thread:$0]  (!%p10590_p5), %s372_s24, 256, %s374_s1, [#allocation5], %s10452_s13, %s10452_s13, %s10453_s28  }
  0x1f   : > { %s10454_s23 = smov [#allocation9]   ;;  %s12207_s3 = sld [smem:[#allocation42_spill]] }
  0x20   : > { %s402_s0 = sshll.u32 %s10454_s23, 4  ;;  %s10455_s20 = smov [#allocation10]   ;;  %s403_s0 = int_to_ptr.vmem [resolvable:$true] %s402_s0 }
  0x21   : > { %s414_s14 = sshll.u32 %s10455_s20, 4  ;;  %s447_s4 = sshll.u32 %s12180_s7, 4  ;;  %s415_s14 = int_to_ptr.vmem [resolvable:$true] %s414_s14  ;;  %s448_s4 = int_to_ptr.hbm [resolvable:$true] %s447_s4 }
  0x22   : > { %s473_s19 = sshll.u32 %s12182_s9, 4  ;;  %s10456_s25 = smov [#allocation15]   ;;  %s474_s19 = int_to_ptr.hbm [resolvable:$true] %s473_s19 }
  0x23   : > { %s400_s22 = sshll.u32 %s12206_s2, 4  ;;  %s449_s17 = sshll.u32 %s10456_s25, 4  ;;  %s401_s22 = int_to_ptr.hbm [resolvable:$true] %s400_s22  ;;  %s450_s17 = int_to_ptr.vmem [resolvable:$true] %s449_s17 }
  0x24   : > { %9650 = dma.hbm_to_vmem [thread:$0]  (!%p10590_p5), %s401_s22, 192, %s403_s0, [#allocation8]  }
  0x25   : > { %s412_s16 = sshll.u32 %s12207_s3, 4  ;;  %s10457_s0 = smov [#allocation18]   ;;  %s413_s16 = int_to_ptr.hbm [resolvable:$true] %s412_s16 }
  0x26   : > { %9653 = dma.hbm_to_vmem [thread:$0]  (!%p10590_p5), %s413_s16, 192, %s415_s14, [#allocation11]  }
  0x27   : > { %9662 = dma.hbm_to_vmem [thread:$0]  (!%p10590_p5), %s448_s4, 16384, %s450_s17, [#allocation16], %s10452_s13, %s10452_s13, %s10453_s28  }
  0x28   : > { %s475_s22 = sshll.u32 %s10457_s0, 4  ;;  %s10458_s23 = smov 512   ;;  %s476_s22 = int_to_ptr.vmem [resolvable:$true] %s475_s22 }
  0x29   : > { %s10459_s20 = smov 32   ;;  %s499_s14 = sshll.u32 %s12184_s11, 4  ;;  %s500_s14 = int_to_ptr.hbm [resolvable:$true] %s499_s14 }
  0x2a   : > { %9668 = dma.hbm_to_vmem [thread:$0]  (!%p10590_p5), %s474_s19, 16384, %s476_s22, [#allocation19], %s10458_s23, %s10458_s23, %s10459_s20  }
  0x2b   : > { %s10460_s1 = smov [#allocation21]   ;;  %s424_s13 = sshll.u32 %s12178_s5, 4  ;;  %s425_s13 = int_to_ptr.hbm [resolvable:$true] %s424_s13 }
  0x2c   : > { %s501_s18 = sshll.u32 %s10460_s1, 4  ;;  %s12191_s28 = smov 64   ;;  %s502_s18 = int_to_ptr.vmem [resolvable:$true] %s501_s18 }
  0x2d   : > { %s10462_s4 = smov 4   ;;  %s10463_s19 = smov [#allocation13]  }
  0x2e   : > { %9674 = dma.hbm_to_vmem [thread:$0]  (!%p10590_p5), %s500_s14, 8192, %s502_s18, [#allocation22], %s12191_s28, %s12191_s28, %s10462_s4  }
  0x2f   : > { %s426_s17 = sshll.u32 %s10463_s19, 4  ;;  %s436_s23 = sshll.u32 %s12179_s6, 4  ;;  %s427_s17 = int_to_ptr.vmem [resolvable:$true] %s426_s17  ;;  %s437_s23 = int_to_ptr.hbm [resolvable:$true] %s436_s23 }
  0x30   : > { %9656 = dma.hbm_to_vmem [thread:$0]  (!%p10590_p5), %s425_s13, 128, %s427_s17, [#allocation8]  }
  0x31   : > { %s462_s16 = sshll.u32 %s12181_s8, 4  ;;  %s10464_s1 = smov [#allocation14]   ;;  %s463_s16 = int_to_ptr.hbm [resolvable:$true] %s462_s16 }
  0x32   : > { %s438_s24 = sshll.u32 %s10464_s1, 4  ;;  %s10465_s14 = smov [#allocation17]   ;;  %s439_s24 = int_to_ptr.vmem [resolvable:$true] %s438_s24 }
  0x33   : > { %9659 = dma.hbm_to_vmem [thread:$0]  (!%p10590_p5), %s437_s23, 128, %s439_s24, [#allocation11]  }
  0x34   : > { %s464_s18 = sshll.u32 %s10465_s14, 4  ;;  %s488_s13 = sshll.u32 %s12183_s10, 4  ;;  %s465_s18 = int_to_ptr.vmem [resolvable:$true] %s464_s18  ;;  %s489_s13 = int_to_ptr.hbm [resolvable:$true] %s488_s13 }
  0x35   : > { %9665 = dma.hbm_to_vmem [thread:$0]  (!%p10590_p5), %s463_s16, 32, %s465_s18, [#allocation16]  }
  0x36   : > { %s12208_s0 = sld [smem:[#allocation35_spill]]  ;;  %s514_s22 = sshll.u32 %s12185_s12, 4  ;;  %s515_s22 = int_to_ptr.hbm [resolvable:$true] %s514_s22 }
  0x37   : > { %s10466_s23 = smov [#allocation20]   ;;  %s10467_s1 = smov [#allocation23]  }
  0x38   : > { %s490_s20 = sshll.u32 %s10466_s23, 4  ;;  %s516_s24 = sshll.u32 %s10467_s1, 4  ;;  %s491_s20 = int_to_ptr.vmem [resolvable:$true] %s490_s20  ;;  %s517_s24 = int_to_ptr.vmem [resolvable:$true] %s516_s24 }
  0x39   : > { %9671 = dma.hbm_to_vmem [thread:$0]  (!%p10590_p5), %s489_s13, 128, %s491_s20, [#allocation19]  }
  0x3a   : > { %9677 = dma.hbm_to_vmem [thread:$0]  (!%p10590_p5), %s515_s22, 64, %s517_s24, [#allocation22]  }
  0x3b   : > { %s39_s16 = sadd.s32 1, %s10442_s29  ;;  %s138_s14 = sadd.s32 1, %s10434_s27 }
  0x3c   : > { %p40_p6 = scmp.ge.s32.totalorder %s39_s16, 3  ;;  %p145_p7 = scmp.ne.s32.totalorder %s10434_s27, %s10430_s26 }
  0x3d   : > { %p146_p8 = scmp.eq.s32.totalorder %s10446_s30, 0  ;;  %p151_p9 = scmp.ne.s32.totalorder %s10430_s26, %s12208_s0 }
  0x3e   : > { %s12341_s16 = smov (%p40_p6, %s39_s16), 0  ;;  %p9694_p12 = scmp.lt.s32.totalorder %s10446_s30, 3 }
  0x3f   : > { %p10662_p10 = por %p146_p8, %p145_p7  ;;  %p10668_p11 = por %p152_p1, %p151_p9 }
  0x40   : > { %s135_s25 = ssub.s32 %s10442_s29, %s12341_s16  ;;  %s527_s4 = sand.u32 1, %s10446_s30  }
  0x41   : > { %p136_p13 = scmp.eq.s32.totalorder %s135_s25, 0  ;;  %s529_s13 = sand.u32 1, %s10434_s27  }
  0x42   : > { %s7908_s17 = sshll.u32 %s529_s13, 10  ;;  %s9263_s0 = sshll.u32 %s10442_s29, 10 }
  0x43   : > { %s10678_s19 = scalar_select %p136_p13, %s10434_s27, %s138_s14  }
  0x44   : > { %s12212_s20 = sld [smem:[#allocation43_spill]]  ;;  %s531_s24 = scalar_lea.vmem [#allocation12], %s7908_s17 }
  0x45   : > { %s540_s28 = sshll.u32 %s531_s24, 4  ;;  %p9679_p0 = pnand %p9694_p12, %p10662_p10  ;;  %s541_s28 = int_to_ptr.vmem [resolvable:$true] %s540_s28 }
  0x46   : > { %s528_s2 = scalar_lea.sflag [#allocation5], %s527_s4  ;;  %s10468_s25 = smov 1024  }
  0x47   : > { %s12213_s3 = smov 64   ;;  %s12215_s13 = sld [smem:[#allocation37_spill]] (!%p10582_p3) }
  0x48   : > { %552 = sbr.rel (%p10582_p3) target bundleno = 1710 (0x6ae), region = 72 }
  0x4a   : > { %s537_s1 = scalar_lea.hbm %s12212_s20, %s9263_s0 }
  0x4b   : > { %s538_s15 = sshll.u32 %s537_s1, 4  ;;  %s539_s15 = int_to_ptr.hbm [resolvable:$true] %s538_s15 }
  0x4c   : > { %9681 = dma.hbm_to_vmem [thread:$0]  (!%p9679_p0), %s539_s15, 16384, %s541_s28, %s528_s2, %s10468_s25, %s10468_s25, %s12213_s3  }
  0x4d   : > { %10385 = dma.done.wait (%p152_p1), [#allocation5], 256  }
  0x4e   : > { %10387 = vsyncadd (%p152_p1), [#allocation5], 4294967040 }
  0x4f   : > { %10389 = dma.done.wait (%p152_p1), [#allocation8], 12480  }
  0x50   : > { %10391 = vsyncadd (%p152_p1), [#allocation8], 4294954816 }
  0x51   : > { %10393 = dma.done.wait (%p152_p1), [#allocation11], 192  }
  0x52   : > { %10395 = vsyncadd (%p152_p1), [#allocation11], 4294967104  ;;  %s574_s2 = sand.u32 1, %s12215_s13   ;;  %s576_s3 = sand.u32 1, %s10430_s26  }
  0x53   : > { %s7917_s28 = sshll.u32 %s576_s3, 10  ;;  %s575_s18 = scalar_lea.sflag [#allocation5], %s574_s2 }
  0x54   : > { %s10705_s4 = scalar_lea.vmem [#allocation12], %s7917_s28 }
  0x55   : > { %10397 = dma.done.wait (%p10668_p11), %s575_s18, 16384  }
  0x56   : > { %10399 = vsyncadd (%p10668_p11), %s575_s18, 4294950912 }
  0x57   : > { %10401 = dma.done.wait (%p152_p1), [#allocation8], 128  }
  0x58   : > { %10403 = vsyncadd (%p152_p1), [#allocation8], 4294967168 }
  0x59   : > { %10405 = dma.done.wait (%p152_p1), [#allocation11], 128  }
  0x5a   : > { %10407 = vsyncadd (%p152_p1), [#allocation11], 4294967168 }
  0x5b   : > { %10409 = dma.done.wait (%p152_p1), [#allocation16], 16416  }
  0x5c   : > { %10411 = vsyncadd (%p152_p1), [#allocation16], 4294950880 }
  0x5d   : > { %10413 = dma.done.wait (%p152_p1), [#allocation19], 16512  }
  0x5e   : > { %10415 = vsyncadd (%p152_p1), [#allocation19], 4294950784 }
  0x5f   : > { %10417 = dma.done.wait (%p152_p1), [#allocation22], 8256  }
  0x60   : > { %10419 = vsyncadd (%p152_p1), [#allocation22], 4294959040  ;;  %s12216_s21 = sld [smem:[#allocation36_spill]] }
  0x66   : > { %p7926_p2 = scmp.ne.s32.totalorder %s12216_s21, 0 }
  0x68   : > { %663 = sbr.rel (%p7926_p2) target bundleno = 549 (0x225), region = 128 }
  0x6d   : > { %v702_v0 = vld [vmem:[#allocation7 + $0x120] sm:$0xff]  ;;  %v703_v2 = vld [vmem:[#allocation7 + $0x128] sm:$0xff] }
  0x6e   : > { %v750_v1 = vld [vmem:[#allocation7 + $0x2a0] sm:$0xff]  ;;  %v930_v3 = vunpack.c.2.s8 %v702_v0  ;;  %v942_v4 = vunpack.c.3.s8 %v702_v0  ;;  %v751_v7 = vld [vmem:[#allocation7 + $0x2a8] sm:$0xff]  ;;  %v931_v8 = vunpack.c.2.s8 %v703_v2  ;;  %v943_v9 = vunpack.c.3.s8 %v703_v2 }
  0x6f   : > { %v1122_v5 = vunpack.c.2.s8 %v750_v1  ;;  %v1134_v6 = vunpack.c.3.s8 %v750_v1  ;;  %v1123_v10 = vunpack.c.2.s8 %v751_v7  ;;  %v1135_v11 = vunpack.c.3.s8 %v751_v7  ;;  %v690_v28 = vld [vmem:[#allocation7 + $0xc0] sm:$0xff]  ;;  %v691_v42 = vld [vmem:[#allocation7 + $0xc8] sm:$0xff] }
  0x70   : > { %v1314_v12 = vcvt.s32.f32 %v930_v3  ;;  %v1326_v13 = vcvt.s32.f32 %v942_v4  ;;  %v1315_v16 = vcvt.s32.f32 %v931_v8  ;;  %v1327_v17 = vcvt.s32.f32 %v943_v9  ;;  %v738_v37 = vld [vmem:[#allocation7 + $0x240] sm:$0xff]  ;;  %v739_v47 = vld [vmem:[#allocation7 + $0x248] sm:$0xff] }
  0x71   : > { %v1506_v14 = vcvt.s32.f32 %v1122_v5  ;;  %v1518_v15 = vcvt.s32.f32 %v1134_v6  ;;  %v1507_v18 = vcvt.s32.f32 %v1123_v10  ;;  %v1519_v19 = vcvt.s32.f32 %v1135_v11  ;;  %v678_v8 = vld [vmem:[#allocation7 + $0x60] sm:$0xff] }
  0x72   : > { %v1614_v20 = vpack.c.bf16 %v1326_v13, %v1314_v12  ;;  %v906_v22 = vunpack.c.0.s8 %v702_v0  ;;  %v918_v23 = vunpack.c.1.s8 %v702_v0  ;;  %v1615_v24 = vpack.c.bf16 %v1327_v17, %v1315_v16  ;;  %v726_v17 = vld [vmem:[#allocation7 + $0x1e0] sm:$0xff] }
  0x73   : > { %v1710_v21 = vpack.c.bf16 %v1518_v15, %v1506_v14  ;;  %v1711_v25 = vpack.c.bf16 %v1519_v19, %v1507_v18  ;;  %v1098_v26 = vunpack.c.0.s8 %v750_v1  ;;  %v1110_v27 = vunpack.c.1.s8 %v750_v1 }
  0x74   : > { %1732 = vmatpush.bf16.msra.mxu0 %v1614_v20  ;;  %v1290_v29 = vcvt.s32.f32 %v906_v22  ;;  %v1302_v30 = vcvt.s32.f32 %v918_v23  ;;  %v907_v31 = vunpack.c.0.s8 %v703_v2  ;;  %v919_v32 = vunpack.c.1.s8 %v703_v2  ;;  %1760 = vmatpush.bf16.msra.mxu2 %v1615_v24  ;;  %v679_v22 = vld [vmem:[#allocation7 + $0x68] sm:$0xff] }
  0x75   : > { %1746 = vmatpush.bf16.msra.mxu1 %v1710_v21  ;;  %1774 = vmatpush.bf16.msra.mxu3 %v1711_v25  ;;  %v1482_v33 = vcvt.s32.f32 %v1098_v26  ;;  %v1494_v34 = vcvt.s32.f32 %v1110_v27  ;;  %v1099_v35 = vunpack.c.0.s8 %v751_v7  ;;  %v1111_v36 = vunpack.c.1.s8 %v751_v7  ;;  %v727_v27 = vld [vmem:[#allocation7 + $0x1e8] sm:$0xff] }
  0x76   : > { %v1602_v38 = vpack.c.bf16 %v1302_v30, %v1290_v29  ;;  %v1291_v39 = vcvt.s32.f32 %v907_v31  ;;  %v1303_v40 = vcvt.s32.f32 %v919_v32  ;;  %v882_v41 = vunpack.c.2.s8 %v690_v28 }
  0x77   : > { %v1698_v43 = vpack.c.bf16 %v1494_v34, %v1482_v33  ;;  %v1483_v44 = vcvt.s32.f32 %v1099_v35  ;;  %v1495_v45 = vcvt.s32.f32 %v1111_v36  ;;  %v894_v46 = vunpack.c.3.s8 %v690_v28 }
  0x78   : > { %1733 = vmatpush.bf16.msra.mxu0 %v1602_v38  ;;  %v1603_v48 = vpack.c.bf16 %v1303_v40, %v1291_v39  ;;  %v1266_v49 = vcvt.s32.f32 %v882_v41  ;;  %v1074_v50 = vunpack.c.2.s8 %v738_v37  ;;  %v1086_v51 = vunpack.c.3.s8 %v738_v37 }
  0x79   : > { %1747 = vmatpush.bf16.msra.mxu1 %v1698_v43  ;;  %v1699_v52 = vpack.c.bf16 %v1495_v45, %v1483_v44  ;;  %v1278_v53 = vcvt.s32.f32 %v894_v46  ;;  %v883_v54 = vunpack.c.2.s8 %v691_v42  ;;  %v895_v55 = vunpack.c.3.s8 %v691_v42 }
  0x7a   : > { %1761 = vmatpush.bf16.msra.mxu2 %v1603_v48  ;;  %v1458_v56 = vcvt.s32.f32 %v1074_v50  ;;  %v1470_v57 = vcvt.s32.f32 %v1086_v51  ;;  %v1075_v58 = vunpack.c.2.s8 %v739_v47  ;;  %v1087_v59 = vunpack.c.3.s8 %v739_v47 }
  0x7b   : > { %1775 = vmatpush.bf16.msra.mxu3 %v1699_v52  ;;  %v1590_v60 = vpack.c.bf16 %v1278_v53, %v1266_v49  ;;  %v1267_v61 = vcvt.s32.f32 %v883_v54  ;;  %v1279_v62 = vcvt.s32.f32 %v895_v55  ;;  %v858_v63 = vunpack.c.0.s8 %v690_v28  ;;  %v666_v52 = vld [vmem:[#allocation7] sm:$0xff] }
  0x7c   : > { %v1686_v0 = vpack.c.bf16 %v1470_v57, %v1458_v56  ;;  %v1459_v1 = vcvt.s32.f32 %v1075_v58  ;;  %v1471_v2 = vcvt.s32.f32 %v1087_v59  ;;  %v870_v3 = vunpack.c.1.s8 %v690_v28 }
  0x7d   : > { %1734 = vmatpush.bf16.msra.mxu0 %v1590_v60  ;;  %v1591_v4 = vpack.c.bf16 %v1279_v62, %v1267_v61  ;;  %v1242_v5 = vcvt.s32.f32 %v858_v63  ;;  %v1050_v6 = vunpack.c.0.s8 %v738_v37  ;;  %v1062_v7 = vunpack.c.1.s8 %v738_v37  ;;  %v714_v61 = vld [vmem:[#allocation7 + $0x180] sm:$0xff] }
  0x7e   : > { %1748 = vmatpush.bf16.msra.mxu1 %v1686_v0  ;;  %v1687_v9 = vpack.c.bf16 %v1471_v2, %v1459_v1  ;;  %v1254_v10 = vcvt.s32.f32 %v870_v3  ;;  %v859_v11 = vunpack.c.0.s8 %v691_v42  ;;  %v871_v12 = vunpack.c.1.s8 %v691_v42  ;;  %v667_v2 = vld [vmem:[#allocation7 + $0x8] sm:$0xff] }
  0x7f   : > { %1762 = vmatpush.bf16.msra.mxu2 %v1591_v4  ;;  %v1434_v13 = vcvt.s32.f32 %v1050_v6  ;;  %v1446_v14 = vcvt.s32.f32 %v1062_v7  ;;  %v1051_v15 = vunpack.c.0.s8 %v739_v47  ;;  %v1063_v16 = vunpack.c.1.s8 %v739_v47  ;;  %v715_v7 = vld [vmem:[#allocation7 + $0x188] sm:$0xff] }
  0x80   : > { %1776 = vmatpush.bf16.msra.mxu3 %v1687_v9  ;;  %v1578_v18 = vpack.c.bf16 %v1254_v10, %v1242_v5  ;;  %v1243_v19 = vcvt.s32.f32 %v859_v11  ;;  %v1255_v20 = vcvt.s32.f32 %v871_v12  ;;  %v834_v21 = vunpack.c.2.s8 %v678_v8 }
  0x81   : > { %v1674_v23 = vpack.c.bf16 %v1446_v14, %v1434_v13  ;;  %v1435_v24 = vcvt.s32.f32 %v1051_v15  ;;  %v1447_v25 = vcvt.s32.f32 %v1063_v16  ;;  %v846_v26 = vunpack.c.3.s8 %v678_v8 }
  0x82   : > { %1735 = vmatpush.bf16.msra.mxu0 %v1578_v18  ;;  %v1579_v28 = vpack.c.bf16 %v1255_v20, %v1243_v19  ;;  %v1218_v29 = vcvt.s32.f32 %v834_v21  ;;  %v1026_v30 = vunpack.c.2.s8 %v726_v17  ;;  %v1038_v31 = vunpack.c.3.s8 %v726_v17 }
  0x83   : > { %1749 = vmatpush.bf16.msra.mxu1 %v1674_v23  ;;  %v1675_v32 = vpack.c.bf16 %v1447_v25, %v1435_v24  ;;  %v1230_v33 = vcvt.s32.f32 %v846_v26  ;;  %v835_v34 = vunpack.c.2.s8 %v679_v22  ;;  %v847_v35 = vunpack.c.3.s8 %v679_v22 }
  0x84   : > { %1763 = vmatpush.bf16.msra.mxu2 %v1579_v28  ;;  %v1410_v36 = vcvt.s32.f32 %v1026_v30  ;;  %v1422_v37 = vcvt.s32.f32 %v1038_v31  ;;  %v1027_v38 = vunpack.c.2.s8 %v727_v27  ;;  %v1039_v39 = vunpack.c.3.s8 %v727_v27 }
  0x85   : > { %1777 = vmatpush.bf16.msra.mxu3 %v1675_v32  ;;  %v1566_v40 = vpack.c.bf16 %v1230_v33, %v1218_v29  ;;  %v1219_v41 = vcvt.s32.f32 %v835_v34  ;;  %v1231_v42 = vcvt.s32.f32 %v847_v35  ;;  %v810_v43 = vunpack.c.0.s8 %v678_v8  ;;  %v10732_v32 = vld [vmem:[#allocation7 + $0x130] sm:$0xff] }
  0x86   : > { %v1662_v44 = vpack.c.bf16 %v1422_v37, %v1410_v36  ;;  %v1411_v45 = vcvt.s32.f32 %v1027_v38  ;;  %v1423_v46 = vcvt.s32.f32 %v1039_v39  ;;  %v822_v47 = vunpack.c.1.s8 %v678_v8 }
  0x87   : > { %1736 = vmatpush.bf16.msra.mxu0 %v1566_v40  ;;  %v1567_v48 = vpack.c.bf16 %v1231_v42, %v1219_v41  ;;  %v1194_v49 = vcvt.s32.f32 %v810_v43  ;;  %v1002_v50 = vunpack.c.0.s8 %v726_v17  ;;  %v1014_v51 = vunpack.c.1.s8 %v726_v17  ;;  %v752_v41 = vld [vmem:[#allocation7 + $0x2b0] sm:$0xff] }
  0x88   : > { %1750 = vmatpush.bf16.msra.mxu1 %v1662_v44  ;;  %v1663_v53 = vpack.c.bf16 %v1423_v46, %v1411_v45  ;;  %v1206_v54 = vcvt.s32.f32 %v822_v47  ;;  %v811_v55 = vunpack.c.0.s8 %v679_v22  ;;  %v823_v56 = vunpack.c.1.s8 %v679_v22  ;;  %v705_v46 = vld [vmem:[#allocation7 + $0x138] sm:$0xff] }
  0x89   : > { %1764 = vmatpush.bf16.msra.mxu2 %v1567_v48  ;;  %v1386_v57 = vcvt.s32.f32 %v1002_v50  ;;  %v1398_v58 = vcvt.s32.f32 %v1014_v51  ;;  %v1003_v59 = vunpack.c.0.s8 %v727_v27  ;;  %v1015_v60 = vunpack.c.1.s8 %v727_v27  ;;  %v10736_v51 = vld [vmem:[#allocation7 + $0x2b8] sm:$0xff] }
  0x8a   : > { %1778 = vmatpush.bf16.msra.mxu3 %v1663_v53  ;;  %v1554_v62 = vpack.c.bf16 %v1206_v54, %v1194_v49  ;;  %v1195_v63 = vcvt.s32.f32 %v811_v55  ;;  %v1207_v0 = vcvt.s32.f32 %v823_v56  ;;  %v786_v1 = vunpack.c.2.s8 %v666_v52  ;;  %v7929_v56 = vld [vmem:[#allocation4] sm:$0xf] }
  0x8b   : > { %v1650_v3 = vpack.c.bf16 %v1398_v58, %v1386_v57  ;;  %v1387_v4 = vcvt.s32.f32 %v1003_v59  ;;  %v1399_v5 = vcvt.s32.f32 %v1015_v60  ;;  %v798_v6 = vunpack.c.3.s8 %v666_v52  ;;  %v9265_v57 = vld [vmem:[#allocation4 + $0x4] sm:$0xf0] }
  0x8c   : > { %1737 = vmatpush.bf16.msra.mxu0 %v1554_v62  ;;  %v1555_v8 = vpack.c.bf16 %v1207_v0, %v1195_v63  ;;  %v1170_v9 = vcvt.s32.f32 %v786_v1  ;;  %v978_v10 = vunpack.c.2.s8 %v714_v61  ;;  %v990_v11 = vunpack.c.3.s8 %v714_v61  ;;  %v9264_v62 = vld [vmem:[#allocation4 + $0x4] sm:$0xf]  ;;  %v7931_v63 = vld [vmem:[#allocation4 + $0x8] sm:$0xf0] }
  0x8d   : > { %1751 = vmatpush.bf16.msra.mxu1 %v1650_v3  ;;  %v1651_v12 = vpack.c.bf16 %v1399_v5, %v1387_v4  ;;  %v1182_v13 = vcvt.s32.f32 %v798_v6  ;;  %v787_v14 = vunpack.c.2.s8 %v667_v2  ;;  %v799_v15 = vunpack.c.3.s8 %v667_v2 }
  0x8e   : > { %1765 = vmatpush.bf16.msra.mxu2 %v1555_v8  ;;  %v1362_v16 = vcvt.s32.f32 %v978_v10  ;;  %v1374_v17 = vcvt.s32.f32 %v990_v11  ;;  %v979_v18 = vunpack.c.2.s8 %v715_v7  ;;  %v991_v19 = vunpack.c.3.s8 %v715_v7 }
  0x8f   : > { %1779 = vmatpush.bf16.msra.mxu3 %v1651_v12  ;;  %v1542_v20 = vpack.c.bf16 %v1182_v13, %v1170_v9  ;;  %v1171_v21 = vcvt.s32.f32 %v787_v14  ;;  %v1183_v22 = vcvt.s32.f32 %v799_v15  ;;  %v762_v23 = vunpack.c.0.s8 %v666_v52 }
  0x90   : > { %v1638_v24 = vpack.c.bf16 %v1374_v17, %v1362_v16  ;;  %v1363_v25 = vcvt.s32.f32 %v979_v18  ;;  %v1375_v26 = vcvt.s32.f32 %v991_v19  ;;  %v774_v27 = vunpack.c.1.s8 %v666_v52 }
  0x91   : > { %1738 = vmatpush.bf16.msra.mxu0 %v1542_v20  ;;  %v1543_v28 = vpack.c.bf16 %v1183_v22, %v1171_v21  ;;  %v1146_v29 = vcvt.s32.f32 %v762_v23  ;;  %v954_v30 = vunpack.c.0.s8 %v714_v61  ;;  %v966_v31 = vunpack.c.1.s8 %v714_v61  ;;  %v692_v20 = vld [vmem:[#allocation7 + $0xd0] sm:$0xff] }
  0x92   : > { %1752 = vmatpush.bf16.msra.mxu1 %v1638_v24  ;;  %v1639_v33 = vpack.c.bf16 %v1375_v26, %v1363_v25  ;;  %v1158_v34 = vcvt.s32.f32 %v774_v27  ;;  %v763_v35 = vunpack.c.0.s8 %v667_v2  ;;  %v775_v36 = vunpack.c.1.s8 %v667_v2  ;;  %v740_v25 = vld [vmem:[#allocation7 + $0x250] sm:$0xff] }
  0x93   : > { %1766 = vmatpush.bf16.msra.mxu2 %v1543_v28  ;;  %v1338_v37 = vcvt.s32.f32 %v954_v30  ;;  %v1350_v38 = vcvt.s32.f32 %v966_v31  ;;  %v955_v39 = vunpack.c.0.s8 %v715_v7  ;;  %v967_v40 = vunpack.c.1.s8 %v715_v7  ;;  %v693_v30 = vld [vmem:[#allocation7 + $0xd8] sm:$0xff] }
  0x94   : > { %1780 = vmatpush.bf16.msra.mxu3 %v1639_v33  ;;  %v1530_v42 = vpack.c.bf16 %v1158_v34, %v1146_v29  ;;  %v1147_v43 = vcvt.s32.f32 %v763_v35  ;;  %v1159_v44 = vcvt.s32.f32 %v775_v36  ;;  %v932_v45 = vunpack.c.2.s8 %v10732_v32  ;;  %v741_v35 = vld [vmem:[#allocation7 + $0x258] sm:$0xff] }
  0x95   : > { %v1626_v47 = vpack.c.bf16 %v1350_v38, %v1338_v37  ;;  %v1339_v48 = vcvt.s32.f32 %v955_v39  ;;  %v1351_v49 = vcvt.s32.f32 %v967_v40  ;;  %v944_v50 = vunpack.c.3.s8 %v10732_v32 }
  0x96   : > { %1739 = vmatpush.bf16.msra.mxu0 %v1530_v42  ;;  %v1531_v52 = vpack.c.bf16 %v1159_v44, %v1147_v43  ;;  %v1316_v53 = vcvt.s32.f32 %v932_v45  ;;  %v1124_v54 = vunpack.c.2.s8 %v752_v41  ;;  %v1136_v55 = vunpack.c.3.s8 %v752_v41 }
  0x97   : > { %1753 = vmatpush.bf16.msra.mxu1 %v1626_v47  ;;  %v1627_v58 = vpack.c.bf16 %v1351_v49, %v1339_v48  ;;  %v1328_v59 = vcvt.s32.f32 %v944_v50  ;;  %v933_v60 = vunpack.c.2.s8 %v705_v46  ;;  %v945_v61 = vunpack.c.3.s8 %v705_v46 }
  0x98   : > { %1767 = vmatpush.bf16.msra.mxu2 %v1531_v52  ;;  %v1508_v0 = vcvt.s32.f32 %v1124_v54  ;;  %v1520_v1 = vcvt.s32.f32 %v1136_v55  ;;  %v1125_v2 = vunpack.c.2.s8 %v10736_v51  ;;  %v1137_v3 = vunpack.c.3.s8 %v10736_v51 }
  0x99   : > { %1781 = vmatpush.bf16.msra.mxu3 %v1627_v58  ;;  %v1616_v4 = vpack.c.bf16 %v1328_v59, %v1316_v53  ;;  %v1317_v5 = vcvt.s32.f32 %v933_v60  ;;  %v1329_v6 = vcvt.s32.f32 %v945_v61  ;;  %v10740_v7 = vor.u32 %v9265_v57, %v7929_v56 }
  0x9a   : > { %v1712_v8 = vpack.c.bf16 %v1520_v1, %v1508_v0  ;;  %v1509_v9 = vcvt.s32.f32 %v1125_v2  ;;  %v1521_v10 = vcvt.s32.f32 %v1137_v3  ;;  %v10742_v11 = vor.u32 %v9264_v62, %v7931_v63  ;;  %v680_v0 = vld [vmem:[#allocation7 + $0x70] sm:$0xff] }
  0x9b   : > { %1788 = vmatpush.bf16.msrb.mxu0 %v1616_v4  ;;  %v1617_v12 = vpack.c.bf16 %v1329_v6, %v1317_v5  ;;  %1768 = vmatmul.bf16.vlgmr.msra.gmra.mxu2 %v10740_v7  ;;  %v908_v13 = vunpack.c.0.s8 %v10732_v32  ;;  %v920_v14 = vunpack.c.1.s8 %v10732_v32  ;;  %v1100_v15 = vunpack.c.0.s8 %v752_v41  ;;  %v728_v5 = vld [vmem:[#allocation7 + $0x1f0] sm:$0xff] }
  0x9c   : > { %1802 = vmatpush.bf16.msrb.mxu1 %v1712_v8  ;;  %v1713_v16 = vpack.c.bf16 %v1521_v10, %v1509_v9  ;;  %1740 = vmatmul.bf16.vlgmr.msra.gmra.mxu0 %v10740_v7  ;;  %v1112_v17 = vunpack.c.1.s8 %v752_v41  ;;  %v909_v18 = vunpack.c.0.s8 %v705_v46  ;;  %v921_v19 = vunpack.c.1.s8 %v705_v46 }
  0x9d   : > { %1816 = vmatpush.bf16.msrb.mxu2 %v1617_v12  ;;  %1754 = vmatmul.bf16.vlgmr.msra.gmra.mxu1 %v10742_v11  ;;  %v1292_v21 = vcvt.s32.f32 %v908_v13  ;;  %v1304_v22 = vcvt.s32.f32 %v920_v14  ;;  %v1484_v23 = vcvt.s32.f32 %v1100_v15  ;;  %v1101_v24 = vunpack.c.0.s8 %v10736_v51  ;;  %v681_v12 = vld [vmem:[#allocation7 + $0x78] sm:$0xff] }
  0x9e   : > { %1830 = vmatpush.bf16.msrb.mxu3 %v1713_v16  ;;  %v1496_v26 = vcvt.s32.f32 %v1112_v17  ;;  %v1293_v27 = vcvt.s32.f32 %v909_v18  ;;  %v1305_v28 = vcvt.s32.f32 %v921_v19  ;;  %v1113_v29 = vunpack.c.1.s8 %v10736_v51 }
  0x9f   : > { %1782 = vmatmul.bf16.vlgmr.msra.gmra.mxu3 %v10742_v11  ;;  %v1604_v31 = vpack.c.bf16 %v1304_v22, %v1292_v21  ;;  %v1485_v32 = vcvt.s32.f32 %v1101_v24  ;;  %v884_v33 = vunpack.c.2.s8 %v692_v20  ;;  %v896_v34 = vunpack.c.3.s8 %v692_v20  ;;  %v729_v21 = vld [vmem:[#allocation7 + $0x1f8] sm:$0xff] }
  0xa0   : > { %v1700_v36 = vpack.c.bf16 %v1496_v26, %v1484_v23  ;;  %v1605_v37 = vpack.c.bf16 %v1305_v28, %v1293_v27  ;;  %v1497_v38 = vcvt.s32.f32 %v1113_v29  ;;  %v1076_v39 = vunpack.c.2.s8 %v740_v25 }
  0xa1   : > { %1789 = vmatpush.bf16.msrb.mxu0 %v1604_v31  ;;  %v1268_v40 = vcvt.s32.f32 %v884_v33  ;;  %v1280_v41 = vcvt.s32.f32 %v896_v34  ;;  %v1088_v42 = vunpack.c.3.s8 %v740_v25  ;;  %v885_v43 = vunpack.c.2.s8 %v693_v30 }
  0xa2   : > { %1803 = vmatpush.bf16.msrb.mxu1 %v1700_v36  ;;  %1817 = vmatpush.bf16.msrb.mxu2 %v1605_v37  ;;  %v1701_v44 = vpack.c.bf16 %v1497_v38, %v1485_v32  ;;  %v1460_v45 = vcvt.s32.f32 %v1076_v39  ;;  %v897_v46 = vunpack.c.3.s8 %v693_v30  ;;  %v1077_v47 = vunpack.c.2.s8 %v741_v35 }
  0xa3   : > { %v1592_v48 = vpack.c.bf16 %v1280_v41, %v1268_v40  ;;  %v1472_v49 = vcvt.s32.f32 %v1088_v42  ;;  %v1269_v50 = vcvt.s32.f32 %v885_v43  ;;  %v1089_v51 = vunpack.c.3.s8 %v741_v35 }
  0xa4   : > { %1831 = vmatpush.bf16.msrb.mxu3 %v1701_v44  ;;  %v1281_v52 = vcvt.s32.f32 %v897_v46  ;;  %v1461_v53 = vcvt.s32.f32 %v1077_v47  ;;  %v860_v54 = vunpack.c.0.s8 %v692_v20  ;;  %v872_v55 = vunpack.c.1.s8 %v692_v20  ;;  %v668_v46 = vld [vmem:[#allocation7 + $0x10] sm:$0xff] }
  0xa5   : > { %1790 = vmatpush.bf16.msrb.mxu0 %v1592_v48  ;;  %v1688_v56 = vpack.c.bf16 %v1472_v49, %v1460_v45  ;;  %v1473_v57 = vcvt.s32.f32 %v1089_v51  ;;  %v1052_v58 = vunpack.c.0.s8 %v740_v25  ;;  %v1064_v59 = vunpack.c.1.s8 %v740_v25  ;;  %v716_v51 = vld [vmem:[#allocation7 + $0x190] sm:$0xff] }
  0xa6   : > { %v1593_v60 = vpack.c.bf16 %v1281_v52, %v1269_v50  ;;  %v1244_v61 = vcvt.s32.f32 %v860_v54  ;;  %v1256_v62 = vcvt.s32.f32 %v872_v55  ;;  %v861_v63 = vunpack.c.0.s8 %v693_v30 }
  0xa7   : > { %1804 = vmatpush.bf16.msrb.mxu1 %v1688_v56  ;;  %v1689_v1 = vpack.c.bf16 %v1473_v57, %v1461_v53  ;;  %v1436_v2 = vcvt.s32.f32 %v1052_v58  ;;  %v1448_v3 = vcvt.s32.f32 %v1064_v59  ;;  %v873_v4 = vunpack.c.1.s8 %v693_v30  ;;  %v669_v56 = vld [vmem:[#allocation7 + $0x18] sm:$0xff] }
  0xa8   : > { %1818 = vmatpush.bf16.msrb.mxu2 %v1593_v60  ;;  %v1580_v6 = vpack.c.bf16 %v1256_v62, %v1244_v61  ;;  %v1245_v8 = vcvt.s32.f32 %v861_v63  ;;  %v1053_v9 = vunpack.c.0.s8 %v741_v35  ;;  %v1065_v10 = vunpack.c.1.s8 %v741_v35 }
  0xa9   : > { %1832 = vmatpush.bf16.msrb.mxu3 %v1689_v1  ;;  %v1676_v13 = vpack.c.bf16 %v1448_v3, %v1436_v2  ;;  %v1257_v14 = vcvt.s32.f32 %v873_v4  ;;  %v836_v15 = vunpack.c.2.s8 %v680_v0  ;;  %v848_v16 = vunpack.c.3.s8 %v680_v0  ;;  %v717_v1 = vld [vmem:[#allocation7 + $0x198] sm:$0xff] }
  0xaa   : > { %1791 = vmatpush.bf16.msrb.mxu0 %v1580_v6  ;;  %v1437_v17 = vcvt.s32.f32 %v1053_v9  ;;  %v1449_v18 = vcvt.s32.f32 %v1065_v10  ;;  %v1028_v19 = vunpack.c.2.s8 %v728_v5  ;;  %v1040_v20 = vunpack.c.3.s8 %v728_v5 }
  0xab   : > { %1805 = vmatpush.bf16.msrb.mxu1 %v1676_v13  ;;  %v1581_v22 = vpack.c.bf16 %v1257_v14, %v1245_v8  ;;  %v1220_v23 = vcvt.s32.f32 %v836_v15  ;;  %v1232_v24 = vcvt.s32.f32 %v848_v16  ;;  %v837_v25 = vunpack.c.2.s8 %v681_v12 }
  0xac   : > { %v1677_v26 = vpack.c.bf16 %v1449_v18, %v1437_v17  ;;  %v1412_v27 = vcvt.s32.f32 %v1028_v19  ;;  %v1424_v28 = vcvt.s32.f32 %v1040_v20  ;;  %v849_v29 = vunpack.c.3.s8 %v681_v12 }
  0xad   : > { %1819 = vmatpush.bf16.msrb.mxu2 %v1581_v22  ;;  %v1568_v30 = vpack.c.bf16 %v1232_v24, %v1220_v23  ;;  %v1221_v31 = vcvt.s32.f32 %v837_v25  ;;  %v1029_v32 = vunpack.c.2.s8 %v729_v21  ;;  %v1041_v33 = vunpack.c.3.s8 %v729_v21 }
  0xae   : > { %1833 = vmatpush.bf16.msrb.mxu3 %v1677_v26  ;;  %v1664_v34 = vpack.c.bf16 %v1424_v28, %v1412_v27  ;;  %v1233_v35 = vcvt.s32.f32 %v849_v29  ;;  %v812_v36 = vunpack.c.0.s8 %v680_v0  ;;  %v824_v37 = vunpack.c.1.s8 %v680_v0  ;;  %v706_v28 = vld [vmem:[#allocation7 + $0x140] sm:$0xff] }
  0xaf   : > { %1792 = vmatpush.bf16.msrb.mxu0 %v1568_v30  ;;  %v1413_v38 = vcvt.s32.f32 %v1029_v32  ;;  %v1425_v39 = vcvt.s32.f32 %v1041_v33  ;;  %v1004_v40 = vunpack.c.0.s8 %v728_v5  ;;  %v1016_v41 = vunpack.c.1.s8 %v728_v5  ;;  %v754_v33 = vld [vmem:[#allocation7 + $0x2c0] sm:$0xff] }
  0xb0   : > { %1806 = vmatpush.bf16.msrb.mxu1 %v1664_v34  ;;  %v1569_v42 = vpack.c.bf16 %v1233_v35, %v1221_v31  ;;  %v1196_v43 = vcvt.s32.f32 %v812_v36  ;;  %v1208_v44 = vcvt.s32.f32 %v824_v37  ;;  %v813_v45 = vunpack.c.0.s8 %v681_v12 }
  0xb1   : > { %v1665_v47 = vpack.c.bf16 %v1425_v39, %v1413_v38  ;;  %v1388_v48 = vcvt.s32.f32 %v1004_v40  ;;  %v1400_v49 = vcvt.s32.f32 %v1016_v41  ;;  %v825_v50 = vunpack.c.1.s8 %v681_v12  ;;  %v707_v38 = vld [vmem:[#allocation7 + $0x148] sm:$0xff] }
  0xb2   : > { %1820 = vmatpush.bf16.msrb.mxu2 %v1569_v42  ;;  %v1556_v52 = vpack.c.bf16 %v1208_v44, %v1196_v43  ;;  %v1197_v53 = vcvt.s32.f32 %v813_v45  ;;  %v1005_v54 = vunpack.c.0.s8 %v729_v21  ;;  %v1017_v55 = vunpack.c.1.s8 %v729_v21 }
  0xb3   : > { %1834 = vmatpush.bf16.msrb.mxu3 %v1665_v47  ;;  %v1652_v57 = vpack.c.bf16 %v1400_v49, %v1388_v48  ;;  %v1209_v58 = vcvt.s32.f32 %v825_v50  ;;  %v788_v59 = vunpack.c.2.s8 %v668_v46  ;;  %v800_v60 = vunpack.c.3.s8 %v668_v46  ;;  %v755_v47 = vld [vmem:[#allocation7 + $0x2c8] sm:$0xff] }
  0xb4   : > { %1793 = vmatpush.bf16.msrb.mxu0 %v1556_v52  ;;  %v1389_v61 = vcvt.s32.f32 %v1005_v54  ;;  %v1401_v62 = vcvt.s32.f32 %v1017_v55  ;;  %v980_v63 = vunpack.c.2.s8 %v716_v51  ;;  %v992_v0 = vunpack.c.3.s8 %v716_v51 }
  0xb5   : > { %1807 = vmatpush.bf16.msrb.mxu1 %v1652_v57  ;;  %v1557_v2 = vpack.c.bf16 %v1209_v58, %v1197_v53  ;;  %v1172_v3 = vcvt.s32.f32 %v788_v59  ;;  %v1184_v4 = vcvt.s32.f32 %v800_v60  ;;  %v789_v5 = vunpack.c.2.s8 %v669_v56 }
  0xb6   : > { %v1653_v6 = vpack.c.bf16 %v1401_v62, %v1389_v61  ;;  %v1364_v8 = vcvt.s32.f32 %v980_v63  ;;  %v1376_v9 = vcvt.s32.f32 %v992_v0  ;;  %v801_v10 = vunpack.c.3.s8 %v669_v56 }
  0xb7   : > { %1821 = vmatpush.bf16.msrb.mxu2 %v1557_v2  ;;  %v1544_v12 = vpack.c.bf16 %v1184_v4, %v1172_v3  ;;  %v1173_v13 = vcvt.s32.f32 %v789_v5  ;;  %v981_v14 = vunpack.c.2.s8 %v717_v1  ;;  %v993_v15 = vunpack.c.3.s8 %v717_v1 }
  0xb8   : > { %1835 = vmatpush.bf16.msrb.mxu3 %v1653_v6  ;;  %v1640_v16 = vpack.c.bf16 %v1376_v9, %v1364_v8  ;;  %v1185_v17 = vcvt.s32.f32 %v801_v10  ;;  %v764_v18 = vunpack.c.0.s8 %v668_v46  ;;  %v776_v19 = vunpack.c.1.s8 %v668_v46  ;;  %v694_v9 = vld [vmem:[#allocation7 + $0xe0] sm:$0xff] }
  0xb9   : > { %1794 = vmatpush.bf16.msrb.mxu0 %v1544_v12  ;;  %v1365_v20 = vcvt.s32.f32 %v981_v14  ;;  %v1377_v21 = vcvt.s32.f32 %v993_v15  ;;  %v956_v22 = vunpack.c.0.s8 %v716_v51  ;;  %v968_v23 = vunpack.c.1.s8 %v716_v51  ;;  %v742_v15 = vld [vmem:[#allocation7 + $0x260] sm:$0xff] }
  0xba   : > { %1808 = vmatpush.bf16.msrb.mxu1 %v1640_v16  ;;  %v1545_v24 = vpack.c.bf16 %v1185_v17, %v1173_v13  ;;  %v1148_v25 = vcvt.s32.f32 %v764_v18  ;;  %v1160_v26 = vcvt.s32.f32 %v776_v19  ;;  %v765_v27 = vunpack.c.0.s8 %v669_v56 }
  0xbb   : > { %v1641_v29 = vpack.c.bf16 %v1377_v21, %v1365_v20  ;;  %v1340_v30 = vcvt.s32.f32 %v956_v22  ;;  %v1352_v31 = vcvt.s32.f32 %v968_v23  ;;  %v777_v32 = vunpack.c.1.s8 %v669_v56  ;;  %v695_v20 = vld [vmem:[#allocation7 + $0xe8] sm:$0xff] }
  0xbc   : > { %1822 = vmatpush.bf16.msrb.mxu2 %v1545_v24  ;;  %v1532_v34 = vpack.c.bf16 %v1160_v26, %v1148_v25  ;;  %v1149_v35 = vcvt.s32.f32 %v765_v27  ;;  %v957_v36 = vunpack.c.0.s8 %v717_v1  ;;  %v969_v37 = vunpack.c.1.s8 %v717_v1 }
  0xbd   : > { %1836 = vmatpush.bf16.msrb.mxu3 %v1641_v29  ;;  %v1628_v39 = vpack.c.bf16 %v1352_v31, %v1340_v30  ;;  %v1161_v40 = vcvt.s32.f32 %v777_v32  ;;  %v934_v41 = vunpack.c.2.s8 %v706_v28  ;;  %v946_v42 = vunpack.c.3.s8 %v706_v28  ;;  %v743_v29 = vld [vmem:[#allocation7 + $0x268] sm:$0xff] }
  0xbe   : > { %1795 = vmatpush.bf16.msrb.mxu0 %v1532_v34  ;;  %v1341_v43 = vcvt.s32.f32 %v957_v36  ;;  %v1353_v44 = vcvt.s32.f32 %v969_v37  ;;  %v1126_v45 = vunpack.c.2.s8 %v754_v33  ;;  %v1138_v46 = vunpack.c.3.s8 %v754_v33 }
  0xbf   : > { %1809 = vmatpush.bf16.msrb.mxu1 %v1628_v39  ;;  %v1533_v48 = vpack.c.bf16 %v1161_v40, %v1149_v35  ;;  %v1318_v49 = vcvt.s32.f32 %v934_v41  ;;  %v1330_v50 = vcvt.s32.f32 %v946_v42  ;;  %v935_v51 = vunpack.c.2.s8 %v707_v38 }
  0xc0   : > { %v1629_v52 = vpack.c.bf16 %v1353_v44, %v1341_v43  ;;  %v1510_v53 = vcvt.s32.f32 %v1126_v45  ;;  %v1522_v54 = vcvt.s32.f32 %v1138_v46  ;;  %v947_v55 = vunpack.c.3.s8 %v707_v38 }
  0xc1   : > { %1823 = vmatpush.bf16.msrb.mxu2 %v1533_v48  ;;  %v1618_v56 = vpack.c.bf16 %v1330_v50, %v1318_v49  ;;  %v1319_v57 = vcvt.s32.f32 %v935_v51  ;;  %v1127_v58 = vunpack.c.2.s8 %v755_v47  ;;  %v1139_v59 = vunpack.c.3.s8 %v755_v47  ;;  %1796 = vmatmul.bf16.vlgmr.msrb.gmra.mxu0 %v10740_v7 }
  0xc2   : > { %1837 = vmatpush.bf16.msrb.mxu3 %v1629_v52  ;;  %v1714_v60 = vpack.c.bf16 %v1522_v54, %v1510_v53  ;;  %v1331_v61 = vcvt.s32.f32 %v947_v55  ;;  %1810 = vmatmul.bf16.vlgmr.msrb.gmra.mxu1 %v10742_v11  ;;  %v910_v62 = vunpack.c.0.s8 %v706_v28  ;;  %v922_v63 = vunpack.c.1.s8 %v706_v28  ;;  %v682_v54 = vld [vmem:[#allocation7 + $0x80] sm:$0xff] }
  0xc3   : > { %1844 = vmatpush.bf16.msra.mxu0 %v1618_v56  ;;  %v1511_v0 = vcvt.s32.f32 %v1127_v58  ;;  %v1523_v1 = vcvt.s32.f32 %v1139_v59  ;;  %v1102_v2 = vunpack.c.0.s8 %v754_v33  ;;  %v1114_v3 = vunpack.c.1.s8 %v754_v33  ;;  %v730_v59 = vld [vmem:[#allocation7 + $0x200] sm:$0xff] }
  0xc4   : > { %1858 = vmatpush.bf16.msra.mxu1 %v1714_v60  ;;  %v1619_v4 = vpack.c.bf16 %v1331_v61, %v1319_v57  ;;  %1824 = vmatmul.bf16.vlgmr.msrb.gmra.mxu2 %v10740_v7  ;;  %v1294_v5 = vcvt.s32.f32 %v910_v62  ;;  %v1306_v6 = vcvt.s32.f32 %v922_v63  ;;  %v911_v8 = vunpack.c.0.s8 %v707_v38 }
  0xc5   : > { %v1715_v10 = vpack.c.bf16 %v1523_v1, %v1511_v0  ;;  %1838 = vmatmul.bf16.vlgmr.msrb.gmra.mxu3 %v10742_v11  ;;  %v1486_v12 = vcvt.s32.f32 %v1102_v2  ;;  %v1498_v13 = vcvt.s32.f32 %v1114_v3  ;;  %v923_v14 = vunpack.c.1.s8 %v707_v38  ;;  %v683_v0 = vld [vmem:[#allocation7 + $0x88] sm:$0xff] }
  0xc6   : > { %1872 = vmatpush.bf16.msra.mxu2 %v1619_v4  ;;  %v1606_v16 = vpack.c.bf16 %v1306_v6, %v1294_v5  ;;  %v1295_v17 = vcvt.s32.f32 %v911_v8  ;;  %v1103_v18 = vunpack.c.0.s8 %v755_v47  ;;  %v1115_v19 = vunpack.c.1.s8 %v755_v47 }
  0xc7   : > { %1886 = vmatpush.bf16.msra.mxu3 %v1715_v10  ;;  %v1702_v21 = vpack.c.bf16 %v1498_v13, %v1486_v12  ;;  %v1307_v22 = vcvt.s32.f32 %v923_v14  ;;  %v886_v23 = vunpack.c.2.s8 %v694_v9  ;;  %v898_v24 = vunpack.c.3.s8 %v694_v9  ;;  %v731_v10 = vld [vmem:[#allocation7 + $0x208] sm:$0xff] }
  0xc8   : > { %1845 = vmatpush.bf16.msra.mxu0 %v1606_v16  ;;  %v1487_v25 = vcvt.s32.f32 %v1103_v18  ;;  %v1499_v26 = vcvt.s32.f32 %v1115_v19  ;;  %v1078_v27 = vunpack.c.2.s8 %v742_v15  ;;  %v1090_v28 = vunpack.c.3.s8 %v742_v15 }
  0xc9   : > { %1859 = vmatpush.bf16.msra.mxu1 %v1702_v21  ;;  %v1607_v30 = vpack.c.bf16 %v1307_v22, %v1295_v17  ;;  %v1270_v31 = vcvt.s32.f32 %v886_v23  ;;  %v1282_v32 = vcvt.s32.f32 %v898_v24  ;;  %v887_v33 = vunpack.c.2.s8 %v695_v20 }
  0xca   : > { %v1703_v34 = vpack.c.bf16 %v1499_v26, %v1487_v25  ;;  %v1462_v35 = vcvt.s32.f32 %v1078_v27  ;;  %v1474_v36 = vcvt.s32.f32 %v1090_v28  ;;  %v899_v37 = vunpack.c.3.s8 %v695_v20 }
  0xcb   : > { %1873 = vmatpush.bf16.msra.mxu2 %v1607_v30  ;;  %v1594_v38 = vpack.c.bf16 %v1282_v32, %v1270_v31  ;;  %v1271_v39 = vcvt.s32.f32 %v887_v33  ;;  %v1079_v40 = vunpack.c.2.s8 %v743_v29  ;;  %v1091_v41 = vunpack.c.3.s8 %v743_v29 }
  0xcc   : > { %1887 = vmatpush.bf16.msra.mxu3 %v1703_v34  ;;  %v1690_v42 = vpack.c.bf16 %v1474_v36, %v1462_v35  ;;  %v1283_v43 = vcvt.s32.f32 %v899_v37  ;;  %v862_v44 = vunpack.c.0.s8 %v694_v9  ;;  %v874_v45 = vunpack.c.1.s8 %v694_v9  ;;  %v670_v36 = vld [vmem:[#allocation7 + $0x20] sm:$0xff] }
  0xcd   : > { %1846 = vmatpush.bf16.msra.mxu0 %v1594_v38  ;;  %v1463_v46 = vcvt.s32.f32 %v1079_v40  ;;  %v1475_v47 = vcvt.s32.f32 %v1091_v41  ;;  %v1054_v48 = vunpack.c.0.s8 %v742_v15  ;;  %v1066_v49 = vunpack.c.1.s8 %v742_v15  ;;  %v718_v41 = vld [vmem:[#allocation7 + $0x1a0] sm:$0xff] }
  0xce   : > { %1860 = vmatpush.bf16.msra.mxu1 %v1690_v42  ;;  %v1595_v50 = vpack.c.bf16 %v1283_v43, %v1271_v39  ;;  %v1246_v51 = vcvt.s32.f32 %v862_v44  ;;  %v1258_v52 = vcvt.s32.f32 %v874_v45  ;;  %v863_v53 = vunpack.c.0.s8 %v695_v20 }
  0xcf   : > { %v1691_v55 = vpack.c.bf16 %v1475_v47, %v1463_v46  ;;  %v1438_v56 = vcvt.s32.f32 %v1054_v48  ;;  %v1450_v57 = vcvt.s32.f32 %v1066_v49  ;;  %v875_v58 = vunpack.c.1.s8 %v695_v20  ;;  %v671_v46 = vld [vmem:[#allocation7 + $0x28] sm:$0xff] }
  0xd0   : > { %1874 = vmatpush.bf16.msra.mxu2 %v1595_v50  ;;  %v1582_v60 = vpack.c.bf16 %v1258_v52, %v1246_v51  ;;  %v1247_v61 = vcvt.s32.f32 %v863_v53  ;;  %v1055_v62 = vunpack.c.0.s8 %v743_v29  ;;  %v1067_v63 = vunpack.c.1.s8 %v743_v29 }
  0xd1   : > { %1888 = vmatpush.bf16.msra.mxu3 %v1691_v55  ;;  %v1678_v1 = vpack.c.bf16 %v1450_v57, %v1438_v56  ;;  %v1259_v2 = vcvt.s32.f32 %v875_v58  ;;  %v838_v3 = vunpack.c.2.s8 %v682_v54  ;;  %v850_v4 = vunpack.c.3.s8 %v682_v54  ;;  %v719_v55 = vld [vmem:[#allocation7 + $0x1a8] sm:$0xff] }
  0xd2   : > { %1847 = vmatpush.bf16.msra.mxu0 %v1582_v60  ;;  %v1439_v5 = vcvt.s32.f32 %v1055_v62  ;;  %v1451_v6 = vcvt.s32.f32 %v1067_v63  ;;  %v1030_v8 = vunpack.c.2.s8 %v730_v59  ;;  %v1042_v9 = vunpack.c.3.s8 %v730_v59 }
  0xd3   : > { %1861 = vmatpush.bf16.msra.mxu1 %v1678_v1  ;;  %v1583_v12 = vpack.c.bf16 %v1259_v2, %v1247_v61  ;;  %v1222_v13 = vcvt.s32.f32 %v838_v3  ;;  %v1234_v14 = vcvt.s32.f32 %v850_v4  ;;  %v839_v15 = vunpack.c.2.s8 %v683_v0 }
  0xd4   : > { %v1679_v16 = vpack.c.bf16 %v1451_v6, %v1439_v5  ;;  %v1414_v17 = vcvt.s32.f32 %v1030_v8  ;;  %v1426_v18 = vcvt.s32.f32 %v1042_v9  ;;  %v851_v19 = vunpack.c.3.s8 %v683_v0 }
  0xd5   : > { %1875 = vmatpush.bf16.msra.mxu2 %v1583_v12  ;;  %v1570_v20 = vpack.c.bf16 %v1234_v14, %v1222_v13  ;;  %v1223_v21 = vcvt.s32.f32 %v839_v15  ;;  %v1031_v22 = vunpack.c.2.s8 %v731_v10  ;;  %v1043_v23 = vunpack.c.3.s8 %v731_v10 }
  0xd6   : > { %1889 = vmatpush.bf16.msra.mxu3 %v1679_v16  ;;  %v1666_v24 = vpack.c.bf16 %v1426_v18, %v1414_v17  ;;  %v1235_v25 = vcvt.s32.f32 %v851_v19  ;;  %v814_v26 = vunpack.c.0.s8 %v682_v54  ;;  %v826_v27 = vunpack.c.1.s8 %v682_v54  ;;  %v708_v18 = vld [vmem:[#allocation7 + $0x150] sm:$0xff] }
  0xd7   : > { %1848 = vmatpush.bf16.msra.mxu0 %v1570_v20  ;;  %v1415_v28 = vcvt.s32.f32 %v1031_v22  ;;  %v1427_v29 = vcvt.s32.f32 %v1043_v23  ;;  %v1006_v30 = vunpack.c.0.s8 %v730_v59  ;;  %v1018_v31 = vunpack.c.1.s8 %v730_v59  ;;  %v756_v23 = vld [vmem:[#allocation7 + $0x2d0] sm:$0xff] }
  0xd8   : > { %1862 = vmatpush.bf16.msra.mxu1 %v1666_v24  ;;  %v1571_v32 = vpack.c.bf16 %v1235_v25, %v1223_v21  ;;  %v1198_v33 = vcvt.s32.f32 %v814_v26  ;;  %v1210_v34 = vcvt.s32.f32 %v826_v27  ;;  %v815_v35 = vunpack.c.0.s8 %v683_v0 }
  0xd9   : > { %v1667_v37 = vpack.c.bf16 %v1427_v29, %v1415_v28  ;;  %v1390_v38 = vcvt.s32.f32 %v1006_v30  ;;  %v1402_v39 = vcvt.s32.f32 %v1018_v31  ;;  %v827_v40 = vunpack.c.1.s8 %v683_v0  ;;  %v709_v28 = vld [vmem:[#allocation7 + $0x158] sm:$0xff] }
  0xda   : > { %1876 = vmatpush.bf16.msra.mxu2 %v1571_v32  ;;  %v1558_v42 = vpack.c.bf16 %v1210_v34, %v1198_v33  ;;  %v1199_v43 = vcvt.s32.f32 %v815_v35  ;;  %v1007_v44 = vunpack.c.0.s8 %v731_v10  ;;  %v1019_v45 = vunpack.c.1.s8 %v731_v10 }
  0xdb   : > { %1890 = vmatpush.bf16.msra.mxu3 %v1667_v37  ;;  %v1654_v47 = vpack.c.bf16 %v1402_v39, %v1390_v38  ;;  %v1211_v48 = vcvt.s32.f32 %v827_v40  ;;  %v790_v49 = vunpack.c.2.s8 %v670_v36  ;;  %v802_v50 = vunpack.c.3.s8 %v670_v36  ;;  %v757_v37 = vld [vmem:[#allocation7 + $0x2d8] sm:$0xff] }
  0xdc   : > { %1849 = vmatpush.bf16.msra.mxu0 %v1558_v42  ;;  %v1391_v51 = vcvt.s32.f32 %v1007_v44  ;;  %v1403_v52 = vcvt.s32.f32 %v1019_v45  ;;  %v982_v53 = vunpack.c.2.s8 %v718_v41  ;;  %v994_v54 = vunpack.c.3.s8 %v718_v41 }
  0xdd   : > { %1863 = vmatpush.bf16.msra.mxu1 %v1654_v47  ;;  %v1559_v56 = vpack.c.bf16 %v1211_v48, %v1199_v43  ;;  %v1174_v57 = vcvt.s32.f32 %v790_v49  ;;  %v1186_v58 = vcvt.s32.f32 %v802_v50  ;;  %v791_v59 = vunpack.c.2.s8 %v671_v46 }
  0xde   : > { %v1655_v60 = vpack.c.bf16 %v1403_v52, %v1391_v51  ;;  %v1366_v61 = vcvt.s32.f32 %v982_v53  ;;  %v1378_v62 = vcvt.s32.f32 %v994_v54  ;;  %v803_v63 = vunpack.c.3.s8 %v671_v46 }
  0xdf   : > { %1877 = vmatpush.bf16.msra.mxu2 %v1559_v56  ;;  %v1546_v0 = vpack.c.bf16 %v1186_v58, %v1174_v57  ;;  %v1175_v1 = vcvt.s32.f32 %v791_v59  ;;  %v983_v2 = vunpack.c.2.s8 %v719_v55  ;;  %v995_v3 = vunpack.c.3.s8 %v719_v55 }
  0xe0   : > { %1891 = vmatpush.bf16.msra.mxu3 %v1655_v60  ;;  %v1642_v4 = vpack.c.bf16 %v1378_v62, %v1366_v61  ;;  %v1187_v5 = vcvt.s32.f32 %v803_v63  ;;  %v766_v6 = vunpack.c.0.s8 %v670_v36  ;;  %v778_v8 = vunpack.c.1.s8 %v670_v36  ;;  %v696_v62 = vld [vmem:[#allocation7 + $0xf0] sm:$0xff] }
  0xe1   : > { %1850 = vmatpush.bf16.msra.mxu0 %v1546_v0  ;;  %v1367_v9 = vcvt.s32.f32 %v983_v2  ;;  %v1379_v10 = vcvt.s32.f32 %v995_v3  ;;  %v958_v12 = vunpack.c.0.s8 %v718_v41  ;;  %v970_v13 = vunpack.c.1.s8 %v718_v41  ;;  %v744_v3 = vld [vmem:[#allocation7 + $0x270] sm:$0xff] }
  0xe2   : > { %1864 = vmatpush.bf16.msra.mxu1 %v1642_v4  ;;  %v1547_v14 = vpack.c.bf16 %v1187_v5, %v1175_v1  ;;  %v1150_v15 = vcvt.s32.f32 %v766_v6  ;;  %v1162_v16 = vcvt.s32.f32 %v778_v8  ;;  %v767_v17 = vunpack.c.0.s8 %v671_v46 }
  0xe3   : > { %v1643_v19 = vpack.c.bf16 %v1379_v10, %v1367_v9  ;;  %v1342_v20 = vcvt.s32.f32 %v958_v12  ;;  %v1354_v21 = vcvt.s32.f32 %v970_v13  ;;  %v779_v22 = vunpack.c.1.s8 %v671_v46  ;;  %v697_v9 = vld [vmem:[#allocation7 + $0xf8] sm:$0xff] }
  0xe4   : > { %1878 = vmatpush.bf16.msra.mxu2 %v1547_v14  ;;  %v1534_v24 = vpack.c.bf16 %v1162_v16, %v1150_v15  ;;  %v1151_v25 = vcvt.s32.f32 %v767_v17  ;;  %v959_v26 = vunpack.c.0.s8 %v719_v55  ;;  %v971_v27 = vunpack.c.1.s8 %v719_v55 }
  0xe5   : > { %1892 = vmatpush.bf16.msra.mxu3 %v1643_v19  ;;  %v1630_v29 = vpack.c.bf16 %v1354_v21, %v1342_v20  ;;  %v1163_v30 = vcvt.s32.f32 %v779_v22  ;;  %v936_v31 = vunpack.c.2.s8 %v708_v18  ;;  %v948_v32 = vunpack.c.3.s8 %v708_v18  ;;  %v745_v19 = vld [vmem:[#allocation7 + $0x278] sm:$0xff] }
  0xe6   : > { %1851 = vmatpush.bf16.msra.mxu0 %v1534_v24  ;;  %v1343_v33 = vcvt.s32.f32 %v959_v26  ;;  %v1355_v34 = vcvt.s32.f32 %v971_v27  ;;  %v1128_v35 = vunpack.c.2.s8 %v756_v23  ;;  %v1140_v36 = vunpack.c.3.s8 %v756_v23 }
  0xe7   : > { %1865 = vmatpush.bf16.msra.mxu1 %v1630_v29  ;;  %v1535_v38 = vpack.c.bf16 %v1163_v30, %v1151_v25  ;;  %v1320_v39 = vcvt.s32.f32 %v936_v31  ;;  %v1332_v40 = vcvt.s32.f32 %v948_v32  ;;  %v937_v41 = vunpack.c.2.s8 %v709_v28 }
  0xe8   : > { %v1631_v42 = vpack.c.bf16 %v1355_v34, %v1343_v33  ;;  %v1512_v43 = vcvt.s32.f32 %v1128_v35  ;;  %v1524_v44 = vcvt.s32.f32 %v1140_v36  ;;  %v949_v45 = vunpack.c.3.s8 %v709_v28 }
  0xe9   : > { %1879 = vmatpush.bf16.msra.mxu2 %v1535_v38  ;;  %v1620_v46 = vpack.c.bf16 %v1332_v40, %v1320_v39  ;;  %v1321_v47 = vcvt.s32.f32 %v937_v41  ;;  %v1129_v48 = vunpack.c.2.s8 %v757_v37  ;;  %v1141_v49 = vunpack.c.3.s8 %v757_v37  ;;  %1852 = vmatmul.bf16.vlgmr.msra.gmra.mxu0 %v10740_v7 }
  0xea   : > { %1893 = vmatpush.bf16.msra.mxu3 %v1631_v42  ;;  %v1716_v50 = vpack.c.bf16 %v1524_v44, %v1512_v43  ;;  %v1333_v51 = vcvt.s32.f32 %v949_v45  ;;  %1866 = vmatmul.bf16.vlgmr.msra.gmra.mxu1 %v10742_v11  ;;  %v912_v52 = vunpack.c.0.s8 %v708_v18  ;;  %v924_v53 = vunpack.c.1.s8 %v708_v18  ;;  %v684_v44 = vld [vmem:[#allocation7 + $0x90] sm:$0xff] }
  0xeb   : > { %1900 = vmatpush.bf16.msrb.mxu0 %v1620_v46  ;;  %v1513_v54 = vcvt.s32.f32 %v1129_v48  ;;  %v1525_v55 = vcvt.s32.f32 %v1141_v49  ;;  %v1104_v56 = vunpack.c.0.s8 %v756_v23  ;;  %v1116_v57 = vunpack.c.1.s8 %v756_v23  ;;  %v732_v49 = vld [vmem:[#allocation7 + $0x210] sm:$0xff] }
  0xec   : > { %1914 = vmatpush.bf16.msrb.mxu1 %v1716_v50  ;;  %v1621_v58 = vpack.c.bf16 %v1333_v51, %v1321_v47  ;;  %1880 = vmatmul.bf16.vlgmr.msra.gmra.mxu2 %v10740_v7  ;;  %v1296_v59 = vcvt.s32.f32 %v912_v52  ;;  %v1308_v60 = vcvt.s32.f32 %v924_v53  ;;  %v913_v61 = vunpack.c.0.s8 %v709_v28 }
  0xed   : > { %v1717_v63 = vpack.c.bf16 %v1525_v55, %v1513_v54  ;;  %1894 = vmatmul.bf16.vlgmr.msra.gmra.mxu3 %v10742_v11  ;;  %v1488_v0 = vcvt.s32.f32 %v1104_v56  ;;  %v1500_v1 = vcvt.s32.f32 %v1116_v57  ;;  %v925_v2 = vunpack.c.1.s8 %v709_v28  ;;  %v685_v54 = vld [vmem:[#allocation7 + $0x98] sm:$0xff] }
  0xee   : > { %1928 = vmatpush.bf16.msrb.mxu2 %v1621_v58  ;;  %v1608_v4 = vpack.c.bf16 %v1308_v60, %v1296_v59  ;;  %v1297_v5 = vcvt.s32.f32 %v913_v61  ;;  %v1105_v6 = vunpack.c.0.s8 %v757_v37  ;;  %v1117_v8 = vunpack.c.1.s8 %v757_v37 }
  0xef   : > { %1942 = vmatpush.bf16.msrb.mxu3 %v1717_v63  ;;  %v1704_v10 = vpack.c.bf16 %v1500_v1, %v1488_v0  ;;  %v1309_v12 = vcvt.s32.f32 %v925_v2  ;;  %v888_v13 = vunpack.c.2.s8 %v696_v62  ;;  %v900_v14 = vunpack.c.3.s8 %v696_v62  ;;  %v733_v63 = vld [vmem:[#allocation7 + $0x218] sm:$0xff] }
  0xf0   : > { %1901 = vmatpush.bf16.msrb.mxu0 %v1608_v4  ;;  %v1489_v15 = vcvt.s32.f32 %v1105_v6  ;;  %v1501_v16 = vcvt.s32.f32 %v1117_v8  ;;  %v1080_v17 = vunpack.c.2.s8 %v744_v3  ;;  %v1092_v18 = vunpack.c.3.s8 %v744_v3 }
  0xf1   : > { %1915 = vmatpush.bf16.msrb.mxu1 %v1704_v10  ;;  %v1609_v20 = vpack.c.bf16 %v1309_v12, %v1297_v5  ;;  %v1272_v21 = vcvt.s32.f32 %v888_v13  ;;  %v1284_v22 = vcvt.s32.f32 %v900_v14  ;;  %v889_v23 = vunpack.c.2.s8 %v697_v9 }
  0xf2   : > { %v1705_v24 = vpack.c.bf16 %v1501_v16, %v1489_v15  ;;  %v1464_v25 = vcvt.s32.f32 %v1080_v17  ;;  %v1476_v26 = vcvt.s32.f32 %v1092_v18  ;;  %v901_v27 = vunpack.c.3.s8 %v697_v9 }
  0xf3   : > { %1929 = vmatpush.bf16.msrb.mxu2 %v1609_v20  ;;  %v1596_v28 = vpack.c.bf16 %v1284_v22, %v1272_v21  ;;  %v1273_v29 = vcvt.s32.f32 %v889_v23  ;;  %v1081_v30 = vunpack.c.2.s8 %v745_v19  ;;  %v1093_v31 = vunpack.c.3.s8 %v745_v19 }
  0xf4   : > { %1943 = vmatpush.bf16.msrb.mxu3 %v1705_v24  ;;  %v1692_v32 = vpack.c.bf16 %v1476_v26, %v1464_v25  ;;  %v1285_v33 = vcvt.s32.f32 %v901_v27  ;;  %v864_v34 = vunpack.c.0.s8 %v696_v62  ;;  %v876_v35 = vunpack.c.1.s8 %v696_v62  ;;  %v672_v26 = vld [vmem:[#allocation7 + $0x30] sm:$0xff] }
  0xf5   : > { %1902 = vmatpush.bf16.msrb.mxu0 %v1596_v28  ;;  %v1465_v36 = vcvt.s32.f32 %v1081_v30  ;;  %v1477_v37 = vcvt.s32.f32 %v1093_v31  ;;  %v1056_v38 = vunpack.c.0.s8 %v744_v3  ;;  %v1068_v39 = vunpack.c.1.s8 %v744_v3  ;;  %v720_v31 = vld [vmem:[#allocation7 + $0x1b0] sm:$0xff] }
  0xf6   : > { %1916 = vmatpush.bf16.msrb.mxu1 %v1692_v32  ;;  %v1597_v40 = vpack.c.bf16 %v1285_v33, %v1273_v29  ;;  %v1248_v41 = vcvt.s32.f32 %v864_v34  ;;  %v1260_v42 = vcvt.s32.f32 %v876_v35  ;;  %v865_v43 = vunpack.c.0.s8 %v697_v9 }
  0xf7   : > { %v1693_v45 = vpack.c.bf16 %v1477_v37, %v1465_v36  ;;  %v1440_v46 = vcvt.s32.f32 %v1056_v38  ;;  %v1452_v47 = vcvt.s32.f32 %v1068_v39  ;;  %v877_v48 = vunpack.c.1.s8 %v697_v9  ;;  %v673_v36 = vld [vmem:[#allocation7 + $0x38] sm:$0xff] }
  0xf8   : > { %1930 = vmatpush.bf16.msrb.mxu2 %v1597_v40  ;;  %v1584_v50 = vpack.c.bf16 %v1260_v42, %v1248_v41  ;;  %v1249_v51 = vcvt.s32.f32 %v865_v43  ;;  %v1057_v52 = vunpack.c.0.s8 %v745_v19  ;;  %v1069_v53 = vunpack.c.1.s8 %v745_v19 }
  0xf9   : > { %1944 = vmatpush.bf16.msrb.mxu3 %v1693_v45  ;;  %v1680_v55 = vpack.c.bf16 %v1452_v47, %v1440_v46  ;;  %v1261_v56 = vcvt.s32.f32 %v877_v48  ;;  %v840_v57 = vunpack.c.2.s8 %v684_v44  ;;  %v852_v58 = vunpack.c.3.s8 %v684_v44  ;;  %v721_v45 = vld [vmem:[#allocation7 + $0x1b8] sm:$0xff] }
  0xfa   : > { %1903 = vmatpush.bf16.msrb.mxu0 %v1584_v50  ;;  %v1441_v59 = vcvt.s32.f32 %v1057_v52  ;;  %v1453_v60 = vcvt.s32.f32 %v1069_v53  ;;  %v1032_v61 = vunpack.c.2.s8 %v732_v49  ;;  %v1044_v62 = vunpack.c.3.s8 %v732_v49 }
  0xfb   : > { %1917 = vmatpush.bf16.msrb.mxu1 %v1680_v55  ;;  %v1585_v0 = vpack.c.bf16 %v1261_v56, %v1249_v51  ;;  %v1224_v1 = vcvt.s32.f32 %v840_v57  ;;  %v1236_v2 = vcvt.s32.f32 %v852_v58  ;;  %v841_v3 = vunpack.c.2.s8 %v685_v54 }
  0xfc   : > { %v1681_v4 = vpack.c.bf16 %v1453_v60, %v1441_v59  ;;  %v1416_v5 = vcvt.s32.f32 %v1032_v61  ;;  %v1428_v6 = vcvt.s32.f32 %v1044_v62  ;;  %v853_v8 = vunpack.c.3.s8 %v685_v54 }
  0xfd   : > { %1931 = vmatpush.bf16.msrb.mxu2 %v1585_v0  ;;  %v1572_v9 = vpack.c.bf16 %v1236_v2, %v1224_v1  ;;  %v1225_v10 = vcvt.s32.f32 %v841_v3  ;;  %v1033_v12 = vunpack.c.2.s8 %v733_v63  ;;  %v1045_v13 = vunpack.c.3.s8 %v733_v63 }
  0xfe   : > { %1945 = vmatpush.bf16.msrb.mxu3 %v1681_v4  ;;  %v1668_v14 = vpack.c.bf16 %v1428_v6, %v1416_v5  ;;  %v1237_v15 = vcvt.s32.f32 %v853_v8  ;;  %v816_v16 = vunpack.c.0.s8 %v684_v44  ;;  %v828_v17 = vunpack.c.1.s8 %v684_v44  ;;  %v710_v6 = vld [vmem:[#allocation7 + $0x160] sm:$0xff] }
  0xff   : > { %1904 = vmatpush.bf16.msrb.mxu0 %v1572_v9  ;;  %v1417_v18 = vcvt.s32.f32 %v1033_v12  ;;  %v1429_v19 = vcvt.s32.f32 %v1045_v13  ;;  %v1008_v20 = vunpack.c.0.s8 %v732_v49  ;;  %v1020_v21 = vunpack.c.1.s8 %v732_v49  ;;  %v758_v13 = vld [vmem:[#allocation7 + $0x2e0] sm:$0xff] }
 0x100   : > { %1918 = vmatpush.bf16.msrb.mxu1 %v1668_v14  ;;  %v1573_v22 = vpack.c.bf16 %v1237_v15, %v1225_v10  ;;  %v1200_v23 = vcvt.s32.f32 %v816_v16  ;;  %v1212_v24 = vcvt.s32.f32 %v828_v17  ;;  %v817_v25 = vunpack.c.0.s8 %v685_v54 }
 0x101   : > { %v1669_v27 = vpack.c.bf16 %v1429_v19, %v1417_v18  ;;  %v1392_v28 = vcvt.s32.f32 %v1008_v20  ;;  %v1404_v29 = vcvt.s32.f32 %v1020_v21  ;;  %v829_v30 = vunpack.c.1.s8 %v685_v54  ;;  %v711_v18 = vld [vmem:[#allocation7 + $0x168] sm:$0xff] }
 0x102   : > { %1932 = vmatpush.bf16.msrb.mxu2 %v1573_v22  ;;  %v1560_v32 = vpack.c.bf16 %v1212_v24, %v1200_v23  ;;  %v1201_v33 = vcvt.s32.f32 %v817_v25  ;;  %v1009_v34 = vunpack.c.0.s8 %v733_v63  ;;  %v1021_v35 = vunpack.c.1.s8 %v733_v63 }
 0x103   : > { %1946 = vmatpush.bf16.msrb.mxu3 %v1669_v27  ;;  %v1656_v37 = vpack.c.bf16 %v1404_v29, %v1392_v28  ;;  %v1213_v38 = vcvt.s32.f32 %v829_v30  ;;  %v792_v39 = vunpack.c.2.s8 %v672_v26  ;;  %v804_v40 = vunpack.c.3.s8 %v672_v26  ;;  %v759_v27 = vld [vmem:[#allocation7 + $0x2e8] sm:$0xff] }
 0x104   : > { %1905 = vmatpush.bf16.msrb.mxu0 %v1560_v32  ;;  %v1393_v41 = vcvt.s32.f32 %v1009_v34  ;;  %v1405_v42 = vcvt.s32.f32 %v1021_v35  ;;  %v984_v43 = vunpack.c.2.s8 %v720_v31  ;;  %v996_v44 = vunpack.c.3.s8 %v720_v31 }
 0x105   : > { %1919 = vmatpush.bf16.msrb.mxu1 %v1656_v37  ;;  %v1561_v46 = vpack.c.bf16 %v1213_v38, %v1201_v33  ;;  %v1176_v47 = vcvt.s32.f32 %v792_v39  ;;  %v1188_v48 = vcvt.s32.f32 %v804_v40  ;;  %v793_v49 = vunpack.c.2.s8 %v673_v36 }
 0x106   : > { %v1657_v50 = vpack.c.bf16 %v1405_v42, %v1393_v41  ;;  %v1368_v51 = vcvt.s32.f32 %v984_v43  ;;  %v1380_v52 = vcvt.s32.f32 %v996_v44  ;;  %v805_v53 = vunpack.c.3.s8 %v673_v36 }
 0x107   : > { %1933 = vmatpush.bf16.msrb.mxu2 %v1561_v46  ;;  %v1548_v54 = vpack.c.bf16 %v1188_v48, %v1176_v47  ;;  %v1177_v55 = vcvt.s32.f32 %v793_v49  ;;  %v985_v56 = vunpack.c.2.s8 %v721_v45  ;;  %v997_v57 = vunpack.c.3.s8 %v721_v45 }
 0x108   : > { %1947 = vmatpush.bf16.msrb.mxu3 %v1657_v50  ;;  %v1644_v58 = vpack.c.bf16 %v1380_v52, %v1368_v51  ;;  %v1189_v59 = vcvt.s32.f32 %v805_v53  ;;  %v768_v60 = vunpack.c.0.s8 %v672_v26  ;;  %v780_v61 = vunpack.c.1.s8 %v672_v26  ;;  %v698_v52 = vld [vmem:[#allocation7 + $0x100] sm:$0xff] }
 0x109   : > { %1906 = vmatpush.bf16.msrb.mxu0 %v1548_v54  ;;  %v1369_v62 = vcvt.s32.f32 %v985_v56  ;;  %v1381_v63 = vcvt.s32.f32 %v997_v57  ;;  %v960_v0 = vunpack.c.0.s8 %v720_v31  ;;  %v972_v1 = vunpack.c.1.s8 %v720_v31  ;;  %v746_v57 = vld [vmem:[#allocation7 + $0x280] sm:$0xff] }
 0x10a   : > { %1920 = vmatpush.bf16.msrb.mxu1 %v1644_v58  ;;  %v1549_v2 = vpack.c.bf16 %v1189_v59, %v1177_v55  ;;  %v1152_v3 = vcvt.s32.f32 %v768_v60  ;;  %v1164_v4 = vcvt.s32.f32 %v780_v61  ;;  %v769_v5 = vunpack.c.0.s8 %v673_v36 }
 0x10b   : > { %v1645_v8 = vpack.c.bf16 %v1381_v63, %v1369_v62  ;;  %v1344_v9 = vcvt.s32.f32 %v960_v0  ;;  %v1356_v10 = vcvt.s32.f32 %v972_v1  ;;  %v781_v12 = vunpack.c.1.s8 %v673_v36  ;;  %v699_v62 = vld [vmem:[#allocation7 + $0x108] sm:$0xff] }
 0x10c   : > { %1934 = vmatpush.bf16.msrb.mxu2 %v1549_v2  ;;  %v1536_v14 = vpack.c.bf16 %v1164_v4, %v1152_v3  ;;  %v1153_v15 = vcvt.s32.f32 %v769_v5  ;;  %v961_v16 = vunpack.c.0.s8 %v721_v45  ;;  %v973_v17 = vunpack.c.1.s8 %v721_v45 }
 0x10d   : > { %1948 = vmatpush.bf16.msrb.mxu3 %v1645_v8  ;;  %v1632_v19 = vpack.c.bf16 %v1356_v10, %v1344_v9  ;;  %v1165_v20 = vcvt.s32.f32 %v781_v12  ;;  %v938_v21 = vunpack.c.2.s8 %v710_v6  ;;  %v950_v22 = vunpack.c.3.s8 %v710_v6  ;;  %v747_v8 = vld [vmem:[#allocation7 + $0x288] sm:$0xff] }
 0x10e   : > { %1907 = vmatpush.bf16.msrb.mxu0 %v1536_v14  ;;  %v1345_v23 = vcvt.s32.f32 %v961_v16  ;;  %v1357_v24 = vcvt.s32.f32 %v973_v17  ;;  %v1130_v25 = vunpack.c.2.s8 %v758_v13  ;;  %v1142_v26 = vunpack.c.3.s8 %v758_v13 }
 0x10f   : > { %1921 = vmatpush.bf16.msrb.mxu1 %v1632_v19  ;;  %v1537_v28 = vpack.c.bf16 %v1165_v20, %v1153_v15  ;;  %v1322_v29 = vcvt.s32.f32 %v938_v21  ;;  %v1334_v30 = vcvt.s32.f32 %v950_v22  ;;  %v939_v31 = vunpack.c.2.s8 %v711_v18 }
 0x110   : > { %v1633_v32 = vpack.c.bf16 %v1357_v24, %v1345_v23  ;;  %v1514_v33 = vcvt.s32.f32 %v1130_v25  ;;  %v1526_v34 = vcvt.s32.f32 %v1142_v26  ;;  %v951_v35 = vunpack.c.3.s8 %v711_v18 }
 0x111   : > { %1935 = vmatpush.bf16.msrb.mxu2 %v1537_v28  ;;  %v1622_v36 = vpack.c.bf16 %v1334_v30, %v1322_v29  ;;  %v1323_v37 = vcvt.s32.f32 %v939_v31  ;;  %v1131_v38 = vunpack.c.2.s8 %v759_v27  ;;  %v1143_v39 = vunpack.c.3.s8 %v759_v27  ;;  %1908 = vmatmul.bf16.vlgmr.msrb.gmra.mxu0 %v10740_v7 }
 0x112   : > { %1949 = vmatpush.bf16.msrb.mxu3 %v1633_v32  ;;  %v1718_v40 = vpack.c.bf16 %v1526_v34, %v1514_v33  ;;  %v1335_v41 = vcvt.s32.f32 %v951_v35  ;;  %1922 = vmatmul.bf16.vlgmr.msrb.gmra.mxu1 %v10742_v11  ;;  %v914_v42 = vunpack.c.0.s8 %v710_v6  ;;  %v926_v43 = vunpack.c.1.s8 %v710_v6  ;;  %v686_v34 = vld [vmem:[#allocation7 + $0xa0] sm:$0xff] }
 0x113   : > { %1956 = vmatpush.bf16.msra.mxu0 %v1622_v36  ;;  %v1515_v44 = vcvt.s32.f32 %v1131_v38  ;;  %v1527_v45 = vcvt.s32.f32 %v1143_v39  ;;  %v1106_v46 = vunpack.c.0.s8 %v758_v13  ;;  %v1118_v47 = vunpack.c.1.s8 %v758_v13  ;;  %v734_v39 = vld [vmem:[#allocation7 + $0x220] sm:$0xff] }
 0x114   : > { %1970 = vmatpush.bf16.msra.mxu1 %v1718_v40  ;;  %v1623_v48 = vpack.c.bf16 %v1335_v41, %v1323_v37  ;;  %1936 = vmatmul.bf16.vlgmr.msrb.gmra.mxu2 %v10740_v7  ;;  %v1298_v49 = vcvt.s32.f32 %v914_v42  ;;  %v1310_v50 = vcvt.s32.f32 %v926_v43  ;;  %v915_v51 = vunpack.c.0.s8 %v711_v18 }
 0x115   : > { %v1719_v53 = vpack.c.bf16 %v1527_v45, %v1515_v44  ;;  %1950 = vmatmul.bf16.vlgmr.msrb.gmra.mxu3 %v10742_v11  ;;  %v1490_v54 = vcvt.s32.f32 %v1106_v46  ;;  %v1502_v55 = vcvt.s32.f32 %v1118_v47  ;;  %v927_v56 = vunpack.c.1.s8 %v711_v18  ;;  %v687_v44 = vld [vmem:[#allocation7 + $0xa8] sm:$0xff] }
 0x116   : > { %1984 = vmatpush.bf16.msra.mxu2 %v1623_v48  ;;  %v1610_v58 = vpack.c.bf16 %v1310_v50, %v1298_v49  ;;  %v1299_v59 = vcvt.s32.f32 %v915_v51  ;;  %v1107_v60 = vunpack.c.0.s8 %v759_v27  ;;  %v1119_v61 = vunpack.c.1.s8 %v759_v27 }
 0x117   : > { %1998 = vmatpush.bf16.msra.mxu3 %v1719_v53  ;;  %v1706_v63 = vpack.c.bf16 %v1502_v55, %v1490_v54  ;;  %v1311_v0 = vcvt.s32.f32 %v927_v56  ;;  %v890_v1 = vunpack.c.2.s8 %v698_v52  ;;  %v902_v2 = vunpack.c.3.s8 %v698_v52  ;;  %v735_v53 = vld [vmem:[#allocation7 + $0x228] sm:$0xff] }
 0x118   : > { %1957 = vmatpush.bf16.msra.mxu0 %v1610_v58  ;;  %v1491_v3 = vcvt.s32.f32 %v1107_v60  ;;  %v1503_v4 = vcvt.s32.f32 %v1119_v61  ;;  %v1082_v5 = vunpack.c.2.s8 %v746_v57  ;;  %v1094_v6 = vunpack.c.3.s8 %v746_v57 }
 0x119   : > { %1971 = vmatpush.bf16.msra.mxu1 %v1706_v63  ;;  %v1611_v9 = vpack.c.bf16 %v1311_v0, %v1299_v59  ;;  %v1274_v10 = vcvt.s32.f32 %v890_v1  ;;  %v1286_v12 = vcvt.s32.f32 %v902_v2  ;;  %v891_v13 = vunpack.c.2.s8 %v699_v62 }
 0x11a   : > { %v1707_v14 = vpack.c.bf16 %v1503_v4, %v1491_v3  ;;  %v1466_v15 = vcvt.s32.f32 %v1082_v5  ;;  %v1478_v16 = vcvt.s32.f32 %v1094_v6  ;;  %v903_v17 = vunpack.c.3.s8 %v699_v62 }
 0x11b   : > { %1985 = vmatpush.bf16.msra.mxu2 %v1611_v9  ;;  %v1598_v18 = vpack.c.bf16 %v1286_v12, %v1274_v10  ;;  %v1275_v19 = vcvt.s32.f32 %v891_v13  ;;  %v1083_v20 = vunpack.c.2.s8 %v747_v8  ;;  %v1095_v21 = vunpack.c.3.s8 %v747_v8 }
 0x11c   : > { %1999 = vmatpush.bf16.msra.mxu3 %v1707_v14  ;;  %v1694_v22 = vpack.c.bf16 %v1478_v16, %v1466_v15  ;;  %v1287_v23 = vcvt.s32.f32 %v903_v17  ;;  %v866_v24 = vunpack.c.0.s8 %v698_v52  ;;  %v878_v25 = vunpack.c.1.s8 %v698_v52  ;;  %v674_v16 = vld [vmem:[#allocation7 + $0x40] sm:$0xff] }
 0x11d   : > { %1958 = vmatpush.bf16.msra.mxu0 %v1598_v18  ;;  %v1467_v26 = vcvt.s32.f32 %v1083_v20  ;;  %v1479_v27 = vcvt.s32.f32 %v1095_v21  ;;  %v1058_v28 = vunpack.c.0.s8 %v746_v57  ;;  %v1070_v29 = vunpack.c.1.s8 %v746_v57  ;;  %v722_v21 = vld [vmem:[#allocation7 + $0x1c0] sm:$0xff] }
 0x11e   : > { %1972 = vmatpush.bf16.msra.mxu1 %v1694_v22  ;;  %v1599_v30 = vpack.c.bf16 %v1287_v23, %v1275_v19  ;;  %v1250_v31 = vcvt.s32.f32 %v866_v24  ;;  %v1262_v32 = vcvt.s32.f32 %v878_v25  ;;  %v867_v33 = vunpack.c.0.s8 %v699_v62 }
 0x11f   : > { %v1695_v35 = vpack.c.bf16 %v1479_v27, %v1467_v26  ;;  %v1442_v36 = vcvt.s32.f32 %v1058_v28  ;;  %v1454_v37 = vcvt.s32.f32 %v1070_v29  ;;  %v879_v38 = vunpack.c.1.s8 %v699_v62  ;;  %v675_v26 = vld [vmem:[#allocation7 + $0x48] sm:$0xff] }
 0x120   : > { %1986 = vmatpush.bf16.msra.mxu2 %v1599_v30  ;;  %v1586_v40 = vpack.c.bf16 %v1262_v32, %v1250_v31  ;;  %v1251_v41 = vcvt.s32.f32 %v867_v33  ;;  %v1059_v42 = vunpack.c.0.s8 %v747_v8  ;;  %v1071_v43 = vunpack.c.1.s8 %v747_v8 }
 0x121   : > { %2000 = vmatpush.bf16.msra.mxu3 %v1695_v35  ;;  %v1682_v45 = vpack.c.bf16 %v1454_v37, %v1442_v36  ;;  %v1263_v46 = vcvt.s32.f32 %v879_v38  ;;  %v842_v47 = vunpack.c.2.s8 %v686_v34  ;;  %v854_v48 = vunpack.c.3.s8 %v686_v34  ;;  %v723_v35 = vld [vmem:[#allocation7 + $0x1c8] sm:$0xff] }
 0x122   : > { %1959 = vmatpush.bf16.msra.mxu0 %v1586_v40  ;;  %v1443_v49 = vcvt.s32.f32 %v1059_v42  ;;  %v1455_v50 = vcvt.s32.f32 %v1071_v43  ;;  %v1034_v51 = vunpack.c.2.s8 %v734_v39  ;;  %v1046_v52 = vunpack.c.3.s8 %v734_v39 }
 0x123   : > { %1973 = vmatpush.bf16.msra.mxu1 %v1682_v45  ;;  %v1587_v54 = vpack.c.bf16 %v1263_v46, %v1251_v41  ;;  %v1226_v55 = vcvt.s32.f32 %v842_v47  ;;  %v1238_v56 = vcvt.s32.f32 %v854_v48  ;;  %v843_v57 = vunpack.c.2.s8 %v687_v44 }
 0x124   : > { %v1683_v58 = vpack.c.bf16 %v1455_v50, %v1443_v49  ;;  %v1418_v59 = vcvt.s32.f32 %v1034_v51  ;;  %v1430_v60 = vcvt.s32.f32 %v1046_v52  ;;  %v855_v61 = vunpack.c.3.s8 %v687_v44 }
 0x125   : > { %1987 = vmatpush.bf16.msra.mxu2 %v1587_v54  ;;  %v1574_v62 = vpack.c.bf16 %v1238_v56, %v1226_v55  ;;  %v1227_v63 = vcvt.s32.f32 %v843_v57  ;;  %v1035_v0 = vunpack.c.2.s8 %v735_v53  ;;  %v1047_v1 = vunpack.c.3.s8 %v735_v53 }
 0x126   : > { %2001 = vmatpush.bf16.msra.mxu3 %v1683_v58  ;;  %v1670_v2 = vpack.c.bf16 %v1430_v60, %v1418_v59  ;;  %v1239_v3 = vcvt.s32.f32 %v855_v61  ;;  %v818_v4 = vunpack.c.0.s8 %v686_v34  ;;  %v830_v5 = vunpack.c.1.s8 %v686_v34  ;;  %v712_v60 = vld [vmem:[#allocation7 + $0x170] sm:$0xff] }
 0x127   : > { %1960 = vmatpush.bf16.msra.mxu0 %v1574_v62  ;;  %v1419_v6 = vcvt.s32.f32 %v1035_v0  ;;  %v1431_v8 = vcvt.s32.f32 %v1047_v1  ;;  %v1010_v9 = vunpack.c.0.s8 %v734_v39  ;;  %v1022_v10 = vunpack.c.1.s8 %v734_v39  ;;  %v760_v1 = vld [vmem:[#allocation7 + $0x2f0] sm:$0xff] }
 0x128   : > { %1974 = vmatpush.bf16.msra.mxu1 %v1670_v2  ;;  %v1575_v12 = vpack.c.bf16 %v1239_v3, %v1227_v63  ;;  %v1202_v13 = vcvt.s32.f32 %v818_v4  ;;  %v1214_v14 = vcvt.s32.f32 %v830_v5  ;;  %v819_v15 = vunpack.c.0.s8 %v687_v44 }
 0x129   : > { %v1671_v17 = vpack.c.bf16 %v1431_v8, %v1419_v6  ;;  %v1394_v18 = vcvt.s32.f32 %v1010_v9  ;;  %v1406_v19 = vcvt.s32.f32 %v1022_v10  ;;  %v831_v20 = vunpack.c.1.s8 %v687_v44  ;;  %v713_v6 = vld [vmem:[#allocation7 + $0x178] sm:$0xff] }
 0x12a   : > { %1988 = vmatpush.bf16.msra.mxu2 %v1575_v12  ;;  %v1562_v22 = vpack.c.bf16 %v1214_v14, %v1202_v13  ;;  %v1203_v23 = vcvt.s32.f32 %v819_v15  ;;  %v1011_v24 = vunpack.c.0.s8 %v735_v53  ;;  %v1023_v25 = vunpack.c.1.s8 %v735_v53 }
 0x12b   : > { %2002 = vmatpush.bf16.msra.mxu3 %v1671_v17  ;;  %v1658_v27 = vpack.c.bf16 %v1406_v19, %v1394_v18  ;;  %v1215_v28 = vcvt.s32.f32 %v831_v20  ;;  %v794_v29 = vunpack.c.2.s8 %v674_v16  ;;  %v806_v30 = vunpack.c.3.s8 %v674_v16  ;;  %v761_v17 = vld [vmem:[#allocation7 + $0x2f8] sm:$0xff] }
 0x12c   : > { %1961 = vmatpush.bf16.msra.mxu0 %v1562_v22  ;;  %v1395_v31 = vcvt.s32.f32 %v1011_v24  ;;  %v1407_v32 = vcvt.s32.f32 %v1023_v25  ;;  %v986_v33 = vunpack.c.2.s8 %v722_v21  ;;  %v998_v34 = vunpack.c.3.s8 %v722_v21 }
 0x12d   : > { %1975 = vmatpush.bf16.msra.mxu1 %v1658_v27  ;;  %v1563_v36 = vpack.c.bf16 %v1215_v28, %v1203_v23  ;;  %v1178_v37 = vcvt.s32.f32 %v794_v29  ;;  %v1190_v38 = vcvt.s32.f32 %v806_v30  ;;  %v795_v39 = vunpack.c.2.s8 %v675_v26 }
 0x12e   : > { %v1659_v40 = vpack.c.bf16 %v1407_v32, %v1395_v31  ;;  %v1370_v41 = vcvt.s32.f32 %v986_v33  ;;  %v1382_v42 = vcvt.s32.f32 %v998_v34  ;;  %v807_v43 = vunpack.c.3.s8 %v675_v26 }
 0x12f   : > { %1989 = vmatpush.bf16.msra.mxu2 %v1563_v36  ;;  %v1550_v44 = vpack.c.bf16 %v1190_v38, %v1178_v37  ;;  %v1179_v45 = vcvt.s32.f32 %v795_v39  ;;  %v987_v46 = vunpack.c.2.s8 %v723_v35  ;;  %v999_v47 = vunpack.c.3.s8 %v723_v35 }
 0x130   : > { %2003 = vmatpush.bf16.msra.mxu3 %v1659_v40  ;;  %v1646_v48 = vpack.c.bf16 %v1382_v42, %v1370_v41  ;;  %v1191_v49 = vcvt.s32.f32 %v807_v43  ;;  %v770_v50 = vunpack.c.0.s8 %v674_v16  ;;  %v782_v51 = vunpack.c.1.s8 %v674_v16  ;;  %v10767_v42 = vld [vmem:[#allocation7 + $0x110] sm:$0xff] }
 0x131   : > { %1962 = vmatpush.bf16.msra.mxu0 %v1550_v44  ;;  %v1371_v52 = vcvt.s32.f32 %v987_v46  ;;  %v1383_v53 = vcvt.s32.f32 %v999_v47  ;;  %v962_v54 = vunpack.c.0.s8 %v722_v21  ;;  %v974_v55 = vunpack.c.1.s8 %v722_v21  ;;  %v748_v47 = vld [vmem:[#allocation7 + $0x290] sm:$0xff] }
 0x132   : > { %1976 = vmatpush.bf16.msra.mxu1 %v1646_v48  ;;  %v1551_v56 = vpack.c.bf16 %v1191_v49, %v1179_v45  ;;  %v1154_v57 = vcvt.s32.f32 %v770_v50  ;;  %v1166_v58 = vcvt.s32.f32 %v782_v51  ;;  %v771_v59 = vunpack.c.0.s8 %v675_v26 }
 0x133   : > { %v1647_v61 = vpack.c.bf16 %v1383_v53, %v1371_v52  ;;  %v1346_v62 = vcvt.s32.f32 %v962_v54  ;;  %v1358_v63 = vcvt.s32.f32 %v974_v55  ;;  %v783_v0 = vunpack.c.1.s8 %v675_v26  ;;  %v10770_v52 = vld [vmem:[#allocation7 + $0x118] sm:$0xff] }
 0x134   : > { %1990 = vmatpush.bf16.msra.mxu2 %v1551_v56  ;;  %v1538_v2 = vpack.c.bf16 %v1166_v58, %v1154_v57  ;;  %v1155_v3 = vcvt.s32.f32 %v771_v59  ;;  %v963_v4 = vunpack.c.0.s8 %v723_v35  ;;  %v975_v5 = vunpack.c.1.s8 %v723_v35 }
 0x135   : > { %2004 = vmatpush.bf16.msra.mxu3 %v1647_v61  ;;  %v1634_v8 = vpack.c.bf16 %v1358_v63, %v1346_v62  ;;  %v1167_v9 = vcvt.s32.f32 %v783_v0  ;;  %v940_v10 = vunpack.c.2.s8 %v712_v60  ;;  %v952_v12 = vunpack.c.3.s8 %v712_v60  ;;  %v749_v61 = vld [vmem:[#allocation7 + $0x298] sm:$0xff] }
 0x136   : > { %1963 = vmatpush.bf16.msra.mxu0 %v1538_v2  ;;  %v1347_v13 = vcvt.s32.f32 %v963_v4  ;;  %v1359_v14 = vcvt.s32.f32 %v975_v5  ;;  %v1132_v15 = vunpack.c.2.s8 %v760_v1  ;;  %v1144_v16 = vunpack.c.3.s8 %v760_v1  ;;  %v10775_v2 = vld [vmem:[#allocation9] sm:$0xff] }
 0x137   : > { %1977 = vmatpush.bf16.msra.mxu1 %v1634_v8  ;;  %v1539_v18 = vpack.c.bf16 %v1167_v9, %v1155_v3  ;;  %v1324_v19 = vcvt.s32.f32 %v940_v10  ;;  %v1336_v20 = vcvt.s32.f32 %v952_v12  ;;  %v941_v21 = vunpack.c.2.s8 %v713_v6  ;;  %v10778_v8 = vld [vmem:[#allocation10] sm:$0xff] }
 0x138   : > { %v1635_v22 = vpack.c.bf16 %v1359_v14, %v1347_v13  ;;  %v1516_v23 = vcvt.s32.f32 %v1132_v15  ;;  %v1528_v24 = vcvt.s32.f32 %v1144_v16  ;;  %v953_v25 = vunpack.c.3.s8 %v713_v6  ;;  %v1741_v14 = vpop.f32.mrf.mxu0  ;;  %v1755_v15 = vpop.f32.mrf.mxu1 }
 0x139   : > { %1991 = vmatpush.bf16.msra.mxu2 %v1539_v18  ;;  %v1624_v26 = vpack.c.bf16 %v1336_v20, %v1324_v19  ;;  %v1325_v27 = vcvt.s32.f32 %v941_v21  ;;  %v1133_v28 = vunpack.c.2.s8 %v761_v17  ;;  %v1145_v29 = vunpack.c.3.s8 %v761_v17  ;;  %1964 = vmatmul.bf16.vlgmr.msra.gmra.mxu0 %v10740_v7 }
 0x13a   : > { %2005 = vmatpush.bf16.msra.mxu3 %v1635_v22  ;;  %v1720_v30 = vpack.c.bf16 %v1528_v24, %v1516_v23  ;;  %v1337_v31 = vcvt.s32.f32 %v953_v25  ;;  %1978 = vmatmul.bf16.vlgmr.msra.gmra.mxu1 %v10742_v11  ;;  %v916_v32 = vunpack.c.0.s8 %v712_v60  ;;  %v928_v33 = vunpack.c.1.s8 %v712_v60 }
 0x13b   : > { %2012 = vmatpush.bf16.msrb.mxu0 %v1624_v26  ;;  %v1517_v34 = vcvt.s32.f32 %v1133_v28  ;;  %v1529_v35 = vcvt.s32.f32 %v1145_v29  ;;  %v1108_v36 = vunpack.c.0.s8 %v760_v1  ;;  %v1120_v37 = vunpack.c.1.s8 %v760_v1 }
 0x13c   : > { %2026 = vmatpush.bf16.msrb.mxu1 %v1720_v30  ;;  %v1625_v38 = vpack.c.bf16 %v1337_v31, %v1325_v27  ;;  %1992 = vmatmul.bf16.vlgmr.msra.gmra.mxu2 %v10740_v7  ;;  %v1300_v39 = vcvt.s32.f32 %v916_v32  ;;  %v1312_v40 = vcvt.s32.f32 %v928_v33  ;;  %v917_v41 = vunpack.c.0.s8 %v713_v6  ;;  %v10787_v32 = vld [vmem:[#allocation7 + $0xb0] sm:$0xff] }
 0x13d   : > { %v1721_v43 = vpack.c.bf16 %v1529_v35, %v1517_v34  ;;  %2006 = vmatmul.bf16.vlgmr.msra.gmra.mxu3 %v10742_v11  ;;  %v1492_v44 = vcvt.s32.f32 %v1108_v36  ;;  %v1504_v45 = vcvt.s32.f32 %v1120_v37  ;;  %v929_v46 = vunpack.c.1.s8 %v713_v6 }
 0x13e   : > { %2040 = vmatpush.bf16.msrb.mxu2 %v1625_v38  ;;  %v1612_v48 = vpack.c.bf16 %v1312_v40, %v1300_v39  ;;  %v1301_v49 = vcvt.s32.f32 %v917_v41  ;;  %v1109_v50 = vunpack.c.0.s8 %v761_v17  ;;  %v1121_v51 = vunpack.c.1.s8 %v761_v17  ;;  %v10794_v41 = vld [vmem:[#allocation7 + $0x230] sm:$0xff] }
 0x13f   : > { %2054 = vmatpush.bf16.msrb.mxu3 %v1721_v43  ;;  %v1708_v53 = vpack.c.bf16 %v1504_v45, %v1492_v44  ;;  %v1313_v54 = vcvt.s32.f32 %v929_v46  ;;  %v892_v55 = vunpack.c.2.s8 %v10767_v42  ;;  %v904_v56 = vunpack.c.3.s8 %v10767_v42  ;;  %v10798_v46 = vld [vmem:[#allocation7 + $0xb8] sm:$0xff] }
 0x140   : > { %2013 = vmatpush.bf16.msrb.mxu0 %v1612_v48  ;;  %v1493_v57 = vcvt.s32.f32 %v1109_v50  ;;  %v1505_v58 = vcvt.s32.f32 %v1121_v51  ;;  %v1084_v59 = vunpack.c.2.s8 %v748_v47  ;;  %v1096_v60 = vunpack.c.3.s8 %v748_v47  ;;  %v10801_v51 = vld [vmem:[#allocation7 + $0x238] sm:$0xff] }
 0x141   : > { %2027 = vmatpush.bf16.msrb.mxu1 %v1708_v53  ;;  %v1613_v62 = vpack.c.bf16 %v1313_v54, %v1301_v49  ;;  %v1276_v63 = vcvt.s32.f32 %v892_v55  ;;  %v1288_v0 = vcvt.s32.f32 %v904_v56  ;;  %v893_v1 = vunpack.c.2.s8 %v10770_v52  ;;  %v1769_v55 = vpop.f32.mrf.mxu2  ;;  %v1783_v56 = vpop.f32.mrf.mxu3 }
 0x142   : > { %v1709_v3 = vpack.c.bf16 %v1505_v58, %v1493_v57  ;;  %v1468_v4 = vcvt.s32.f32 %v1084_v59  ;;  %v1480_v5 = vcvt.s32.f32 %v1096_v60  ;;  %v905_v6 = vunpack.c.3.s8 %v10770_v52 }
 0x143   : > { %2041 = vmatpush.bf16.msrb.mxu2 %v1613_v62  ;;  %v1600_v9 = vpack.c.bf16 %v1288_v0, %v1276_v63  ;;  %v1277_v10 = vcvt.s32.f32 %v893_v1  ;;  %v1085_v12 = vunpack.c.2.s8 %v749_v61  ;;  %v1097_v13 = vunpack.c.3.s8 %v749_v61  ;;  %v1743_v1 = vpop.f32.mrf.mxu0 }
 0x144   : > { %2055 = vmatpush.bf16.msrb.mxu3 %v1709_v3  ;;  %v1696_v16 = vpack.c.bf16 %v1480_v5, %v1468_v4  ;;  %v1289_v17 = vcvt.s32.f32 %v905_v6  ;;  %v1756_v18 = vadd.f32 %v1755_v15, %v1741_v14  ;;  %v2072_v19 = vperm.slane %v10775_v2, 0  ;;  %v1757_v3 = vpop.f32.mrf.mxu1 }
 0x145   : > { %2014 = vmatpush.bf16.msrb.mxu0 %v1600_v9  ;;  %v1469_v20 = vcvt.s32.f32 %v1085_v12  ;;  %v1481_v21 = vcvt.s32.f32 %v1097_v13  ;;  %v2124_v22 = vperm.slane %v10778_v8, 0  ;;  %v868_v23 = vunpack.c.0.s8 %v10767_v42 }
 0x146   : > { %2028 = vmatpush.bf16.msrb.mxu1 %v1696_v16  ;;  %v1601_v24 = vpack.c.bf16 %v1289_v17, %v1277_v10  ;;  %v2096_v25 = vmul.f32 %v2072_v19, %v1756_v18  ;;  %v880_v26 = vunpack.c.1.s8 %v10767_v42  ;;  %v1060_v27 = vunpack.c.0.s8 %v748_v47 }
 0x147   : > { %v1697_v28 = vpack.c.bf16 %v1481_v21, %v1469_v20  ;;  %v1252_v29 = vcvt.s32.f32 %v868_v23  ;;  %v1072_v30 = vunpack.c.1.s8 %v748_v47  ;;  %v869_v31 = vunpack.c.0.s8 %v10770_v52 }
 0x148   : > { %2042 = vmatpush.bf16.msrb.mxu2 %v1601_v24  ;;  %v10791_v33 = vadd.f32 %v2124_v22, %v2096_v25  ;;  %v1264_v34 = vcvt.s32.f32 %v880_v26  ;;  %v1444_v35 = vcvt.s32.f32 %v1060_v27  ;;  %v881_v36 = vunpack.c.1.s8 %v10770_v52 }
 0x149   : > { %2056 = vmatpush.bf16.msrb.mxu3 %v1697_v28  ;;  %v1456_v37 = vcvt.s32.f32 %v1072_v30  ;;  %v1253_v38 = vcvt.s32.f32 %v869_v31  ;;  %v1061_v39 = vunpack.c.0.s8 %v749_v61  ;;  %v1073_v40 = vunpack.c.1.s8 %v749_v61 }
 0x14a   : > { %v7935_v42 = vmul.f32 -1.442695, %v10791_v33  ;;  %v1588_v43 = vpack.c.bf16 %v1264_v34, %v1252_v29  ;;  %v1265_v44 = vcvt.s32.f32 %v881_v36  ;;  %v844_v45 = vunpack.c.2.s8 %v10787_v32 }
 0x14b   : > { %v1684_v47 = vpack.c.bf16 %v1456_v37, %v1444_v35  ;;  %v1445_v48 = vcvt.s32.f32 %v1061_v39  ;;  %v1457_v49 = vcvt.s32.f32 %v1073_v40  ;;  %v856_v50 = vunpack.c.3.s8 %v10787_v32  ;;  %v10833_v39 = vld [vmem:[#allocation7 + $0x50] sm:$0xff] }
 0x14c   : > { %9782 = vpow2.f32 %v7935_v42  ;;  %2015 = vmatpush.bf16.msrb.mxu0 %v1588_v43  ;;  %v1589_v52 = vpack.c.bf16 %v1265_v44, %v1253_v38  ;;  %v1228_v53 = vcvt.s32.f32 %v844_v45  ;;  %v1036_v54 = vunpack.c.2.s8 %v10794_v41  ;;  %v10838_v43 = vld [vmem:[#allocation7 + $0x1d0] sm:$0xff] }
 0x14d   : > { %2029 = vmatpush.bf16.msrb.mxu1 %v1684_v47  ;;  %v1685_v57 = vpack.c.bf16 %v1457_v49, %v1445_v48  ;;  %v1240_v58 = vcvt.s32.f32 %v856_v50  ;;  %v1048_v59 = vunpack.c.3.s8 %v10794_v41  ;;  %v845_v60 = vunpack.c.2.s8 %v10798_v46 }
 0x14e   : > { %2043 = vmatpush.bf16.msrb.mxu2 %v1589_v52  ;;  %v1420_v61 = vcvt.s32.f32 %v1036_v54  ;;  %v857_v62 = vunpack.c.3.s8 %v10798_v46  ;;  %v1037_v63 = vunpack.c.2.s8 %v10801_v51  ;;  %v1049_v0 = vunpack.c.3.s8 %v10801_v51 }
 0x14f   : > { %2057 = vmatpush.bf16.msrb.mxu3 %v1685_v57  ;;  %v1576_v4 = vpack.c.bf16 %v1240_v58, %v1228_v53  ;;  %v1432_v5 = vcvt.s32.f32 %v1048_v59  ;;  %v1229_v6 = vcvt.s32.f32 %v845_v60  ;;  %v1784_v9 = vadd.f32 %v1783_v56, %v1769_v55  ;;  %v10850_v55 = vld [vmem:[#allocation7 + $0x58] sm:$0xff] }
 0x150   : > { %v1241_v10 = vcvt.s32.f32 %v857_v62  ;;  %v1421_v12 = vcvt.s32.f32 %v1037_v63  ;;  %v1433_v13 = vcvt.s32.f32 %v1049_v0  ;;  %v2073_v14 = vperm.slane %v10775_v2, 1  ;;  %v10853_v60 = vld [vmem:[#allocation7 + $0x1d8] sm:$0xff]  ;;  %v1785_v62 = vpop.f32.mrf.mxu3 }
 0x151   : > { %2016 = vmatpush.bf16.msrb.mxu0 %v1576_v4  ;;  %v1672_v15 = vpack.c.bf16 %v1432_v5, %v1420_v61  ;;  %v2125_v16 = vperm.slane %v10778_v8, 1  ;;  %v1758_v17 = vadd.f32 %v1757_v3, %v1743_v1  ;;  %v820_v18 = vunpack.c.0.s8 %v10787_v32  ;;  %v1771_v61 = vpop.f32.mrf.mxu2 }
 0x152   : > { %v9783_v20 = vpop.eup %9782  ;;  %v1577_v21 = vpack.c.bf16 %v1241_v10, %v1229_v6  ;;  %v1673_v23 = vpack.c.bf16 %v1433_v13, %v1421_v12  ;;  %v2097_v24 = vmul.f32 %v2073_v14, %v1784_v9  ;;  %v832_v25 = vunpack.c.1.s8 %v10787_v32 }
 0x153   : > { %v10815_v26 = vadd.f32 1.0, %v9783_v20  ;;  %2030 = vmatpush.bf16.msrb.mxu1 %v1672_v15  ;;  %v2108_v27 = vmul.f32 %v2072_v19, %v1758_v17  ;;  %v1204_v28 = vcvt.s32.f32 %v820_v18  ;;  %v1012_v29 = vunpack.c.0.s8 %v10794_v41 }
 0x154   : > { %2044 = vmatpush.bf16.msrb.mxu2 %v1577_v21  ;;  %2058 = vmatpush.bf16.msrb.mxu3 %v1673_v23  ;;  %v10822_v30 = vadd.f32 %v2125_v16, %v2097_v24  ;;  %v1216_v31 = vcvt.s32.f32 %v832_v25  ;;  %v1024_v34 = vunpack.c.1.s8 %v10794_v41  ;;  %v821_v32 = vunpack.c.0.s8 %v10798_v46 }
 0x155   : > { %9784 = vrcp.f32 %v10815_v26  ;;  %v2277_v35 = vand.u32 2147483647, %v10815_v26  ;;  %v10831_v36 = vadd.f32 %v2124_v22, %v2108_v27  ;;  %v1396_v38 = vcvt.s32.f32 %v1012_v29 }
 0x156   : > { %v7936_v19 = vmul.f32 -1.442695, %v10822_v30  ;;  %v1564_v37 = vpack.c.bf16 %v1216_v31, %v1204_v28  ;;  %vm2273_vm0 = vweird.f32 %v10815_v26  ;;  %v2279_v40 = vand.u32 2147483648, %v10815_v26 }
 0x157   : > { %v1408_v41 = vcvt.s32.f32 %v1024_v34  ;;  %v833_v42 = vunpack.c.1.s8 %v10798_v46  ;;  %v7947_v44 = vmul.f32 -1.442695, %v10831_v36  ;;  %v1205_v45 = vcvt.s32.f32 %v821_v32 }
 0x158   : > { %9786 = vpow2.f32 %v7936_v19  ;;  %2017 = vmatpush.bf16.msrb.mxu0 %v1564_v37  ;;  %v1013_v22 = vunpack.c.0.s8 %v10801_v51  ;;  %v1025_v49 = vunpack.c.1.s8 %v10801_v51  ;;  %v796_v50 = vunpack.c.2.s8 %v10833_v39 }
 0x159   : > { %v1660_v47 = vpack.c.bf16 %v1408_v41, %v1396_v38  ;;  %v1217_v48 = vcvt.s32.f32 %v833_v42  ;;  %vm10844_vm1 = vcmp.eq.f32.partialorder %v2277_v35, 8.507059e+37  ;;  %9788 = vpow2.f32 %v7947_v44  ;;  %v1797_v41 = vpop.f32.mrf.mxu0  ;;  %v1811_v42 = vpop.f32.mrf.mxu1 }
 0x15a   : > { %v1397_v46 = vcvt.s32.f32 %v1013_v22  ;;  %v808_v53 = vunpack.c.3.s8 %v10833_v39  ;;  %v988_v54 = vunpack.c.2.s8 %v10838_v43  ;;  %v1409_v58 = vcvt.s32.f32 %v1025_v49  ;;  %v1825_v44 = vpop.f32.mrf.mxu2 }
 0x15b   : > { %v9785_v56 = vpop.eup %9784  ;;  %2031 = vmatpush.bf16.msrb.mxu1 %v1660_v47  ;;  %v1565_v57 = vpack.c.bf16 %v1217_v48, %v1205_v45  ;;  %v1180_v59 = vcvt.s32.f32 %v796_v50  ;;  %v1000_v51 = vunpack.c.3.s8 %v10838_v43  ;;  %v797_v5 = vunpack.c.2.s8 %v10850_v55  ;;  %v1839_v45 = vpop.f32.mrf.mxu3 }
 0x15c   : > { %v2269_v63 = vmul.f32 %v9785_v56, %v10815_v26  ;;  %vm2274_vm2 = vweird.f32 %v9785_v56  ;;  %v1192_v0 = vcvt.s32.f32 %v808_v53  ;;  %v1372_v1 = vcvt.s32.f32 %v988_v54 }
 0x15d   : > { %2045 = vmatpush.bf16.msrb.mxu2 %v1565_v57  ;;  %v1661_v3 = vpack.c.bf16 %v1409_v58, %v1397_v46  ;;  %v1384_v4 = vcvt.s32.f32 %v1000_v51  ;;  %v809_v6 = vunpack.c.3.s8 %v10850_v55  ;;  %v989_v13 = vunpack.c.2.s8 %v10853_v60  ;;  %vm10865_vm3 = vmor %vm2273_vm0, %vm2274_vm2 }
 0x15e   : > { %v9787_v9 = vpop.eup %9786  ;;  %v2270_v10 = vsub.f32 1.0, %v2269_v63  ;;  %v1552_v12 = vpack.c.bf16 %v1192_v0, %v1180_v59  ;;  %v1001_v15 = vunpack.c.3.s8 %v10853_v60  ;;  %v1181_v20 = vcvt.s32.f32 %v797_v5 }
 0x15f   : > { %v10860_v17 = vadd.f32 1.0, %v9787_v9  ;;  %2059 = vmatpush.bf16.msrb.mxu3 %v1661_v3  ;;  %v1648_v18 = vpack.c.bf16 %v1384_v4, %v1372_v1  ;;  %v1193_v21 = vcvt.s32.f32 %v809_v6  ;;  %v9789_v23 = vpop.eup %9788  ;;  %v1373_v25 = vcvt.s32.f32 %v989_v13 }
 0x160   : > { %v2271_v24 = vmul.f32 %v9785_v56, %v2270_v10  ;;  %2018 = vmatpush.bf16.msrb.mxu0 %v1552_v12  ;;  %v1385_v27 = vcvt.s32.f32 %v1001_v15  ;;  %v1786_v28 = vadd.f32 %v1785_v62, %v1771_v61  ;;  %v2280_v31 = vor.u32 1.1754944e-38, %v2279_v40 }
 0x161   : > { %9790 = vrcp.f32 %v10860_v17  ;;  %v2292_v34 = vand.u32 2147483647, %v10860_v17  ;;  %v2294_v32 = vand.u32 2147483648, %v10860_v17  ;;  %2032 = vmatpush.bf16.msrb.mxu1 %v1648_v18  ;;  %v10872_v19 = vadd.f32 1.0, %v9789_v23  ;;  %v1813_v23 = vpop.f32.mrf.mxu1 }
 0x162   : > { %v2272_v35 = vadd.f32 %v9785_v56, %v2271_v24  ;;  %v1553_v37 = vpack.c.bf16 %v1193_v21, %v1181_v20  ;;  %v1649_v38 = vpack.c.bf16 %v1385_v27, %v1373_v25  ;;  %vm2288_vm4 = vweird.f32 %v10860_v17  ;;  %v1799_v21 = vpop.f32.mrf.mxu0 }
 0x163   : > { %v2109_v26 = vmul.f32 %v2073_v14, %v1786_v28  ;;  %v772_v40 = vunpack.c.0.s8 %v10833_v39  ;;  %v10880_v47 = vor.u32 1.1754944e-38, %v2294_v32  ;;  %9792 = vrcp.f32 %v10872_v19  ;;  %v1827_v28 = vpop.f32.mrf.mxu2  ;;  %v1841_v29 = vpop.f32.mrf.mxu3 }
 0x164   : > { %v2276_v22 = vsel %vm10865_vm3, %v9785_v56, %v2272_v35  ;;  %v2457_v48 = vand.u32 2147483647, %v10872_v19  ;;  %2046 = vmatpush.bf16.msrb.mxu2 %v1553_v37  ;;  %2060 = vmatpush.bf16.msrb.mxu3 %v1649_v38  ;;  %v2459_v14 = vand.u32 2147483648, %v10872_v19  ;;  %v784_v46 = vunpack.c.1.s8 %v10833_v39 }
 0x165   : > { %v2281_v49 = vsel %vm10844_vm1, %v2280_v31, %v2276_v22  ;;  %v10889_v50 = vadd.f32 %v2125_v16, %v2109_v26  ;;  %vm10893_vm5 = vcmp.eq.f32.partialorder %v2292_v34, 8.507059e+37  ;;  %vm2453_vm6 = vweird.f32 %v10872_v19 }
 0x166   : > { %v2628_v53 = vmul.f32 %v2281_v49, %v10791_v33  ;;  %v1156_v56 = vcvt.s32.f32 %v772_v40  ;;  %v964_v52 = vunpack.c.0.s8 %v10838_v43  ;;  %v10899_v58 = vor.u32 1.1754944e-38, %v2459_v14 }
 0x167   : > { %v9791_v57 = vpop.eup %9790  ;;  %v7948_v59 = vmul.f32 -1.442695, %v10889_v50  ;;  %v1168_v16 = vcvt.s32.f32 %v784_v46  ;;  %v976_v51 = vunpack.c.1.s8 %v10838_v43  ;;  %v773_v61 = vunpack.c.0.s8 %v10850_v55 }
 0x168   : > { %2652 = vst [vmem:[#allocation2] sm:$0xff] %v2628_v53  ;;  %v2284_v33 = vmul.f32 %v9791_v57, %v10860_v17  ;;  %vm2289_vm7 = vweird.f32 %v9791_v57  ;;  %v1348_v39 = vcvt.s32.f32 %v964_v52  ;;  %vm10905_vm8 = vcmp.eq.f32.partialorder %v2457_v48, 8.507059e+37 }
 0x169   : > { %9794 = vpow2.f32 %v7948_v59  ;;  %v1540_v63 = vpack.c.bf16 %v1168_v16, %v1156_v56  ;;  %v1360_v0 = vcvt.s32.f32 %v976_v51  ;;  %v785_v1 = vunpack.c.1.s8 %v10850_v55  ;;  %v9793_v3 = vpop.eup %9792  ;;  %vm10916_vm10 = vmor %vm2288_vm4, %vm2289_vm7 }
 0x16a   : > { %v2285_v4 = vsub.f32 1.0, %v2284_v33  ;;  %v1157_v5 = vcvt.s32.f32 %v773_v61  ;;  %v965_v43 = vunpack.c.0.s8 %v10853_v60  ;;  %v977_v6 = vunpack.c.1.s8 %v10853_v60 }
 0x16b   : > { %v2449_v9 = vmul.f32 %v9793_v3, %v10872_v19  ;;  %vm2454_vm9 = vweird.f32 %v9793_v3  ;;  %2019 = vmatpush.bf16.msrb.mxu0 %v1540_v63  ;;  %v1636_v10 = vpack.c.bf16 %v1360_v0, %v1348_v39  ;;  %v1169_v12 = vcvt.s32.f32 %v785_v1  ;;  %v1867_v39 = vpop.f32.mrf.mxu1 }
 0x16c   : > { %v2286_v13 = vmul.f32 %v9791_v57, %v2285_v4  ;;  %v1349_v15 = vcvt.s32.f32 %v965_v43  ;;  %v1361_v18 = vcvt.s32.f32 %v977_v6  ;;  %v1812_v20 = vadd.f32 %v1811_v42, %v1797_v41  ;;  %vm10930_vm11 = vmor %vm2453_vm6, %vm2454_vm9 }
 0x16d   : > { %v2450_v60 = vsub.f32 1.0, %v2449_v9  ;;  %2033 = vmatpush.bf16.msrb.mxu1 %v1636_v10  ;;  %v1541_v24 = vpack.c.bf16 %v1169_v12, %v1157_v5  ;;  %v2074_v25 = vperm.slane %v10775_v2, 2  ;;  %v2126_v27 = vperm.slane %v10778_v8, 2 }
 0x16e   : > { %v2287_v31 = vadd.f32 %v9791_v57, %v2286_v13  ;;  %v1637_v34 = vpack.c.bf16 %v1361_v18, %v1349_v15  ;;  %2020 = vmatmul.bf16.vlgmr.msrb.gmra.mxu0 %v10740_v7  ;;  %v1840_v32 = vadd.f32 %v1839_v45, %v1825_v44  ;;  %v2075_v17 = vperm.slane %v10775_v2, 3 }
 0x16f   : > { %v9795_v35 = vpop.eup %9794  ;;  %v2451_v37 = vmul.f32 %v9793_v3, %v2450_v60  ;;  %2047 = vmatpush.bf16.msrb.mxu2 %v1541_v24  ;;  %v2098_v38 = vmul.f32 %v2074_v25, %v1812_v20  ;;  %v2127_v41 = vperm.slane %v10778_v8, 3  ;;  %v1814_v42 = vadd.f32 %v1813_v23, %v1799_v21  ;;  %v1881_v55 = vpop.f32.mrf.mxu2 }
 0x170   : > { %v2291_v26 = vsel %vm10916_vm10, %v9791_v57, %v2287_v31  ;;  %v2257_v44 = vadd.f32 1.0, %v9795_v35  ;;  %2061 = vmatpush.bf16.msrb.mxu3 %v1637_v34  ;;  %2034 = vmatmul.bf16.vlgmr.msrb.gmra.mxu1 %v10742_v11  ;;  %v2099_v45 = vmul.f32 %v2075_v17, %v1840_v32  ;;  %v1842_v22 = vadd.f32 %v1841_v29, %v1827_v28  ;;  %v1895_v60 = vpop.f32.mrf.mxu3 }
 0x171   : > { %v2296_v48 = vsel %vm10893_vm5, %v10880_v47, %v2291_v26  ;;  %v2452_v49 = vadd.f32 %v9793_v3, %v2451_v37  ;;  %v10938_v14 = vadd.f32 %v2126_v27, %v2098_v38  ;;  %v2110_v46 = vmul.f32 %v2074_v25, %v1814_v42 }
 0x172   : > { %v2629_v19 = vmul.f32 %v2296_v48, %v10822_v30  ;;  %9796 = vrcp.f32 %v2257_v44  ;;  %2048 = vmatmul.bf16.vlgmr.msrb.gmra.mxu2 %v10740_v7  ;;  %v10946_v52 = vadd.f32 %v2127_v41, %v2099_v45  ;;  %v2111_v30 = vmul.f32 %v2075_v17, %v1842_v22 }
 0x173   : > { %v2456_v53 = vsel %vm10930_vm11, %v9793_v3, %v2452_v49  ;;  %2062 = vmatmul.bf16.vlgmr.msrb.gmra.mxu3 %v10742_v11  ;;  %v7937_v56 = vmul.f32 -1.442695, %v10938_v14  ;;  %v10951_v54 = vadd.f32 %v2126_v27, %v2110_v46  ;;  %v2076_v61 = vperm.slane %v10775_v2, 4  ;;  %v1869_v45 = vpop.f32.mrf.mxu1 }
 0x174   : > { %2653 = vst [vmem:[#allocation2 + $0x8] sm:$0xff] %v2629_v19  ;;  %v2461_v47 = vsel %vm10905_vm8, %v10899_v58, %v2456_v53  ;;  %v7938_v7 = vmul.f32 -1.442695, %v10946_v52  ;;  %v10956_v11 = vadd.f32 %v2127_v41, %v2111_v30  ;;  %v1853_v58 = vpop.f32.mrf.mxu0  ;;  %v2472_v62 = vand.u32 2147483647, %v2257_v44 }
 0x175   : > { %v2640_v57 = vmul.f32 %v2461_v47, %v10831_v36  ;;  %9798 = vpow2.f32 %v7937_v56  ;;  %v7949_v59 = vmul.f32 -1.442695, %v10951_v54  ;;  %v2474_v36 = vand.u32 2147483648, %v2257_v44 }
 0x176   : > { %9800 = vpow2.f32 %v7938_v7  ;;  %v7950_v51 = vmul.f32 -1.442695, %v10956_v11  ;;  %v1868_v63 = vadd.f32 %v1867_v39, %v1853_v58  ;;  %vm2468_vm12 = vweird.f32 %v2257_v44 }
 0x177   : > { %2656 = vst [vmem:[#allocation2 + $0x20] sm:$0xff] %v2640_v57  ;;  %9802 = vpow2.f32 %v7949_v59  ;;  %v2128_v5 = vperm.slane %v10778_v8, 4  ;;  %vm10969_vm15 = vcmp.eq.f32.partialorder %v2472_v62, 8.507059e+37  ;;  %v2475_v13 = vor.u32 1.1754944e-38, %v2474_v36  ;;  %v1883_v47 = vpop.f32.mrf.mxu2 }
 0x178   : > { %v9797_v16 = vpop.eup %9796  ;;  %9804 = vpow2.f32 %v7950_v51  ;;  %v2100_v4 = vmul.f32 %v2076_v61, %v1868_v63  ;;  %v1896_v28 = vadd.f32 %v1895_v60, %v1881_v55  ;;  %v2077_v29 = vperm.slane %v10775_v2, 5  ;;  %v1897_v30 = vpop.f32.mrf.mxu3 }
 0x179   : > { %v2464_v33 = vmul.f32 %v9797_v16, %v2257_v44  ;;  %vm2469_vm13 = vweird.f32 %v9797_v16  ;;  %v2129_v53 = vperm.slane %v10778_v8, 5 }
 0x17a   : > { %vm10965_vm14 = vmor %vm2468_vm12, %vm2469_vm13  ;;  %v10982_v24 = vadd.f32 %v2128_v5, %v2100_v4  ;;  %v2101_v22 = vmul.f32 %v2077_v29, %v1896_v28 }
 0x17b   : > { %v9799_v0 = vpop.eup %9798  ;;  %v2465_v1 = vsub.f32 1.0, %v2464_v33 }
 0x17c   : > { %v10960_v3 = vadd.f32 1.0, %v9799_v0  ;;  %v9801_v43 = vpop.eup %9800  ;;  %v7939_v40 = vmul.f32 -1.442695, %v10982_v24  ;;  %v1855_v44 = vpop.f32.mrf.mxu0  ;;  %v11021_v39 = vadd.f32 %v2129_v53, %v2101_v22  ;;  %v1898_v0 = vadd.f32 %v1897_v30, %v1883_v47 }
 0x17d   : > { %v2466_v6 = vmul.f32 %v9797_v16, %v2465_v1  ;;  %v9803_v9 = vpop.eup %9802  ;;  %v10976_v21 = vadd.f32 1.0, %v9801_v43  ;;  %v1870_v56 = vadd.f32 %v1869_v45, %v1855_v44  ;;  %v2078_v44 = vperm.slane %v10775_v2, 6 }
 0x17e   : > { %9806 = vrcp.f32 %v10960_v3  ;;  %v2307_v15 = vand.u32 2147483647, %v10960_v3  ;;  %v2309_v20 = vand.u32 2147483648, %v10960_v3  ;;  %v10978_v23 = vadd.f32 1.0, %v9803_v9  ;;  %v9805_v25 = vpop.eup %9804 }
 0x17f   : > { %v2467_v18 = vadd.f32 %v9797_v16, %v2466_v6  ;;  %9808 = vrcp.f32 %v10976_v21  ;;  %v2322_v34 = vand.u32 2147483647, %v10976_v21  ;;  %v2324_v32 = vand.u32 2147483648, %v10976_v21 }
 0x180   : > { %9810 = vrcp.f32 %v10978_v23  ;;  %vm2303_vm0 = vweird.f32 %v10960_v3  ;;  %vm10995_vm1 = vcmp.eq.f32.partialorder %v2307_v15, 8.507059e+37  ;;  %v2310_v37 = vor.u32 1.1754944e-38, %v2309_v20 }
 0x181   : > { %v2471_v27 = vsel %vm10965_vm14, %v9797_v16, %v2467_v18  ;;  %v2487_v41 = vand.u32 2147483647, %v10978_v23  ;;  %v2489_v42 = vand.u32 2147483648, %v10978_v23  ;;  %v11001_v26 = vadd.f32 1.0, %v9805_v25 }
 0x182   : > { %v2476_v31 = vsel %vm10969_vm15, %v2475_v13, %v2471_v27  ;;  %vm2318_vm2 = vweird.f32 %v10976_v21  ;;  %vm2483_vm3 = vweird.f32 %v10978_v23  ;;  %vm11007_vm5 = vcmp.eq.f32.partialorder %v2322_v34, 8.507059e+37 }
 0x183   : > { %v2641_v17 = vmul.f32 %v2476_v31, %v10889_v50  ;;  %v2325_v49 = vor.u32 1.1754944e-38, %v2324_v32  ;;  %9812 = vrcp.f32 %v11001_v26  ;;  %vm11014_vm6 = vcmp.eq.f32.partialorder %v2487_v41, 8.507059e+37 }
 0x184   : > { %v9807_v38 = vpop.eup %9806  ;;  %9814 = vpow2.f32 %v7939_v40  ;;  %v2490_v16 = vor.u32 1.1754944e-38, %v2489_v42  ;;  %vm2498_vm7 = vweird.f32 %v11001_v26  ;;  %v2502_v58 = vand.u32 2147483647, %v11001_v26 }
 0x185   : > { %2657 = vst [vmem:[#allocation2 + $0x28] sm:$0xff] %v2641_v17  ;;  %v2299_v50 = vmul.f32 %v9807_v38, %v10960_v3  ;;  %vm2304_vm4 = vweird.f32 %v9807_v38  ;;  %v9809_v46 = vpop.eup %9808  ;;  %v2112_v63 = vmul.f32 %v2076_v61, %v1870_v56  ;;  %v7940_v43 = vmul.f32 -1.442695, %v11021_v39 }
 0x186   : > { %v9811_v57 = vpop.eup %9810  ;;  %v2314_v7 = vmul.f32 %v9809_v46, %v10976_v21  ;;  %vm11026_vm8 = vmor %vm2303_vm0, %vm2304_vm4  ;;  %vm2319_vm9 = vweird.f32 %v9809_v46  ;;  %v2504_v10 = vand.u32 2147483648, %v11001_v26  ;;  %v2113_v12 = vmul.f32 %v2077_v29, %v1898_v0 }
 0x187   : > { %v2300_v19 = vsub.f32 1.0, %v2299_v50  ;;  %v2479_v33 = vmul.f32 %v9811_v57, %v10978_v23  ;;  %vm2484_vm10 = vweird.f32 %v9811_v57  ;;  %v11036_v3 = vadd.f32 %v2128_v5, %v2112_v63  ;;  %vm11042_vm11 = vmor %vm2318_vm2, %vm2319_vm9 }
 0x188   : > { %v2315_v36 = vsub.f32 1.0, %v2314_v7  ;;  %vm2485_vm13 = vmor %vm2483_vm3, %vm2484_vm10  ;;  %9816 = vpow2.f32 %v7940_v43  ;;  %v2505_v35 = vor.u32 1.1754944e-38, %v2504_v10  ;;  %vm2503_vm15 = vcmp.eq.f32.partialorder %v2502_v58, 8.507059e+37 }
 0x189   : > { %v2301_v51 = vmul.f32 %v9807_v38, %v2300_v19  ;;  %v2480_v4 = vsub.f32 1.0, %v2479_v33  ;;  %v9813_v6 = vpop.eup %9812  ;;  %v7951_v28 = vmul.f32 -1.442695, %v11036_v3  ;;  %v11069_v41 = vadd.f32 %v2129_v53, %v2113_v12 }
 0x18a   : > { %v2316_v9 = vmul.f32 %v9809_v46, %v2315_v36  ;;  %v9815_v13 = vpop.eup %9814  ;;  %v2494_v20 = vmul.f32 %v9813_v6, %v11001_v26  ;;  %vm2499_vm12 = vweird.f32 %v9813_v6  ;;  %v2130_v47 = vperm.slane %v10778_v8, 6 }
 0x18b   : > { %v2302_v1 = vadd.f32 %v9807_v38, %v2301_v51  ;;  %v2481_v18 = vmul.f32 %v9811_v57, %v2480_v4  ;;  %v2248_v60 = vadd.f32 1.0, %v9815_v13  ;;  %vm11064_vm14 = vmor %vm2498_vm7, %vm2499_vm12  ;;  %v7952_v50 = vmul.f32 -1.442695, %v11069_v41 }
 0x18c   : > { %v2317_v5 = vadd.f32 %v9809_v46, %v2316_v9  ;;  %v2495_v27 = vsub.f32 1.0, %v2494_v20  ;;  %v2079_v36 = vperm.slane %v10775_v2, 7  ;;  %v2131_v12 = vperm.slane %v10778_v8, 7 }
 0x18d   : > { %v2306_v15 = vsel %vm11026_vm8, %v9807_v38, %v2302_v1  ;;  %v2482_v25 = vadd.f32 %v9811_v57, %v2481_v18  ;;  %9818 = vrcp.f32 %v2248_v60  ;;  %vm2333_vm0 = vweird.f32 %v2248_v60 }
 0x18e   : > { %v2311_v55 = vsel %vm10995_vm1, %v2310_v37, %v2306_v15  ;;  %v2321_v29 = vsel %vm11042_vm11, %v9809_v46, %v2317_v5  ;;  %v2496_v32 = vmul.f32 %v9813_v6, %v2495_v27  ;;  %9820 = vpow2.f32 %v7951_v28  ;;  %v9817_v42 = vpop.eup %9816 }
 0x18f   : > { %v2630_v21 = vmul.f32 %v2311_v55, %v10938_v14  ;;  %v2326_v31 = vsel %vm11007_vm5, %v2325_v49, %v2321_v29  ;;  %v2486_v34 = vsel %vm2485_vm13, %v9811_v57, %v2482_v25  ;;  %v1923_v40 = vpop.f32.mrf.mxu1  ;;  %v2249_v45 = vadd.f32 1.0, %v9817_v42 }
 0x190   : > { %v2631_v23 = vmul.f32 %v2326_v31, %v10946_v52  ;;  %v2491_v17 = vsel %vm11014_vm6, %v2490_v16, %v2486_v34  ;;  %v2497_v38 = vadd.f32 %v9813_v6, %v2496_v32  ;;  %v1909_v52 = vpop.f32.mrf.mxu0  ;;  %v2337_v53 = vand.u32 2147483647, %v2248_v60 }
 0x191   : > { %2654 = vst [vmem:[#allocation2 + $0x10] sm:$0xff] %v2630_v21  ;;  %v2642_v37 = vmul.f32 %v2491_v17, %v10951_v54  ;;  %v1924_v22 = vadd.f32 %v1923_v40, %v1909_v52  ;;  %9822 = vrcp.f32 %v2249_v45  ;;  %v2339_v56 = vand.u32 2147483648, %v2248_v60 }
 0x192   : > { %2655 = vst [vmem:[#allocation2 + $0x18] sm:$0xff] %v2631_v23  ;;  %v2501_v26 = vsel %vm11064_vm14, %v9813_v6, %v2497_v38  ;;  %9824 = vpow2.f32 %v7952_v50  ;;  %vm11083_vm3 = vcmp.eq.f32.partialorder %v2337_v53, 8.507059e+37  ;;  %vm2348_vm4 = vweird.f32 %v2249_v45 }
 0x193   : > { %2658 = vst [vmem:[#allocation2 + $0x30] sm:$0xff] %v2642_v37  ;;  %v9819_v48 = vpop.eup %9818  ;;  %v2506_v54 = vsel %vm2503_vm15, %v2505_v35, %v2501_v26  ;;  %v2102_v7 = vmul.f32 %v2078_v44, %v1924_v22  ;;  %v2340_v51 = vor.u32 1.1754944e-38, %v2339_v56  ;;  %v2352_v1 = vand.u32 2147483647, %v2249_v45 }
 0x194   : > { %v2643_v49 = vmul.f32 %v2506_v54, %v10956_v11  ;;  %v2329_v46 = vmul.f32 %v9819_v48, %v2248_v60  ;;  %v9821_v19 = vpop.eup %9820  ;;  %vm2334_vm1 = vweird.f32 %v9819_v48  ;;  %v2354_v9 = vand.u32 2147483648, %v2249_v45 }
 0x195   : > { %v2260_v57 = vadd.f32 1.0, %v9821_v19  ;;  %vm11079_vm2 = vmor %vm2333_vm0, %vm2334_vm1  ;;  %v11087_v33 = vadd.f32 %v2130_v47, %v2102_v7  ;;  %vm11104_vm7 = vcmp.eq.f32.partialorder %v2352_v1, 8.507059e+37 }
 0x196   : > { %2659 = vst [vmem:[#allocation2 + $0x38] sm:$0xff] %v2643_v49  ;;  %v2330_v30 = vsub.f32 1.0, %v2329_v46  ;;  %v2355_v32 = vor.u32 1.1754944e-38, %v2354_v9 }
 0x197   : > { %9826 = vrcp.f32 %v2260_v57  ;;  %v1937_v58 = vpop.f32.mrf.mxu2  ;;  %v9823_v63 = vpop.eup %9822  ;;  %v7941_v10 = vmul.f32 -1.442695, %v11087_v33  ;;  %v2517_v8 = vand.u32 2147483647, %v2260_v57  ;;  %v2519_v29 = vand.u32 2147483648, %v2260_v57 }
 0x198   : > { %v2331_v59 = vmul.f32 %v9819_v48, %v2330_v30  ;;  %v1951_v62 = vpop.f32.mrf.mxu3  ;;  %v9825_v43 = vpop.eup %9824  ;;  %v2344_v6 = vmul.f32 %v9823_v63, %v2249_v45  ;;  %vm2349_vm5 = vweird.f32 %v9823_v63  ;;  %vm2513_vm8 = vweird.f32 %v2260_v57 }
 0x199   : > { %v1952_v4 = vadd.f32 %v1951_v62, %v1937_v58  ;;  %v1911_v13 = vpop.f32.mrf.mxu0  ;;  %v1925_v15 = vpop.f32.mrf.mxu1  ;;  %v2261_v18 = vadd.f32 1.0, %v9825_v43  ;;  %9828 = vpow2.f32 %v7941_v10  ;;  %vm11100_vm6 = vmor %vm2348_vm4, %vm2349_vm5  ;;  %vm11112_vm10 = vcmp.eq.f32.partialorder %v2517_v8, 8.507059e+37 }
 0x19a   : > { %v2332_v0 = vadd.f32 %v9819_v48, %v2331_v59  ;;  %v1926_v55 = vadd.f32 %v1925_v15, %v1911_v13  ;;  %v2345_v60 = vsub.f32 1.0, %v2344_v6  ;;  %v11141_v15 = vld [vmem:[#allocation9 + $0x8] sm:$0xf] }
 0x19b   : > { %v2103_v20 = vmul.f32 %v2079_v36, %v1952_v4  ;;  %9830 = vrcp.f32 %v2261_v18  ;;  %vm2528_vm12 = vweird.f32 %v2261_v18  ;;  %v2534_v30 = vand.u32 2147483648, %v2261_v18 }
 0x19c   : > { %v2336_v61 = vsel %vm11079_vm2, %v9819_v48, %v2332_v0  ;;  %v2346_v27 = vmul.f32 %v9823_v63, %v2345_v60 }
 0x19d   : > { %v2341_v5 = vsel %vm11083_vm3, %v2340_v51, %v2336_v61  ;;  %v9827_v21 = vpop.eup %9826  ;;  %v11108_v23 = vadd.f32 %v2131_v12, %v2103_v20  ;;  %v2535_v62 = vor.u32 1.1754944e-38, %v2534_v30  ;;  %v2081_v30 = vperm.slane %v11141_v15, 1 }
 0x19e   : > { %v2632_v25 = vmul.f32 %v2341_v5, %v10982_v24  ;;  %v2509_v28 = vmul.f32 %v9827_v21, %v2260_v57  ;;  %v2114_v24 = vmul.f32 %v2078_v44, %v1926_v55  ;;  %v2347_v17 = vadd.f32 %v9823_v63, %v2346_v27  ;;  %v11147_v55 = vld [vmem:[#allocation10 + $0x8] sm:$0xf] }
 0x19f   : > { %vm2514_vm9 = vweird.f32 %v9827_v21  ;;  %v1939_v35 = vpop.f32.mrf.mxu2  ;;  %v7942_v42 = vmul.f32 -1.442695, %v11108_v23  ;;  %v9829_v40 = vpop.eup %9828  ;;  %v2520_v44 = vor.u32 1.1754944e-38, %v2519_v29 }
 0x1a0   : > { %2661 = vst [vmem:[#allocation2 + $0x40] sm:$0xff] %v2632_v25  ;;  %v2510_v14 = vsub.f32 1.0, %v2509_v28  ;;  %v1953_v37 = vpop.f32.mrf.mxu3  ;;  %v11117_v52 = vadd.f32 %v2130_v47, %v2114_v24  ;;  %v2351_v26 = vsel %vm11100_vm6, %v9823_v63, %v2347_v17  ;;  %vm11123_vm11 = vmor %vm2513_vm8, %vm2514_vm9  ;;  %v2250_v49 = vadd.f32 1.0, %v9829_v40 }
 0x1a1   : > { %v1954_v50 = vadd.f32 %v1953_v37, %v1939_v35  ;;  %v9831_v22 = vpop.eup %9830  ;;  %v2356_v48 = vsel %vm11104_vm7, %v2355_v32, %v2351_v26  ;;  %9832 = vpow2.f32 %v7942_v42  ;;  %v2532_v47 = vand.u32 2147483647, %v2261_v18 }
 0x1a2   : > { %v2511_v45 = vmul.f32 %v9827_v21, %v2510_v14  ;;  %v7953_v46 = vmul.f32 -1.442695, %v11117_v52  ;;  %v2633_v19 = vmul.f32 %v2356_v48, %v11021_v39  ;;  %v2524_v56 = vmul.f32 %v9831_v22, %v2261_v18 }
 0x1a3   : > { %vm2529_vm13 = vweird.f32 %v9831_v22  ;;  %9834 = vrcp.f32 %v2250_v49  ;;  %v2115_v59 = vmul.f32 %v2079_v36, %v1954_v50  ;;  %vm2533_vm15 = vcmp.eq.f32.partialorder %v2532_v47, 8.507059e+37 }
 0x1a4   : > { %v2512_v53 = vadd.f32 %v9827_v21, %v2511_v45  ;;  %2662 = vst [vmem:[#allocation2 + $0x48] sm:$0xff] %v2633_v19  ;;  %v2525_v7 = vsub.f32 1.0, %v2524_v56  ;;  %9836 = vpow2.f32 %v7953_v46  ;;  %vm2530_vm14 = vmor %vm2528_vm12, %vm2529_vm13  ;;  %vm2363_vm0 = vweird.f32 %v2250_v49 }
 0x1a5   : > { %v11136_v51 = vadd.f32 %v2131_v12, %v2115_v59  ;;  %v2367_v6 = vand.u32 2147483647, %v2250_v49  ;;  %v2369_v9 = vand.u32 2147483648, %v2250_v49  ;;  %v2132_v32 = vperm.slane %v11147_v55, 0 }
 0x1a6   : > { %v2516_v57 = vsel %vm11123_vm11, %v9827_v21, %v2512_v53  ;;  %v2526_v16 = vmul.f32 %v9831_v22, %v2525_v7 }
 0x1a7   : > { %v2521_v11 = vsel %vm11112_vm10, %v2520_v44, %v2516_v57  ;;  %v9833_v58 = vpop.eup %9832  ;;  %v7954_v1 = vmul.f32 -1.442695, %v11136_v51  ;;  %v2370_v20 = vor.u32 1.1754944e-38, %v2369_v9  ;;  %vm2368_vm3 = vcmp.eq.f32.partialorder %v2367_v6, 8.507059e+37 }
 0x1a8   : > { %v2644_v39 = vmul.f32 %v2521_v11, %v11036_v3  ;;  %v2527_v63 = vadd.f32 %v9831_v22, %v2526_v16  ;;  %v2251_v0 = vadd.f32 1.0, %v9833_v58 }
 0x1a9   : > { %v9835_v2 = vpop.eup %9834 }
 0x1aa   : > { %2665 = vst [vmem:[#allocation2 + $0x60] sm:$0xff] %v2644_v39  ;;  %v9837_v36 = vpop.eup %9836  ;;  %v2531_v4 = vsel %vm2530_vm14, %v9831_v22, %v2527_v63  ;;  %v2359_v43 = vmul.f32 %v9835_v2, %v2250_v49  ;;  %9838 = vrcp.f32 %v2251_v0  ;;  %vm2364_vm1 = vweird.f32 %v9835_v2 }
 0x1ab   : > { %v2536_v3 = vsel %vm2533_vm15, %v2535_v62, %v2531_v4  ;;  %v2262_v13 = vadd.f32 1.0, %v9837_v36  ;;  %9840 = vpow2.f32 %v7954_v1  ;;  %vm11143_vm2 = vmor %vm2363_vm0, %vm2364_vm1  ;;  %vm2378_vm4 = vweird.f32 %v2251_v0 }
 0x1ac   : > { %v2645_v10 = vmul.f32 %v2536_v3, %v11069_v41  ;;  %v2360_v12 = vsub.f32 1.0, %v2359_v43  ;;  %v2080_v41 = vperm.slane %v11141_v15, 0  ;;  %v2382_v8 = vand.u32 2147483647, %v2251_v0 }
 0x1ad   : > { %9842 = vrcp.f32 %v2262_v13  ;;  %v2384_v31 = vand.u32 2147483648, %v2251_v0  ;;  %v2547_v26 = vand.u32 2147483647, %v2262_v13  ;;  %v2549_v22 = vand.u32 2147483648, %v2262_v13 }
 0x1ae   : > { %2666 = vst [vmem:[#allocation2 + $0x68] sm:$0xff] %v2645_v10  ;;  %v2361_v61 = vmul.f32 %v9835_v2, %v2360_v12  ;;  %vm11159_vm7 = vcmp.eq.f32.partialorder %v2382_v8, 8.507059e+37  ;;  %vm2543_vm8 = vweird.f32 %v2262_v13  ;;  %v2133_v1 = vperm.slane %v11147_v55, 1 }
 0x1af   : > { %v2385_v50 = vor.u32 1.1754944e-38, %v2384_v31  ;;  %vm11168_vm10 = vcmp.eq.f32.partialorder %v2547_v26, 8.507059e+37  ;;  %v2550_v11 = vor.u32 1.1754944e-38, %v2549_v22 }
 0x1b0   : > { %v9839_v5 = vpop.eup %9838  ;;  %v2362_v60 = vadd.f32 %v9835_v2, %v2361_v61 }
 0x1b1   : > { %v2374_v25 = vmul.f32 %v9839_v5, %v2251_v0  ;;  %v9841_v28 = vpop.eup %9840  ;;  %vm2379_vm5 = vweird.f32 %v9839_v5 }
 0x1b2   : > { %v2366_v29 = vsel %vm11143_vm2, %v9835_v2, %v2362_v60  ;;  %v2263_v14 = vadd.f32 1.0, %v9841_v28  ;;  %vm11155_vm6 = vmor %vm2378_vm4, %vm2379_vm5 }
 0x1b3   : > { %v2371_v24 = vsel %vm2368_vm3, %v2370_v20, %v2366_v29  ;;  %v2375_v17 = vsub.f32 1.0, %v2374_v25  ;;  %v9843_v35 = vpop.eup %9842 }
 0x1b4   : > { %v2634_v37 = vmul.f32 %v2371_v24, %v11087_v33  ;;  %v2539_v40 = vmul.f32 %v9843_v35, %v2262_v13  ;;  %9844 = vrcp.f32 %v2263_v14  ;;  %vm2544_vm9 = vweird.f32 %v9843_v35 }
 0x1b5   : > { %v2376_v42 = vmul.f32 %v9839_v5, %v2375_v17  ;;  %vm11175_vm11 = vmor %vm2543_vm8, %vm2544_vm9  ;;  %vm2558_vm12 = vweird.f32 %v2263_v14  ;;  %v2562_v43 = vand.u32 2147483647, %v2263_v14  ;;  %v2564_v3 = vand.u32 2147483648, %v2263_v14 }
 0x1b6   : > { %v1965_v21 = vpop.f32.mrf.mxu0  ;;  %2663 = vst [vmem:[#allocation2 + $0x50] sm:$0xff] %v2634_v37  ;;  %v2540_v54 = vsub.f32 1.0, %v2539_v40 }
 0x1b7   : > { %v1979_v27 = vpop.f32.mrf.mxu1  ;;  %v2377_v33 = vadd.f32 %v9839_v5, %v2376_v42  ;;  %vm2563_vm15 = vcmp.eq.f32.partialorder %v2562_v43, 8.507059e+37 }
 0x1b8   : > { %v1980_v34 = vadd.f32 %v1979_v27, %v1965_v21  ;;  %v2541_v53 = vmul.f32 %v9843_v35, %v2540_v54 }
 0x1b9   : > { %v2381_v19 = vsel %vm11155_vm6, %v9839_v5, %v2377_v33  ;;  %v2565_v5 = vor.u32 1.1754944e-38, %v2564_v3 }
 0x1ba   : > { %v2104_v38 = vmul.f32 %v2080_v41, %v1980_v34  ;;  %v2386_v7 = vsel %vm11159_vm7, %v2385_v50, %v2381_v19  ;;  %v9845_v58 = vpop.eup %9844  ;;  %v2542_v63 = vadd.f32 %v9843_v35, %v2541_v53 }
 0x1bb   : > { %v2635_v62 = vmul.f32 %v2386_v7, %v11108_v23  ;;  %v2554_v2 = vmul.f32 %v9845_v58, %v2263_v14  ;;  %vm2559_vm13 = vweird.f32 %v9845_v58 }
 0x1bc   : > { %v11163_v48 = vadd.f32 %v2132_v32, %v2104_v38  ;;  %v2546_v4 = vsel %vm11175_vm11, %v9843_v35, %v2542_v63  ;;  %vm2560_vm14 = vmor %vm2558_vm12, %vm2559_vm13 }
 0x1bd   : > { %2664 = vst [vmem:[#allocation2 + $0x58] sm:$0xff] %v2635_v62  ;;  %v2551_v9 = vsel %vm11168_vm10, %v2550_v11, %v2546_v4  ;;  %v2555_v10 = vsub.f32 1.0, %v2554_v2 }
 0x1be   : > { %v7943_v49 = vmul.f32 -1.442695, %v11163_v48  ;;  %v1967_v46 = vpop.f32.mrf.mxu0  ;;  %v2646_v12 = vmul.f32 %v2551_v9, %v11117_v52 }
 0x1bf   : > { %v1993_v47 = vpop.f32.mrf.mxu2  ;;  %v1981_v57 = vpop.f32.mrf.mxu1  ;;  %v2556_v18 = vmul.f32 %v9845_v58, %v2555_v10 }
 0x1c0   : > { %9846 = vpow2.f32 %v7943_v49  ;;  %v2007_v39 = vpop.f32.mrf.mxu3  ;;  %v1982_v16 = vadd.f32 %v1981_v57, %v1967_v46  ;;  %2667 = vst [vmem:[#allocation2 + $0x70] sm:$0xff] %v2646_v12 }
 0x1c1   : > { %v2008_v0 = vadd.f32 %v2007_v39, %v1993_v47  ;;  %v2557_v25 = vadd.f32 %v9845_v58, %v2556_v18 }
 0x1c2   : > { %v2116_v36 = vmul.f32 %v2080_v41, %v1982_v16 }
 0x1c3   : > { %v2105_v6 = vmul.f32 %v2081_v30, %v2008_v0  ;;  %v2561_v52 = vsel %vm2560_vm14, %v9845_v58, %v2557_v25 }
 0x1c4   : > { %v11185_v23 = vadd.f32 %v2132_v32, %v2116_v36  ;;  %v2566_v28 = vsel %vm2563_vm15, %v2565_v5, %v2561_v52 }
 0x1c5   : > { %v11188_v13 = vadd.f32 %v2133_v1, %v2105_v6  ;;  %v2647_v29 = vmul.f32 %v2566_v28, %v11136_v51 }
 0x1c6   : > { %v9847_v61 = vpop.eup %9846  ;;  %v7955_v20 = vmul.f32 -1.442695, %v11185_v23 }
 0x1c7   : > { %v2252_v60 = vadd.f32 1.0, %v9847_v61  ;;  %v7944_v21 = vmul.f32 -1.442695, %v11188_v13  ;;  %v1995_v41 = vpop.f32.mrf.mxu2  ;;  %2668 = vst [vmem:[#allocation2 + $0x78] sm:$0xff] %v2647_v29 }
 0x1c8   : > { %9848 = vpow2.f32 %v7955_v20  ;;  %v2009_v8 = vpop.f32.mrf.mxu3 }
 0x1c9   : > { %9850 = vrcp.f32 %v2252_v60  ;;  %v2010_v27 = vadd.f32 %v2009_v8, %v1995_v41  ;;  %vm2393_vm0 = vweird.f32 %v2252_v60  ;;  %v2399_v38 = vand.u32 2147483648, %v2252_v60 }
 0x1ca   : > { %9852 = vpow2.f32 %v7944_v21  ;;  %v2397_v26 = vand.u32 2147483647, %v2252_v60  ;;  %v2082_v41 = vperm.slane %v11141_v15, 2  ;;  %v2134_v8 = vperm.slane %v11147_v55, 2 }
 0x1cb   : > { %v2117_v31 = vmul.f32 %v2081_v30, %v2010_v27  ;;  %v2400_v45 = vor.u32 1.1754944e-38, %v2399_v38 }
 0x1cc   : > { %vm2398_vm3 = vcmp.eq.f32.partialorder %v2397_v26, 8.507059e+37 }
 0x1cd   : > { %v11194_v32 = vadd.f32 %v2133_v1, %v2117_v31 }
 0x1ce   : > { %v9849_v34 = vpop.eup %9848 }
 0x1cf   : > { %v9851_v24 = vpop.eup %9850  ;;  %v2264_v17 = vadd.f32 1.0, %v9849_v34  ;;  %v7956_v37 = vmul.f32 -1.442695, %v11194_v32  ;;  %v2083_v34 = vperm.slane %v11141_v15, 3 }
 0x1d0   : > { %v9853_v14 = vpop.eup %9852  ;;  %v2389_v35 = vmul.f32 %v9851_v24, %v2252_v60  ;;  %vm2394_vm1 = vweird.f32 %v9851_v24 }
 0x1d1   : > { %v2253_v42 = vadd.f32 1.0, %v9853_v14  ;;  %9854 = vrcp.f32 %v2264_v17  ;;  %vm2395_vm2 = vmor %vm2393_vm0, %vm2394_vm1  ;;  %vm2573_vm4 = vweird.f32 %v2264_v17  ;;  %v2579_v19 = vand.u32 2147483648, %v2264_v17 }
 0x1d2   : > { %v2390_v40 = vsub.f32 1.0, %v2389_v35  ;;  %9856 = vpow2.f32 %v7956_v37  ;;  %v2577_v57 = vand.u32 2147483647, %v2264_v17  ;;  %v2135_v35 = vperm.slane %v11147_v55, 3 }
 0x1d3   : > { %9858 = vrcp.f32 %v2253_v42  ;;  %vm2408_vm5 = vweird.f32 %v2253_v42  ;;  %v2414_v7 = vand.u32 2147483648, %v2253_v42  ;;  %v2412_v11 = vand.u32 2147483647, %v2253_v42 }
 0x1d4   : > { %v2391_v51 = vmul.f32 %v9851_v24, %v2390_v40  ;;  %v2580_v16 = vor.u32 1.1754944e-38, %v2579_v19  ;;  %vm2578_vm11 = vcmp.eq.f32.partialorder %v2577_v57, 8.507059e+37 }
 0x1d5   : > { %v2415_v63 = vor.u32 1.1754944e-38, %v2414_v7  ;;  %vm2413_vm10 = vcmp.eq.f32.partialorder %v2412_v11, 8.507059e+37 }
 0x1d6   : > { %v2392_v44 = vadd.f32 %v9851_v24, %v2391_v51 }
 0x1d7   : > { %v9855_v50 = vpop.eup %9854 }
 0x1d8   : > { %v9857_v22 = vpop.eup %9856  ;;  %v2396_v33 = vsel %vm2395_vm2, %v9851_v24, %v2392_v44  ;;  %v2569_v54 = vmul.f32 %v9855_v50, %v2264_v17  ;;  %vm2574_vm6 = vweird.f32 %v9855_v50 }
 0x1d9   : > { %v9859_v49 = vpop.eup %9858  ;;  %v2401_v46 = vsel %vm2398_vm3, %v2400_v45, %v2396_v33  ;;  %v2265_v53 = vadd.f32 1.0, %v9857_v22  ;;  %vm2575_vm8 = vmor %vm2573_vm4, %vm2574_vm6 }
 0x1da   : > { %v2636_v56 = vmul.f32 %v2401_v46, %v11163_v48  ;;  %v2404_v47 = vmul.f32 %v9859_v49, %v2253_v42  ;;  %v2570_v30 = vsub.f32 1.0, %v2569_v54  ;;  %vm2409_vm7 = vweird.f32 %v9859_v49 }
 0x1db   : > { %9860 = vrcp.f32 %v2265_v53  ;;  %vm2410_vm9 = vmor %vm2408_vm5, %vm2409_vm7  ;;  %v2594_v10 = vand.u32 2147483648, %v2265_v53  ;;  %v2592_v61 = vand.u32 2147483647, %v2265_v53  ;;  %vm2588_vm13 = vweird.f32 %v2265_v53 }
 0x1dc   : > { %2670 = vst [vmem:[#allocation2 + $0x80] sm:$0xff] %v2636_v56  ;;  %v2405_v59 = vsub.f32 1.0, %v2404_v47  ;;  %v2571_v39 = vmul.f32 %v9855_v50, %v2570_v30 }
 0x1dd   : > { %v2595_v20 = vor.u32 1.1754944e-38, %v2594_v10  ;;  %vm2593_vm15 = vcmp.eq.f32.partialorder %v2592_v61, 8.507059e+37 }
 0x1de   : > { %v2406_v58 = vmul.f32 %v9859_v49, %v2405_v59  ;;  %v2572_v62 = vadd.f32 %v9855_v50, %v2571_v39 }
 0x1e0   : > { %v2407_v48 = vadd.f32 %v9859_v49, %v2406_v58  ;;  %v2576_v0 = vsel %vm2575_vm8, %v9855_v50, %v2572_v62 }
 0x1e1   : > { %v9861_v1 = vpop.eup %9860  ;;  %v2581_v2 = vsel %vm2578_vm11, %v2580_v16, %v2576_v0 }
 0x1e2   : > { %v2411_v36 = vsel %vm2410_vm9, %v9859_v49, %v2407_v48  ;;  %v2648_v4 = vmul.f32 %v2581_v2, %v11185_v23  ;;  %v2584_v43 = vmul.f32 %v9861_v1, %v2265_v53  ;;  %vm2589_vm12 = vweird.f32 %v9861_v1 }
 0x1e3   : > { %v2416_v3 = vsel %vm2413_vm10, %v2415_v63, %v2411_v36  ;;  %vm2590_vm14 = vmor %vm2588_vm13, %vm2589_vm12  ;;  %v10469_v49 = vmov 0.0  }
 0x1e4   : > { %v2637_v6 = vmul.f32 %v2416_v3, %v11188_v13  ;;  %2674 = vst [vmem:[#allocation2 + $0xa0] sm:$0xff] %v2648_v4  ;;  %v2585_v9 = vsub.f32 1.0, %v2584_v43 }
 0x1e5   : > { %2678 = vst [vmem:[#allocation3 + $0x30] sm:$0xff] %v10469_v49 }
 0x1e6   : > { %2671 = vst [vmem:[#allocation2 + $0x88] sm:$0xff] %v2637_v6  ;;  %v2586_v12 = vmul.f32 %v9861_v1, %v2585_v9 }
 0x1e7   : > { %2679 = vst [vmem:[#allocation3] sm:$0xff] %v10469_v49 }
 0x1e8   : > { %v2587_v18 = vadd.f32 %v9861_v1, %v2586_v12  ;;  %2680 = vst [vmem:[#allocation3 + $0x58] sm:$0xff] %v10469_v49 }
 0x1e9   : > { %2681 = vst [vmem:[#allocation3 + $0x18] sm:$0xff] %v10469_v49 }
 0x1ea   : > { %v2591_v5 = vsel %vm2590_vm14, %v9861_v1, %v2587_v18  ;;  %2682 = vst [vmem:[#allocation3 + $0x50] sm:$0xff] %v10469_v49 }
 0x1eb   : > { %v2596_v60 = vsel %vm2593_vm15, %v2595_v20, %v2591_v5  ;;  %v2021_v21 = vpop.f32.mrf.mxu0  ;;  %2683 = vst [vmem:[#allocation3 + $0x68] sm:$0xff] %v10469_v49 }
 0x1ec   : > { %v2649_v23 = vmul.f32 %v2596_v60, %v11194_v32  ;;  %2684 = vst [vmem:[#allocation3 + $0x8] sm:$0xff] %v10469_v49 }
 0x1ed   : > { %v2035_v13 = vpop.f32.mrf.mxu1  ;;  %2685 = vst [vmem:[#allocation3 + $0x48] sm:$0xff] %v10469_v49 }
 0x1ee   : > { %2675 = vst [vmem:[#allocation2 + $0xa8] sm:$0xff] %v2649_v23  ;;  %v2036_v25 = vadd.f32 %v2035_v13, %v2021_v21 }
 0x1ef   : > { %2686 = vst [vmem:[#allocation3 + $0x40] sm:$0xff] %v10469_v49 }
 0x1f0   : > { %v2106_v52 = vmul.f32 %v2082_v41, %v2036_v25  ;;  %2687 = vst [vmem:[#allocation3 + $0x20] sm:$0xff] %v10469_v49 }
 0x1f1   : > { %2688 = vst [vmem:[#allocation3 + $0x10] sm:$0xff] %v10469_v49 }
 0x1f2   : > { %v11204_v27 = vadd.f32 %v2134_v8, %v2106_v52  ;;  %2689 = vst [vmem:[#allocation3 + $0x38] sm:$0xff] %v10469_v49 }
 0x1f3   : > { %v2023_v28 = vpop.f32.mrf.mxu0  ;;  %2690 = vst [vmem:[#allocation3 + $0x60] sm:$0xff] %v10469_v49 }
 0x1f4   : > { %v7945_v29 = vmul.f32 -1.442695, %v11204_v27  ;;  %2691 = vst [vmem:[#allocation3 + $0x70] sm:$0xff] %v10469_v49 }
 0x1f5   : > { %v2049_v31 = vpop.f32.mrf.mxu2  ;;  %v2037_v24 = vpop.f32.mrf.mxu1  ;;  %2692 = vst [vmem:[#allocation3 + $0x78] sm:$0xff] %v10469_v49 }
 0x1f6   : > { %9862 = vpow2.f32 %v7945_v29  ;;  %v2063_v17 = vpop.f32.mrf.mxu3  ;;  %v2038_v32 = vadd.f32 %v2037_v24, %v2023_v28  ;;  %2693 = vst [vmem:[#allocation3 + $0x28] sm:$0xff] %v10469_v49 }
 0x1f7   : > { %v2064_v14 = vadd.f32 %v2063_v17, %v2049_v31 }
 0x1f8   : > { %v2118_v37 = vmul.f32 %v2082_v41, %v2038_v32 }
 0x1f9   : > { %v2107_v38 = vmul.f32 %v2083_v34, %v2064_v14 }
 0x1fa   : > { %v11209_v42 = vadd.f32 %v2134_v8, %v2118_v37 }
 0x1fb   : > { %v11211_v40 = vadd.f32 %v2135_v35, %v2107_v38 }
 0x1fc   : > { %v9863_v26 = vpop.eup %9862  ;;  %v7957_v51 = vmul.f32 -1.442695, %v11209_v42 }
 0x1fd   : > { %v2254_v45 = vadd.f32 1.0, %v9863_v26  ;;  %v7946_v44 = vmul.f32 -1.442695, %v11211_v40  ;;  %v2051_v15 = vpop.f32.mrf.mxu2 }
 0x1fe   : > { %9864 = vpow2.f32 %v7957_v51  ;;  %v2065_v50 = vpop.f32.mrf.mxu3 }
 0x1ff   : > { %9866 = vrcp.f32 %v2254_v45  ;;  %v2066_v22 = vadd.f32 %v2065_v50, %v2051_v15  ;;  %v2429_v7 = vand.u32 2147483648, %v2254_v45  ;;  %vm2423_vm0 = vweird.f32 %v2254_v45 }
 0x200   : > { %9868 = vpow2.f32 %v7946_v44  ;;  %v2427_v11 = vand.u32 2147483647, %v2254_v45 }
 0x201   : > { %v2119_v33 = vmul.f32 %v2083_v34, %v2066_v22  ;;  %v2430_v58 = vor.u32 1.1754944e-38, %v2429_v7 }
 0x202   : > { %vm2428_vm3 = vcmp.eq.f32.partialorder %v2427_v11, 8.507059e+37 }
 0x203   : > { %v11215_v54 = vadd.f32 %v2135_v35, %v2119_v33 }
 0x204   : > { %v9865_v55 = vpop.eup %9864 }
 0x205   : > { %v9867_v46 = vpop.eup %9866  ;;  %v2266_v19 = vadd.f32 1.0, %v9865_v55  ;;  %v7958_v47 = vmul.f32 -1.442695, %v11215_v54 }
 0x206   : > { %v9869_v53 = vpop.eup %9868  ;;  %v2419_v56 = vmul.f32 %v9867_v46, %v2254_v45  ;;  %vm2424_vm1 = vweird.f32 %v9867_v46 }
 0x207   : > { %v2255_v30 = vadd.f32 1.0, %v9869_v53  ;;  %9870 = vrcp.f32 %v2266_v19  ;;  %vm2425_vm2 = vmor %vm2423_vm0, %vm2424_vm1  ;;  %v2609_v3 = vand.u32 2147483648, %v2266_v19  ;;  %v2607_v10 = vand.u32 2147483647, %v2266_v19 }
 0x208   : > { %v2420_v57 = vsub.f32 1.0, %v2419_v56  ;;  %9872 = vpow2.f32 %v7958_v47  ;;  %vm2603_vm5 = vweird.f32 %v2266_v19 }
 0x209   : > { %9874 = vrcp.f32 %v2255_v30  ;;  %v2444_v12 = vand.u32 2147483648, %v2255_v30  ;;  %v2442_v18 = vand.u32 2147483647, %v2255_v30  ;;  %v2610_v5 = vor.u32 1.1754944e-38, %v2609_v3 }
 0x20a   : > { %v2421_v59 = vmul.f32 %v9867_v46, %v2420_v57  ;;  %vm2438_vm8 = vweird.f32 %v2255_v30  ;;  %vm2608_vm9 = vcmp.eq.f32.partialorder %v2607_v10, 8.507059e+37 }
 0x20b   : > { %v2445_v41 = vor.u32 1.1754944e-38, %v2444_v12  ;;  %vm2443_vm11 = vcmp.eq.f32.partialorder %v2442_v18, 8.507059e+37 }
 0x20c   : > { %v2422_v39 = vadd.f32 %v9867_v46, %v2421_v59 }
 0x20d   : > { %v9871_v16 = vpop.eup %9870 }
 0x20e   : > { %v9873_v62 = vpop.eup %9872  ;;  %v2426_v63 = vsel %vm2425_vm2, %v9867_v46, %v2422_v39  ;;  %v2599_v48 = vmul.f32 %v9871_v16, %v2266_v19  ;;  %vm2604_vm4 = vweird.f32 %v9871_v16 }
 0x20f   : > { %v9875_v0 = vpop.eup %9874  ;;  %v2431_v1 = vsel %vm2428_vm3, %v2430_v58, %v2426_v63  ;;  %v2267_v2 = vadd.f32 1.0, %v9873_v62  ;;  %vm2605_vm7 = vmor %vm2603_vm5, %vm2604_vm4 }
 0x210   : > { %v2638_v36 = vmul.f32 %v2431_v1, %v11204_v27  ;;  %v2434_v4 = vmul.f32 %v9875_v0, %v2255_v30  ;;  %v2600_v43 = vsub.f32 1.0, %v2599_v48  ;;  %vm2439_vm6 = vweird.f32 %v9875_v0 }
 0x211   : > { %9876 = vrcp.f32 %v2267_v2  ;;  %vm2440_vm10 = vmor %vm2438_vm8, %vm2439_vm6  ;;  %v2624_v31 = vand.u32 2147483648, %v2267_v2  ;;  %v2622_v24 = vand.u32 2147483647, %v2267_v2  ;;  %vm2618_vm13 = vweird.f32 %v2267_v2 }
 0x212   : > { %2672 = vst [vmem:[#allocation2 + $0x90] sm:$0xff] %v2638_v36  ;;  %v2435_v6 = vsub.f32 1.0, %v2434_v4  ;;  %v2601_v9 = vmul.f32 %v9871_v16, %v2600_v43 }
 0x213   : > { %v2625_v32 = vor.u32 1.1754944e-38, %v2624_v31  ;;  %vm2623_vm15 = vcmp.eq.f32.partialorder %v2622_v24, 8.507059e+37 }
 0x214   : > { %v2436_v61 = vmul.f32 %v9875_v0, %v2435_v6  ;;  %v2602_v20 = vadd.f32 %v9871_v16, %v2601_v9 }
 0x216   : > { %v2437_v60 = vadd.f32 %v9875_v0, %v2436_v61  ;;  %v2606_v21 = vsel %vm2605_vm7, %v9871_v16, %v2602_v20 }
 0x217   : > { %v9877_v23 = vpop.eup %9876  ;;  %v2611_v13 = vsel %vm2608_vm9, %v2610_v5, %v2606_v21 }
 0x218   : > { %v2441_v25 = vsel %vm2440_vm10, %v9875_v0, %v2437_v60  ;;  %v2650_v8 = vmul.f32 %v2611_v13, %v11209_v42  ;;  %v2614_v52 = vmul.f32 %v9877_v23, %v2267_v2  ;;  %vm2619_vm12 = vweird.f32 %v9877_v23 }
 0x219   : > { %v2446_v27 = vsel %vm2443_vm11, %v2445_v41, %v2441_v25  ;;  %vm2620_vm14 = vmor %vm2618_vm13, %vm2619_vm12 }
 0x21a   : > { %v2639_v28 = vmul.f32 %v2446_v27, %v11211_v40  ;;  %2676 = vst [vmem:[#allocation2 + $0xb0] sm:$0xff] %v2650_v8  ;;  %v2615_v29 = vsub.f32 1.0, %v2614_v52 }
 0x21c   : > { %2673 = vst [vmem:[#allocation2 + $0x98] sm:$0xff] %v2639_v28  ;;  %v2616_v34 = vmul.f32 %v9877_v23, %v2615_v29 }
 0x21e   : > { %v2617_v17 = vadd.f32 %v9877_v23, %v2616_v34 }
 0x220   : > { %v2621_v14 = vsel %vm2620_vm14, %v9877_v23, %v2617_v17 }
 0x221   : > { %v2626_v35 = vsel %vm2623_vm15, %v2625_v32, %v2621_v14 }
 0x222   : > { %v2651_v37 = vmul.f32 %v2626_v35, %v11215_v54 }
 0x224   : > { %2677 = vst [vmem:[#allocation2 + $0xb8] sm:$0xff] %v2651_v37 }
 0x225 PF: > { %v2749_v38 = vld [vmem:[%s10705_s4 + $0xc0] sm:$0xff]  ;;  %s12267_s17 = sld [smem:[#allocation36_spill]] }
 0x226   : > { %v2781_v42 = vld [vmem:[%s10705_s4 + $0x1c0] sm:$0xff]  ;;  %v2965_v26 = vunpack.c.2.s8 %v2749_v38  ;;  %v2973_v51 = vunpack.c.3.s8 %v2749_v38  ;;  %v2949_v59 = vunpack.c.0.s8 %v2749_v38  ;;  %v2957_v11 = vunpack.c.1.s8 %v2749_v38 }
 0x227   : > { %v2813_v40 = vld [vmem:[%s10705_s4 + $0x2c0] sm:$0xff]  ;;  %v3093_v45 = vunpack.c.2.s8 %v2781_v42  ;;  %v3101_v44 = vunpack.c.3.s8 %v2781_v42  ;;  %v3077_v58 = vunpack.c.0.s8 %v2781_v42  ;;  %v3085_v62 = vunpack.c.1.s8 %v2781_v42 }
 0x228   : > { %v2845_v15 = vld [vmem:[%s10705_s4 + $0x3c0] sm:$0xff]  ;;  %v3221_v50 = vunpack.c.2.s8 %v2813_v40  ;;  %v3229_v22 = vunpack.c.3.s8 %v2813_v40  ;;  %v3477_v49 = vcvt.s32.f32 %v2965_v26  ;;  %v3485_v54 = vcvt.s32.f32 %v2973_v51 }
 0x229   : > { %v3349_v33 = vunpack.c.2.s8 %v2845_v15  ;;  %v3357_v55 = vunpack.c.3.s8 %v2845_v15  ;;  %v3605_v46 = vcvt.s32.f32 %v3093_v45  ;;  %v3613_v19 = vcvt.s32.f32 %v3101_v44  ;;  %v2741_v63 = vld [vmem:[%s10705_s4 + $0x80] sm:$0xff] }
 0x22a   : > { %v3733_v53 = vcvt.s32.f32 %v3221_v50  ;;  %v3741_v56 = vcvt.s32.f32 %v3229_v22  ;;  %v3933_v57 = vpack.c.bf16 %v3485_v54, %v3477_v49  ;;  %v3461_v48 = vcvt.s32.f32 %v2949_v59  ;;  %v2773_v6 = vld [vmem:[%s10705_s4 + $0x180] sm:$0xff] }
 0x22b   : > { %v3861_v47 = vcvt.s32.f32 %v3349_v33  ;;  %v3869_v30 = vcvt.s32.f32 %v3357_v55  ;;  %v3997_v7 = vpack.c.bf16 %v3613_v19, %v3605_v46  ;;  %v3469_v0 = vcvt.s32.f32 %v2957_v11  ;;  %v2805_v18 = vld [vmem:[%s10705_s4 + $0x280] sm:$0xff]  ;;  %s9266_s0 = sshll.u32 %s12267_s17, 6  ;;  %p7961_p1 = scmp.ne.s32.totalorder %s12267_s17, 2 }
 0x22c   : > { %v4061_v39 = vpack.c.bf16 %v3741_v56, %v3733_v53  ;;  %4133 = vmatpush.bf16.msra.mxu0 %v3933_v57  ;;  %v3205_v1 = vunpack.c.0.s8 %v2813_v40  ;;  %v3213_v2 = vunpack.c.1.s8 %v2813_v40  ;;  %v3589_v36 = vcvt.s32.f32 %v3077_v58  ;;  %v2837_v23 = vld [vmem:[%s10705_s4 + $0x380] sm:$0xff]  ;;  %s11251_s22 = scalar_lea.vmem [#allocation2], %s9266_s0 }
 0x22d   : > { %v4125_v16 = vpack.c.bf16 %v3869_v30, %v3861_v47  ;;  %4147 = vmatpush.bf16.msra.mxu1 %v3997_v7  ;;  %v3597_v4 = vcvt.s32.f32 %v3085_v62  ;;  %v3333_v43 = vunpack.c.0.s8 %v2845_v15  ;;  %v3341_v3 = vunpack.c.1.s8 %v2845_v15  ;;  %v2733_v50 = vld [vmem:[%s10705_s4 + $0x40] sm:$0xff] }
 0x22e   : > { %4161 = vmatpush.bf16.msra.mxu2 %v4061_v39  ;;  %v3925_v9 = vpack.c.bf16 %v3469_v0, %v3461_v48  ;;  %v3717_v10 = vcvt.s32.f32 %v3205_v1  ;;  %v3725_v12 = vcvt.s32.f32 %v3213_v2  ;;  %v2933_v61 = vunpack.c.2.s8 %v2741_v63  ;;  %v2765_v56 = vld [vmem:[%s10705_s4 + $0x140] sm:$0xff] }
 0x22f   : > { %4175 = vmatpush.bf16.msra.mxu3 %v4125_v16  ;;  %v3989_v20 = vpack.c.bf16 %v3597_v4, %v3589_v36  ;;  %v3845_v5 = vcvt.s32.f32 %v3333_v43  ;;  %v3853_v60 = vcvt.s32.f32 %v3341_v3  ;;  %v2941_v21 = vunpack.c.3.s8 %v2741_v63  ;;  %v2797_v59 = vld [vmem:[%s10705_s4 + $0x240] sm:$0xff] }
 0x230   : > { %4134 = vmatpush.bf16.msra.mxu0 %v3925_v9  ;;  %v4053_v41 = vpack.c.bf16 %v3725_v12, %v3717_v10  ;;  %v3445_v13 = vcvt.s32.f32 %v2933_v61  ;;  %v3061_v25 = vunpack.c.2.s8 %v2773_v6  ;;  %v3069_v8 = vunpack.c.3.s8 %v2773_v6  ;;  %v2829_v62 = vld [vmem:[%s10705_s4 + $0x340] sm:$0xff] }
 0x231   : > { %4148 = vmatpush.bf16.msra.mxu1 %v3989_v20  ;;  %v4117_v52 = vpack.c.bf16 %v3853_v60, %v3845_v5  ;;  %v3453_v27 = vcvt.s32.f32 %v2941_v21  ;;  %v3189_v28 = vunpack.c.2.s8 %v2805_v18  ;;  %v3197_v29 = vunpack.c.3.s8 %v2805_v18 }
 0x232   : > { %4162 = vmatpush.bf16.msra.mxu2 %v4053_v41  ;;  %v3573_v31 = vcvt.s32.f32 %v3061_v25  ;;  %v3581_v34 = vcvt.s32.f32 %v3069_v8  ;;  %v3317_v24 = vunpack.c.2.s8 %v2837_v23  ;;  %v3325_v17 = vunpack.c.3.s8 %v2837_v23 }
 0x233   : > { %4176 = vmatpush.bf16.msra.mxu3 %v4117_v52  ;;  %v3917_v32 = vpack.c.bf16 %v3453_v27, %v3445_v13  ;;  %v3701_v14 = vcvt.s32.f32 %v3189_v28  ;;  %v3709_v35 = vcvt.s32.f32 %v3197_v29  ;;  %v2917_v37 = vunpack.c.0.s8 %v2741_v63  ;;  %v2725_v52 = vld [vmem:[%s10705_s4] sm:$0xff] }
 0x234   : > { %v3981_v38 = vpack.c.bf16 %v3581_v34, %v3573_v31  ;;  %v3829_v42 = vcvt.s32.f32 %v3317_v24  ;;  %v3837_v40 = vcvt.s32.f32 %v3325_v17  ;;  %v2925_v26 = vunpack.c.1.s8 %v2741_v63 }
 0x235   : > { %4135 = vmatpush.bf16.msra.mxu0 %v3917_v32  ;;  %v4045_v51 = vpack.c.bf16 %v3709_v35, %v3701_v14  ;;  %v3429_v45 = vcvt.s32.f32 %v2917_v37  ;;  %v3045_v44 = vunpack.c.0.s8 %v2773_v6  ;;  %v3053_v15 = vunpack.c.1.s8 %v2773_v6  ;;  %v2757_v14 = vld [vmem:[%s10705_s4 + $0x100] sm:$0xff] }
 0x236   : > { %4149 = vmatpush.bf16.msra.mxu1 %v3981_v38  ;;  %v4109_v22 = vpack.c.bf16 %v3837_v40, %v3829_v42  ;;  %v3437_v33 = vcvt.s32.f32 %v2925_v26  ;;  %v3173_v55 = vunpack.c.0.s8 %v2805_v18  ;;  %v3181_v49 = vunpack.c.1.s8 %v2805_v18  ;;  %v2789_v40 = vld [vmem:[%s10705_s4 + $0x200] sm:$0xff] }
 0x237   : > { %4163 = vmatpush.bf16.msra.mxu2 %v4045_v51  ;;  %v3557_v54 = vcvt.s32.f32 %v3045_v44  ;;  %v3565_v46 = vcvt.s32.f32 %v3053_v15  ;;  %v3301_v19 = vunpack.c.0.s8 %v2837_v23  ;;  %v3309_v53 = vunpack.c.1.s8 %v2837_v23  ;;  %v2821_v15 = vld [vmem:[%s10705_s4 + $0x300] sm:$0xff] }
 0x238   : > { %4177 = vmatpush.bf16.msra.mxu3 %v4109_v22  ;;  %v3909_v47 = vpack.c.bf16 %v3437_v33, %v3429_v45  ;;  %v3685_v30 = vcvt.s32.f32 %v3173_v55  ;;  %v3693_v57 = vcvt.s32.f32 %v3181_v49  ;;  %v2901_v7 = vunpack.c.2.s8 %v2733_v50 }
 0x239   : > { %v3973_v11 = vpack.c.bf16 %v3565_v46, %v3557_v54  ;;  %v3813_v39 = vcvt.s32.f32 %v3301_v19  ;;  %v3821_v16 = vcvt.s32.f32 %v3309_v53  ;;  %v2909_v58 = vunpack.c.3.s8 %v2733_v50 }
 0x23a   : > { %4136 = vmatpush.bf16.msra.mxu0 %v3909_v47  ;;  %v4037_v63 = vpack.c.bf16 %v3693_v57, %v3685_v30  ;;  %v3413_v48 = vcvt.s32.f32 %v2901_v7  ;;  %v3029_v0 = vunpack.c.2.s8 %v2765_v56  ;;  %v3037_v1 = vunpack.c.3.s8 %v2765_v56 }
 0x23b   : > { %4150 = vmatpush.bf16.msra.mxu1 %v3973_v11  ;;  %v4101_v2 = vpack.c.bf16 %v3821_v16, %v3813_v39  ;;  %v3421_v36 = vcvt.s32.f32 %v2909_v58  ;;  %v3157_v4 = vunpack.c.2.s8 %v2797_v59  ;;  %v3165_v43 = vunpack.c.3.s8 %v2797_v59 }
 0x23c   : > { %4164 = vmatpush.bf16.msra.mxu2 %v4037_v63  ;;  %v3541_v3 = vcvt.s32.f32 %v3029_v0  ;;  %v3549_v6 = vcvt.s32.f32 %v3037_v1  ;;  %v3285_v9 = vunpack.c.2.s8 %v2829_v62  ;;  %v3293_v10 = vunpack.c.3.s8 %v2829_v62 }
 0x23d   : > { %4178 = vmatpush.bf16.msra.mxu3 %v4101_v2  ;;  %v3901_v12 = vpack.c.bf16 %v3421_v36, %v3413_v48  ;;  %v3669_v61 = vcvt.s32.f32 %v3157_v4  ;;  %v3677_v18 = vcvt.s32.f32 %v3165_v43  ;;  %v2885_v20 = vunpack.c.0.s8 %v2733_v50  ;;  %v2750_v2 = vld [vmem:[%s10705_s4 + $0xc8] sm:$0xff] }
 0x23e   : > { %v3965_v5 = vpack.c.bf16 %v3549_v6, %v3541_v3  ;;  %v3797_v60 = vcvt.s32.f32 %v3285_v9  ;;  %v3805_v21 = vcvt.s32.f32 %v3293_v10  ;;  %v2893_v23 = vunpack.c.1.s8 %v2733_v50 }
 0x23f   : > { %4137 = vmatpush.bf16.msra.mxu0 %v3901_v12  ;;  %v4029_v41 = vpack.c.bf16 %v3677_v18, %v3669_v61  ;;  %v3397_v13 = vcvt.s32.f32 %v2885_v20  ;;  %v3013_v25 = vunpack.c.0.s8 %v2765_v56  ;;  %v3021_v8 = vunpack.c.1.s8 %v2765_v56  ;;  %v2782_v61 = vld [vmem:[%s10705_s4 + $0x1c8] sm:$0xff] }
 0x240   : > { %4151 = vmatpush.bf16.msra.mxu1 %v3965_v5  ;;  %v4093_v27 = vpack.c.bf16 %v3805_v21, %v3797_v60  ;;  %v3405_v28 = vcvt.s32.f32 %v2893_v23  ;;  %v3141_v29 = vunpack.c.0.s8 %v2797_v59  ;;  %v3149_v31 = vunpack.c.1.s8 %v2797_v59  ;;  %v2814_v21 = vld [vmem:[%s10705_s4 + $0x2c8] sm:$0xff] }
 0x241   : > { %4165 = vmatpush.bf16.msra.mxu2 %v4029_v41  ;;  %v3525_v34 = vcvt.s32.f32 %v3013_v25  ;;  %v3533_v24 = vcvt.s32.f32 %v3021_v8  ;;  %v3269_v17 = vunpack.c.0.s8 %v2829_v62  ;;  %v3277_v32 = vunpack.c.1.s8 %v2829_v62  ;;  %v2846_v8 = vld [vmem:[%s10705_s4 + $0x3c8] sm:$0xff] }
 0x242   : > { %4179 = vmatpush.bf16.msra.mxu3 %v4093_v27  ;;  %v3893_v35 = vpack.c.bf16 %v3405_v28, %v3397_v13  ;;  %v3653_v37 = vcvt.s32.f32 %v3141_v29  ;;  %v3661_v38 = vcvt.s32.f32 %v3149_v31  ;;  %v2869_v42 = vunpack.c.2.s8 %v2725_v52 }
 0x243   : > { %v3957_v26 = vpack.c.bf16 %v3533_v24, %v3525_v34  ;;  %v3781_v51 = vcvt.s32.f32 %v3269_v17  ;;  %v3789_v45 = vcvt.s32.f32 %v3277_v32  ;;  %v2877_v44 = vunpack.c.3.s8 %v2725_v52 }
 0x244   : > { %4138 = vmatpush.bf16.msra.mxu0 %v3893_v35  ;;  %v4021_v50 = vpack.c.bf16 %v3661_v38, %v3653_v37  ;;  %v3381_v22 = vcvt.s32.f32 %v2869_v42  ;;  %v2997_v33 = vunpack.c.2.s8 %v2757_v14  ;;  %v3005_v55 = vunpack.c.3.s8 %v2757_v14 }
 0x245   : > { %4152 = vmatpush.bf16.msra.mxu1 %v3957_v26  ;;  %v4085_v49 = vpack.c.bf16 %v3789_v45, %v3781_v51  ;;  %v3389_v54 = vcvt.s32.f32 %v2877_v44  ;;  %v3125_v46 = vunpack.c.2.s8 %v2789_v40  ;;  %v3133_v19 = vunpack.c.3.s8 %v2789_v40 }
 0x246   : > { %4166 = vmatpush.bf16.msra.mxu2 %v4021_v50  ;;  %v3509_v53 = vcvt.s32.f32 %v2997_v33  ;;  %v3517_v56 = vcvt.s32.f32 %v3005_v55  ;;  %v3253_v47 = vunpack.c.2.s8 %v2821_v15  ;;  %v3261_v30 = vunpack.c.3.s8 %v2821_v15 }
 0x247   : > { %4180 = vmatpush.bf16.msra.mxu3 %v4085_v49  ;;  %v3885_v57 = vpack.c.bf16 %v3389_v54, %v3381_v22  ;;  %v3637_v7 = vcvt.s32.f32 %v3125_v46  ;;  %v3645_v59 = vcvt.s32.f32 %v3133_v19  ;;  %v2853_v11 = vunpack.c.0.s8 %v2725_v52  ;;  %v2742_v49 = vld [vmem:[%s10705_s4 + $0x88] sm:$0xff] }
 0x248   : > { %v3949_v39 = vpack.c.bf16 %v3517_v56, %v3509_v53  ;;  %v3765_v16 = vcvt.s32.f32 %v3253_v47  ;;  %v3773_v58 = vcvt.s32.f32 %v3261_v30  ;;  %v2861_v62 = vunpack.c.1.s8 %v2725_v52 }
 0x249   : > { %4139 = vmatpush.bf16.msra.mxu0 %v3885_v57  ;;  %v4013_v63 = vpack.c.bf16 %v3645_v59, %v3637_v7  ;;  %v3365_v48 = vcvt.s32.f32 %v2853_v11  ;;  %v2981_v0 = vunpack.c.0.s8 %v2757_v14  ;;  %v2989_v1 = vunpack.c.1.s8 %v2757_v14  ;;  %v2774_v7 = vld [vmem:[%s10705_s4 + $0x188] sm:$0xff] }
 0x24a   : > { %4153 = vmatpush.bf16.msra.mxu1 %v3949_v39  ;;  %v4077_v36 = vpack.c.bf16 %v3773_v58, %v3765_v16  ;;  %v3373_v4 = vcvt.s32.f32 %v2861_v62  ;;  %v3109_v43 = vunpack.c.0.s8 %v2789_v40  ;;  %v3117_v3 = vunpack.c.1.s8 %v2789_v40  ;;  %v2806_v58 = vld [vmem:[%s10705_s4 + $0x288] sm:$0xff] }
 0x24b   : > { %4167 = vmatpush.bf16.msra.mxu2 %v4013_v63  ;;  %v3493_v6 = vcvt.s32.f32 %v2981_v0  ;;  %v3501_v9 = vcvt.s32.f32 %v2989_v1  ;;  %v3237_v10 = vunpack.c.0.s8 %v2821_v15  ;;  %v3245_v12 = vunpack.c.1.s8 %v2821_v15  ;;  %v2838_v1 = vld [vmem:[%s10705_s4 + $0x388] sm:$0xff] }
 0x24c   : > { %4181 = vmatpush.bf16.msra.mxu3 %v4077_v36  ;;  %v3877_v18 = vpack.c.bf16 %v3373_v4, %v3365_v48  ;;  %v3621_v20 = vcvt.s32.f32 %v3109_v43  ;;  %v3629_v5 = vcvt.s32.f32 %v3117_v3  ;;  %v2966_v60 = vunpack.c.2.s8 %v2750_v2 }
 0x24d   : > { %v3941_v23 = vpack.c.bf16 %v3501_v9, %v3493_v6  ;;  %v3749_v41 = vcvt.s32.f32 %v3237_v10  ;;  %v3757_v13 = vcvt.s32.f32 %v3245_v12  ;;  %v2974_v25 = vunpack.c.3.s8 %v2750_v2 }
 0x24e   : > { %4140 = vmatpush.bf16.msra.mxu0 %v3877_v18  ;;  %v4005_v52 = vpack.c.bf16 %v3629_v5, %v3621_v20  ;;  %v3478_v27 = vcvt.s32.f32 %v2966_v60  ;;  %v3094_v28 = vunpack.c.2.s8 %v2782_v61  ;;  %v3102_v29 = vunpack.c.3.s8 %v2782_v61 }
 0x24f   : > { %4154 = vmatpush.bf16.msra.mxu1 %v3941_v23  ;;  %v4069_v31 = vpack.c.bf16 %v3757_v13, %v3749_v41  ;;  %v3486_v34 = vcvt.s32.f32 %v2974_v25  ;;  %v3222_v24 = vunpack.c.2.s8 %v2814_v21  ;;  %v3230_v17 = vunpack.c.3.s8 %v2814_v21 }
 0x250   : > { %4168 = vmatpush.bf16.msra.mxu2 %v4005_v52  ;;  %v3606_v32 = vcvt.s32.f32 %v3094_v28  ;;  %v3614_v14 = vcvt.s32.f32 %v3102_v29  ;;  %v3350_v35 = vunpack.c.2.s8 %v2846_v8  ;;  %v3358_v37 = vunpack.c.3.s8 %v2846_v8 }
 0x251   : > { %4182 = vmatpush.bf16.msra.mxu3 %v4069_v31  ;;  %v3934_v38 = vpack.c.bf16 %v3486_v34, %v3478_v27  ;;  %v3734_v42 = vcvt.s32.f32 %v3222_v24  ;;  %v3742_v40 = vcvt.s32.f32 %v3230_v17  ;;  %v2950_v26 = vunpack.c.0.s8 %v2750_v2  ;;  %v2734_v31 = vld [vmem:[%s10705_s4 + $0x48] sm:$0xff] }
 0x252   : > { %v3998_v51 = vpack.c.bf16 %v3614_v14, %v3606_v32  ;;  %v3862_v45 = vcvt.s32.f32 %v3350_v35  ;;  %v3870_v44 = vcvt.s32.f32 %v3358_v37  ;;  %v2958_v15 = vunpack.c.1.s8 %v2750_v2 }
 0x253   : > { %4189 = vmatpush.bf16.msrb.mxu0 %v3934_v38  ;;  %v4062_v50 = vpack.c.bf16 %v3742_v40, %v3734_v42  ;;  %v3462_v22 = vcvt.s32.f32 %v2950_v26  ;;  %v3078_v33 = vunpack.c.0.s8 %v2782_v61  ;;  %v3086_v55 = vunpack.c.1.s8 %v2782_v61  ;;  %v2766_v42 = vld [vmem:[%s10705_s4 + $0x148] sm:$0xff] }
 0x254   : > { %4203 = vmatpush.bf16.msrb.mxu1 %v3998_v51  ;;  %v4126_v54 = vpack.c.bf16 %v3870_v44, %v3862_v45  ;;  %v3470_v46 = vcvt.s32.f32 %v2958_v15  ;;  %v3206_v19 = vunpack.c.0.s8 %v2814_v21  ;;  %v3214_v53 = vunpack.c.1.s8 %v2814_v21  ;;  %v2798_v44 = vld [vmem:[%s10705_s4 + $0x248] sm:$0xff] }
 0x255   : > { %4217 = vmatpush.bf16.msrb.mxu2 %v4062_v50  ;;  %v3590_v56 = vcvt.s32.f32 %v3078_v33  ;;  %v3598_v47 = vcvt.s32.f32 %v3086_v55  ;;  %v3334_v30 = vunpack.c.0.s8 %v2846_v8  ;;  %v3342_v57 = vunpack.c.1.s8 %v2846_v8  ;;  %v2830_v55 = vld [vmem:[%s10705_s4 + $0x348] sm:$0xff] }
 0x256   : > { %4231 = vmatpush.bf16.msrb.mxu3 %v4126_v54  ;;  %v3926_v59 = vpack.c.bf16 %v3470_v46, %v3462_v22  ;;  %v3718_v11 = vcvt.s32.f32 %v3206_v19  ;;  %v3726_v39 = vcvt.s32.f32 %v3214_v53  ;;  %v2934_v16 = vunpack.c.2.s8 %v2742_v49 }
 0x257   : > { %v3990_v62 = vpack.c.bf16 %v3598_v47, %v3590_v56  ;;  %v3846_v63 = vcvt.s32.f32 %v3334_v30  ;;  %v3854_v48 = vcvt.s32.f32 %v3342_v57  ;;  %v2942_v0 = vunpack.c.3.s8 %v2742_v49 }
 0x258   : > { %4190 = vmatpush.bf16.msrb.mxu0 %v3926_v59  ;;  %v4054_v2 = vpack.c.bf16 %v3726_v39, %v3718_v11  ;;  %v3446_v36 = vcvt.s32.f32 %v2934_v16  ;;  %v3062_v4 = vunpack.c.2.s8 %v2774_v7  ;;  %v3070_v43 = vunpack.c.3.s8 %v2774_v7 }
 0x259   : > { %4204 = vmatpush.bf16.msrb.mxu1 %v3990_v62  ;;  %v4118_v3 = vpack.c.bf16 %v3854_v48, %v3846_v63  ;;  %v3454_v6 = vcvt.s32.f32 %v2942_v0  ;;  %v3190_v9 = vunpack.c.2.s8 %v2806_v58  ;;  %v3198_v10 = vunpack.c.3.s8 %v2806_v58 }
 0x25a   : > { %4218 = vmatpush.bf16.msrb.mxu2 %v4054_v2  ;;  %v3574_v12 = vcvt.s32.f32 %v3062_v4  ;;  %v3582_v61 = vcvt.s32.f32 %v3070_v43  ;;  %v3318_v18 = vunpack.c.2.s8 %v2838_v1  ;;  %v3326_v20 = vunpack.c.3.s8 %v2838_v1 }
 0x25b   : > { %4232 = vmatpush.bf16.msrb.mxu3 %v4118_v3  ;;  %v3918_v5 = vpack.c.bf16 %v3454_v6, %v3446_v36  ;;  %v3702_v60 = vcvt.s32.f32 %v3190_v9  ;;  %v3710_v21 = vcvt.s32.f32 %v3198_v10  ;;  %v2918_v23 = vunpack.c.0.s8 %v2742_v49  ;;  %v2715_v3 = vld [vmem:[%s11251_s22 + $0x10] sm:$0xff] }
 0x25c   : > { %v3982_v41 = vpack.c.bf16 %v3582_v61, %v3574_v12  ;;  %v3830_v13 = vcvt.s32.f32 %v3318_v18  ;;  %v3838_v25 = vcvt.s32.f32 %v3326_v20  ;;  %v2926_v8 = vunpack.c.1.s8 %v2742_v49  ;;  %v2719_v6 = vld [vmem:[%s11251_s22 + $0x30] sm:$0xff]  ;;  %v2716_v18 = vld [vmem:[%s11251_s22 + $0x18] sm:$0xff] }
 0x25d   : > { %4191 = vmatpush.bf16.msrb.mxu0 %v3918_v5  ;;  %v4046_v52 = vpack.c.bf16 %v3710_v21, %v3702_v60  ;;  %v3430_v27 = vcvt.s32.f32 %v2918_v23  ;;  %v3046_v28 = vunpack.c.0.s8 %v2774_v7  ;;  %v3054_v29 = vunpack.c.1.s8 %v2774_v7  ;;  %v2720_v20 = vld [vmem:[%s11251_s22 + $0x38] sm:$0xff] }
 0x25e   : > { %4205 = vmatpush.bf16.msrb.mxu1 %v3982_v41  ;;  %v4110_v34 = vpack.c.bf16 %v3838_v25, %v3830_v13  ;;  %v3438_v24 = vcvt.s32.f32 %v2926_v8  ;;  %v3174_v17 = vunpack.c.0.s8 %v2806_v58  ;;  %v3182_v32 = vunpack.c.1.s8 %v2806_v58  ;;  %v2726_v41 = vld [vmem:[%s10705_s4 + $0x8] sm:$0xff] }
 0x25f   : > { %4219 = vmatpush.bf16.msrb.mxu2 %v4046_v52  ;;  %v3558_v14 = vcvt.s32.f32 %v3046_v28  ;;  %v3566_v35 = vcvt.s32.f32 %v3054_v29  ;;  %v3302_v37 = vunpack.c.0.s8 %v2838_v1  ;;  %v3310_v38 = vunpack.c.1.s8 %v2838_v1  ;;  %v11259_v13 = vld [vmem:[%s10705_s4 + $0x108] sm:$0xff] }
 0x260   : > { %4233 = vmatpush.bf16.msrb.mxu3 %v4110_v34  ;;  %v3910_v40 = vpack.c.bf16 %v3438_v24, %v3430_v27  ;;  %v3686_v26 = vcvt.s32.f32 %v3174_v17  ;;  %v3694_v51 = vcvt.s32.f32 %v3182_v32  ;;  %v2902_v45 = vunpack.c.2.s8 %v2734_v31  ;;  %v2790_v28 = vld [vmem:[%s10705_s4 + $0x208] sm:$0xff] }
 0x261   : > { %v3974_v15 = vpack.c.bf16 %v3566_v35, %v3558_v14  ;;  %v3814_v50 = vcvt.s32.f32 %v3302_v37  ;;  %v3822_v22 = vcvt.s32.f32 %v3310_v38  ;;  %v2910_v33 = vunpack.c.3.s8 %v2734_v31  ;;  %v11267_v17 = vld [vmem:[%s10705_s4 + $0x308] sm:$0xff]  ;;  %v2713_v38 = vld [vmem:[%s11251_s22] sm:$0xff] }
 0x262   : > { %4192 = vmatpush.bf16.msrb.mxu0 %v3910_v40  ;;  %v4038_v49 = vpack.c.bf16 %v3694_v51, %v3686_v26  ;;  %v3414_v54 = vcvt.s32.f32 %v2902_v45  ;;  %v3030_v46 = vunpack.c.2.s8 %v2766_v42  ;;  %v3038_v19 = vunpack.c.3.s8 %v2766_v42  ;;  %v2717_v45 = vld [vmem:[%s11251_s22 + $0x20] sm:$0xff] }
 0x263   : > { %4206 = vmatpush.bf16.msrb.mxu1 %v3974_v15  ;;  %v4102_v53 = vpack.c.bf16 %v3822_v22, %v3814_v50  ;;  %v3422_v56 = vcvt.s32.f32 %v2910_v33  ;;  %v3158_v47 = vunpack.c.2.s8 %v2798_v44  ;;  %v3166_v30 = vunpack.c.3.s8 %v2798_v44  ;;  %v2718_v15 = vld [vmem:[%s11251_s22 + $0x28] sm:$0xff] }
 0x264   : > { %4220 = vmatpush.bf16.msrb.mxu2 %v4038_v49  ;;  %v3542_v57 = vcvt.s32.f32 %v3030_v46  ;;  %v3550_v7 = vcvt.s32.f32 %v3038_v19  ;;  %v3286_v59 = vunpack.c.2.s8 %v2830_v55  ;;  %v3294_v11 = vunpack.c.3.s8 %v2830_v55 }
 0x265   : > { %4234 = vmatpush.bf16.msrb.mxu3 %v4102_v53  ;;  %v3902_v39 = vpack.c.bf16 %v3422_v56, %v3414_v54  ;;  %v3670_v16 = vcvt.s32.f32 %v3158_v47  ;;  %v3678_v58 = vcvt.s32.f32 %v3166_v30  ;;  %v2886_v62 = vunpack.c.0.s8 %v2734_v31 }
 0x266   : > { %v3966_v63 = vpack.c.bf16 %v3550_v7, %v3542_v57  ;;  %v3798_v48 = vcvt.s32.f32 %v3286_v59  ;;  %v3806_v0 = vcvt.s32.f32 %v3294_v11  ;;  %v2894_v1 = vunpack.c.1.s8 %v2734_v31 }
 0x267   : > { %4193 = vmatpush.bf16.msrb.mxu0 %v3902_v39  ;;  %v4030_v2 = vpack.c.bf16 %v3678_v58, %v3670_v16  ;;  %v3398_v36 = vcvt.s32.f32 %v2886_v62  ;;  %v3014_v4 = vunpack.c.0.s8 %v2766_v42  ;;  %v3022_v43 = vunpack.c.1.s8 %v2766_v42 }
 0x268   : > { %4207 = vmatpush.bf16.msrb.mxu1 %v3966_v63  ;;  %v4094_v9 = vpack.c.bf16 %v3806_v0, %v3798_v48  ;;  %v3406_v10 = vcvt.s32.f32 %v2894_v1  ;;  %v3142_v12 = vunpack.c.0.s8 %v2798_v44  ;;  %v3150_v61 = vunpack.c.1.s8 %v2798_v44  ;;  %v2714_v44 = vld [vmem:[%s11251_s22 + $0x8] sm:$0xff]  ;;  %v2751_v63 = vld [vmem:[%s10705_s4 + $0xd0] sm:$0xff] }
 0x269   : > { %4221 = vmatpush.bf16.msrb.mxu2 %v4030_v2  ;;  %v3526_v5 = vcvt.s32.f32 %v3014_v4  ;;  %v3534_v60 = vcvt.s32.f32 %v3022_v43  ;;  %v3270_v21 = vunpack.c.0.s8 %v2830_v55  ;;  %v3278_v23 = vunpack.c.1.s8 %v2830_v55 }
 0x26a   : > { %4235 = vmatpush.bf16.msrb.mxu3 %v4094_v9  ;;  %v3894_v25 = vpack.c.bf16 %v3406_v10, %v3398_v36  ;;  %v3654_v8 = vcvt.s32.f32 %v3142_v12  ;;  %v3662_v52 = vcvt.s32.f32 %v3150_v61  ;;  %v11261_v27 = vpack.c.bf16 %v2719_v6, %v2715_v3  ;;  %v2783_v36 = vld [vmem:[%s10705_s4 + $0x1d0] sm:$0xff] }
 0x26b   : > { %v3958_v29 = vpack.c.bf16 %v3534_v60, %v3526_v5  ;;  %v3782_v31 = vcvt.s32.f32 %v3270_v21  ;;  %v3790_v34 = vcvt.s32.f32 %v3278_v23  ;;  %v11264_v24 = vpack.c.bf16 %v2720_v20, %v2716_v18  ;;  %v2815_v18 = vld [vmem:[%s10705_s4 + $0x2d0] sm:$0xff] }
 0x26c   : > { %4194 = vmatpush.bf16.msrb.mxu0 %v3894_v25  ;;  %v4022_v32 = vpack.c.bf16 %v3662_v52, %v3654_v8  ;;  %4169 = vmatmul.bf16.vlgmr.msra.gmra.mxu2 %v11261_v27  ;;  %v2870_v14 = vunpack.c.2.s8 %v2726_v41  ;;  %v2878_v35 = vunpack.c.3.s8 %v2726_v41  ;;  %v2998_v37 = vunpack.c.2.s8 %v11259_v13  ;;  %v2847_v23 = vld [vmem:[%s10705_s4 + $0x3d0] sm:$0xff] }
 0x26d   : > { %4208 = vmatpush.bf16.msrb.mxu1 %v3958_v29  ;;  %v4086_v42 = vpack.c.bf16 %v3790_v34, %v3782_v31  ;;  %4183 = vmatmul.bf16.vlgmr.msra.gmra.mxu3 %v11264_v24  ;;  %v3006_v40 = vunpack.c.3.s8 %v11259_v13  ;;  %v3126_v26 = vunpack.c.2.s8 %v2790_v28  ;;  %v3134_v51 = vunpack.c.3.s8 %v2790_v28 }
 0x26e   : > { %4222 = vmatpush.bf16.msrb.mxu2 %v4022_v32  ;;  %v3382_v50 = vcvt.s32.f32 %v2870_v14  ;;  %v3390_v22 = vcvt.s32.f32 %v2878_v35  ;;  %v3510_v33 = vcvt.s32.f32 %v2998_v37  ;;  %v3254_v55 = vunpack.c.2.s8 %v11267_v17 }
 0x26f   : > { %4236 = vmatpush.bf16.msrb.mxu3 %v4086_v42  ;;  %v3518_v49 = vcvt.s32.f32 %v3006_v40  ;;  %v3638_v54 = vcvt.s32.f32 %v3126_v26  ;;  %v3646_v46 = vcvt.s32.f32 %v3134_v51  ;;  %v3262_v19 = vunpack.c.3.s8 %v11267_v17 }
 0x270   : > { %v3886_v53 = vpack.c.bf16 %v3390_v22, %v3382_v50  ;;  %v3766_v56 = vcvt.s32.f32 %v3254_v55  ;;  %v11279_v47 = vpack.c.bf16 %v2717_v45, %v2713_v38  ;;  %v11281_v30 = vpack.c.bf16 %v2718_v15, %v2714_v44 }
 0x271   : > { %v3950_v57 = vpack.c.bf16 %v3518_v49, %v3510_v33  ;;  %v4014_v7 = vpack.c.bf16 %v3646_v46, %v3638_v54  ;;  %v3774_v59 = vcvt.s32.f32 %v3262_v19  ;;  %v2854_v11 = vunpack.c.0.s8 %v2726_v41  ;;  %v2743_v33 = vld [vmem:[%s10705_s4 + $0x90] sm:$0xff] }
 0x272   : > { %4195 = vmatpush.bf16.msrb.mxu0 %v3886_v53  ;;  %4155 = vmatmul.bf16.vlgmr.msra.gmra.mxu1 %v11281_v30  ;;  %v2862_v39 = vunpack.c.1.s8 %v2726_v41  ;;  %v2982_v16 = vunpack.c.0.s8 %v11259_v13  ;;  %v2990_v58 = vunpack.c.1.s8 %v11259_v13  ;;  %v3110_v62 = vunpack.c.0.s8 %v2790_v28 }
 0x273   : > { %4209 = vmatpush.bf16.msrb.mxu1 %v3950_v57  ;;  %4223 = vmatpush.bf16.msrb.mxu2 %v4014_v7  ;;  %v4078_v48 = vpack.c.bf16 %v3774_v59, %v3766_v56  ;;  %v3366_v0 = vcvt.s32.f32 %v2854_v11  ;;  %v3118_v1 = vunpack.c.1.s8 %v2790_v28  ;;  %v3238_v2 = vunpack.c.0.s8 %v11267_v17  ;;  %v2775_v7 = vld [vmem:[%s10705_s4 + $0x190] sm:$0xff] }
 0x274   : > { %4141 = vmatmul.bf16.vlgmr.msra.gmra.mxu0 %v11279_v47  ;;  %v3374_v4 = vcvt.s32.f32 %v2862_v39  ;;  %v3494_v43 = vcvt.s32.f32 %v2982_v16  ;;  %v3502_v3 = vcvt.s32.f32 %v2990_v58  ;;  %v3622_v6 = vcvt.s32.f32 %v3110_v62  ;;  %v2807_v58 = vld [vmem:[%s10705_s4 + $0x290] sm:$0xff] }
 0x275   : > { %4237 = vmatpush.bf16.msrb.mxu3 %v4078_v48  ;;  %v3630_v9 = vcvt.s32.f32 %v3118_v1  ;;  %v3246_v10 = vunpack.c.1.s8 %v11267_v17  ;;  %v3750_v12 = vcvt.s32.f32 %v3238_v2  ;;  %v2967_v61 = vunpack.c.2.s8 %v2751_v63  ;;  %v2839_v1 = vld [vmem:[%s10705_s4 + $0x390] sm:$0xff] }
 0x276   : > { %v3878_v20 = vpack.c.bf16 %v3374_v4, %v3366_v0  ;;  %v3942_v5 = vpack.c.bf16 %v3502_v3, %v3494_v43  ;;  %v2975_v60 = vunpack.c.3.s8 %v2751_v63  ;;  %v3095_v21 = vunpack.c.2.s8 %v2783_v36 }
 0x277   : > { %v4006_v41 = vpack.c.bf16 %v3630_v9, %v3622_v6  ;;  %v3758_v13 = vcvt.s32.f32 %v3246_v10  ;;  %v3479_v25 = vcvt.s32.f32 %v2967_v61  ;;  %v3103_v8 = vunpack.c.3.s8 %v2783_v36 }
 0x278   : > { %4196 = vmatpush.bf16.msrb.mxu0 %v3878_v20  ;;  %4210 = vmatpush.bf16.msrb.mxu1 %v3942_v5  ;;  %v3487_v52 = vcvt.s32.f32 %v2975_v60  ;;  %v3607_v28 = vcvt.s32.f32 %v3095_v21  ;;  %v3223_v29 = vunpack.c.2.s8 %v2815_v18  ;;  %v3231_v31 = vunpack.c.3.s8 %v2815_v18 }
 0x279   : > { %4224 = vmatpush.bf16.msrb.mxu2 %v4006_v41  ;;  %v4070_v34 = vpack.c.bf16 %v3758_v13, %v3750_v12  ;;  %v3615_v17 = vcvt.s32.f32 %v3103_v8  ;;  %v3351_v32 = vunpack.c.2.s8 %v2847_v23  ;;  %v3359_v14 = vunpack.c.3.s8 %v2847_v23 }
 0x27a   : > { %v3935_v35 = vpack.c.bf16 %v3487_v52, %v3479_v25  ;;  %v3735_v37 = vcvt.s32.f32 %v3223_v29  ;;  %v3743_v38 = vcvt.s32.f32 %v3231_v31  ;;  %v2951_v42 = vunpack.c.0.s8 %v2751_v63 }
 0x27b   : > { %4238 = vmatpush.bf16.msrb.mxu3 %v4070_v34  ;;  %v3999_v40 = vpack.c.bf16 %v3615_v17, %v3607_v28  ;;  %v3863_v26 = vcvt.s32.f32 %v3351_v32  ;;  %v3871_v51 = vcvt.s32.f32 %v3359_v14  ;;  %v2959_v45 = vunpack.c.1.s8 %v2751_v63  ;;  %v2735_v34 = vld [vmem:[%s10705_s4 + $0x50] sm:$0xff] }
 0x27c   : > { %4245 = vmatpush.bf16.msra.mxu0 %v3935_v35  ;;  %v4063_v44 = vpack.c.bf16 %v3743_v38, %v3735_v37  ;;  %v3463_v15 = vcvt.s32.f32 %v2951_v42  ;;  %v3079_v50 = vunpack.c.0.s8 %v2783_v36  ;;  %v3087_v22 = vunpack.c.1.s8 %v2783_v36  ;;  %4225 = vmatmul.bf16.vlgmr.msrb.gmra.mxu2 %v11261_v27 }
 0x27d   : > { %4259 = vmatpush.bf16.msra.mxu1 %v3999_v40  ;;  %v4127_v55 = vpack.c.bf16 %v3871_v51, %v3863_v26  ;;  %v3471_v49 = vcvt.s32.f32 %v2959_v45  ;;  %v3207_v54 = vunpack.c.0.s8 %v2815_v18  ;;  %v3215_v46 = vunpack.c.1.s8 %v2815_v18  ;;  %v2767_v26 = vld [vmem:[%s10705_s4 + $0x150] sm:$0xff] }
 0x27e   : > { %4273 = vmatpush.bf16.msra.mxu2 %v4063_v44  ;;  %v3591_v19 = vcvt.s32.f32 %v3079_v50  ;;  %v3599_v53 = vcvt.s32.f32 %v3087_v22  ;;  %v3335_v56 = vunpack.c.0.s8 %v2847_v23  ;;  %v3343_v57 = vunpack.c.1.s8 %v2847_v23  ;;  %4239 = vmatmul.bf16.vlgmr.msrb.gmra.mxu3 %v11264_v24  ;;  %v2799_v50 = vld [vmem:[%s10705_s4 + $0x250] sm:$0xff] }
 0x27f   : > { %4287 = vmatpush.bf16.msra.mxu3 %v4127_v55  ;;  %v3927_v59 = vpack.c.bf16 %v3471_v49, %v3463_v15  ;;  %v3719_v11 = vcvt.s32.f32 %v3207_v54  ;;  %v3727_v39 = vcvt.s32.f32 %v3215_v46  ;;  %v2935_v16 = vunpack.c.2.s8 %v2743_v33  ;;  %v2831_v54 = vld [vmem:[%s10705_s4 + $0x350] sm:$0xff] }
 0x280   : > { %v3991_v62 = vpack.c.bf16 %v3599_v53, %v3591_v19  ;;  %v3847_v63 = vcvt.s32.f32 %v3335_v56  ;;  %v3855_v48 = vcvt.s32.f32 %v3343_v57  ;;  %v2943_v0 = vunpack.c.3.s8 %v2743_v33 }
 0x281   : > { %4246 = vmatpush.bf16.msra.mxu0 %v3927_v59  ;;  %v4055_v2 = vpack.c.bf16 %v3727_v39, %v3719_v11  ;;  %v3447_v36 = vcvt.s32.f32 %v2935_v16  ;;  %v3063_v4 = vunpack.c.2.s8 %v2775_v7  ;;  %v3071_v43 = vunpack.c.3.s8 %v2775_v7 }
 0x282   : > { %4260 = vmatpush.bf16.msra.mxu1 %v3991_v62  ;;  %v4119_v3 = vpack.c.bf16 %v3855_v48, %v3847_v63  ;;  %v3455_v6 = vcvt.s32.f32 %v2943_v0  ;;  %v3191_v9 = vunpack.c.2.s8 %v2807_v58  ;;  %v3199_v10 = vunpack.c.3.s8 %v2807_v58 }
 0x283   : > { %4274 = vmatpush.bf16.msra.mxu2 %v4055_v2  ;;  %v3575_v12 = vcvt.s32.f32 %v3063_v4  ;;  %v3583_v61 = vcvt.s32.f32 %v3071_v43  ;;  %v3319_v18 = vunpack.c.2.s8 %v2839_v1  ;;  %v3327_v20 = vunpack.c.3.s8 %v2839_v1  ;;  %4211 = vmatmul.bf16.vlgmr.msrb.gmra.mxu1 %v11281_v30 }
 0x284   : > { %4288 = vmatpush.bf16.msra.mxu3 %v4119_v3  ;;  %v3919_v5 = vpack.c.bf16 %v3455_v6, %v3447_v36  ;;  %v3703_v60 = vcvt.s32.f32 %v3191_v9  ;;  %v3711_v21 = vcvt.s32.f32 %v3199_v10  ;;  %v2919_v23 = vunpack.c.0.s8 %v2743_v33  ;;  %4197 = vmatmul.bf16.vlgmr.msrb.gmra.mxu0 %v11279_v47 }
 0x285   : > { %v3983_v41 = vpack.c.bf16 %v3583_v61, %v3575_v12  ;;  %v3831_v13 = vcvt.s32.f32 %v3319_v18  ;;  %v3839_v25 = vcvt.s32.f32 %v3327_v20  ;;  %v2927_v8 = vunpack.c.1.s8 %v2743_v33  ;;  %v2727_v12 = vld [vmem:[%s10705_s4 + $0x10] sm:$0xff] }
 0x286   : > { %4247 = vmatpush.bf16.msra.mxu0 %v3919_v5  ;;  %v4047_v52 = vpack.c.bf16 %v3711_v21, %v3703_v60  ;;  %v3431_v28 = vcvt.s32.f32 %v2919_v23  ;;  %v3047_v29 = vunpack.c.0.s8 %v2775_v7  ;;  %v3055_v31 = vunpack.c.1.s8 %v2775_v7 }
 0x287   : > { %4261 = vmatpush.bf16.msra.mxu1 %v3983_v41  ;;  %v4111_v17 = vpack.c.bf16 %v3839_v25, %v3831_v13  ;;  %v3439_v32 = vcvt.s32.f32 %v2927_v8  ;;  %v3175_v14 = vunpack.c.0.s8 %v2807_v58  ;;  %v3183_v35 = vunpack.c.1.s8 %v2807_v58  ;;  %v2759_v13 = vld [vmem:[%s10705_s4 + $0x110] sm:$0xff] }
 0x288   : > { %4275 = vmatpush.bf16.msra.mxu2 %v4047_v52  ;;  %v3559_v37 = vcvt.s32.f32 %v3047_v29  ;;  %v3567_v38 = vcvt.s32.f32 %v3055_v31  ;;  %v3303_v42 = vunpack.c.0.s8 %v2839_v1  ;;  %v3311_v40 = vunpack.c.1.s8 %v2839_v1  ;;  %v2791_v29 = vld [vmem:[%s10705_s4 + $0x210] sm:$0xff] }
 0x289   : > { %4289 = vmatpush.bf16.msra.mxu3 %v4111_v17  ;;  %v3911_v51 = vpack.c.bf16 %v3439_v32, %v3431_v28  ;;  %v3687_v45 = vcvt.s32.f32 %v3175_v14  ;;  %v3695_v44 = vcvt.s32.f32 %v3183_v35  ;;  %v2903_v15 = vunpack.c.2.s8 %v2735_v34  ;;  %v2823_v14 = vld [vmem:[%s10705_s4 + $0x310] sm:$0xff] }
 0x28a   : > { %v3975_v22 = vpack.c.bf16 %v3567_v38, %v3559_v37  ;;  %v3815_v33 = vcvt.s32.f32 %v3303_v42  ;;  %v3823_v55 = vcvt.s32.f32 %v3311_v40  ;;  %v2911_v49 = vunpack.c.3.s8 %v2735_v34 }
 0x28b   : > { %4248 = vmatpush.bf16.msra.mxu0 %v3911_v51  ;;  %v4039_v46 = vpack.c.bf16 %v3695_v44, %v3687_v45  ;;  %v3415_v19 = vcvt.s32.f32 %v2903_v15  ;;  %v3031_v53 = vunpack.c.2.s8 %v2767_v26  ;;  %v3039_v56 = vunpack.c.3.s8 %v2767_v26 }
 0x28c   : > { %4262 = vmatpush.bf16.msra.mxu1 %v3975_v22  ;;  %v4103_v57 = vpack.c.bf16 %v3823_v55, %v3815_v33  ;;  %v3423_v7 = vcvt.s32.f32 %v2911_v49  ;;  %v3159_v59 = vunpack.c.2.s8 %v2799_v50  ;;  %v3167_v11 = vunpack.c.3.s8 %v2799_v50 }
 0x28d   : > { %4276 = vmatpush.bf16.msra.mxu2 %v4039_v46  ;;  %v3543_v39 = vcvt.s32.f32 %v3031_v53  ;;  %v3551_v16 = vcvt.s32.f32 %v3039_v56  ;;  %v3287_v58 = vunpack.c.2.s8 %v2831_v54  ;;  %v3295_v62 = vunpack.c.3.s8 %v2831_v54 }
 0x28e   : > { %4290 = vmatpush.bf16.msra.mxu3 %v4103_v57  ;;  %v3903_v63 = vpack.c.bf16 %v3423_v7, %v3415_v19  ;;  %v3671_v48 = vcvt.s32.f32 %v3159_v59  ;;  %v3679_v0 = vcvt.s32.f32 %v3167_v11  ;;  %v2887_v1 = vunpack.c.0.s8 %v2735_v34 }
 0x28f   : > { %v3967_v2 = vpack.c.bf16 %v3551_v16, %v3543_v39  ;;  %v3799_v36 = vcvt.s32.f32 %v3287_v58  ;;  %v3807_v4 = vcvt.s32.f32 %v3295_v62  ;;  %v2895_v43 = vunpack.c.1.s8 %v2735_v34  ;;  %v2752_v39 = vld [vmem:[%s10705_s4 + $0xd8] sm:$0xff] }
 0x290   : > { %4249 = vmatpush.bf16.msra.mxu0 %v3903_v63  ;;  %v4031_v3 = vpack.c.bf16 %v3679_v0, %v3671_v48  ;;  %v3399_v6 = vcvt.s32.f32 %v2887_v1  ;;  %v3015_v9 = vunpack.c.0.s8 %v2767_v26  ;;  %v3023_v10 = vunpack.c.1.s8 %v2767_v26 }
 0x291   : > { %4263 = vmatpush.bf16.msra.mxu1 %v3967_v2  ;;  %v4095_v61 = vpack.c.bf16 %v3807_v4, %v3799_v36  ;;  %v3407_v18 = vcvt.s32.f32 %v2895_v43  ;;  %v3143_v20 = vunpack.c.0.s8 %v2799_v50  ;;  %v3151_v5 = vunpack.c.1.s8 %v2799_v50  ;;  %v2784_v36 = vld [vmem:[%s10705_s4 + $0x1d8] sm:$0xff] }
 0x292   : > { %4277 = vmatpush.bf16.msra.mxu2 %v4031_v3  ;;  %v3527_v60 = vcvt.s32.f32 %v3015_v9  ;;  %v3535_v21 = vcvt.s32.f32 %v3023_v10  ;;  %v3271_v23 = vunpack.c.0.s8 %v2831_v54  ;;  %v3279_v41 = vunpack.c.1.s8 %v2831_v54  ;;  %v2816_v9 = vld [vmem:[%s10705_s4 + $0x2d8] sm:$0xff] }
 0x293   : > { %4291 = vmatpush.bf16.msra.mxu3 %v4095_v61  ;;  %v3895_v25 = vpack.c.bf16 %v3407_v18, %v3399_v6  ;;  %v3655_v8 = vcvt.s32.f32 %v3143_v20  ;;  %v3663_v52 = vcvt.s32.f32 %v3151_v5  ;;  %v2871_v28 = vunpack.c.2.s8 %v2727_v12  ;;  %v2848_v20 = vld [vmem:[%s10705_s4 + $0x3d8] sm:$0xff] }
 0x294   : > { %v3959_v31 = vpack.c.bf16 %v3535_v21, %v3527_v60  ;;  %v3783_v34 = vcvt.s32.f32 %v3271_v23  ;;  %v3791_v17 = vcvt.s32.f32 %v3279_v41  ;;  %v2879_v32 = vunpack.c.3.s8 %v2727_v12 }
 0x295   : > { %4250 = vmatpush.bf16.msra.mxu0 %v3895_v25  ;;  %v4023_v35 = vpack.c.bf16 %v3663_v52, %v3655_v8  ;;  %v3383_v37 = vcvt.s32.f32 %v2871_v28  ;;  %v2999_v38 = vunpack.c.2.s8 %v2759_v13  ;;  %v3007_v42 = vunpack.c.3.s8 %v2759_v13 }
 0x296   : > { %4264 = vmatpush.bf16.msra.mxu1 %v3959_v31  ;;  %v4087_v40 = vpack.c.bf16 %v3791_v17, %v3783_v34  ;;  %v3391_v26 = vcvt.s32.f32 %v2879_v32  ;;  %v3127_v51 = vunpack.c.2.s8 %v2791_v29  ;;  %v3135_v45 = vunpack.c.3.s8 %v2791_v29 }
 0x297   : > { %4278 = vmatpush.bf16.msra.mxu2 %v4023_v35  ;;  %v3511_v44 = vcvt.s32.f32 %v2999_v38  ;;  %v3519_v15 = vcvt.s32.f32 %v3007_v42  ;;  %v3255_v50 = vunpack.c.2.s8 %v2823_v14  ;;  %v3263_v22 = vunpack.c.3.s8 %v2823_v14 }
 0x298   : > { %4292 = vmatpush.bf16.msra.mxu3 %v4087_v40  ;;  %v3887_v33 = vpack.c.bf16 %v3391_v26, %v3383_v37  ;;  %v3639_v55 = vcvt.s32.f32 %v3127_v51  ;;  %v3647_v49 = vcvt.s32.f32 %v3135_v45  ;;  %v2855_v54 = vunpack.c.0.s8 %v2727_v12 }
 0x299   : > { %v3951_v46 = vpack.c.bf16 %v3519_v15, %v3511_v44  ;;  %v3767_v19 = vcvt.s32.f32 %v3255_v50  ;;  %v3775_v53 = vcvt.s32.f32 %v3263_v22  ;;  %v2863_v56 = vunpack.c.1.s8 %v2727_v12  ;;  %v2744_v44 = vld [vmem:[%s10705_s4 + $0x98] sm:$0xff] }
 0x29a   : > { %4251 = vmatpush.bf16.msra.mxu0 %v3887_v33  ;;  %v4015_v57 = vpack.c.bf16 %v3647_v49, %v3639_v55  ;;  %v3367_v7 = vcvt.s32.f32 %v2855_v54  ;;  %v2983_v59 = vunpack.c.0.s8 %v2759_v13  ;;  %v2991_v11 = vunpack.c.1.s8 %v2759_v13 }
 0x29b   : > { %4265 = vmatpush.bf16.msra.mxu1 %v3951_v46  ;;  %v4079_v16 = vpack.c.bf16 %v3775_v53, %v3767_v19  ;;  %v3375_v58 = vcvt.s32.f32 %v2863_v56  ;;  %v3111_v62 = vunpack.c.0.s8 %v2791_v29  ;;  %v3119_v63 = vunpack.c.1.s8 %v2791_v29  ;;  %v2776_v19 = vld [vmem:[%s10705_s4 + $0x198] sm:$0xff] }
 0x29c   : > { %4279 = vmatpush.bf16.msra.mxu2 %v4015_v57  ;;  %v3495_v48 = vcvt.s32.f32 %v2983_v59  ;;  %v3503_v0 = vcvt.s32.f32 %v2991_v11  ;;  %v3239_v1 = vunpack.c.0.s8 %v2823_v14  ;;  %v3247_v2 = vunpack.c.1.s8 %v2823_v14  ;;  %v2808_v59 = vld [vmem:[%s10705_s4 + $0x298] sm:$0xff] }
 0x29d   : > { %4293 = vmatpush.bf16.msra.mxu3 %v4079_v16  ;;  %v3879_v4 = vpack.c.bf16 %v3375_v58, %v3367_v7  ;;  %v3623_v43 = vcvt.s32.f32 %v3111_v62  ;;  %v3631_v3 = vcvt.s32.f32 %v3119_v63  ;;  %v2968_v6 = vunpack.c.2.s8 %v2752_v39  ;;  %v2840_v62 = vld [vmem:[%s10705_s4 + $0x398] sm:$0xff] }
 0x29e   : > { %v3943_v10 = vpack.c.bf16 %v3503_v0, %v3495_v48  ;;  %v3751_v12 = vcvt.s32.f32 %v3239_v1  ;;  %v3759_v61 = vcvt.s32.f32 %v3247_v2  ;;  %v2976_v18 = vunpack.c.3.s8 %v2752_v39 }
 0x29f   : > { %4252 = vmatpush.bf16.msra.mxu0 %v3879_v4  ;;  %v4007_v5 = vpack.c.bf16 %v3631_v3, %v3623_v43  ;;  %v3480_v60 = vcvt.s32.f32 %v2968_v6  ;;  %v3096_v21 = vunpack.c.2.s8 %v2784_v36  ;;  %v3104_v23 = vunpack.c.3.s8 %v2784_v36 }
 0x2a0   : > { %4266 = vmatpush.bf16.msra.mxu1 %v3943_v10  ;;  %v4071_v41 = vpack.c.bf16 %v3759_v61, %v3751_v12  ;;  %v3488_v13 = vcvt.s32.f32 %v2976_v18  ;;  %v3224_v25 = vunpack.c.2.s8 %v2816_v9  ;;  %v3232_v8 = vunpack.c.3.s8 %v2816_v9 }
 0x2a1   : > { %4280 = vmatpush.bf16.msra.mxu2 %v4007_v5  ;;  %v3608_v52 = vcvt.s32.f32 %v3096_v21  ;;  %v3616_v28 = vcvt.s32.f32 %v3104_v23  ;;  %v3352_v29 = vunpack.c.2.s8 %v2848_v20  ;;  %v3360_v31 = vunpack.c.3.s8 %v2848_v20 }
 0x2a2   : > { %4294 = vmatpush.bf16.msra.mxu3 %v4071_v41  ;;  %v3936_v34 = vpack.c.bf16 %v3488_v13, %v3480_v60  ;;  %v3736_v17 = vcvt.s32.f32 %v3224_v25  ;;  %v3744_v32 = vcvt.s32.f32 %v3232_v8  ;;  %v2952_v14 = vunpack.c.0.s8 %v2752_v39  ;;  %4253 = vmatmul.bf16.vlgmr.msra.gmra.mxu0 %v11279_v47 }
 0x2a3   : > { %v4000_v35 = vpack.c.bf16 %v3616_v28, %v3608_v52  ;;  %v3864_v37 = vcvt.s32.f32 %v3352_v29  ;;  %v3872_v38 = vcvt.s32.f32 %v3360_v31  ;;  %v2960_v42 = vunpack.c.1.s8 %v2752_v39  ;;  %4267 = vmatmul.bf16.vlgmr.msra.gmra.mxu1 %v11281_v30  ;;  %v2736_v52 = vld [vmem:[%s10705_s4 + $0x58] sm:$0xff] }
 0x2a4   : > { %4301 = vmatpush.bf16.msrb.mxu0 %v3936_v34  ;;  %v4064_v40 = vpack.c.bf16 %v3744_v32, %v3736_v17  ;;  %v3464_v26 = vcvt.s32.f32 %v2952_v14  ;;  %v3080_v51 = vunpack.c.0.s8 %v2784_v36  ;;  %v3088_v45 = vunpack.c.1.s8 %v2784_v36  ;;  %4281 = vmatmul.bf16.vlgmr.msra.gmra.mxu2 %v11261_v27 }
 0x2a5   : > { %4315 = vmatpush.bf16.msrb.mxu1 %v4000_v35  ;;  %v4128_v15 = vpack.c.bf16 %v3872_v38, %v3864_v37  ;;  %v3472_v50 = vcvt.s32.f32 %v2960_v42  ;;  %v3208_v22 = vunpack.c.0.s8 %v2816_v9  ;;  %v3216_v33 = vunpack.c.1.s8 %v2816_v9  ;;  %4295 = vmatmul.bf16.vlgmr.msra.gmra.mxu3 %v11264_v24  ;;  %v2768_v37 = vld [vmem:[%s10705_s4 + $0x158] sm:$0xff] }
 0x2a6   : > { %4329 = vmatpush.bf16.msrb.mxu2 %v4064_v40  ;;  %v3592_v55 = vcvt.s32.f32 %v3080_v51  ;;  %v3600_v49 = vcvt.s32.f32 %v3088_v45  ;;  %v3336_v54 = vunpack.c.0.s8 %v2848_v20  ;;  %v3344_v46 = vunpack.c.1.s8 %v2848_v20  ;;  %v2800_v51 = vld [vmem:[%s10705_s4 + $0x258] sm:$0xff] }
 0x2a7   : > { %4343 = vmatpush.bf16.msrb.mxu3 %v4128_v15  ;;  %v3928_v53 = vpack.c.bf16 %v3472_v50, %v3464_v26  ;;  %v3720_v56 = vcvt.s32.f32 %v3208_v22  ;;  %v3728_v57 = vcvt.s32.f32 %v3216_v33  ;;  %v2936_v7 = vunpack.c.2.s8 %v2744_v44  ;;  %v2832_v22 = vld [vmem:[%s10705_s4 + $0x358] sm:$0xff] }
 0x2a8   : > { %v3992_v11 = vpack.c.bf16 %v3600_v49, %v3592_v55  ;;  %v3848_v39 = vcvt.s32.f32 %v3336_v54  ;;  %v3856_v16 = vcvt.s32.f32 %v3344_v46  ;;  %v2944_v58 = vunpack.c.3.s8 %v2744_v44 }
 0x2a9   : > { %4302 = vmatpush.bf16.msrb.mxu0 %v3928_v53  ;;  %v4056_v63 = vpack.c.bf16 %v3728_v57, %v3720_v56  ;;  %v3448_v48 = vcvt.s32.f32 %v2936_v7  ;;  %v3064_v0 = vunpack.c.2.s8 %v2776_v19  ;;  %v3072_v1 = vunpack.c.3.s8 %v2776_v19 }
 0x2aa   : > { %4316 = vmatpush.bf16.msrb.mxu1 %v3992_v11  ;;  %v4120_v2 = vpack.c.bf16 %v3856_v16, %v3848_v39  ;;  %v3456_v36 = vcvt.s32.f32 %v2944_v58  ;;  %v3192_v4 = vunpack.c.2.s8 %v2808_v59  ;;  %v3200_v43 = vunpack.c.3.s8 %v2808_v59 }
 0x2ab   : > { %4330 = vmatpush.bf16.msrb.mxu2 %v4056_v63  ;;  %v3576_v3 = vcvt.s32.f32 %v3064_v0  ;;  %v3584_v6 = vcvt.s32.f32 %v3072_v1  ;;  %v3320_v9 = vunpack.c.2.s8 %v2840_v62  ;;  %v3328_v10 = vunpack.c.3.s8 %v2840_v62 }
 0x2ac   : > { %4344 = vmatpush.bf16.msrb.mxu3 %v4120_v2  ;;  %v3920_v12 = vpack.c.bf16 %v3456_v36, %v3448_v48  ;;  %v3704_v61 = vcvt.s32.f32 %v3192_v4  ;;  %v3712_v18 = vcvt.s32.f32 %v3200_v43  ;;  %v2920_v20 = vunpack.c.0.s8 %v2744_v44 }
 0x2ad   : > { %v3984_v5 = vpack.c.bf16 %v3584_v6, %v3576_v3  ;;  %v3832_v60 = vcvt.s32.f32 %v3320_v9  ;;  %v3840_v21 = vcvt.s32.f32 %v3328_v10  ;;  %v2928_v23 = vunpack.c.1.s8 %v2744_v44  ;;  %v2728_v3 = vld [vmem:[%s10705_s4 + $0x18] sm:$0xff] }
 0x2ae   : > { %4303 = vmatpush.bf16.msrb.mxu0 %v3920_v12  ;;  %v4048_v41 = vpack.c.bf16 %v3712_v18, %v3704_v61  ;;  %v3432_v13 = vcvt.s32.f32 %v2920_v20  ;;  %v3048_v25 = vunpack.c.0.s8 %v2776_v19  ;;  %v3056_v8 = vunpack.c.1.s8 %v2776_v19 }
 0x2af   : > { %4317 = vmatpush.bf16.msrb.mxu1 %v3984_v5  ;;  %v4112_v28 = vpack.c.bf16 %v3840_v21, %v3832_v60  ;;  %v3440_v29 = vcvt.s32.f32 %v2928_v23  ;;  %v3176_v31 = vunpack.c.0.s8 %v2808_v59  ;;  %v3184_v34 = vunpack.c.1.s8 %v2808_v59  ;;  %v2760_v60 = vld [vmem:[%s10705_s4 + $0x118] sm:$0xff] }
 0x2b0   : > { %4331 = vmatpush.bf16.msrb.mxu2 %v4048_v41  ;;  %v3560_v17 = vcvt.s32.f32 %v3048_v25  ;;  %v3568_v32 = vcvt.s32.f32 %v3056_v8  ;;  %v3304_v14 = vunpack.c.0.s8 %v2840_v62  ;;  %v3312_v35 = vunpack.c.1.s8 %v2840_v62  ;;  %v2792_v25 = vld [vmem:[%s10705_s4 + $0x218] sm:$0xff] }
 0x2b1   : > { %4345 = vmatpush.bf16.msrb.mxu3 %v4112_v28  ;;  %v3912_v38 = vpack.c.bf16 %v3440_v29, %v3432_v13  ;;  %v3688_v42 = vcvt.s32.f32 %v3176_v31  ;;  %v3696_v40 = vcvt.s32.f32 %v3184_v34  ;;  %v2904_v26 = vunpack.c.2.s8 %v2736_v52  ;;  %v2824_v31 = vld [vmem:[%s10705_s4 + $0x318] sm:$0xff] }
 0x2b2   : > { %v3976_v45 = vpack.c.bf16 %v3568_v32, %v3560_v17  ;;  %v3816_v44 = vcvt.s32.f32 %v3304_v14  ;;  %v3824_v15 = vcvt.s32.f32 %v3312_v35  ;;  %v2912_v50 = vunpack.c.3.s8 %v2736_v52 }
 0x2b3   : > { %4304 = vmatpush.bf16.msrb.mxu0 %v3912_v38  ;;  %v4040_v33 = vpack.c.bf16 %v3696_v40, %v3688_v42  ;;  %v3416_v55 = vcvt.s32.f32 %v2904_v26  ;;  %v3032_v49 = vunpack.c.2.s8 %v2768_v37  ;;  %v3040_v54 = vunpack.c.3.s8 %v2768_v37 }
 0x2b4   : > { %4318 = vmatpush.bf16.msrb.mxu1 %v3976_v45  ;;  %v4104_v46 = vpack.c.bf16 %v3824_v15, %v3816_v44  ;;  %v3424_v19 = vcvt.s32.f32 %v2912_v50  ;;  %v3160_v53 = vunpack.c.2.s8 %v2800_v51  ;;  %v3168_v56 = vunpack.c.3.s8 %v2800_v51 }
 0x2b5   : > { %4332 = vmatpush.bf16.msrb.mxu2 %v4040_v33  ;;  %v3544_v57 = vcvt.s32.f32 %v3032_v49  ;;  %v3552_v7 = vcvt.s32.f32 %v3040_v54  ;;  %v3288_v59 = vunpack.c.2.s8 %v2832_v22  ;;  %v3296_v11 = vunpack.c.3.s8 %v2832_v22 }
 0x2b6   : > { %4346 = vmatpush.bf16.msrb.mxu3 %v4104_v46  ;;  %v3904_v39 = vpack.c.bf16 %v3424_v19, %v3416_v55  ;;  %v3672_v16 = vcvt.s32.f32 %v3160_v53  ;;  %v3680_v58 = vcvt.s32.f32 %v3168_v56  ;;  %v2888_v62 = vunpack.c.0.s8 %v2736_v52 }
 0x2b7   : > { %v3968_v63 = vpack.c.bf16 %v3552_v7, %v3544_v57  ;;  %v3800_v48 = vcvt.s32.f32 %v3288_v59  ;;  %v3808_v0 = vcvt.s32.f32 %v3296_v11  ;;  %v2896_v1 = vunpack.c.1.s8 %v2736_v52  ;;  %v2753_v57 = vld [vmem:[%s10705_s4 + $0xe0] sm:$0xff] }
 0x2b8   : > { %4305 = vmatpush.bf16.msrb.mxu0 %v3904_v39  ;;  %v4032_v2 = vpack.c.bf16 %v3680_v58, %v3672_v16  ;;  %v3400_v36 = vcvt.s32.f32 %v2888_v62  ;;  %v3016_v4 = vunpack.c.0.s8 %v2768_v37  ;;  %v3024_v43 = vunpack.c.1.s8 %v2768_v37 }
 0x2b9   : > { %4319 = vmatpush.bf16.msrb.mxu1 %v3968_v63  ;;  %v4096_v6 = vpack.c.bf16 %v3808_v0, %v3800_v48  ;;  %v3408_v9 = vcvt.s32.f32 %v2896_v1  ;;  %v3144_v10 = vunpack.c.0.s8 %v2800_v51  ;;  %v3152_v12 = vunpack.c.1.s8 %v2800_v51  ;;  %v2785_v48 = vld [vmem:[%s10705_s4 + $0x1e0] sm:$0xff] }
 0x2ba   : > { %4333 = vmatpush.bf16.msrb.mxu2 %v4032_v2  ;;  %v3528_v61 = vcvt.s32.f32 %v3016_v4  ;;  %v3536_v18 = vcvt.s32.f32 %v3024_v43  ;;  %v3272_v20 = vunpack.c.0.s8 %v2832_v22  ;;  %v3280_v5 = vunpack.c.1.s8 %v2832_v22  ;;  %v2817_v4 = vld [vmem:[%s10705_s4 + $0x2e0] sm:$0xff] }
 0x2bb   : > { %4347 = vmatpush.bf16.msrb.mxu3 %v4096_v6  ;;  %v3896_v21 = vpack.c.bf16 %v3408_v9, %v3400_v36  ;;  %v3656_v23 = vcvt.s32.f32 %v3144_v10  ;;  %v3664_v41 = vcvt.s32.f32 %v3152_v12  ;;  %v2872_v13 = vunpack.c.2.s8 %v2728_v3  ;;  %v2849_v10 = vld [vmem:[%s10705_s4 + $0x3e0] sm:$0xff] }
 0x2bc   : > { %v3960_v8 = vpack.c.bf16 %v3536_v18, %v3528_v61  ;;  %v3784_v52 = vcvt.s32.f32 %v3272_v20  ;;  %v3792_v28 = vcvt.s32.f32 %v3280_v5  ;;  %v2880_v29 = vunpack.c.3.s8 %v2728_v3 }
 0x2bd   : > { %4306 = vmatpush.bf16.msrb.mxu0 %v3896_v21  ;;  %v4024_v34 = vpack.c.bf16 %v3664_v41, %v3656_v23  ;;  %v3384_v17 = vcvt.s32.f32 %v2872_v13  ;;  %v3000_v32 = vunpack.c.2.s8 %v2760_v60  ;;  %v3008_v14 = vunpack.c.3.s8 %v2760_v60 }
 0x2be   : > { %4320 = vmatpush.bf16.msrb.mxu1 %v3960_v8  ;;  %v4088_v35 = vpack.c.bf16 %v3792_v28, %v3784_v52  ;;  %v3392_v37 = vcvt.s32.f32 %v2880_v29  ;;  %v3128_v38 = vunpack.c.2.s8 %v2792_v25  ;;  %v3136_v42 = vunpack.c.3.s8 %v2792_v25 }
 0x2bf   : > { %4334 = vmatpush.bf16.msrb.mxu2 %v4024_v34  ;;  %v3512_v40 = vcvt.s32.f32 %v3000_v32  ;;  %v3520_v26 = vcvt.s32.f32 %v3008_v14  ;;  %v3256_v51 = vunpack.c.2.s8 %v2824_v31  ;;  %v3264_v45 = vunpack.c.3.s8 %v2824_v31 }
 0x2c0   : > { %4348 = vmatpush.bf16.msrb.mxu3 %v4088_v35  ;;  %v3888_v44 = vpack.c.bf16 %v3392_v37, %v3384_v17  ;;  %v3640_v15 = vcvt.s32.f32 %v3128_v38  ;;  %v3648_v50 = vcvt.s32.f32 %v3136_v42  ;;  %v2856_v22 = vunpack.c.0.s8 %v2728_v3 }
 0x2c1   : > { %v3952_v33 = vpack.c.bf16 %v3520_v26, %v3512_v40  ;;  %v3768_v55 = vcvt.s32.f32 %v3256_v51  ;;  %v3776_v49 = vcvt.s32.f32 %v3264_v45  ;;  %v2864_v54 = vunpack.c.1.s8 %v2728_v3  ;;  %v2745_v40 = vld [vmem:[%s10705_s4 + $0xa0] sm:$0xff] }
 0x2c2   : > { %4307 = vmatpush.bf16.msrb.mxu0 %v3888_v44  ;;  %v4016_v46 = vpack.c.bf16 %v3648_v50, %v3640_v15  ;;  %v3368_v19 = vcvt.s32.f32 %v2856_v22  ;;  %v2984_v53 = vunpack.c.0.s8 %v2760_v60  ;;  %v2992_v56 = vunpack.c.1.s8 %v2760_v60 }
 0x2c3   : > { %4321 = vmatpush.bf16.msrb.mxu1 %v3952_v33  ;;  %v4080_v7 = vpack.c.bf16 %v3776_v49, %v3768_v55  ;;  %v3376_v59 = vcvt.s32.f32 %v2864_v54  ;;  %v3112_v11 = vunpack.c.0.s8 %v2792_v25  ;;  %v3120_v39 = vunpack.c.1.s8 %v2792_v25  ;;  %v2777_v55 = vld [vmem:[%s10705_s4 + $0x1a0] sm:$0xff] }
 0x2c4   : > { %4335 = vmatpush.bf16.msrb.mxu2 %v4016_v46  ;;  %v3496_v16 = vcvt.s32.f32 %v2984_v53  ;;  %v3504_v58 = vcvt.s32.f32 %v2992_v56  ;;  %v3240_v62 = vunpack.c.0.s8 %v2824_v31  ;;  %v3248_v63 = vunpack.c.1.s8 %v2824_v31  ;;  %v2809_v53 = vld [vmem:[%s10705_s4 + $0x2a0] sm:$0xff] }
 0x2c5   : > { %4349 = vmatpush.bf16.msrb.mxu3 %v4080_v7  ;;  %v3880_v0 = vpack.c.bf16 %v3376_v59, %v3368_v19  ;;  %v3624_v1 = vcvt.s32.f32 %v3112_v11  ;;  %v3632_v2 = vcvt.s32.f32 %v3120_v39  ;;  %v2969_v36 = vunpack.c.2.s8 %v2753_v57  ;;  %v2841_v11 = vld [vmem:[%s10705_s4 + $0x3a0] sm:$0xff] }
 0x2c6   : > { %v3944_v43 = vpack.c.bf16 %v3504_v58, %v3496_v16  ;;  %v3752_v3 = vcvt.s32.f32 %v3240_v62  ;;  %v3760_v6 = vcvt.s32.f32 %v3248_v63  ;;  %v2977_v9 = vunpack.c.3.s8 %v2753_v57 }
 0x2c7   : > { %4308 = vmatpush.bf16.msrb.mxu0 %v3880_v0  ;;  %v4008_v12 = vpack.c.bf16 %v3632_v2, %v3624_v1  ;;  %v3481_v61 = vcvt.s32.f32 %v2969_v36  ;;  %v3097_v18 = vunpack.c.2.s8 %v2785_v48  ;;  %v3105_v20 = vunpack.c.3.s8 %v2785_v48 }
 0x2c8   : > { %4322 = vmatpush.bf16.msrb.mxu1 %v3944_v43  ;;  %v4072_v5 = vpack.c.bf16 %v3760_v6, %v3752_v3  ;;  %v3489_v60 = vcvt.s32.f32 %v2977_v9  ;;  %v3225_v21 = vunpack.c.2.s8 %v2817_v4  ;;  %v3233_v23 = vunpack.c.3.s8 %v2817_v4 }
 0x2c9   : > { %4336 = vmatpush.bf16.msrb.mxu2 %v4008_v12  ;;  %v3609_v41 = vcvt.s32.f32 %v3097_v18  ;;  %v3617_v13 = vcvt.s32.f32 %v3105_v20  ;;  %v3353_v25 = vunpack.c.2.s8 %v2849_v10  ;;  %v3361_v8 = vunpack.c.3.s8 %v2849_v10 }
 0x2ca   : > { %4350 = vmatpush.bf16.msrb.mxu3 %v4072_v5  ;;  %v3937_v52 = vpack.c.bf16 %v3489_v60, %v3481_v61  ;;  %v3737_v28 = vcvt.s32.f32 %v3225_v21  ;;  %v3745_v29 = vcvt.s32.f32 %v3233_v23  ;;  %v2953_v31 = vunpack.c.0.s8 %v2753_v57  ;;  %4309 = vmatmul.bf16.vlgmr.msrb.gmra.mxu0 %v11279_v47 }
 0x2cb   : > { %v4001_v34 = vpack.c.bf16 %v3617_v13, %v3609_v41  ;;  %v3865_v17 = vcvt.s32.f32 %v3353_v25  ;;  %v3873_v32 = vcvt.s32.f32 %v3361_v8  ;;  %v2961_v14 = vunpack.c.1.s8 %v2753_v57  ;;  %4323 = vmatmul.bf16.vlgmr.msrb.gmra.mxu1 %v11281_v30  ;;  %v2737_v41 = vld [vmem:[%s10705_s4 + $0x60] sm:$0xff] }
 0x2cc   : > { %4357 = vmatpush.bf16.msra.mxu0 %v3937_v52  ;;  %v4065_v35 = vpack.c.bf16 %v3745_v29, %v3737_v28  ;;  %v3465_v37 = vcvt.s32.f32 %v2953_v31  ;;  %v3081_v38 = vunpack.c.0.s8 %v2785_v48  ;;  %v3089_v42 = vunpack.c.1.s8 %v2785_v48  ;;  %4337 = vmatmul.bf16.vlgmr.msrb.gmra.mxu2 %v11261_v27 }
 0x2cd   : > { %4371 = vmatpush.bf16.msra.mxu1 %v4001_v34  ;;  %v4129_v26 = vpack.c.bf16 %v3873_v32, %v3865_v17  ;;  %v3473_v51 = vcvt.s32.f32 %v2961_v14  ;;  %v3209_v45 = vunpack.c.0.s8 %v2817_v4  ;;  %v3217_v44 = vunpack.c.1.s8 %v2817_v4  ;;  %4351 = vmatmul.bf16.vlgmr.msrb.gmra.mxu3 %v11264_v24  ;;  %v2769_v17 = vld [vmem:[%s10705_s4 + $0x160] sm:$0xff] }
 0x2ce   : > { %4385 = vmatpush.bf16.msra.mxu2 %v4065_v35  ;;  %v3593_v15 = vcvt.s32.f32 %v3081_v38  ;;  %v3601_v50 = vcvt.s32.f32 %v3089_v42  ;;  %v3337_v22 = vunpack.c.0.s8 %v2849_v10  ;;  %v3345_v33 = vunpack.c.1.s8 %v2849_v10  ;;  %v2801_v38 = vld [vmem:[%s10705_s4 + $0x260] sm:$0xff] }
 0x2cf   : > { %4399 = vmatpush.bf16.msra.mxu3 %v4129_v26  ;;  %v3929_v49 = vpack.c.bf16 %v3473_v51, %v3465_v37  ;;  %v3721_v54 = vcvt.s32.f32 %v3209_v45  ;;  %v3729_v46 = vcvt.s32.f32 %v3217_v44  ;;  %v2937_v19 = vunpack.c.2.s8 %v2745_v40  ;;  %v2833_v45 = vld [vmem:[%s10705_s4 + $0x360] sm:$0xff] }
 0x2d0   : > { %v3993_v56 = vpack.c.bf16 %v3601_v50, %v3593_v15  ;;  %v3849_v57 = vcvt.s32.f32 %v3337_v22  ;;  %v3857_v7 = vcvt.s32.f32 %v3345_v33  ;;  %v2945_v59 = vunpack.c.3.s8 %v2745_v40 }
 0x2d1   : > { %4358 = vmatpush.bf16.msra.mxu0 %v3929_v49  ;;  %v4057_v39 = vpack.c.bf16 %v3729_v46, %v3721_v54  ;;  %v3449_v16 = vcvt.s32.f32 %v2937_v19  ;;  %v3065_v58 = vunpack.c.2.s8 %v2777_v55  ;;  %v3073_v62 = vunpack.c.3.s8 %v2777_v55 }
 0x2d2   : > { %4372 = vmatpush.bf16.msra.mxu1 %v3993_v56  ;;  %v4121_v63 = vpack.c.bf16 %v3857_v7, %v3849_v57  ;;  %v3457_v48 = vcvt.s32.f32 %v2945_v59  ;;  %v3193_v0 = vunpack.c.2.s8 %v2809_v53  ;;  %v3201_v1 = vunpack.c.3.s8 %v2809_v53 }
 0x2d3   : > { %4386 = vmatpush.bf16.msra.mxu2 %v4057_v39  ;;  %v3577_v2 = vcvt.s32.f32 %v3065_v58  ;;  %v3585_v36 = vcvt.s32.f32 %v3073_v62  ;;  %v3321_v4 = vunpack.c.2.s8 %v2841_v11  ;;  %v3329_v43 = vunpack.c.3.s8 %v2841_v11 }
 0x2d4   : > { %4400 = vmatpush.bf16.msra.mxu3 %v4121_v63  ;;  %v3921_v3 = vpack.c.bf16 %v3457_v48, %v3449_v16  ;;  %v3705_v6 = vcvt.s32.f32 %v3193_v0  ;;  %v3713_v9 = vcvt.s32.f32 %v3201_v1  ;;  %v2921_v10 = vunpack.c.0.s8 %v2745_v40 }
 0x2d5   : > { %v3985_v12 = vpack.c.bf16 %v3585_v36, %v3577_v2  ;;  %v3833_v61 = vcvt.s32.f32 %v3321_v4  ;;  %v3841_v18 = vcvt.s32.f32 %v3329_v43  ;;  %v2929_v20 = vunpack.c.1.s8 %v2745_v40  ;;  %v2729_v2 = vld [vmem:[%s10705_s4 + $0x20] sm:$0xff] }
 0x2d6   : > { %4359 = vmatpush.bf16.msra.mxu0 %v3921_v3  ;;  %v4049_v5 = vpack.c.bf16 %v3713_v9, %v3705_v6  ;;  %v3433_v60 = vcvt.s32.f32 %v2921_v10  ;;  %v3049_v21 = vunpack.c.0.s8 %v2777_v55  ;;  %v3057_v23 = vunpack.c.1.s8 %v2777_v55 }
 0x2d7   : > { %4373 = vmatpush.bf16.msra.mxu1 %v3985_v12  ;;  %v4113_v13 = vpack.c.bf16 %v3841_v18, %v3833_v61  ;;  %v3441_v25 = vcvt.s32.f32 %v2929_v20  ;;  %v3177_v8 = vunpack.c.0.s8 %v2809_v53  ;;  %v3185_v52 = vunpack.c.1.s8 %v2809_v53  ;;  %v2761_v61 = vld [vmem:[%s10705_s4 + $0x120] sm:$0xff] }
 0x2d8   : > { %4387 = vmatpush.bf16.msra.mxu2 %v4049_v5  ;;  %v3561_v28 = vcvt.s32.f32 %v3049_v21  ;;  %v3569_v29 = vcvt.s32.f32 %v3057_v23  ;;  %v3305_v31 = vunpack.c.0.s8 %v2841_v11  ;;  %v3313_v34 = vunpack.c.1.s8 %v2841_v11  ;;  %v2793_v21 = vld [vmem:[%s10705_s4 + $0x220] sm:$0xff] }
 0x2d9   : > { %4401 = vmatpush.bf16.msra.mxu3 %v4113_v13  ;;  %v3913_v32 = vpack.c.bf16 %v3441_v25, %v3433_v60  ;;  %v3689_v14 = vcvt.s32.f32 %v3177_v8  ;;  %v3697_v35 = vcvt.s32.f32 %v3185_v52  ;;  %v2905_v37 = vunpack.c.2.s8 %v2737_v41  ;;  %v2825_v8 = vld [vmem:[%s10705_s4 + $0x320] sm:$0xff] }
 0x2da   : > { %v3977_v42 = vpack.c.bf16 %v3569_v29, %v3561_v28  ;;  %v3817_v40 = vcvt.s32.f32 %v3305_v31  ;;  %v3825_v26 = vcvt.s32.f32 %v3313_v34  ;;  %v2913_v51 = vunpack.c.3.s8 %v2737_v41 }
 0x2db   : > { %4360 = vmatpush.bf16.msra.mxu0 %v3913_v32  ;;  %v4041_v44 = vpack.c.bf16 %v3697_v35, %v3689_v14  ;;  %v3417_v15 = vcvt.s32.f32 %v2905_v37  ;;  %v3033_v50 = vunpack.c.2.s8 %v2769_v17  ;;  %v3041_v22 = vunpack.c.3.s8 %v2769_v17 }
 0x2dc   : > { %4374 = vmatpush.bf16.msra.mxu1 %v3977_v42  ;;  %v4105_v33 = vpack.c.bf16 %v3825_v26, %v3817_v40  ;;  %v3425_v55 = vcvt.s32.f32 %v2913_v51  ;;  %v3161_v49 = vunpack.c.2.s8 %v2801_v38  ;;  %v3169_v54 = vunpack.c.3.s8 %v2801_v38 }
 0x2dd   : > { %4388 = vmatpush.bf16.msra.mxu2 %v4041_v44  ;;  %v3545_v46 = vcvt.s32.f32 %v3033_v50  ;;  %v3553_v19 = vcvt.s32.f32 %v3041_v22  ;;  %v3289_v53 = vunpack.c.2.s8 %v2833_v45  ;;  %v3297_v56 = vunpack.c.3.s8 %v2833_v45 }
 0x2de   : > { %4402 = vmatpush.bf16.msra.mxu3 %v4105_v33  ;;  %v3905_v57 = vpack.c.bf16 %v3425_v55, %v3417_v15  ;;  %v3673_v7 = vcvt.s32.f32 %v3161_v49  ;;  %v3681_v59 = vcvt.s32.f32 %v3169_v54  ;;  %v2889_v11 = vunpack.c.0.s8 %v2737_v41 }
 0x2df   : > { %v3969_v39 = vpack.c.bf16 %v3553_v19, %v3545_v46  ;;  %v3801_v16 = vcvt.s32.f32 %v3289_v53  ;;  %v3809_v58 = vcvt.s32.f32 %v3297_v56  ;;  %v2897_v62 = vunpack.c.1.s8 %v2737_v41  ;;  %v2754_v46 = vld [vmem:[%s10705_s4 + $0xe8] sm:$0xff] }
 0x2e0   : > { %4361 = vmatpush.bf16.msra.mxu0 %v3905_v57  ;;  %v4033_v63 = vpack.c.bf16 %v3681_v59, %v3673_v7  ;;  %v3401_v48 = vcvt.s32.f32 %v2889_v11  ;;  %v3017_v0 = vunpack.c.0.s8 %v2769_v17  ;;  %v3025_v1 = vunpack.c.1.s8 %v2769_v17 }
 0x2e1   : > { %4375 = vmatpush.bf16.msra.mxu1 %v3969_v39  ;;  %v4097_v36 = vpack.c.bf16 %v3809_v58, %v3801_v16  ;;  %v3409_v4 = vcvt.s32.f32 %v2897_v62  ;;  %v3145_v43 = vunpack.c.0.s8 %v2801_v38  ;;  %v3153_v3 = vunpack.c.1.s8 %v2801_v38  ;;  %v2786_v16 = vld [vmem:[%s10705_s4 + $0x1e8] sm:$0xff] }
 0x2e2   : > { %4389 = vmatpush.bf16.msra.mxu2 %v4033_v63  ;;  %v3529_v6 = vcvt.s32.f32 %v3017_v0  ;;  %v3537_v9 = vcvt.s32.f32 %v3025_v1  ;;  %v3273_v10 = vunpack.c.0.s8 %v2833_v45  ;;  %v3281_v12 = vunpack.c.1.s8 %v2833_v45  ;;  %v2818_v0 = vld [vmem:[%s10705_s4 + $0x2e8] sm:$0xff] }
 0x2e3   : > { %4403 = vmatpush.bf16.msra.mxu3 %v4097_v36  ;;  %v3897_v18 = vpack.c.bf16 %v3409_v4, %v3401_v48  ;;  %v3657_v20 = vcvt.s32.f32 %v3145_v43  ;;  %v3665_v5 = vcvt.s32.f32 %v3153_v3  ;;  %v2873_v60 = vunpack.c.2.s8 %v2729_v2  ;;  %v2850_v43 = vld [vmem:[%s10705_s4 + $0x3e8] sm:$0xff] }
 0x2e4   : > { %v3961_v23 = vpack.c.bf16 %v3537_v9, %v3529_v6  ;;  %v3785_v41 = vcvt.s32.f32 %v3273_v10  ;;  %v3793_v13 = vcvt.s32.f32 %v3281_v12  ;;  %v2881_v25 = vunpack.c.3.s8 %v2729_v2 }
 0x2e5   : > { %4362 = vmatpush.bf16.msra.mxu0 %v3897_v18  ;;  %v4025_v52 = vpack.c.bf16 %v3665_v5, %v3657_v20  ;;  %v3385_v28 = vcvt.s32.f32 %v2873_v60  ;;  %v3001_v29 = vunpack.c.2.s8 %v2761_v61  ;;  %v3009_v31 = vunpack.c.3.s8 %v2761_v61 }
 0x2e6   : > { %4376 = vmatpush.bf16.msra.mxu1 %v3961_v23  ;;  %v4089_v34 = vpack.c.bf16 %v3793_v13, %v3785_v41  ;;  %v3393_v17 = vcvt.s32.f32 %v2881_v25  ;;  %v3129_v32 = vunpack.c.2.s8 %v2793_v21  ;;  %v3137_v14 = vunpack.c.3.s8 %v2793_v21 }
 0x2e7   : > { %4390 = vmatpush.bf16.msra.mxu2 %v4025_v52  ;;  %v3513_v35 = vcvt.s32.f32 %v3001_v29  ;;  %v3521_v37 = vcvt.s32.f32 %v3009_v31  ;;  %v3257_v38 = vunpack.c.2.s8 %v2825_v8  ;;  %v3265_v42 = vunpack.c.3.s8 %v2825_v8 }
 0x2e8   : > { %4404 = vmatpush.bf16.msra.mxu3 %v4089_v34  ;;  %v3889_v40 = vpack.c.bf16 %v3393_v17, %v3385_v28  ;;  %v3641_v26 = vcvt.s32.f32 %v3129_v32  ;;  %v3649_v51 = vcvt.s32.f32 %v3137_v14  ;;  %v2857_v45 = vunpack.c.0.s8 %v2729_v2 }
 0x2e9   : > { %v3953_v44 = vpack.c.bf16 %v3521_v37, %v3513_v35  ;;  %v3769_v15 = vcvt.s32.f32 %v3257_v38  ;;  %v3777_v50 = vcvt.s32.f32 %v3265_v42  ;;  %v2865_v22 = vunpack.c.1.s8 %v2729_v2  ;;  %v2746_v35 = vld [vmem:[%s10705_s4 + $0xa8] sm:$0xff] }
 0x2ea   : > { %4363 = vmatpush.bf16.msra.mxu0 %v3889_v40  ;;  %v4017_v33 = vpack.c.bf16 %v3649_v51, %v3641_v26  ;;  %v3369_v55 = vcvt.s32.f32 %v2857_v45  ;;  %v2985_v49 = vunpack.c.0.s8 %v2761_v61  ;;  %v2993_v54 = vunpack.c.1.s8 %v2761_v61 }
 0x2eb   : > { %4377 = vmatpush.bf16.msra.mxu1 %v3953_v44  ;;  %v4081_v19 = vpack.c.bf16 %v3777_v50, %v3769_v15  ;;  %v3377_v53 = vcvt.s32.f32 %v2865_v22  ;;  %v3113_v56 = vunpack.c.0.s8 %v2793_v21  ;;  %v3121_v57 = vunpack.c.1.s8 %v2793_v21  ;;  %v2778_v15 = vld [vmem:[%s10705_s4 + $0x1a8] sm:$0xff] }
 0x2ec   : > { %4391 = vmatpush.bf16.msra.mxu2 %v4017_v33  ;;  %v3497_v7 = vcvt.s32.f32 %v2985_v49  ;;  %v3505_v59 = vcvt.s32.f32 %v2993_v54  ;;  %v3241_v11 = vunpack.c.0.s8 %v2825_v8  ;;  %v3249_v39 = vunpack.c.1.s8 %v2825_v8  ;;  %v2810_v49 = vld [vmem:[%s10705_s4 + $0x2a8] sm:$0xff] }
 0x2ed   : > { %4405 = vmatpush.bf16.msra.mxu3 %v4081_v19  ;;  %v3881_v58 = vpack.c.bf16 %v3377_v53, %v3369_v55  ;;  %v3625_v62 = vcvt.s32.f32 %v3113_v56  ;;  %v3633_v63 = vcvt.s32.f32 %v3121_v57  ;;  %v2970_v48 = vunpack.c.2.s8 %v2754_v46  ;;  %v2842_v56 = vld [vmem:[%s10705_s4 + $0x3a8] sm:$0xff] }
 0x2ee   : > { %v3945_v1 = vpack.c.bf16 %v3505_v59, %v3497_v7  ;;  %v3753_v2 = vcvt.s32.f32 %v3241_v11  ;;  %v3761_v36 = vcvt.s32.f32 %v3249_v39  ;;  %v2978_v4 = vunpack.c.3.s8 %v2754_v46 }
 0x2ef   : > { %4364 = vmatpush.bf16.msra.mxu0 %v3881_v58  ;;  %v4009_v3 = vpack.c.bf16 %v3633_v63, %v3625_v62  ;;  %v3482_v6 = vcvt.s32.f32 %v2970_v48  ;;  %v3098_v9 = vunpack.c.2.s8 %v2786_v16  ;;  %v3106_v10 = vunpack.c.3.s8 %v2786_v16 }
 0x2f0   : > { %4378 = vmatpush.bf16.msra.mxu1 %v3945_v1  ;;  %v4073_v12 = vpack.c.bf16 %v3761_v36, %v3753_v2  ;;  %v3490_v61 = vcvt.s32.f32 %v2978_v4  ;;  %v3226_v18 = vunpack.c.2.s8 %v2818_v0  ;;  %v3234_v20 = vunpack.c.3.s8 %v2818_v0 }
 0x2f1   : > { %4392 = vmatpush.bf16.msra.mxu2 %v4009_v3  ;;  %v3610_v5 = vcvt.s32.f32 %v3098_v9  ;;  %v3618_v60 = vcvt.s32.f32 %v3106_v10  ;;  %v3354_v21 = vunpack.c.2.s8 %v2850_v43  ;;  %v3362_v23 = vunpack.c.3.s8 %v2850_v43 }
 0x2f2   : > { %4406 = vmatpush.bf16.msra.mxu3 %v4073_v12  ;;  %v3938_v41 = vpack.c.bf16 %v3490_v61, %v3482_v6  ;;  %v3738_v13 = vcvt.s32.f32 %v3226_v18  ;;  %v3746_v25 = vcvt.s32.f32 %v3234_v20  ;;  %v2954_v8 = vunpack.c.0.s8 %v2754_v46  ;;  %4365 = vmatmul.bf16.vlgmr.msra.gmra.mxu0 %v11279_v47 }
 0x2f3   : > { %v4002_v52 = vpack.c.bf16 %v3618_v60, %v3610_v5  ;;  %v3866_v28 = vcvt.s32.f32 %v3354_v21  ;;  %v3874_v29 = vcvt.s32.f32 %v3362_v23  ;;  %v2962_v31 = vunpack.c.1.s8 %v2754_v46  ;;  %4379 = vmatmul.bf16.vlgmr.msra.gmra.mxu1 %v11281_v30  ;;  %v2738_v5 = vld [vmem:[%s10705_s4 + $0x68] sm:$0xff] }
 0x2f4   : > { %4413 = vmatpush.bf16.msrb.mxu0 %v3938_v41  ;;  %v4066_v34 = vpack.c.bf16 %v3746_v25, %v3738_v13  ;;  %v3466_v17 = vcvt.s32.f32 %v2954_v8  ;;  %v3082_v32 = vunpack.c.0.s8 %v2786_v16  ;;  %v3090_v14 = vunpack.c.1.s8 %v2786_v16  ;;  %4393 = vmatmul.bf16.vlgmr.msra.gmra.mxu2 %v11261_v27 }
 0x2f5   : > { %4427 = vmatpush.bf16.msrb.mxu1 %v4002_v52  ;;  %v4130_v37 = vpack.c.bf16 %v3874_v29, %v3866_v28  ;;  %v3474_v38 = vcvt.s32.f32 %v2962_v31  ;;  %v3210_v42 = vunpack.c.0.s8 %v2818_v0  ;;  %v3218_v40 = vunpack.c.1.s8 %v2818_v0  ;;  %4407 = vmatmul.bf16.vlgmr.msra.gmra.mxu3 %v11264_v24  ;;  %v2770_v28 = vld [vmem:[%s10705_s4 + $0x168] sm:$0xff] }
 0x2f6   : > { %4441 = vmatpush.bf16.msrb.mxu2 %v4066_v34  ;;  %v3594_v26 = vcvt.s32.f32 %v3082_v32  ;;  %v3602_v51 = vcvt.s32.f32 %v3090_v14  ;;  %v3338_v45 = vunpack.c.0.s8 %v2850_v43  ;;  %v3346_v44 = vunpack.c.1.s8 %v2850_v43  ;;  %v2802_v32 = vld [vmem:[%s10705_s4 + $0x268] sm:$0xff] }
 0x2f7   : > { %4455 = vmatpush.bf16.msrb.mxu3 %v4130_v37  ;;  %v3930_v50 = vpack.c.bf16 %v3474_v38, %v3466_v17  ;;  %v3722_v22 = vcvt.s32.f32 %v3210_v42  ;;  %v3730_v33 = vcvt.s32.f32 %v3218_v40  ;;  %v2938_v55 = vunpack.c.2.s8 %v2746_v35  ;;  %v2834_v42 = vld [vmem:[%s10705_s4 + $0x368] sm:$0xff] }
 0x2f8   : > { %v3994_v54 = vpack.c.bf16 %v3602_v51, %v3594_v26  ;;  %v3850_v46 = vcvt.s32.f32 %v3338_v45  ;;  %v3858_v19 = vcvt.s32.f32 %v3346_v44  ;;  %v2946_v53 = vunpack.c.3.s8 %v2746_v35 }
 0x2f9   : > { %4414 = vmatpush.bf16.msrb.mxu0 %v3930_v50  ;;  %v4058_v57 = vpack.c.bf16 %v3730_v33, %v3722_v22  ;;  %v3450_v7 = vcvt.s32.f32 %v2938_v55  ;;  %v3066_v59 = vunpack.c.2.s8 %v2778_v15  ;;  %v3074_v11 = vunpack.c.3.s8 %v2778_v15 }
 0x2fa   : > { %4428 = vmatpush.bf16.msrb.mxu1 %v3994_v54  ;;  %v4122_v39 = vpack.c.bf16 %v3858_v19, %v3850_v46  ;;  %v3458_v16 = vcvt.s32.f32 %v2946_v53  ;;  %v3194_v58 = vunpack.c.2.s8 %v2810_v49  ;;  %v3202_v62 = vunpack.c.3.s8 %v2810_v49 }
 0x2fb   : > { %4442 = vmatpush.bf16.msrb.mxu2 %v4058_v57  ;;  %v3578_v63 = vcvt.s32.f32 %v3066_v59  ;;  %v3586_v48 = vcvt.s32.f32 %v3074_v11  ;;  %v3322_v0 = vunpack.c.2.s8 %v2842_v56  ;;  %v3330_v1 = vunpack.c.3.s8 %v2842_v56 }
 0x2fc   : > { %4456 = vmatpush.bf16.msrb.mxu3 %v4122_v39  ;;  %v3922_v2 = vpack.c.bf16 %v3458_v16, %v3450_v7  ;;  %v3706_v36 = vcvt.s32.f32 %v3194_v58  ;;  %v3714_v4 = vcvt.s32.f32 %v3202_v62  ;;  %v2922_v43 = vunpack.c.0.s8 %v2746_v35 }
 0x2fd   : > { %v3986_v3 = vpack.c.bf16 %v3586_v48, %v3578_v63  ;;  %v3834_v6 = vcvt.s32.f32 %v3322_v0  ;;  %v3842_v9 = vcvt.s32.f32 %v3330_v1  ;;  %v2930_v10 = vunpack.c.1.s8 %v2746_v35  ;;  %v2730_v63 = vld [vmem:[%s10705_s4 + $0x28] sm:$0xff] }
 0x2fe   : > { %4415 = vmatpush.bf16.msrb.mxu0 %v3922_v2  ;;  %v4050_v12 = vpack.c.bf16 %v3714_v4, %v3706_v36  ;;  %v3434_v61 = vcvt.s32.f32 %v2922_v43  ;;  %v3050_v18 = vunpack.c.0.s8 %v2778_v15  ;;  %v3058_v20 = vunpack.c.1.s8 %v2778_v15 }
 0x2ff   : > { %4429 = vmatpush.bf16.msrb.mxu1 %v3986_v3  ;;  %v4114_v60 = vpack.c.bf16 %v3842_v9, %v3834_v6  ;;  %v3442_v21 = vcvt.s32.f32 %v2930_v10  ;;  %v3178_v23 = vunpack.c.0.s8 %v2810_v49  ;;  %v3186_v41 = vunpack.c.1.s8 %v2810_v49  ;;  %v2762_v6 = vld [vmem:[%s10705_s4 + $0x128] sm:$0xff] }
 0x300   : > { %4443 = vmatpush.bf16.msrb.mxu2 %v4050_v12  ;;  %v3562_v13 = vcvt.s32.f32 %v3050_v18  ;;  %v3570_v25 = vcvt.s32.f32 %v3058_v20  ;;  %v3306_v8 = vunpack.c.0.s8 %v2842_v56  ;;  %v3314_v52 = vunpack.c.1.s8 %v2842_v56  ;;  %v2794_v18 = vld [vmem:[%s10705_s4 + $0x228] sm:$0xff] }
 0x301   : > { %4457 = vmatpush.bf16.msrb.mxu3 %v4114_v60  ;;  %v3914_v29 = vpack.c.bf16 %v3442_v21, %v3434_v61  ;;  %v3690_v31 = vcvt.s32.f32 %v3178_v23  ;;  %v3698_v34 = vcvt.s32.f32 %v3186_v41  ;;  %v2906_v17 = vunpack.c.2.s8 %v2738_v5  ;;  %v2826_v23 = vld [vmem:[%s10705_s4 + $0x328] sm:$0xff] }
 0x302   : > { %v3978_v14 = vpack.c.bf16 %v3570_v25, %v3562_v13  ;;  %v3818_v35 = vcvt.s32.f32 %v3306_v8  ;;  %v3826_v37 = vcvt.s32.f32 %v3314_v52  ;;  %v2914_v38 = vunpack.c.3.s8 %v2738_v5 }
 0x303   : > { %4416 = vmatpush.bf16.msrb.mxu0 %v3914_v29  ;;  %v4042_v40 = vpack.c.bf16 %v3698_v34, %v3690_v31  ;;  %v3418_v26 = vcvt.s32.f32 %v2906_v17  ;;  %v3034_v51 = vunpack.c.2.s8 %v2770_v28  ;;  %v3042_v45 = vunpack.c.3.s8 %v2770_v28 }
 0x304   : > { %4430 = vmatpush.bf16.msrb.mxu1 %v3978_v14  ;;  %v4106_v44 = vpack.c.bf16 %v3826_v37, %v3818_v35  ;;  %v3426_v15 = vcvt.s32.f32 %v2914_v38  ;;  %v3162_v50 = vunpack.c.2.s8 %v2802_v32  ;;  %v3170_v22 = vunpack.c.3.s8 %v2802_v32 }
 0x305   : > { %4444 = vmatpush.bf16.msrb.mxu2 %v4042_v40  ;;  %v3546_v33 = vcvt.s32.f32 %v3034_v51  ;;  %v3554_v55 = vcvt.s32.f32 %v3042_v45  ;;  %v3290_v49 = vunpack.c.2.s8 %v2834_v42  ;;  %v3298_v54 = vunpack.c.3.s8 %v2834_v42 }
 0x306   : > { %4458 = vmatpush.bf16.msrb.mxu3 %v4106_v44  ;;  %v3906_v46 = vpack.c.bf16 %v3426_v15, %v3418_v26  ;;  %v3674_v19 = vcvt.s32.f32 %v3162_v50  ;;  %v3682_v53 = vcvt.s32.f32 %v3170_v22  ;;  %v2890_v56 = vunpack.c.0.s8 %v2738_v5 }
 0x307   : > { %v3970_v57 = vpack.c.bf16 %v3554_v55, %v3546_v33  ;;  %v3802_v7 = vcvt.s32.f32 %v3290_v49  ;;  %v3810_v59 = vcvt.s32.f32 %v3298_v54  ;;  %v2898_v11 = vunpack.c.1.s8 %v2738_v5  ;;  %v2755_v33 = vld [vmem:[%s10705_s4 + $0xf0] sm:$0xff] }
 0x308   : > { %4417 = vmatpush.bf16.msrb.mxu0 %v3906_v46  ;;  %v4034_v39 = vpack.c.bf16 %v3682_v53, %v3674_v19  ;;  %v3402_v16 = vcvt.s32.f32 %v2890_v56  ;;  %v3018_v58 = vunpack.c.0.s8 %v2770_v28  ;;  %v3026_v62 = vunpack.c.1.s8 %v2770_v28 }
 0x309   : > { %4431 = vmatpush.bf16.msrb.mxu1 %v3970_v57  ;;  %v4098_v48 = vpack.c.bf16 %v3810_v59, %v3802_v7  ;;  %v3410_v0 = vcvt.s32.f32 %v2898_v11  ;;  %v3146_v1 = vunpack.c.0.s8 %v2802_v32  ;;  %v3154_v2 = vunpack.c.1.s8 %v2802_v32  ;;  %v2787_v7 = vld [vmem:[%s10705_s4 + $0x1f0] sm:$0xff] }
 0x30a   : > { %4445 = vmatpush.bf16.msrb.mxu2 %v4034_v39  ;;  %v3530_v36 = vcvt.s32.f32 %v3018_v58  ;;  %v3538_v4 = vcvt.s32.f32 %v3026_v62  ;;  %v3274_v43 = vunpack.c.0.s8 %v2834_v42  ;;  %v3282_v3 = vunpack.c.1.s8 %v2834_v42  ;;  %v2819_v58 = vld [vmem:[%s10705_s4 + $0x2f0] sm:$0xff] }
 0x30b   : > { %4459 = vmatpush.bf16.msrb.mxu3 %v4098_v48  ;;  %v3898_v9 = vpack.c.bf16 %v3410_v0, %v3402_v16  ;;  %v3658_v10 = vcvt.s32.f32 %v3146_v1  ;;  %v3666_v12 = vcvt.s32.f32 %v3154_v2  ;;  %v2874_v61 = vunpack.c.2.s8 %v2730_v63  ;;  %v2851_v1 = vld [vmem:[%s10705_s4 + $0x3f0] sm:$0xff] }
 0x30c   : > { %v3962_v20 = vpack.c.bf16 %v3538_v4, %v3530_v36  ;;  %v3786_v5 = vcvt.s32.f32 %v3274_v43  ;;  %v3794_v60 = vcvt.s32.f32 %v3282_v3  ;;  %v2882_v21 = vunpack.c.3.s8 %v2730_v63 }
 0x30d   : > { %4418 = vmatpush.bf16.msrb.mxu0 %v3898_v9  ;;  %v4026_v41 = vpack.c.bf16 %v3666_v12, %v3658_v10  ;;  %v3386_v13 = vcvt.s32.f32 %v2874_v61  ;;  %v3002_v25 = vunpack.c.2.s8 %v2762_v6  ;;  %v3010_v8 = vunpack.c.3.s8 %v2762_v6 }
 0x30e   : > { %4432 = vmatpush.bf16.msrb.mxu1 %v3962_v20  ;;  %v4090_v52 = vpack.c.bf16 %v3794_v60, %v3786_v5  ;;  %v3394_v28 = vcvt.s32.f32 %v2882_v21  ;;  %v3130_v29 = vunpack.c.2.s8 %v2794_v18  ;;  %v3138_v31 = vunpack.c.3.s8 %v2794_v18 }
 0x30f   : > { %4446 = vmatpush.bf16.msrb.mxu2 %v4026_v41  ;;  %v3514_v34 = vcvt.s32.f32 %v3002_v25  ;;  %v3522_v17 = vcvt.s32.f32 %v3010_v8  ;;  %v3258_v32 = vunpack.c.2.s8 %v2826_v23  ;;  %v3266_v14 = vunpack.c.3.s8 %v2826_v23 }
 0x310   : > { %4460 = vmatpush.bf16.msrb.mxu3 %v4090_v52  ;;  %v3890_v35 = vpack.c.bf16 %v3394_v28, %v3386_v13  ;;  %v3642_v37 = vcvt.s32.f32 %v3130_v29  ;;  %v3650_v38 = vcvt.s32.f32 %v3138_v31  ;;  %v2858_v42 = vunpack.c.0.s8 %v2730_v63 }
 0x311   : > { %v3954_v40 = vpack.c.bf16 %v3522_v17, %v3514_v34  ;;  %v3770_v26 = vcvt.s32.f32 %v3258_v32  ;;  %v3778_v51 = vcvt.s32.f32 %v3266_v14  ;;  %v2866_v45 = vunpack.c.1.s8 %v2730_v63 }
 0x312   : > { %4419 = vmatpush.bf16.msrb.mxu0 %v3890_v35  ;;  %v4018_v44 = vpack.c.bf16 %v3650_v38, %v3642_v37  ;;  %v3370_v15 = vcvt.s32.f32 %v2858_v42  ;;  %v2986_v50 = vunpack.c.0.s8 %v2762_v6  ;;  %v2994_v22 = vunpack.c.1.s8 %v2762_v6  ;;  %v4142_v35 = vpop.f32.mrf.mxu0  ;;  %v4156_v37 = vpop.f32.mrf.mxu1  ;;  %v2747_v38 = vld [vmem:[%s10705_s4 + $0xb0] sm:$0xff] }
 0x313   : > { %4433 = vmatpush.bf16.msrb.mxu1 %v3954_v40  ;;  %v4082_v55 = vpack.c.bf16 %v3778_v51, %v3770_v26  ;;  %v3378_v49 = vcvt.s32.f32 %v2866_v45  ;;  %v3114_v54 = vunpack.c.0.s8 %v2794_v18  ;;  %v3122_v46 = vunpack.c.1.s8 %v2794_v18  ;;  %v2779_v45 = vld [vmem:[%s10705_s4 + $0x1b0] sm:$0xff] }
 0x314   : > { %4447 = vmatpush.bf16.msrb.mxu2 %v4018_v44  ;;  %v3498_v19 = vcvt.s32.f32 %v2986_v50  ;;  %v3506_v53 = vcvt.s32.f32 %v2994_v22  ;;  %v3242_v56 = vunpack.c.0.s8 %v2826_v23  ;;  %v3250_v57 = vunpack.c.1.s8 %v2826_v23 }
 0x315   : > { %4461 = vmatpush.bf16.msrb.mxu3 %v4082_v55  ;;  %v3882_v59 = vpack.c.bf16 %v3378_v49, %v3370_v15  ;;  %v3626_v11 = vcvt.s32.f32 %v3114_v54  ;;  %v3634_v39 = vcvt.s32.f32 %v3122_v46  ;;  %v2971_v16 = vunpack.c.2.s8 %v2755_v33  ;;  %v2811_v55 = vld [vmem:[%s10705_s4 + $0x2b0] sm:$0xff] }
 0x316   : > { %v3946_v62 = vpack.c.bf16 %v3506_v53, %v3498_v19  ;;  %v3754_v63 = vcvt.s32.f32 %v3242_v56  ;;  %v3762_v48 = vcvt.s32.f32 %v3250_v57  ;;  %v2979_v0 = vunpack.c.3.s8 %v2755_v33  ;;  %v2843_v53 = vld [vmem:[%s10705_s4 + $0x3b0] sm:$0xff] }
 0x317   : > { %4420 = vmatpush.bf16.msrb.mxu0 %v3882_v59  ;;  %v4010_v2 = vpack.c.bf16 %v3634_v39, %v3626_v11  ;;  %v3483_v36 = vcvt.s32.f32 %v2971_v16  ;;  %v3099_v4 = vunpack.c.2.s8 %v2787_v7  ;;  %v3107_v43 = vunpack.c.3.s8 %v2787_v7 }
 0x318   : > { %4434 = vmatpush.bf16.msrb.mxu1 %v3946_v62  ;;  %v4074_v3 = vpack.c.bf16 %v3762_v48, %v3754_v63  ;;  %v3491_v6 = vcvt.s32.f32 %v2979_v0  ;;  %v3227_v9 = vunpack.c.2.s8 %v2819_v58  ;;  %v3235_v10 = vunpack.c.3.s8 %v2819_v58  ;;  %v4184_v62 = vpop.f32.mrf.mxu3 }
 0x319   : > { %4448 = vmatpush.bf16.msrb.mxu2 %v4010_v2  ;;  %v3611_v12 = vcvt.s32.f32 %v3099_v4  ;;  %v3619_v61 = vcvt.s32.f32 %v3107_v43  ;;  %v3355_v18 = vunpack.c.2.s8 %v2851_v1  ;;  %v3363_v20 = vunpack.c.3.s8 %v2851_v1  ;;  %v2694_v2 = vld [vmem:[#allocation3 + $0x30] sm:$0xff] }
 0x31a   : > { %4462 = vmatpush.bf16.msrb.mxu3 %v4074_v3  ;;  %v3939_v5 = vpack.c.bf16 %v3491_v6, %v3483_v36  ;;  %v3739_v60 = vcvt.s32.f32 %v3227_v9  ;;  %v3747_v21 = vcvt.s32.f32 %v3235_v10  ;;  %v2955_v23 = vunpack.c.0.s8 %v2755_v33  ;;  %4421 = vmatmul.bf16.vlgmr.msrb.gmra.mxu0 %v11279_v47 }
 0x31b   : > { %v4003_v41 = vpack.c.bf16 %v3619_v61, %v3611_v12  ;;  %v3867_v13 = vcvt.s32.f32 %v3355_v18  ;;  %v3875_v25 = vcvt.s32.f32 %v3363_v20  ;;  %v2963_v8 = vunpack.c.1.s8 %v2755_v33  ;;  %4435 = vmatmul.bf16.vlgmr.msrb.gmra.mxu1 %v11281_v30  ;;  %v4170_v33 = vpop.f32.mrf.mxu2 }
 0x31c   : > { %4469 = vmatpush.bf16.msra.mxu0 %v3939_v5  ;;  %v4067_v52 = vpack.c.bf16 %v3747_v21, %v3739_v60  ;;  %v3467_v28 = vcvt.s32.f32 %v2955_v23  ;;  %v3083_v29 = vunpack.c.0.s8 %v2787_v7  ;;  %v3091_v31 = vunpack.c.1.s8 %v2787_v7  ;;  %4449 = vmatmul.bf16.vlgmr.msrb.gmra.mxu2 %v11261_v27 }
 0x31d   : > { %4483 = vmatpush.bf16.msra.mxu1 %v4003_v41  ;;  %v4131_v34 = vpack.c.bf16 %v3875_v25, %v3867_v13  ;;  %v3475_v17 = vcvt.s32.f32 %v2963_v8  ;;  %v3211_v32 = vunpack.c.0.s8 %v2819_v58  ;;  %v3219_v14 = vunpack.c.1.s8 %v2819_v58  ;;  %4463 = vmatmul.bf16.vlgmr.msrb.gmra.mxu3 %v11264_v24  ;;  %v4144_v13 = vpop.f32.mrf.mxu0  ;;  %v4158_v25 = vpop.f32.mrf.mxu1 }
 0x31e   : > { %4497 = vmatpush.bf16.msra.mxu2 %v4067_v52  ;;  %v3595_v42 = vcvt.s32.f32 %v3083_v29  ;;  %v3603_v40 = vcvt.s32.f32 %v3091_v31  ;;  %v3339_v26 = vunpack.c.0.s8 %v2851_v1  ;;  %v3347_v51 = vunpack.c.1.s8 %v2851_v1  ;;  %v2739_v31 = vld [vmem:[%s10705_s4 + $0x70] sm:$0xff] }
 0x31f   : > { %4511 = vmatpush.bf16.msra.mxu3 %v4131_v34  ;;  %v3931_v44 = vpack.c.bf16 %v3475_v17, %v3467_v28  ;;  %v3723_v15 = vcvt.s32.f32 %v3211_v32  ;;  %v3731_v50 = vcvt.s32.f32 %v3219_v14  ;;  %v4157_v22 = vadd.f32 %v4156_v37, %v4142_v35  ;;  %v2771_v37 = vld [vmem:[%s10705_s4 + $0x170] sm:$0xff] }
 0x320   : > { %v3995_v49 = vpack.c.bf16 %v3603_v40, %v3595_v42  ;;  %v3851_v54 = vcvt.s32.f32 %v3339_v26  ;;  %v3859_v46 = vcvt.s32.f32 %v3347_v51  ;;  %v2939_v19 = vunpack.c.2.s8 %v2747_v38  ;;  %v2803_v51 = vld [vmem:[%s10705_s4 + $0x270] sm:$0xff] }
 0x321   : > { %4470 = vmatpush.bf16.msra.mxu0 %v3931_v44  ;;  %v4059_v56 = vpack.c.bf16 %v3731_v50, %v3723_v15  ;;  %v4171_v57 = vadd.f32 %v4170_v33, %v4157_v22  ;;  %v2947_v7 = vunpack.c.3.s8 %v2747_v38  ;;  %v3067_v59 = vunpack.c.2.s8 %v2779_v45  ;;  %v2835_v22 = vld [vmem:[%s10705_s4 + $0x370] sm:$0xff] }
 0x322   : > { %4484 = vmatpush.bf16.msra.mxu1 %v3995_v49  ;;  %v4123_v11 = vpack.c.bf16 %v3859_v46, %v3851_v54  ;;  %v3451_v39 = vcvt.s32.f32 %v2939_v19  ;;  %v3075_v16 = vunpack.c.3.s8 %v2779_v45  ;;  %v3195_v58 = vunpack.c.2.s8 %v2811_v55  ;;  %v4186_v46 = vpop.f32.mrf.mxu3 }
 0x323   : > { %4498 = vmatpush.bf16.msra.mxu2 %v4059_v56  ;;  %v3459_v63 = vcvt.s32.f32 %v2947_v7  ;;  %v3579_v48 = vcvt.s32.f32 %v3067_v59  ;;  %v3203_v0 = vunpack.c.3.s8 %v2811_v55  ;;  %v3323_v1 = vunpack.c.2.s8 %v2843_v53  ;;  %v4172_v35 = vpop.f32.mrf.mxu2 }
 0x324   : > { %4512 = vmatpush.bf16.msra.mxu3 %v4123_v11  ;;  %v3587_v36 = vcvt.s32.f32 %v3075_v16  ;;  %v3707_v4 = vcvt.s32.f32 %v3195_v58  ;;  %v3331_v43 = vunpack.c.3.s8 %v2843_v53  ;;  %v4185_v3 = vadd.f32 %v4184_v62, %v4171_v57  ;;  %v2702_v16 = vld [vmem:[#allocation3 + $0x40] sm:$0xff] }
 0x325   : > { %v3923_v6 = vpack.c.bf16 %v3459_v63, %v3451_v39  ;;  %v3715_v9 = vcvt.s32.f32 %v3203_v0  ;;  %v3835_v10 = vcvt.s32.f32 %v3323_v1  ;;  %v2923_v12 = vunpack.c.0.s8 %v2747_v38 }
 0x326   : > { %v3987_v61 = vpack.c.bf16 %v3587_v36, %v3579_v48  ;;  %v3843_v18 = vcvt.s32.f32 %v3331_v43  ;;  %v4581_v20 = vadd.f32 %v4185_v3, %v2694_v2  ;;  %v2931_v5 = vunpack.c.1.s8 %v2747_v38 }
 0x327   : > { %4471 = vmatpush.bf16.msra.mxu0 %v3923_v6  ;;  %v4051_v60 = vpack.c.bf16 %v3715_v9, %v3707_v4  ;;  %v3435_v21 = vcvt.s32.f32 %v2923_v12  ;;  %v3051_v23 = vunpack.c.0.s8 %v2779_v45  ;;  %v3059_v41 = vunpack.c.1.s8 %v2779_v45 }
 0x328   : > { %4485 = vmatpush.bf16.msra.mxu1 %v3987_v61  ;;  %v4115_v8 = vpack.c.bf16 %v3843_v18, %v3835_v10  ;;  %4597 = vst [vmem:[#allocation3 + $0x30] sm:$0xff] %v4581_v20  ;;  %v3443_v52 = vcvt.s32.f32 %v2931_v5  ;;  %v3179_v28 = vunpack.c.0.s8 %v2811_v55  ;;  %v3187_v29 = vunpack.c.1.s8 %v2811_v55  ;;  %v2731_v18 = vld [vmem:[%s10705_s4 + $0x30] sm:$0xff] }
 0x329   : > { %4499 = vmatpush.bf16.msra.mxu2 %v4051_v60  ;;  %v3563_v34 = vcvt.s32.f32 %v3051_v23  ;;  %v3571_v17 = vcvt.s32.f32 %v3059_v41  ;;  %v3307_v32 = vunpack.c.0.s8 %v2843_v53  ;;  %v3315_v14 = vunpack.c.1.s8 %v2843_v53 }
 0x32a   : > { %4513 = vmatpush.bf16.msra.mxu3 %v4115_v8  ;;  %v3915_v38 = vpack.c.bf16 %v3443_v52, %v3435_v21  ;;  %v3691_v42 = vcvt.s32.f32 %v3179_v28  ;;  %v3699_v40 = vcvt.s32.f32 %v3187_v29  ;;  %v4159_v26 = vadd.f32 %v4158_v25, %v4144_v13  ;;  %v2763_v8 = vld [vmem:[%s10705_s4 + $0x130] sm:$0xff] }
 0x32b   : > { %v3979_v45 = vpack.c.bf16 %v3571_v17, %v3563_v34  ;;  %v3819_v44 = vcvt.s32.f32 %v3307_v32  ;;  %v3827_v15 = vcvt.s32.f32 %v3315_v14  ;;  %v2907_v50 = vunpack.c.2.s8 %v2739_v31  ;;  %v2795_v34 = vld [vmem:[%s10705_s4 + $0x230] sm:$0xff] }
 0x32c   : > { %4472 = vmatpush.bf16.msra.mxu0 %v3915_v38  ;;  %v4043_v33 = vpack.c.bf16 %v3699_v40, %v3691_v42  ;;  %v4173_v55 = vadd.f32 %v4172_v35, %v4159_v26  ;;  %v2915_v49 = vunpack.c.3.s8 %v2739_v31  ;;  %v3035_v54 = vunpack.c.2.s8 %v2771_v37 }
 0x32d   : > { %4486 = vmatpush.bf16.msra.mxu1 %v3979_v45  ;;  %v4107_v19 = vpack.c.bf16 %v3827_v15, %v3819_v44  ;;  %v3419_v53 = vcvt.s32.f32 %v2907_v50  ;;  %v3043_v56 = vunpack.c.3.s8 %v2771_v37  ;;  %v3163_v57 = vunpack.c.2.s8 %v2803_v51 }
 0x32e   : > { %4500 = vmatpush.bf16.msra.mxu2 %v4043_v33  ;;  %v3427_v7 = vcvt.s32.f32 %v2915_v49  ;;  %v3547_v59 = vcvt.s32.f32 %v3035_v54  ;;  %v3171_v11 = vunpack.c.3.s8 %v2803_v51  ;;  %v3291_v39 = vunpack.c.2.s8 %v2835_v22 }
 0x32f   : > { %4514 = vmatpush.bf16.msra.mxu3 %v4107_v19  ;;  %v3555_v58 = vcvt.s32.f32 %v3043_v56  ;;  %v3675_v62 = vcvt.s32.f32 %v3163_v57  ;;  %v3299_v63 = vunpack.c.3.s8 %v2835_v22  ;;  %v4187_v48 = vadd.f32 %v4186_v46, %v4173_v55 }
 0x330   : > { %v3907_v0 = vpack.c.bf16 %v3427_v7, %v3419_v53  ;;  %v3683_v1 = vcvt.s32.f32 %v3171_v11  ;;  %v3803_v2 = vcvt.s32.f32 %v3291_v39  ;;  %v2891_v36 = vunpack.c.0.s8 %v2739_v31 }
 0x331   : > { %v3971_v4 = vpack.c.bf16 %v3555_v58, %v3547_v59  ;;  %v3811_v43 = vcvt.s32.f32 %v3299_v63  ;;  %v4589_v3 = vadd.f32 %v4187_v48, %v2702_v16  ;;  %v2899_v6 = vunpack.c.1.s8 %v2739_v31  ;;  %v2756_v58 = vld [vmem:[%s10705_s4 + $0xf8] sm:$0xff] }
 0x332   : > { %4473 = vmatpush.bf16.msra.mxu0 %v3907_v0  ;;  %v4035_v9 = vpack.c.bf16 %v3683_v1, %v3675_v62  ;;  %v3403_v10 = vcvt.s32.f32 %v2891_v36  ;;  %v3019_v12 = vunpack.c.0.s8 %v2771_v37  ;;  %v3027_v61 = vunpack.c.1.s8 %v2771_v37  ;;  %v2827_v37 = vld [vmem:[%s10705_s4 + $0x330] sm:$0xff] }
 0x333   : > { %4487 = vmatpush.bf16.msra.mxu1 %v3971_v4  ;;  %v4099_v20 = vpack.c.bf16 %v3811_v43, %v3803_v2  ;;  %4605 = vst [vmem:[#allocation3 + $0x40] sm:$0xff] %v4589_v3  ;;  %v3411_v5 = vcvt.s32.f32 %v2899_v6  ;;  %v3147_v60 = vunpack.c.0.s8 %v2803_v51  ;;  %v3155_v21 = vunpack.c.1.s8 %v2803_v51  ;;  %v2788_v43 = vld [vmem:[%s10705_s4 + $0x1f8] sm:$0xff] }
 0x334   : > { %4501 = vmatpush.bf16.msra.mxu2 %v4035_v9  ;;  %v3531_v23 = vcvt.s32.f32 %v3019_v12  ;;  %v3539_v41 = vcvt.s32.f32 %v3027_v61  ;;  %v3275_v13 = vunpack.c.0.s8 %v2835_v22  ;;  %v3283_v25 = vunpack.c.1.s8 %v2835_v22  ;;  %v2820_v12 = vld [vmem:[%s10705_s4 + $0x2f8] sm:$0xff]  ;;  %v4198_v61 = vpop.f32.mrf.mxu0 }
 0x335   : > { %4515 = vmatpush.bf16.msra.mxu3 %v4099_v20  ;;  %v3899_v52 = vpack.c.bf16 %v3411_v5, %v3403_v10  ;;  %v3659_v28 = vcvt.s32.f32 %v3147_v60  ;;  %v3667_v29 = vcvt.s32.f32 %v3155_v21  ;;  %v2875_v31 = vunpack.c.2.s8 %v2731_v18 }
 0x336   : > { %v3963_v17 = vpack.c.bf16 %v3539_v41, %v3531_v23  ;;  %v3787_v32 = vcvt.s32.f32 %v3275_v13  ;;  %v3795_v14 = vcvt.s32.f32 %v3283_v25  ;;  %v2883_v35 = vunpack.c.3.s8 %v2731_v18  ;;  %v2852_v23 = vld [vmem:[%s10705_s4 + $0x3f8] sm:$0xff]  ;;  %v11393_v41 = vpop.f32.mrf.mxu2  ;;  %v11395_v13 = vpop.f32.mrf.mxu3 }
 0x337   : > { %4474 = vmatpush.bf16.msra.mxu0 %v3899_v52  ;;  %v4027_v38 = vpack.c.bf16 %v3667_v29, %v3659_v28  ;;  %v3387_v42 = vcvt.s32.f32 %v2875_v31  ;;  %v3003_v40 = vunpack.c.2.s8 %v2763_v8  ;;  %v3011_v26 = vunpack.c.3.s8 %v2763_v8 }
 0x338   : > { %4488 = vmatpush.bf16.msra.mxu1 %v3963_v17  ;;  %v4091_v51 = vpack.c.bf16 %v3795_v14, %v3787_v32  ;;  %v3395_v45 = vcvt.s32.f32 %v2883_v35  ;;  %v3131_v44 = vunpack.c.2.s8 %v2795_v34  ;;  %v3139_v15 = vunpack.c.3.s8 %v2795_v34 }
 0x339   : > { %4502 = vmatpush.bf16.msra.mxu2 %v4027_v38  ;;  %v3515_v50 = vcvt.s32.f32 %v3003_v40  ;;  %v3523_v22 = vcvt.s32.f32 %v3011_v26  ;;  %v3259_v33 = vunpack.c.2.s8 %v2827_v37  ;;  %v3267_v55 = vunpack.c.3.s8 %v2827_v37 }
 0x33a   : > { %4516 = vmatpush.bf16.msra.mxu3 %v4091_v51  ;;  %v3891_v49 = vpack.c.bf16 %v3395_v45, %v3387_v42  ;;  %v3643_v54 = vcvt.s32.f32 %v3131_v44  ;;  %v3651_v46 = vcvt.s32.f32 %v3139_v15  ;;  %v2859_v19 = vunpack.c.0.s8 %v2731_v18 }
 0x33b   : > { %v3955_v53 = vpack.c.bf16 %v3523_v22, %v3515_v50  ;;  %v3771_v56 = vcvt.s32.f32 %v3259_v33  ;;  %v3779_v57 = vcvt.s32.f32 %v3267_v55  ;;  %v2867_v7 = vunpack.c.1.s8 %v2731_v18  ;;  %v4212_v18 = vpop.f32.mrf.mxu1 }
 0x33c   : > { %4475 = vmatpush.bf16.msra.mxu0 %v3891_v49  ;;  %v4019_v59 = vpack.c.bf16 %v3651_v46, %v3643_v54  ;;  %v3371_v11 = vcvt.s32.f32 %v2859_v19  ;;  %v2987_v39 = vunpack.c.0.s8 %v2763_v8  ;;  %v2995_v16 = vunpack.c.1.s8 %v2763_v8 }
 0x33d   : > { %4489 = vmatpush.bf16.msra.mxu1 %v3955_v53  ;;  %v4083_v62 = vpack.c.bf16 %v3779_v57, %v3771_v56  ;;  %v3379_v63 = vcvt.s32.f32 %v2867_v7  ;;  %v3115_v48 = vunpack.c.0.s8 %v2795_v34  ;;  %v3123_v0 = vunpack.c.1.s8 %v2795_v34  ;;  %v2748_v53 = vld [vmem:[%s10705_s4 + $0xb8] sm:$0xff] }
 0x33e   : > { %4503 = vmatpush.bf16.msra.mxu2 %v4019_v59  ;;  %v3499_v1 = vcvt.s32.f32 %v2987_v39  ;;  %v3507_v2 = vcvt.s32.f32 %v2995_v16  ;;  %v3243_v36 = vunpack.c.0.s8 %v2827_v37  ;;  %v3251_v4 = vunpack.c.1.s8 %v2827_v37 }
 0x33f   : > { %4517 = vmatpush.bf16.msra.mxu3 %v4083_v62  ;;  %v3883_v3 = vpack.c.bf16 %v3379_v63, %v3371_v11  ;;  %v3627_v6 = vcvt.s32.f32 %v3115_v48  ;;  %v3635_v9 = vcvt.s32.f32 %v3123_v0  ;;  %v2972_v10 = vunpack.c.2.s8 %v2756_v58  ;;  %v11403_v11 = vld [vmem:[%s10705_s4 + $0x1b8] sm:$0xff]  ;;  %v11408_v48 = vpop.f32.mrf.mxu0 }
 0x340   : > { %v3947_v20 = vpack.c.bf16 %v3507_v2, %v3499_v1  ;;  %v3755_v5 = vcvt.s32.f32 %v3243_v36  ;;  %v3763_v60 = vcvt.s32.f32 %v3251_v4  ;;  %v2980_v21 = vunpack.c.3.s8 %v2756_v58  ;;  %v11406_v63 = vld [vmem:[%s10705_s4 + $0x2b8] sm:$0xff] }
 0x341   : > { %4476 = vmatpush.bf16.msra.mxu0 %v3883_v3  ;;  %v4011_v25 = vpack.c.bf16 %v3635_v9, %v3627_v6  ;;  %v3484_v8 = vcvt.s32.f32 %v2972_v10  ;;  %v3100_v52 = vunpack.c.2.s8 %v2788_v43  ;;  %v3108_v28 = vunpack.c.3.s8 %v2788_v43  ;;  %v11413_v3 = vpop.f32.mrf.mxu2  ;;  %v11415_v6 = vpop.f32.mrf.mxu3 }
 0x342   : > { %4490 = vmatpush.bf16.msra.mxu1 %v3947_v20  ;;  %v4075_v29 = vpack.c.bf16 %v3763_v60, %v3755_v5  ;;  %v3492_v31 = vcvt.s32.f32 %v2980_v21  ;;  %v3228_v34 = vunpack.c.2.s8 %v2820_v12  ;;  %v3236_v17 = vunpack.c.3.s8 %v2820_v12 }
 0x343   : > { %4504 = vmatpush.bf16.msra.mxu2 %v4011_v25  ;;  %v3612_v32 = vcvt.s32.f32 %v3100_v52  ;;  %v3620_v14 = vcvt.s32.f32 %v3108_v28  ;;  %v3356_v35 = vunpack.c.2.s8 %v2852_v23  ;;  %v3364_v37 = vunpack.c.3.s8 %v2852_v23  ;;  %v11410_v0 = vpop.f32.mrf.mxu1  ;;  %v2695_v52 = vld [vmem:[#allocation3] sm:$0xff] }
 0x344   : > { %4518 = vmatpush.bf16.msra.mxu3 %v4075_v29  ;;  %v3940_v38 = vpack.c.bf16 %v3492_v31, %v3484_v8  ;;  %v3740_v42 = vcvt.s32.f32 %v3228_v34  ;;  %v3748_v40 = vcvt.s32.f32 %v3236_v17  ;;  %v2956_v26 = vunpack.c.0.s8 %v2756_v58  ;;  %4477 = vmatmul.bf16.vlgmr.msra.gmra.mxu0 %v11279_v47 }
 0x345   : > { %v4004_v51 = vpack.c.bf16 %v3620_v14, %v3612_v32  ;;  %v3868_v45 = vcvt.s32.f32 %v3356_v35  ;;  %v3876_v44 = vcvt.s32.f32 %v3364_v37  ;;  %v2964_v15 = vunpack.c.1.s8 %v2756_v58  ;;  %4491 = vmatmul.bf16.vlgmr.msra.gmra.mxu1 %v11281_v30 }
 0x346   : > { %4525 = vmatpush.bf16.msrb.mxu0 %v3940_v38  ;;  %v4068_v50 = vpack.c.bf16 %v3748_v40, %v3740_v42  ;;  %v3468_v22 = vcvt.s32.f32 %v2956_v26  ;;  %v3084_v33 = vunpack.c.0.s8 %v2788_v43  ;;  %v3092_v55 = vunpack.c.1.s8 %v2788_v43  ;;  %4505 = vmatmul.bf16.vlgmr.msra.gmra.mxu2 %v11261_v27  ;;  %v2844_v43 = vld [vmem:[%s10705_s4 + $0x3b8] sm:$0xff] }
 0x347   : > { %4539 = vmatpush.bf16.msrb.mxu1 %v4004_v51  ;;  %v4132_v49 = vpack.c.bf16 %v3876_v44, %v3868_v45  ;;  %v3476_v54 = vcvt.s32.f32 %v2964_v15  ;;  %v3212_v46 = vunpack.c.0.s8 %v2820_v12  ;;  %v3220_v19 = vunpack.c.1.s8 %v2820_v12  ;;  %4519 = vmatmul.bf16.vlgmr.msra.gmra.mxu3 %v11264_v24  ;;  %v11425_v44 = vpop.f32.mrf.mxu0 }
 0x348   : > { %4553 = vmatpush.bf16.msrb.mxu2 %v4068_v50  ;;  %v3596_v56 = vcvt.s32.f32 %v3084_v33  ;;  %v3604_v57 = vcvt.s32.f32 %v3092_v55  ;;  %v3340_v7 = vunpack.c.0.s8 %v2852_v23  ;;  %v3348_v59 = vunpack.c.1.s8 %v2852_v23  ;;  %v2740_v55 = vld [vmem:[%s10705_s4 + $0x78] sm:$0xff] }
 0x349   : > { %4567 = vmatpush.bf16.msrb.mxu3 %v4132_v49  ;;  %v3932_v39 = vpack.c.bf16 %v3476_v54, %v3468_v22  ;;  %v3724_v16 = vcvt.s32.f32 %v3212_v46  ;;  %v3732_v58 = vcvt.s32.f32 %v3220_v19  ;;  %v4213_v62 = vadd.f32 %v4212_v18, %v4198_v61  ;;  %v11432_v49 = vpop.f32.mrf.mxu2  ;;  %v11434_v54 = vpop.f32.mrf.mxu3 }
 0x34a   : > { %v3996_v1 = vpack.c.bf16 %v3604_v57, %v3596_v56  ;;  %v3852_v2 = vcvt.s32.f32 %v3340_v7  ;;  %v3860_v36 = vcvt.s32.f32 %v3348_v59  ;;  %v2940_v4 = vunpack.c.2.s8 %v2748_v53  ;;  %v2772_v57 = vld [vmem:[%s10705_s4 + $0x178] sm:$0xff] }
 0x34b   : > { %4526 = vmatpush.bf16.msrb.mxu0 %v3932_v39  ;;  %v4060_v9 = vpack.c.bf16 %v3732_v58, %v3724_v16  ;;  %v4227_v10 = vadd.f32 %v11393_v41, %v4213_v62  ;;  %v2948_v12 = vunpack.c.3.s8 %v2748_v53  ;;  %v3068_v61 = vunpack.c.2.s8 %v11403_v11  ;;  %v2804_v16 = vld [vmem:[%s10705_s4 + $0x278] sm:$0xff] }
 0x34c   : > { %4540 = vmatpush.bf16.msrb.mxu1 %v3996_v1  ;;  %v4124_v18 = vpack.c.bf16 %v3860_v36, %v3852_v2  ;;  %v3452_v20 = vcvt.s32.f32 %v2940_v4  ;;  %v3076_v5 = vunpack.c.3.s8 %v11403_v11  ;;  %v3196_v60 = vunpack.c.2.s8 %v11406_v63  ;;  %v2836_v2 = vld [vmem:[%s10705_s4 + $0x378] sm:$0xff] }
 0x34d   : > { %4554 = vmatpush.bf16.msrb.mxu2 %v4060_v9  ;;  %v3460_v21 = vcvt.s32.f32 %v2948_v12  ;;  %v3580_v23 = vcvt.s32.f32 %v3068_v61  ;;  %v3204_v25 = vunpack.c.3.s8 %v11406_v63  ;;  %v3324_v8 = vunpack.c.2.s8 %v2844_v43 }
 0x34e   : > { %4568 = vmatpush.bf16.msrb.mxu3 %v4124_v18  ;;  %v3588_v28 = vcvt.s32.f32 %v3076_v5  ;;  %v3708_v41 = vcvt.s32.f32 %v3196_v60  ;;  %v3332_v29 = vunpack.c.3.s8 %v2844_v43  ;;  %v4241_v31 = vadd.f32 %v11395_v13, %v4227_v10  ;;  %v11427_v13 = vpop.f32.mrf.mxu1  ;;  %v2703_v60 = vld [vmem:[#allocation3 + $0x20] sm:$0xff] }
 0x34f   : > { %v3924_v34 = vpack.c.bf16 %v3460_v21, %v3452_v20  ;;  %v3716_v17 = vcvt.s32.f32 %v3204_v25  ;;  %v3836_v32 = vcvt.s32.f32 %v3324_v8  ;;  %v2924_v14 = vunpack.c.0.s8 %v2748_v53 }
 0x350   : > { %v3988_v35 = vpack.c.bf16 %v3588_v28, %v3580_v23  ;;  %v3844_v37 = vcvt.s32.f32 %v3332_v29  ;;  %v4582_v38 = vadd.f32 %v4241_v31, %v2695_v52  ;;  %v2932_v42 = vunpack.c.1.s8 %v2748_v53 }
 0x351   : > { %4527 = vmatpush.bf16.msrb.mxu0 %v3924_v34  ;;  %v4052_v40 = vpack.c.bf16 %v3716_v17, %v3708_v41  ;;  %v3436_v26 = vcvt.s32.f32 %v2924_v14  ;;  %v3052_v51 = vunpack.c.0.s8 %v11403_v11  ;;  %v3060_v45 = vunpack.c.1.s8 %v11403_v11  ;;  %v11447_v34 = vpop.f32.mrf.mxu2  ;;  %v11449_v17 = vpop.f32.mrf.mxu3 }
 0x352   : > { %4541 = vmatpush.bf16.msrb.mxu1 %v3988_v35  ;;  %v4116_v15 = vpack.c.bf16 %v3844_v37, %v3836_v32  ;;  %4598 = vst [vmem:[#allocation3] sm:$0xff] %v4582_v38  ;;  %v3444_v50 = vcvt.s32.f32 %v2932_v42  ;;  %v3180_v22 = vunpack.c.0.s8 %v11406_v63  ;;  %v3188_v33 = vunpack.c.1.s8 %v11406_v63 }
 0x353   : > { %4555 = vmatpush.bf16.msrb.mxu2 %v4052_v40  ;;  %v3564_v46 = vcvt.s32.f32 %v3052_v51  ;;  %v3572_v19 = vcvt.s32.f32 %v3060_v45  ;;  %v3308_v53 = vunpack.c.0.s8 %v2844_v43  ;;  %v3316_v56 = vunpack.c.1.s8 %v2844_v43 }
 0x354   : > { %4569 = vmatpush.bf16.msrb.mxu3 %v4116_v15  ;;  %v3916_v7 = vpack.c.bf16 %v3444_v50, %v3436_v26  ;;  %v3692_v59 = vcvt.s32.f32 %v3180_v22  ;;  %v3700_v11 = vcvt.s32.f32 %v3188_v33  ;;  %v4215_v39 = vadd.f32 %v11410_v0, %v11408_v48  ;;  %v2732_v26 = vld [vmem:[%s10705_s4 + $0x38] sm:$0xff] }
 0x355   : > { %v3980_v58 = vpack.c.bf16 %v3572_v19, %v3564_v46  ;;  %v3820_v62 = vcvt.s32.f32 %v3308_v53  ;;  %v3828_v63 = vcvt.s32.f32 %v3316_v56  ;;  %v2908_v1 = vunpack.c.2.s8 %v2740_v55  ;;  %v2764_v19 = vld [vmem:[%s10705_s4 + $0x138] sm:$0xff] }
 0x356   : > { %4528 = vmatpush.bf16.msrb.mxu0 %v3916_v7  ;;  %v4044_v36 = vpack.c.bf16 %v3700_v11, %v3692_v59  ;;  %v4229_v4 = vadd.f32 %v11413_v3, %v4215_v39  ;;  %v2916_v9 = vunpack.c.3.s8 %v2740_v55  ;;  %v3036_v43 = vunpack.c.2.s8 %v2772_v57  ;;  %v11443_v3 = vpop.f32.mrf.mxu0  ;;  %v11445_v52 = vpop.f32.mrf.mxu1  ;;  %v2796_v59 = vld [vmem:[%s10705_s4 + $0x238] sm:$0xff] }
 0x357   : > { %4542 = vmatpush.bf16.msrb.mxu1 %v3980_v58  ;;  %v4108_v10 = vpack.c.bf16 %v3828_v63, %v3820_v62  ;;  %v3420_v12 = vcvt.s32.f32 %v2908_v1  ;;  %v3044_v61 = vunpack.c.3.s8 %v2772_v57  ;;  %v3164_v18 = vunpack.c.2.s8 %v2804_v16  ;;  %v2828_v63 = vld [vmem:[%s10705_s4 + $0x338] sm:$0xff] }
 0x358   : > { %4556 = vmatpush.bf16.msrb.mxu2 %v4044_v36  ;;  %v3428_v20 = vcvt.s32.f32 %v2916_v9  ;;  %v3548_v48 = vcvt.s32.f32 %v3036_v43  ;;  %v3172_v0 = vunpack.c.3.s8 %v2804_v16  ;;  %v3292_v5 = vunpack.c.2.s8 %v2836_v2 }
 0x359   : > { %4570 = vmatpush.bf16.msrb.mxu3 %v4108_v10  ;;  %v3556_v21 = vcvt.s32.f32 %v3044_v61  ;;  %v3676_v23 = vcvt.s32.f32 %v3164_v18  ;;  %v3300_v25 = vunpack.c.3.s8 %v2836_v2  ;;  %v4243_v8 = vadd.f32 %v11415_v6, %v4229_v4  ;;  %v4338_v18 = vpop.f32.mrf.mxu2 }
 0x35a   : > { %v3908_v28 = vpack.c.bf16 %v3428_v20, %v3420_v12  ;;  %v3684_v41 = vcvt.s32.f32 %v3172_v0  ;;  %v3804_v29 = vcvt.s32.f32 %v3292_v5  ;;  %v2892_v31 = vunpack.c.0.s8 %v2740_v55  ;;  %v11455_v20 = vpop.f32.mrf.mxu3 }
 0x35b   : > { %v3972_v32 = vpack.c.bf16 %v3556_v21, %v3548_v48  ;;  %v3812_v14 = vcvt.s32.f32 %v3300_v25  ;;  %v4590_v35 = vadd.f32 %v4243_v8, %v2703_v60  ;;  %v2900_v37 = vunpack.c.1.s8 %v2740_v55 }
 0x35c   : > { %4529 = vmatpush.bf16.msrb.mxu0 %v3908_v28  ;;  %v4036_v38 = vpack.c.bf16 %v3684_v41, %v3676_v23  ;;  %v3404_v6 = vcvt.s32.f32 %v2892_v31  ;;  %v3020_v42 = vunpack.c.0.s8 %v2772_v57  ;;  %v3028_v40 = vunpack.c.1.s8 %v2772_v57 }
 0x35d   : > { %4543 = vmatpush.bf16.msrb.mxu1 %v3972_v32  ;;  %v4100_v51 = vpack.c.bf16 %v3812_v14, %v3804_v29  ;;  %4606 = vst [vmem:[#allocation3 + $0x20] sm:$0xff] %v4590_v35  ;;  %v3412_v45 = vcvt.s32.f32 %v2900_v37  ;;  %v3148_v15 = vunpack.c.0.s8 %v2804_v16  ;;  %v3156_v50 = vunpack.c.1.s8 %v2804_v16 }
 0x35e   : > { %4557 = vmatpush.bf16.msrb.mxu2 %v4036_v38  ;;  %v3532_v22 = vcvt.s32.f32 %v3020_v42  ;;  %v3540_v33 = vcvt.s32.f32 %v3028_v40  ;;  %v3276_v46 = vunpack.c.0.s8 %v2836_v2  ;;  %v3284_v55 = vunpack.c.1.s8 %v2836_v2  ;;  %v4310_v9 = vpop.f32.mrf.mxu0  ;;  %v4324_v43 = vpop.f32.mrf.mxu1 }
 0x35f   : > { %4571 = vmatpush.bf16.msrb.mxu3 %v4100_v51  ;;  %v3900_v53 = vpack.c.bf16 %v3412_v45, %v3404_v6  ;;  %v3660_v56 = vcvt.s32.f32 %v3148_v15  ;;  %v3668_v7 = vcvt.s32.f32 %v3156_v50  ;;  %v2876_v57 = vunpack.c.2.s8 %v2732_v26 }
 0x360   : > { %v3964_v11 = vpack.c.bf16 %v3540_v33, %v3532_v22  ;;  %v3788_v39 = vcvt.s32.f32 %v3276_v46  ;;  %v3796_v58 = vcvt.s32.f32 %v3284_v55  ;;  %v2884_v62 = vunpack.c.3.s8 %v2732_v26 }
 0x361   : > { %4530 = vmatpush.bf16.msrb.mxu0 %v3900_v53  ;;  %v4028_v16 = vpack.c.bf16 %v3668_v7, %v3660_v56  ;;  %v3388_v1 = vcvt.s32.f32 %v2876_v57  ;;  %v3004_v36 = vunpack.c.2.s8 %v2764_v19  ;;  %v3012_v4 = vunpack.c.3.s8 %v2764_v19 }
 0x362   : > { %4544 = vmatpush.bf16.msrb.mxu1 %v3964_v11  ;;  %v4092_v2 = vpack.c.bf16 %v3796_v58, %v3788_v39  ;;  %v3396_v10 = vcvt.s32.f32 %v2884_v62  ;;  %v3132_v12 = vunpack.c.2.s8 %v2796_v59  ;;  %v3140_v61 = vunpack.c.3.s8 %v2796_v59 }
 0x363   : > { %4558 = vmatpush.bf16.msrb.mxu2 %v4028_v16  ;;  %v3516_v48 = vcvt.s32.f32 %v3004_v36  ;;  %v3524_v0 = vcvt.s32.f32 %v3012_v4  ;;  %v3260_v5 = vunpack.c.2.s8 %v2828_v63  ;;  %v3268_v60 = vunpack.c.3.s8 %v2828_v63  ;;  %v2696_v16 = vld [vmem:[#allocation3 + $0x58] sm:$0xff]  ;;  %v2704_v36 = vld [vmem:[#allocation3 + $0x10] sm:$0xff] }
 0x364   : > { %4572 = vmatpush.bf16.msrb.mxu3 %v4092_v2  ;;  %v3892_v21 = vpack.c.bf16 %v3396_v10, %v3388_v1  ;;  %v3644_v23 = vcvt.s32.f32 %v3132_v12  ;;  %v3652_v25 = vcvt.s32.f32 %v3140_v61  ;;  %v2860_v8 = vunpack.c.0.s8 %v2732_v26 }
 0x365   : > { %v3956_v28 = vpack.c.bf16 %v3524_v0, %v3516_v48  ;;  %v3772_v41 = vcvt.s32.f32 %v3260_v5  ;;  %v3780_v29 = vcvt.s32.f32 %v3268_v60  ;;  %v2868_v31 = vunpack.c.1.s8 %v2732_v26  ;;  %v2698_v0 = vld [vmem:[#allocation3 + $0x50] sm:$0xff] }
 0x366   : > { %4531 = vmatpush.bf16.msrb.mxu0 %v3892_v21  ;;  %v4020_v32 = vpack.c.bf16 %v3652_v25, %v3644_v23  ;;  %v3372_v14 = vcvt.s32.f32 %v2860_v8  ;;  %v2988_v35 = vunpack.c.0.s8 %v2764_v19  ;;  %v2996_v37 = vunpack.c.1.s8 %v2764_v19  ;;  %v4312_v55 = vpop.f32.mrf.mxu0  ;;  %v4326_v53 = vpop.f32.mrf.mxu1  ;;  %v2706_v8 = vld [vmem:[#allocation3 + $0x60] sm:$0xff] }
 0x367   : > { %4545 = vmatpush.bf16.msrb.mxu1 %v3956_v28  ;;  %v4084_v38 = vpack.c.bf16 %v3780_v29, %v3772_v41  ;;  %v3380_v6 = vcvt.s32.f32 %v2868_v31  ;;  %v3116_v42 = vunpack.c.0.s8 %v2796_v59  ;;  %v3124_v40 = vunpack.c.1.s8 %v2796_v59  ;;  %v4340_v59 = vpop.f32.mrf.mxu2 }
 0x368   : > { %4559 = vmatpush.bf16.msrb.mxu2 %v4020_v32  ;;  %v3500_v51 = vcvt.s32.f32 %v2988_v35  ;;  %v3508_v45 = vcvt.s32.f32 %v2996_v37  ;;  %v3244_v15 = vunpack.c.0.s8 %v2828_v63  ;;  %v3252_v50 = vunpack.c.1.s8 %v2828_v63 }
 0x369   : > { %4573 = vmatpush.bf16.msrb.mxu3 %v4084_v38  ;;  %v3884_v22 = vpack.c.bf16 %v3380_v6, %v3372_v14  ;;  %v3628_v33 = vcvt.s32.f32 %v3116_v42  ;;  %v3636_v46 = vcvt.s32.f32 %v3124_v40  ;;  %v4269_v26 = vadd.f32 %v11427_v13, %v11425_v44  ;;  %v4354_v13 = vpop.f32.mrf.mxu3  ;;  %v2699_v38 = vld [vmem:[#allocation3 + $0x68] sm:$0xff] }
 0x36a   : > { %v3948_v19 = vpack.c.bf16 %v3508_v45, %v3500_v51  ;;  %v3756_v56 = vcvt.s32.f32 %v3244_v15  ;;  %v3764_v7 = vcvt.s32.f32 %v3252_v50  ;;  %v4271_v57 = vadd.f32 %v11445_v52, %v11443_v3  ;;  %v2705_v52 = vld [vmem:[#allocation3 + $0x38] sm:$0xff] }
 0x36b   : > { %4532 = vmatpush.bf16.msrb.mxu0 %v3884_v22  ;;  %v4012_v11 = vpack.c.bf16 %v3636_v46, %v3628_v33  ;;  %v4283_v39 = vadd.f32 %v11432_v49, %v4269_v26  ;;  %v4325_v58 = vadd.f32 %v4324_v43, %v4310_v9  ;;  %v4327_v62 = vadd.f32 %v4326_v53, %v4312_v55  ;;  %v2697_v49 = vld [vmem:[#allocation3 + $0x18] sm:$0xff]  ;;  %v2707_v33 = vld [vmem:[#allocation3 + $0x70] sm:$0xff] }
 0x36c   : > { %4546 = vmatpush.bf16.msrb.mxu1 %v3948_v19  ;;  %v4076_v63 = vpack.c.bf16 %v3764_v7, %v3756_v56  ;;  %v4285_v44 = vadd.f32 %v11447_v34, %v4271_v57 }
 0x36d   : > { %4560 = vmatpush.bf16.msrb.mxu2 %v4012_v11  ;;  %v4297_v1 = vadd.f32 %v11434_v54, %v4283_v39  ;;  %v4339_v4 = vadd.f32 %v4338_v18, %v4325_v58  ;;  %v4341_v2 = vadd.f32 %v4340_v59, %v4327_v62  ;;  %v2700_v59 = vld [vmem:[#allocation3 + $0x8] sm:$0xff] }
 0x36e   : > { %4574 = vmatpush.bf16.msrb.mxu3 %v4076_v63  ;;  %4533 = vmatmul.bf16.vlgmr.msrb.gmra.mxu0 %v11279_v47  ;;  %v4299_v3 = vadd.f32 %v11449_v17, %v4285_v44 }
 0x36f   : > { %4547 = vmatmul.bf16.vlgmr.msrb.gmra.mxu1 %v11281_v30  ;;  %v4583_v9 = vadd.f32 %v4297_v1, %v2696_v16  ;;  %v4353_v43 = vadd.f32 %v11455_v20, %v4339_v4  ;;  %v4355_v34 = vadd.f32 %v4354_v13, %v4341_v2  ;;  %v4366_v61 = vpop.f32.mrf.mxu0  ;;  %v2708_v1 = vld [vmem:[#allocation3 + $0x78] sm:$0xff] }
 0x370   : > { %4561 = vmatmul.bf16.vlgmr.msrb.gmra.mxu2 %v11261_v27  ;;  %v4591_v10 = vadd.f32 %v4299_v3, %v2704_v36  ;;  %v4380_v47 = vpop.f32.mrf.mxu1 }
 0x371   : > { %4575 = vmatmul.bf16.vlgmr.msrb.gmra.mxu3 %v11264_v24  ;;  %4599 = vst [vmem:[#allocation3 + $0x58] sm:$0xff] %v4583_v9  ;;  %v4584_v54 = vadd.f32 %v4353_v43, %v2697_v49  ;;  %v4592_v12 = vadd.f32 %v4355_v34, %v2705_v52  ;;  %v4381_v17 = vadd.f32 %v4380_v47, %v4366_v61  ;;  %v2701_v34 = vld [vmem:[#allocation3 + $0x48] sm:$0xff] }
 0x372   : > { %4607 = vst [vmem:[#allocation3 + $0x10] sm:$0xff] %v4591_v10 }
 0x373   : > { %4600 = vst [vmem:[#allocation3 + $0x18] sm:$0xff] %v4584_v54 }
 0x374   : > { %4608 = vst [vmem:[#allocation3 + $0x38] sm:$0xff] %v4592_v12 }
 0x377   : > { %v4394_v18 = vpop.f32.mrf.mxu2  ;;  %v4368_v20 = vpop.f32.mrf.mxu0 }
 0x378   : > { %v4395_v30 = vadd.f32 %v4394_v18, %v4381_v17  ;;  %v4408_v48 = vpop.f32.mrf.mxu3  ;;  %v4382_v5 = vpop.f32.mrf.mxu1 }
 0x379   : > { %v4383_v21 = vadd.f32 %v4382_v5, %v4368_v20 }
 0x37a   : > { %v4409_v60 = vadd.f32 %v4408_v48, %v4395_v30  ;;  %v2709_v30 = vld [vmem:[#allocation3 + $0x28] sm:$0xff] }
 0x37c   : > { %v4585_v27 = vadd.f32 %v4409_v60, %v2698_v0 }
 0x37e   : > { %4601 = vst [vmem:[#allocation3 + $0x50] sm:$0xff] %v4585_v27 }
 0x37f   : > { %v4396_v24 = vpop.f32.mrf.mxu2 }
 0x380   : > { %v4397_v23 = vadd.f32 %v4396_v24, %v4383_v21  ;;  %v4410_v25 = vpop.f32.mrf.mxu3 }
 0x382   : > { %v4411_v28 = vadd.f32 %v4410_v25, %v4397_v23 }
 0x384   : > { %v4593_v41 = vadd.f32 %v4411_v28, %v2706_v8 }
 0x386   : > { %4609 = vst [vmem:[#allocation3 + $0x60] sm:$0xff] %v4593_v41 }
 0x397   : > { %v4422_v29 = vpop.f32.mrf.mxu0 }
 0x398   : > { %v4436_v31 = vpop.f32.mrf.mxu1 }
 0x399   : > { %v4437_v32 = vadd.f32 %v4436_v31, %v4422_v29 }
 0x39f   : > { %v4450_v14 = vpop.f32.mrf.mxu2  ;;  %v4424_v6 = vpop.f32.mrf.mxu0 }
 0x3a0   : > { %v4451_v35 = vadd.f32 %v4450_v14, %v4437_v32  ;;  %v4464_v37 = vpop.f32.mrf.mxu3  ;;  %v4438_v42 = vpop.f32.mrf.mxu1 }
 0x3a1   : > { %v4439_v45 = vadd.f32 %v4438_v42, %v4424_v6 }
 0x3a2   : > { %v4465_v40 = vadd.f32 %v4464_v37, %v4451_v35 }
 0x3a4   : > { %v4586_v51 = vadd.f32 %v4465_v40, %v2699_v38 }
 0x3a6   : > { %4602 = vst [vmem:[#allocation3 + $0x68] sm:$0xff] %v4586_v51 }
 0x3a7   : > { %v4452_v15 = vpop.f32.mrf.mxu2 }
 0x3a8   : > { %v4453_v50 = vadd.f32 %v4452_v15, %v4439_v45  ;;  %v4466_v22 = vpop.f32.mrf.mxu3 }
 0x3aa   : > { %v4467_v46 = vadd.f32 %v4466_v22, %v4453_v50 }
 0x3ac   : > { %v4594_v26 = vadd.f32 %v4467_v46, %v2707_v33 }
 0x3ae   : > { %4610 = vst [vmem:[#allocation3 + $0x70] sm:$0xff] %v4594_v26 }
 0x3c1   : > { %v4478_v55 = vpop.f32.mrf.mxu0 }
 0x3c2   : > { %v4492_v53 = vpop.f32.mrf.mxu1 }
 0x3c3   : > { %v4493_v19 = vadd.f32 %v4492_v53, %v4478_v55 }
 0x3c9   : > { %v4506_v56 = vpop.f32.mrf.mxu2  ;;  %v4480_v11 = vpop.f32.mrf.mxu0 }
 0x3ca   : > { %v4507_v7 = vadd.f32 %v4506_v56, %v4493_v19  ;;  %v4520_v57 = vpop.f32.mrf.mxu3  ;;  %v4494_v39 = vpop.f32.mrf.mxu1 }
 0x3cb   : > { %v4495_v63 = vadd.f32 %v4494_v39, %v4480_v11 }
 0x3cc   : > { %v4521_v58 = vadd.f32 %v4520_v57, %v4507_v7 }
 0x3ce   : > { %v4587_v62 = vadd.f32 %v4521_v58, %v2700_v59 }
 0x3d0   : > { %4603 = vst [vmem:[#allocation3 + $0x8] sm:$0xff] %v4587_v62 }
 0x3d1   : > { %v4508_v16 = vpop.f32.mrf.mxu2 }
 0x3d2   : > { %v4509_v44 = vadd.f32 %v4508_v16, %v4495_v63  ;;  %v4522_v13 = vpop.f32.mrf.mxu3 }
 0x3d4   : > { %v4523_v36 = vadd.f32 %v4522_v13, %v4509_v44 }
 0x3d6   : > { %v4595_v4 = vadd.f32 %v4523_v36, %v2708_v1 }
 0x3d8   : > { %4611 = vst [vmem:[#allocation3 + $0x78] sm:$0xff] %v4595_v4 }
 0x3eb   : > { %v4534_v2 = vpop.f32.mrf.mxu0 }
 0x3ec   : > { %v4548_v3 = vpop.f32.mrf.mxu1 }
 0x3ed   : > { %v4549_v49 = vadd.f32 %v4548_v3, %v4534_v2 }
 0x3f3   : > { %v4562_v52 = vpop.f32.mrf.mxu2  ;;  %v4536_v54 = vpop.f32.mrf.mxu0 }
 0x3f4   : > { %v4563_v9 = vadd.f32 %v4562_v52, %v4549_v49  ;;  %v4576_v43 = vpop.f32.mrf.mxu3  ;;  %v4550_v12 = vpop.f32.mrf.mxu1 }
 0x3f5   : > { %v4551_v47 = vadd.f32 %v4550_v12, %v4536_v54 }
 0x3f6   : > { %v4577_v10 = vadd.f32 %v4576_v43, %v4563_v9 }
 0x3f8   : > { %v4588_v61 = vadd.f32 %v4577_v10, %v2701_v34 }
 0x3fa   : > { %4604 = vst [vmem:[#allocation3 + $0x48] sm:$0xff] %v4588_v61 }
 0x3fb   : > { %v4564_v17 = vpop.f32.mrf.mxu2 }
 0x3fc   : > { %v4565_v18 = vadd.f32 %v4564_v17, %v4551_v47  ;;  %v4578_v48 = vpop.f32.mrf.mxu3 }
 0x3fe   : > { %v4579_v0 = vadd.f32 %v4578_v48, %v4565_v18  ;;  %4616 = sbr.rel (%p7961_p1) target bundleno = 1699 (0x6a3), region = 132 }
 0x400   : > { %v4596_v20 = vadd.f32 %v4579_v0, %v2709_v30 }
 0x402   : > { %4612 = vst [vmem:[#allocation3 + $0x28] sm:$0xff] %v4596_v20 }
 0x403   : > { %v8036_v5 = vld [vmem:[#allocation15 + $0x70] sm:$0xf]  ;;  %v9282_v60 = vld [vmem:[#allocation15 + $0x74] sm:$0xf0]  ;;  %v8028_v31 = vld [vmem:[#allocation15 + $0x60] sm:$0xf] }
 0x404   : > { %v8100_v27 = vld [vmem:[#allocation15 + $0xf0] sm:$0xf]  ;;  %v8037_v21 = vor.u32 %v9282_v60, %v8036_v5  ;;  %v9298_v24 = vld [vmem:[#allocation15 + $0xf4] sm:$0xf0]  ;;  %v9280_v14 = vld [vmem:[#allocation15 + $0x64] sm:$0xf0] }
 0x405   : > { %v8164_v23 = vld [vmem:[#allocation15 + $0x170] sm:$0xf]  ;;  %v9314_v25 = vld [vmem:[#allocation15 + $0x174] sm:$0xf0]  ;;  %v8101_v8 = vor.u32 %v9298_v24, %v8100_v27  ;;  %v8092_v35 = vld [vmem:[#allocation15 + $0xe0] sm:$0xf]  ;;  %v8029_v38 = vor.u32 %v9280_v14, %v8028_v31 }
 0x406   : > { %v8165_v28 = vor.u32 %v9314_v25, %v8164_v23  ;;  %v8228_v41 = vld [vmem:[#allocation15 + $0x1f0] sm:$0xf]  ;;  %v9330_v29 = vld [vmem:[#allocation15 + $0x1f4] sm:$0xf0]  ;;  %5803 = vmatpush.bf16.msra.mxu0 %v8037_v21  ;;  %v9296_v37 = vld [vmem:[#allocation15 + $0xe4] sm:$0xf0] }
 0x407   : > { %v8229_v32 = vor.u32 %v9330_v29, %v8228_v41  ;;  %5817 = vmatpush.bf16.msra.mxu1 %v8101_v8  ;;  %v8093_v6 = vor.u32 %v9296_v37, %v8092_v35  ;;  %v8156_v42 = vld [vmem:[#allocation15 + $0x160] sm:$0xf]  ;;  %v9312_v40 = vld [vmem:[#allocation15 + $0x164] sm:$0xf0]  ;;  %v8020_v50 = vld [vmem:[#allocation15 + $0x50] sm:$0xf] }
 0x408   : > { %5831 = vmatpush.bf16.msra.mxu2 %v8165_v28  ;;  %v8220_v51 = vld [vmem:[#allocation15 + $0x1e0] sm:$0xf]  ;;  %v8157_v45 = vor.u32 %v9312_v40, %v8156_v42  ;;  %v9328_v15 = vld [vmem:[#allocation15 + $0x1e4] sm:$0xf0]  ;;  %v9278_v22 = vld [vmem:[#allocation15 + $0x54] sm:$0xf0] }
 0x409   : > { %5845 = vmatpush.bf16.msra.mxu3 %v8229_v32  ;;  %v8221_v33 = vor.u32 %v9328_v15, %v8220_v51  ;;  %v8084_v46 = vld [vmem:[#allocation15 + $0xd0] sm:$0xf]  ;;  %v9294_v26 = vld [vmem:[#allocation15 + $0xd4] sm:$0xf0]  ;;  %v8021_v53 = vor.u32 %v9278_v22, %v8020_v50  ;;  %v8012_v11 = vld [vmem:[#allocation15 + $0x40] sm:$0xf] }
 0x40a   : > { %v8148_v55 = vld [vmem:[#allocation15 + $0x150] sm:$0xf]  ;;  %5804 = vmatpush.bf16.msra.mxu0 %v8029_v38  ;;  %v9310_v19 = vld [vmem:[#allocation15 + $0x154] sm:$0xf0]  ;;  %v8085_v57 = vor.u32 %v9294_v26, %v8084_v46  ;;  %v9276_v39 = vld [vmem:[#allocation15 + $0x44] sm:$0xf0] }
 0x40b   : > { %v8212_v56 = vld [vmem:[#allocation15 + $0x1d0] sm:$0xf]  ;;  %v9326_v7 = vld [vmem:[#allocation15 + $0x1d4] sm:$0xf0]  ;;  %5818 = vmatpush.bf16.msra.mxu1 %v8093_v6  ;;  %v8149_v59 = vor.u32 %v9310_v19, %v8148_v55  ;;  %v8076_v58 = vld [vmem:[#allocation15 + $0xc0] sm:$0xf]  ;;  %v8013_v36 = vor.u32 %v9276_v39, %v8012_v11 }
 0x40c   : > { %5832 = vmatpush.bf16.msra.mxu2 %v8157_v45  ;;  %v8213_v62 = vor.u32 %v9326_v7, %v8212_v56  ;;  %v9292_v63 = vld [vmem:[#allocation15 + $0xc4] sm:$0xf0]  ;;  %v8140_v16 = vld [vmem:[#allocation15 + $0x140] sm:$0xf]  ;;  %v8004_v3 = vld [vmem:[#allocation15 + $0x30] sm:$0xf] }
 0x40d   : > { %5846 = vmatpush.bf16.msra.mxu3 %v8221_v33  ;;  %v9308_v44 = vld [vmem:[#allocation15 + $0x144] sm:$0xf0]  ;;  %v8204_v13 = vld [vmem:[#allocation15 + $0x1c0] sm:$0xf]  ;;  %v8077_v4 = vor.u32 %v9292_v63, %v8076_v58  ;;  %v9274_v49 = vld [vmem:[#allocation15 + $0x34] sm:$0xf0] }
 0x40e   : > { %v9324_v1 = vld [vmem:[#allocation15 + $0x1c4] sm:$0xf0]  ;;  %5805 = vmatpush.bf16.msra.mxu0 %v8021_v53  ;;  %v8141_v2 = vor.u32 %v9308_v44, %v8140_v16  ;;  %v8068_v52 = vld [vmem:[#allocation15 + $0xb0] sm:$0xf]  ;;  %v9290_v43 = vld [vmem:[#allocation15 + $0xb4] sm:$0xf0]  ;;  %v8005_v61 = vor.u32 %v9274_v49, %v8004_v3 }
 0x40f   : > { %5819 = vmatpush.bf16.msra.mxu1 %v8085_v57  ;;  %v8205_v9 = vor.u32 %v9324_v1, %v8204_v13  ;;  %v8132_v34 = vld [vmem:[#allocation15 + $0x130] sm:$0xf]  ;;  %v9306_v10 = vld [vmem:[#allocation15 + $0x134] sm:$0xf0]  ;;  %v8069_v47 = vor.u32 %v9290_v43, %v8068_v52  ;;  %v7996_v18 = vld [vmem:[#allocation15 + $0x20] sm:$0xf] }
 0x410   : > { %5833 = vmatpush.bf16.msra.mxu2 %v8149_v59  ;;  %v8196_v54 = vld [vmem:[#allocation15 + $0x1b0] sm:$0xf]  ;;  %v9322_v12 = vld [vmem:[#allocation15 + $0x1b4] sm:$0xf0]  ;;  %v8133_v17 = vor.u32 %v9306_v10, %v8132_v34  ;;  %v9272_v30 = vld [vmem:[#allocation15 + $0x24] sm:$0xf0] }
 0x411   : > { %5847 = vmatpush.bf16.msra.mxu3 %v8213_v62  ;;  %v8060_v48 = vld [vmem:[#allocation15 + $0xa0] sm:$0xf]  ;;  %v8197_v0 = vor.u32 %v9322_v12, %v8196_v54  ;;  %v9288_v20 = vld [vmem:[#allocation15 + $0xa4] sm:$0xf0]  ;;  %v7997_v24 = vor.u32 %v9272_v30, %v7996_v18  ;;  %v7988_v23 = vld [vmem:[#allocation15 + $0x10] sm:$0xf] }
 0x412   : > { %5806 = vmatpush.bf16.msra.mxu0 %v8013_v36  ;;  %v8124_v5 = vld [vmem:[#allocation15 + $0x120] sm:$0xf]  ;;  %v9304_v60 = vld [vmem:[#allocation15 + $0x124] sm:$0xf0]  ;;  %v8061_v25 = vor.u32 %v9288_v20, %v8060_v48  ;;  %v9270_v28 = vld [vmem:[#allocation15 + $0x14] sm:$0xf0] }
 0x413   : > { %5820 = vmatpush.bf16.msra.mxu1 %v8077_v4  ;;  %v8188_v27 = vld [vmem:[#allocation15 + $0x1a0] sm:$0xf]  ;;  %v9320_v21 = vld [vmem:[#allocation15 + $0x1a4] sm:$0xf0]  ;;  %v8125_v8 = vor.u32 %v9304_v60, %v8124_v5  ;;  %v8052_v41 = vld [vmem:[#allocation15 + $0x90] sm:$0xf]  ;;  %v7989_v42 = vor.u32 %v9270_v28, %v7988_v23 }
 0x414   : > { %5834 = vmatpush.bf16.msra.mxu2 %v8141_v2  ;;  %v9286_v29 = vld [vmem:[#allocation15 + $0x94] sm:$0xf0]  ;;  %v8189_v31 = vor.u32 %v9320_v21, %v8188_v27  ;;  %v8116_v32 = vld [vmem:[#allocation15 + $0x110] sm:$0xf]  ;;  %v7980_v38 = vld [vmem:[#allocation15] sm:$0xf] }
 0x415   : > { %5848 = vmatpush.bf16.msra.mxu3 %v8205_v9  ;;  %v9302_v14 = vld [vmem:[#allocation15 + $0x114] sm:$0xf0]  ;;  %v8180_v35 = vld [vmem:[#allocation15 + $0x190] sm:$0xf]  ;;  %v9268_v6 = vld [vmem:[#allocation15 + $0x4] sm:$0xf0]  ;;  %v8053_v50 = vor.u32 %v9286_v29, %v8052_v41 }
 0x416   : > { %5807 = vmatpush.bf16.msra.mxu0 %v8005_v61  ;;  %v9318_v37 = vld [vmem:[#allocation15 + $0x194] sm:$0xf0]  ;;  %v8044_v40 = vld [vmem:[#allocation15 + $0x80] sm:$0xf]  ;;  %v9284_v51 = vld [vmem:[#allocation15 + $0x84] sm:$0xf0]  ;;  %v8117_v22 = vor.u32 %v9302_v14, %v8116_v32  ;;  %v7981_v63 = vor.u32 %v9268_v6, %v7980_v38 }
 0x417   : > { %5821 = vmatpush.bf16.msra.mxu1 %v8069_v47  ;;  %v8108_v45 = vld [vmem:[#allocation15 + $0x100] sm:$0xf]  ;;  %v9300_v15 = vld [vmem:[#allocation15 + $0x104] sm:$0xf0]  ;;  %v8292_v26 = vld [vmem:[#allocation15 + $0x270] sm:$0xf]  ;;  %v8181_v53 = vor.u32 %v9318_v37, %v8180_v35  ;;  %v8045_v1 = vor.u32 %v9284_v51, %v8044_v40 }
 0x418   : > { %5835 = vmatpush.bf16.msra.mxu2 %v8133_v17  ;;  %v8172_v33 = vld [vmem:[#allocation15 + $0x180] sm:$0xf]  ;;  %v9316_v46 = vld [vmem:[#allocation15 + $0x184] sm:$0xf0]  ;;  %v9346_v55 = vld [vmem:[#allocation15 + $0x274] sm:$0xf0]  ;;  %v8109_v36 = vor.u32 %v9300_v15, %v8108_v45 }
 0x419   : > { %5849 = vmatpush.bf16.msra.mxu3 %v8197_v0  ;;  %v8356_v19 = vld [vmem:[#allocation15 + $0x2f0] sm:$0xf]  ;;  %v9362_v56 = vld [vmem:[#allocation15 + $0x2f4] sm:$0xf0]  ;;  %v11471_v39 = vld [vmem:[#allocation15 + $0x260] sm:$0xf]  ;;  %v8173_v49 = vor.u32 %v9316_v46, %v8172_v33  ;;  %v8293_v52 = vor.u32 %v9346_v55, %v8292_v26 }
 0x41a   : > { %5808 = vmatpush.bf16.msra.mxu0 %v7997_v24  ;;  %v8420_v7 = vld [vmem:[#allocation15 + $0x370] sm:$0xf]  ;;  %v9378_v57 = vld [vmem:[#allocation15 + $0x374] sm:$0xf0]  ;;  %v11473_v58 = vld [vmem:[#allocation15 + $0x264] sm:$0xf0]  ;;  %v8357_v10 = vor.u32 %v9362_v56, %v8356_v19 }
 0x41b   : > { %5822 = vmatpush.bf16.msra.mxu1 %v8061_v25  ;;  %v8484_v59 = vld [vmem:[#allocation15 + $0x3f0] sm:$0xf]  ;;  %v9394_v11 = vld [vmem:[#allocation15 + $0x3f4] sm:$0xf0]  ;;  %v11475_v62 = vld [vmem:[#allocation15 + $0x2e0] sm:$0xf]  ;;  %v8421_v54 = vor.u32 %v9378_v57, %v8420_v7  ;;  %v8285_v17 = vor.u32 %v11473_v58, %v11471_v39 }
 0x41c   : > { %5836 = vmatpush.bf16.msra.mxu2 %v8125_v8  ;;  %v11477_v16 = vld [vmem:[#allocation15 + $0x2e4] sm:$0xf0]  ;;  %v11479_v44 = vld [vmem:[#allocation15 + $0x360] sm:$0xf]  ;;  %v11487_v3 = vld [vmem:[#allocation15 + $0x250] sm:$0xf]  ;;  %v8485_v47 = vor.u32 %v9394_v11, %v8484_v59 }
 0x41d   : > { %5850 = vmatpush.bf16.msra.mxu3 %v8189_v31  ;;  %v11481_v13 = vld [vmem:[#allocation15 + $0x364] sm:$0xf0]  ;;  %v11483_v4 = vld [vmem:[#allocation15 + $0x3e0] sm:$0xf]  ;;  %v11489_v9 = vld [vmem:[#allocation15 + $0x254] sm:$0xf0]  ;;  %v8349_v18 = vor.u32 %v11477_v16, %v11475_v62 }
 0x41e   : > { %5809 = vmatpush.bf16.msra.mxu0 %v7989_v42  ;;  %v11485_v2 = vld [vmem:[#allocation15 + $0x3e4] sm:$0xf0]  ;;  %v11491_v43 = vld [vmem:[#allocation15 + $0x2d0] sm:$0xf]  ;;  %v11493_v34 = vld [vmem:[#allocation15 + $0x2d4] sm:$0xf0]  ;;  %v8413_v30 = vor.u32 %v11481_v13, %v11479_v44  ;;  %v8277_v5 = vor.u32 %v11489_v9, %v11487_v3 }
 0x41f   : > { %5823 = vmatpush.bf16.msra.mxu1 %v8053_v50  ;;  %v11495_v12 = vld [vmem:[#allocation15 + $0x350] sm:$0xf]  ;;  %v11497_v61 = vld [vmem:[#allocation15 + $0x354] sm:$0xf0]  ;;  %v8477_v20 = vor.u32 %v11485_v2, %v11483_v4  ;;  %v8341_v60 = vor.u32 %v11493_v34, %v11491_v43  ;;  %v4625_v21 = vld [vmem:[#allocation3 + $0x40] sm:$0xff] }
 0x420   : > { %5837 = vmatpush.bf16.msra.mxu2 %v8117_v22  ;;  %v11505_v48 = vld [vmem:[#allocation15 + $0x3d0] sm:$0xf]  ;;  %v11507_v0 = vld [vmem:[#allocation15 + $0x3d4] sm:$0xf0]  ;;  %v8405_v23 = vor.u32 %v11497_v61, %v11495_v12  ;;  %v4619_v28 = vld [vmem:[#allocation3 + $0x58] sm:$0xff] }
 0x421   : > { %5851 = vmatpush.bf16.msra.mxu3 %v8181_v53  ;;  %v4617_v27 = vld [vmem:[#allocation3 + $0x30] sm:$0xff]  ;;  %v11515_v24 = vld [vmem:[#allocation13] sm:$0xff]  ;;  %v8469_v32 = vor.u32 %v11507_v0, %v11505_v48  ;;  %v4618_v37 = vld [vmem:[#allocation3] sm:$0xff] }
 0x422   : > { %5810 = vmatpush.bf16.msra.mxu0 %v7981_v63  ;;  %v4635_v25 = vperm.slane %v11515_v24, 0  ;;  %v11520_v8 = vld [vmem:[#allocation14] sm:$0xff]  ;;  %v4637_v29 = vperm.slane %v11515_v24, 2  ;;  %v4636_v31 = vperm.slane %v11515_v24, 1  ;;  %v4626_v38 = vld [vmem:[#allocation3 + $0x20] sm:$0xff]  ;;  %v4620_v50 = vld [vmem:[#allocation3 + $0x18] sm:$0xff] }
 0x423   : > { %5824 = vmatpush.bf16.msra.mxu1 %v8045_v1  ;;  %v4627_v41 = vld [vmem:[#allocation3 + $0x10] sm:$0xff]  ;;  %v4669_v14 = vperm.slane %v11520_v8, 0  ;;  %v4671_v35 = vperm.slane %v11520_v8, 2  ;;  %v4670_v6 = vperm.slane %v11520_v8, 1  ;;  %v11529_v42 = vld [vmem:[#allocation15 + $0x240] sm:$0xf] }
 0x424   : > { %5838 = vmatpush.bf16.msra.mxu2 %v8109_v36  ;;  %v4651_v40 = vmul.f32 %v4635_v25, %v4617_v27  ;;  %v4659_v51 = vmul.f32 %v4635_v25, %v4625_v21  ;;  %v4653_v45 = vmul.f32 %v4637_v29, %v4619_v28  ;;  %v4661_v15 = vmul.f32 %v4637_v29, %v4627_v41  ;;  %v9340_v22 = vld [vmem:[#allocation15 + $0x244] sm:$0xf0]  ;;  %v4628_v26 = vld [vmem:[#allocation3 + $0x38] sm:$0xff]  ;;  %v4621_v61 = vld [vmem:[#allocation3 + $0x50] sm:$0xff] }
 0x425   : > { %5852 = vmatpush.bf16.msra.mxu3 %v8173_v49  ;;  %v4652_v33 = vmul.f32 %v4636_v31, %v4618_v37  ;;  %v4660_v46 = vmul.f32 %v4636_v31, %v4626_v38  ;;  %v4638_v55 = vperm.slane %v11515_v24, 3  ;;  %v4672_v53 = vperm.slane %v11520_v8, 3  ;;  %v8332_v19 = vld [vmem:[#allocation15 + $0x2c0] sm:$0xf]  ;;  %v9356_v56 = vld [vmem:[#allocation15 + $0x2c4] sm:$0xf0] }
 0x426   : > { %5859 = vmatpush.bf16.msrb.mxu0 %v8293_v52  ;;  %v8396_v7 = vld [vmem:[#allocation15 + $0x340] sm:$0xf]  ;;  %v11533_v57 = vadd.f32 %v4669_v14, %v4651_v40  ;;  %v11535_v59 = vadd.f32 %v4669_v14, %v4659_v51  ;;  %v11537_v11 = vadd.f32 %v4671_v35, %v4653_v45  ;;  %v11539_v39 = vadd.f32 %v4671_v35, %v4661_v15  ;;  %v9372_v58 = vld [vmem:[#allocation15 + $0x344] sm:$0xf0]  ;;  %v8260_v48 = vld [vmem:[#allocation15 + $0x230] sm:$0xf] }
 0x427   : > { %5873 = vmatpush.bf16.msrb.mxu1 %v8357_v10  ;;  %v8460_v62 = vld [vmem:[#allocation15 + $0x3c0] sm:$0xf]  ;;  %v11541_v63 = vadd.f32 %v4670_v6, %v4652_v33  ;;  %v11543_v16 = vadd.f32 %v4670_v6, %v4660_v46  ;;  %v4654_v44 = vmul.f32 %v4638_v55, %v4620_v50  ;;  %v4639_v13 = vperm.slane %v11515_v24, 4  ;;  %v9388_v49 = vld [vmem:[#allocation15 + $0x3c4] sm:$0xf0] }
 0x428   : > { %5887 = vmatpush.bf16.msrb.mxu2 %v8421_v54  ;;  %v7962_v1 = vmul.f32 -1.442695, %v11533_v57  ;;  %v7970_v36 = vmul.f32 -1.442695, %v11535_v59  ;;  %v7964_v4 = vmul.f32 -1.442695, %v11537_v11  ;;  %v4662_v2 = vmul.f32 %v4638_v55, %v4628_v26 }
 0x429   : > { %5901 = vmatpush.bf16.msrb.mxu3 %v8485_v47  ;;  %v8269_v3 = vor.u32 %v9340_v22, %v11529_v42  ;;  %v7972_v52 = vmul.f32 -1.442695, %v11539_v39  ;;  %v7963_v9 = vmul.f32 -1.442695, %v11541_v63  ;;  %v11552_v10 = vadd.f32 %v4672_v53, %v4654_v44  ;;  %v4629_v47 = vld [vmem:[#allocation3 + $0x60] sm:$0xff]  ;;  %v4623_v42 = vld [vmem:[#allocation3 + $0x8] sm:$0xff] }
 0x42a   : > { %5860 = vmatpush.bf16.msrb.mxu0 %v8285_v17  ;;  %9878 = vpow2.f32 %v7962_v1  ;;  %v7971_v54 = vmul.f32 -1.442695, %v11543_v16  ;;  %v11555_v12 = vadd.f32 %v4672_v53, %v4662_v2  ;;  %v4673_v17 = vperm.slane %v11520_v8, 4  ;;  %v9338_v0 = vld [vmem:[#allocation15 + $0x234] sm:$0xf0]  ;;  %v4631_v40 = vld [vmem:[#allocation3 + $0x78] sm:$0xff] }
 0x42b   : > { %5874 = vmatpush.bf16.msrb.mxu1 %v8349_v18  ;;  %v8333_v18 = vor.u32 %v9356_v56, %v8332_v19  ;;  %9880 = vpow2.f32 %v7970_v36  ;;  %v8461_v27 = vor.u32 %v9388_v49, %v8460_v62  ;;  %v9354_v21 = vld [vmem:[#allocation15 + $0x2b4] sm:$0xf0]  ;;  %v8388_v25 = vld [vmem:[#allocation15 + $0x330] sm:$0xf]  ;;  %v4663_v41 = vmul.f32 %v4639_v13, %v4629_v47 }
 0x42c   : > { %5888 = vmatpush.bf16.msrb.mxu2 %v8413_v30  ;;  %v8397_v30 = vor.u32 %v9372_v58, %v8396_v7  ;;  %9882 = vpow2.f32 %v7964_v4  ;;  %v9370_v28 = vld [vmem:[#allocation15 + $0x334] sm:$0xf0]  ;;  %v8452_v29 = vld [vmem:[#allocation15 + $0x3b0] sm:$0xf]  ;;  %v7965_v43 = vmul.f32 -1.442695, %v11552_v10  ;;  %v8261_v34 = vor.u32 %v9338_v0, %v8260_v48 }
 0x42d   : > { %5902 = vmatpush.bf16.msrb.mxu3 %v8477_v20  ;;  %v8324_v20 = vld [vmem:[#allocation15 + $0x2b0] sm:$0xf]  ;;  %9884 = vpow2.f32 %v7972_v52  ;;  %v9386_v31 = vld [vmem:[#allocation15 + $0x3b4] sm:$0xf0]  ;;  %v8389_v14 = vor.u32 %v9370_v28, %v8388_v25  ;;  %v4641_v35 = vperm.slane %v11515_v24, 6  ;;  %v11566_v6 = vadd.f32 %v4673_v17, %v4663_v41 }
 0x42e   : > { %5861 = vmatpush.bf16.msrb.mxu0 %v8277_v5  ;;  %v4655_v5 = vmul.f32 %v4639_v13, %v4621_v61  ;;  %9886 = vpow2.f32 %v7963_v9  ;;  %v8453_v38 = vor.u32 %v9386_v31, %v8452_v29  ;;  %v4675_v7 = vperm.slane %v11520_v8, 6 }
 0x42f   : > { %5875 = vmatpush.bf16.msrb.mxu1 %v8341_v60  ;;  %v7973_v60 = vmul.f32 -1.442695, %v11555_v12  ;;  %9888 = vpow2.f32 %v7971_v54  ;;  %v11575_v26 = vmul.f32 %v4641_v35, %v4623_v42  ;;  %v11577_v55 = vmul.f32 %v4641_v35, %v4631_v40 }
 0x430   : > { %5889 = vmatpush.bf16.msrb.mxu2 %v8405_v23  ;;  %v11563_v23 = vadd.f32 %v4673_v17, %v4655_v5  ;;  %v9879_v37 = vpop.eup %9878  ;;  %9890 = vpow2.f32 %v7965_v43  ;;  %v11582_v56 = vmul.f32 -1.442695, %v11566_v6  ;;  %v4640_v4 = vperm.slane %v11515_v24, 5 }
 0x431   : > { %5903 = vmatpush.bf16.msrb.mxu3 %v8469_v32  ;;  %v8325_v32 = vor.u32 %v9354_v21, %v8324_v20  ;;  %v9881_v51 = vpop.eup %9880  ;;  %v11568_v45 = vadd.f32 1.0, %v9879_v37  ;;  %9892 = vpow2.f32 %v7973_v60  ;;  %v11750_v42 = vadd.f32 %v4675_v7, %v11577_v55 }
 0x432   : > { %5862 = vmatpush.bf16.msrb.mxu0 %v8269_v3  ;;  %v9883_v15 = vpop.eup %9882  ;;  %v11570_v50 = vadd.f32 1.0, %v9881_v51  ;;  %v7966_v22 = vmul.f32 -1.442695, %v11563_v23 }
 0x433   : > { %5876 = vmatpush.bf16.msrb.mxu1 %v8333_v18  ;;  %v9885_v33 = vpop.eup %9884  ;;  %9894 = vrcp.f32 %v11568_v45  ;;  %v4776_v46 = vand.u32 2147483648, %v11568_v45  ;;  %v4774_v19 = vand.u32 2147483647, %v11568_v45  ;;  %v11587_v13 = vadd.f32 1.0, %v9883_v15 }
 0x434   : > { %5890 = vmatpush.bf16.msrb.mxu2 %v8397_v30  ;;  %v9887_v53 = vpop.eup %9886  ;;  %9896 = vrcp.f32 %v11570_v50  ;;  %v4894_v62 = vand.u32 2147483647, %v11570_v50  ;;  %v4896_v44 = vand.u32 2147483648, %v11570_v50  ;;  %v11589_v1 = vadd.f32 1.0, %v9885_v33 }
 0x435   : > { %5904 = vmatpush.bf16.msrb.mxu3 %v8461_v27  ;;  %v9889_v58 = vpop.eup %9888  ;;  %vm4770_vm0 = vweird.f32 %v11568_v45  ;;  %v11592_v36 = vadd.f32 1.0, %v9887_v53  ;;  %9898 = vpow2.f32 %v7966_v22  ;;  %v11595_v3 = vor.u32 1.1754944e-38, %v4776_v46  ;;  %v8252_v46 = vld [vmem:[#allocation15 + $0x220] sm:$0xf]  ;;  %v9336_v53 = vld [vmem:[#allocation15 + $0x224] sm:$0xf0] }
 0x436   : > { %5863 = vmatpush.bf16.msrb.mxu0 %v8261_v34  ;;  %v9891_v2 = vpop.eup %9890  ;;  %vm4890_vm1 = vweird.f32 %v11570_v50  ;;  %9900 = vrcp.f32 %v11587_v13  ;;  %v4806_v49 = vand.u32 2147483648, %v11587_v13  ;;  %vm11602_vm2 = vcmp.eq.f32.partialorder %v4774_v19, 8.507059e+37 }
 0x437   : > { %5877 = vmatpush.bf16.msrb.mxu1 %v8325_v32  ;;  %v11600_v52 = vpop.eup %9892  ;;  %v4804_v54 = vand.u32 2147483647, %v11587_v13  ;;  %9902 = vrcp.f32 %v11589_v1  ;;  %v4926_v61 = vand.u32 2147483648, %v11589_v1  ;;  %v11609_v47 = vadd.f32 1.0, %v9889_v58  ;;  %v9368_v58 = vld [vmem:[#allocation15 + $0x324] sm:$0xf0] }
 0x438   : > { %5891 = vmatpush.bf16.msrb.mxu2 %v8389_v14  ;;  %vm11611_vm3 = vcmp.eq.f32.partialorder %v4894_v62, 8.507059e+37  ;;  %v4897_v30 = vor.u32 1.1754944e-38, %v4896_v44  ;;  %vm4800_vm4 = vweird.f32 %v11587_v13  ;;  %v4924_v48 = vand.u32 2147483647, %v11589_v1 }
 0x439   : > { %5905 = vmatpush.bf16.msrb.mxu3 %v8453_v38  ;;  %v9895_v17 = vpop.eup %9894  ;;  %9904 = vrcp.f32 %v11592_v36  ;;  %v11619_v5 = vor.u32 1.1754944e-38, %v4806_v49  ;;  %vm4920_vm5 = vweird.f32 %v11589_v1  ;;  %vm4785_vm6 = vweird.f32 %v11592_v36 }
 0x43a   : > { %v9897_v0 = vpop.eup %9896  ;;  %v4766_v20 = vmul.f32 %v9895_v17, %v11568_v45  ;;  %vm4771_vm7 = vweird.f32 %v9895_v17  ;;  %v4789_v21 = vand.u32 2147483647, %v11592_v36  ;;  %v4791_v25 = vand.u32 2147483648, %v11592_v36 }
 0x43b   : > { %v4886_v27 = vmul.f32 %v9897_v0, %v11570_v50  ;;  %v11626_v28 = vpop.eup %9898  ;;  %vm4891_vm8 = vweird.f32 %v9897_v0  ;;  %vm11628_vm9 = vcmp.eq.f32.partialorder %v4804_v54, 8.507059e+37  ;;  %v11632_v31 = vor.u32 1.1754944e-38, %v4926_v61  ;;  %vm11650_vm13 = vmor %vm4770_vm0, %vm4771_vm7  ;;  %v9364_v61 = vld [vmem:[#allocation15 + $0x304] sm:$0xf0] }
 0x43c   : > { %v4767_v41 = vsub.f32 1.0, %v4766_v20  ;;  %9906 = vrcp.f32 %v11609_v47  ;;  %v9901_v43 = vpop.eup %9900  ;;  %vm11635_vm10 = vcmp.eq.f32.partialorder %v4924_v48, 8.507059e+37  ;;  %v4909_v32 = vand.u32 2147483647, %v11609_v47  ;;  %vm11658_vm11 = vmor %vm4890_vm1, %vm4891_vm8 }
 0x43d   : > { %v4887_v34 = vsub.f32 1.0, %v4886_v27  ;;  %v4911_v14 = vand.u32 2147483648, %v11609_v47  ;;  %v9903_v35 = vpop.eup %9902  ;;  %v4796_v38 = vmul.f32 %v9901_v43, %v11587_v13  ;;  %vm11643_vm12 = vcmp.eq.f32.partialorder %v4789_v21, 8.507059e+37 }
 0x43e   : > { %v4768_v37 = vmul.f32 %v9895_v17, %v4767_v41  ;;  %v4792_v40 = vor.u32 1.1754944e-38, %v4791_v25  ;;  %vm4801_vm14 = vweird.f32 %v9901_v43  ;;  %v4916_v33 = vmul.f32 %v9903_v35, %v11589_v1 }
 0x43f   : > { %v9905_v51 = vpop.eup %9904  ;;  %v4888_v22 = vmul.f32 %v9897_v0, %v4887_v34  ;;  %vm4921_vm15 = vweird.f32 %v9903_v35  ;;  %v4797_v45 = vsub.f32 1.0, %v4796_v38  ;;  %v11663_v44 = vor.u32 1.1754944e-38, %v4911_v14  ;;  %vm11683_vm1 = vmor %vm4800_vm4, %vm4801_vm14 }
 0x440   : > { %v4769_v19 = vadd.f32 %v9895_v17, %v4768_v37  ;;  %v4781_v62 = vmul.f32 %v9905_v51, %v11592_v36  ;;  %v4917_v54 = vsub.f32 1.0, %v4916_v33  ;;  %vm4786_vm0 = vweird.f32 %v9905_v51 }
 0x441   : > { %v4889_v49 = vadd.f32 %v9897_v0, %v4888_v22  ;;  %vm11665_vm7 = vcmp.eq.f32.partialorder %v4909_v32, 8.507059e+37  ;;  %v11669_v48 = vadd.f32 1.0, %v9891_v2  ;;  %v4798_v27 = vmul.f32 %v9901_v43, %v4797_v45  ;;  %vm11703_vm4 = vmor %vm4785_vm6, %vm4786_vm0  ;;  %v9384_v45 = vld [vmem:[#allocation15 + $0x3a4] sm:$0xf0]  ;;  %v9382_v2 = vld [vmem:[#allocation15 + $0x394] sm:$0xf0] }
 0x442   : > { %v11671_v20 = vpop.eup %9906  ;;  %v4773_v50 = vsel %vm11650_vm13, %v9895_v17, %v4769_v19  ;;  %v4782_v21 = vsub.f32 1.0, %v4781_v62  ;;  %v8253_v25 = vor.u32 %v9336_v53, %v8252_v46  ;;  %v4918_v32 = vmul.f32 %v9903_v35, %v4917_v54  ;;  %v8316_v46 = vld [vmem:[#allocation15 + $0x2a0] sm:$0xf]  ;;  %v9352_v53 = vld [vmem:[#allocation15 + $0x2a4] sm:$0xf0] }
 0x443   : > { %v4778_v41 = vsel %vm11602_vm2, %v11595_v3, %v4773_v50  ;;  %v4893_v34 = vsel %vm11658_vm11, %v9897_v0, %v4889_v49  ;;  %v4901_v17 = vmul.f32 %v11671_v20, %v11609_v47  ;;  %v4799_v3 = vadd.f32 %v9901_v43, %v4798_v27  ;;  %vm11695_vm2 = vmor %vm4920_vm5, %vm4921_vm15  ;;  %v8244_v62 = vld [vmem:[#allocation15 + $0x210] sm:$0xf]  ;;  %v9334_v49 = vld [vmem:[#allocation15 + $0x214] sm:$0xf0] }
 0x444   : > { %v4898_v14 = vsel %vm11611_vm3, %v4897_v30, %v4893_v34  ;;  %v5005_v9 = vmul.f32 %v4778_v41, %v11533_v57  ;;  %v4783_v13 = vmul.f32 %v9905_v51, %v4782_v21  ;;  %5864 = vmatpush.bf16.msrb.mxu0 %v8253_v25  ;;  %v4919_v38 = vadd.f32 %v9903_v35, %v4918_v32  ;;  %v8308_v54 = vld [vmem:[#allocation15 + $0x290] sm:$0xf]  ;;  %v9350_v50 = vld [vmem:[#allocation15 + $0x294] sm:$0xf0]  ;;  %v8236_v32 = vld [vmem:[#allocation15 + $0x200] sm:$0xf] }
 0x445   : > { %v5013_v37 = vmul.f32 %v4898_v14, %v11535_v59  ;;  %v4902_v57 = vsub.f32 1.0, %v4901_v17  ;;  %vm4906_vm3 = vweird.f32 %v11671_v20  ;;  %v4803_v1 = vsel %vm11683_vm1, %v9901_v43, %v4799_v3  ;;  %v8372_v27 = vld [vmem:[#allocation15 + $0x310] sm:$0xf]  ;;  %v9366_v21 = vld [vmem:[#allocation15 + $0x314] sm:$0xf0] }
 0x446   : > { %v4784_v30 = vadd.f32 %v9905_v51, %v4783_v13  ;;  %v11711_v15 = vadd.f32 1.0, %v11600_v52  ;;  %9908 = vrcp.f32 %v11669_v48  ;;  %v4808_v36 = vsel %vm11628_vm9, %v11619_v5, %v4803_v1  ;;  %v8436_v34 = vld [vmem:[#allocation15 + $0x390] sm:$0xf]  ;;  %v9281_v1 = vld [vmem:[#allocation15 + $0x74] sm:$0xf] }
 0x447   : > { %v11714_v59 = vpack.c.bf16 %v5013_v37, %v5005_v9  ;;  %v4923_v22 = vsel %vm11695_vm2, %v9903_v35, %v4919_v38  ;;  %v4903_v33 = vmul.f32 %v11671_v20, %v4902_v57  ;;  %v5007_v43 = vmul.f32 %v4808_v36, %v11537_v11  ;;  %v8380_v35 = vld [vmem:[#allocation15 + $0x320] sm:$0xf]  ;;  %v9313_v5 = vld [vmem:[#allocation15 + $0x174] sm:$0xf] }
 0x448   : > { %v4928_v52 = vsel %vm11635_vm10, %v11632_v31, %v4923_v22  ;;  %v4788_v19 = vsel %vm11703_vm4, %v9905_v51, %v4784_v30  ;;  %vm12290_vm5 = vweird.f32 %v11609_v47  ;;  %v4819_v29 = vand.u32 2147483647, %v11669_v48  ;;  %v8444_v47 = vld [vmem:[#allocation15 + $0x3a0] sm:$0xf]  ;;  %v8038_v30 = vld [vmem:[#allocation15 + $0x78] sm:$0xf0] }
 0x449   : > { %vm11730_vm6 = vmor %vm12290_vm5, %vm4906_vm3  ;;  %5811 = vmatmul.bf16.vlgmr.msra.gmra.mxu0 %v11714_v59  ;;  %v5015_v60 = vmul.f32 %v4928_v52, %v11539_v39  ;;  %v4793_v11 = vsel %vm11643_vm12, %v4792_v40, %v4788_v19  ;;  %v4904_v31 = vadd.f32 %v11671_v20, %v4903_v33  ;;  %v4821_v51 = vand.u32 2147483648, %v11669_v48  ;;  %v11768_v9 = vld [vmem:[#allocation15 + $0x280] sm:$0xf]  ;;  %v9297_v33 = vld [vmem:[#allocation15 + $0xf4] sm:$0xf] }
 0x44a   : > { %9910 = vrcp.f32 %v11711_v15  ;;  %v11745_v39 = vadd.f32 %v4675_v7, %v11575_v26  ;;  %v5006_v41 = vmul.f32 %v4793_v11, %v11541_v63  ;;  %vm4815_vm8 = vweird.f32 %v11669_v48  ;;  %v9332_v26 = vld [vmem:[#allocation15 + $0x204] sm:$0xf0] }
 0x44b   : > { %v11752_v40 = vpack.c.bf16 %v5015_v60, %v5007_v43  ;;  %v4908_v25 = vsel %vm11730_vm6, %v11671_v20, %v4904_v31  ;;  %vm11764_vm9 = vcmp.eq.f32.partialorder %v4819_v29, 8.507059e+37  ;;  %v8317_v14 = vor.u32 %v9352_v53, %v8316_v46  ;;  %v11770_v63 = vld [vmem:[#allocation15 + $0x284] sm:$0xf0]  ;;  %v8102_v46 = vld [vmem:[#allocation15 + $0xf8] sm:$0xf0] }
 0x44c   : > { %v11759_v17 = vpop.eup %9908  ;;  %v4913_v55 = vsel %vm11665_vm7, %v11663_v44, %v4908_v25  ;;  %v8381_v20 = vor.u32 %v9368_v58, %v8380_v35  ;;  %v4822_v13 = vor.u32 1.1754944e-38, %v4821_v51  ;;  %vm4935_vm10 = vweird.f32 %v11711_v15  ;;  %v8364_v44 = vld [vmem:[#allocation15 + $0x300] sm:$0xf]  ;;  %v8166_v29 = vld [vmem:[#allocation15 + $0x178] sm:$0xf0] }
 0x44d   : > { %5839 = vmatmul.bf16.vlgmr.msra.gmra.mxu2 %v11752_v40  ;;  %v5014_v3 = vmul.f32 %v4913_v55, %v11543_v16  ;;  %v4811_v0 = vmul.f32 %v11759_v17, %v11669_v48  ;;  %v4939_v37 = vand.u32 2147483647, %v11711_v15  ;;  %5878 = vmatpush.bf16.msrb.mxu1 %v8317_v14  ;;  %v8445_v38 = vor.u32 %v9384_v45, %v8444_v47  ;;  %v8428_v31 = vld [vmem:[#allocation15 + $0x380] sm:$0xf]  ;;  %v9380_v51 = vld [vmem:[#allocation15 + $0x384] sm:$0xf0] }
 0x44e   : > { %5892 = vmatpush.bf16.msrb.mxu2 %v8381_v20  ;;  %v8245_v18 = vor.u32 %v9334_v49, %v8244_v62  ;;  %v8309_v57 = vor.u32 %v9350_v50, %v8308_v54  ;;  %vm4816_vm11 = vweird.f32 %v11759_v17  ;;  %v8373_v22 = vor.u32 %v9366_v21, %v8372_v27  ;;  %v4622_v48 = vld [vmem:[#allocation3 + $0x68] sm:$0xff]  ;;  %v8030_v20 = vld [vmem:[#allocation15 + $0x68] sm:$0xf0] }
 0x44f   : > { %v11778_v36 = vpack.c.bf16 %v5014_v3, %v5006_v41  ;;  %v4812_v16 = vsub.f32 1.0, %v4811_v0  ;;  %v4941_v52 = vand.u32 2147483648, %v11711_v15  ;;  %5906 = vmatpush.bf16.msrb.mxu3 %v8445_v38  ;;  %v8437_v43 = vor.u32 %v9382_v2, %v8436_v34  ;;  %vm11795_vm12 = vmor %vm4815_vm8, %vm4816_vm11  ;;  %v11809_v41 = vld [vmem:[#allocation15 + $0x1f4] sm:$0xf]  ;;  %v8230_v34 = vld [vmem:[#allocation15 + $0x1f8] sm:$0xf0] }
 0x450   : > { %v11781_v53 = vpop.eup %9910  ;;  %5865 = vmatpush.bf16.msrb.mxu0 %v8245_v18  ;;  %v8237_v19 = vor.u32 %v9332_v26, %v8236_v32  ;;  %9912 = vpow2.f32 %v11582_v56  ;;  %v8301_v60 = vor.u32 %v11770_v63, %v11768_v9  ;;  %v8365_v11 = vor.u32 %v9364_v61, %v8364_v44  ;;  %v4630_v26 = vld [vmem:[#allocation3 + $0x70] sm:$0xff] }
 0x451   : > { %5825 = vmatmul.bf16.vlgmr.msra.gmra.mxu1 %v11778_v36  ;;  %v4813_v35 = vmul.f32 %v11759_v17, %v4812_v16  ;;  %v4931_v58 = vmul.f32 %v11781_v53, %v11711_v15  ;;  %vm4936_vm13 = vweird.f32 %v11781_v53  ;;  %v8041_v56 = vor.u32 %v9281_v1, %v8038_v30  ;;  %v4624_v16 = vld [vmem:[#allocation3 + $0x48] sm:$0xff]  ;;  %v9311_v1 = vld [vmem:[#allocation15 + $0x164] sm:$0xf] }
 0x452   : > { %5879 = vmatpush.bf16.msrb.mxu1 %v8309_v57  ;;  %5893 = vmatpush.bf16.msrb.mxu2 %v8373_v22  ;;  %v8105_v45 = vor.u32 %v9297_v33, %v8102_v46  ;;  %v11801_v62 = vadd.f32 1.0, %v11626_v28  ;;  %v8169_v50 = vor.u32 %v9313_v5, %v8166_v29  ;;  %v7968_v27 = vmul.f32 -1.442695, %v11745_v39  ;;  %vm11823_vm15 = vmor %vm4935_vm10, %vm4936_vm13  ;;  %v4632_v46 = vld [vmem:[#allocation3 + $0x28] sm:$0xff] }
 0x453   : > { %v4814_v49 = vadd.f32 %v11759_v17, %v4813_v35  ;;  %v4932_v54 = vsub.f32 1.0, %v4931_v58  ;;  %vm11805_vm14 = vcmp.eq.f32.partialorder %v4939_v37, 8.507059e+37  ;;  %5907 = vmatpush.bf16.msrb.mxu3 %v8437_v43  ;;  %v8429_v25 = vor.u32 %v9380_v51, %v8428_v31 }
 0x454   : > { %5866 = vmatpush.bf16.msrb.mxu0 %v8237_v19  ;;  %9914 = vrcp.f32 %v11801_v62  ;;  %v7976_v32 = vmul.f32 -1.442695, %v11750_v42  ;;  %v4834_v9 = vand.u32 2147483647, %v11801_v62  ;;  %v4656_v63 = vmul.f32 %v4640_v4, %v4622_v48 }
 0x455   : > { %v4818_v28 = vsel %vm11795_vm12, %v11759_v17, %v4814_v49  ;;  %v4933_v2 = vmul.f32 %v11781_v53, %v4932_v54  ;;  %9916 = vpow2.f32 %v7968_v27  ;;  %v4942_v17 = vor.u32 1.1754944e-38, %v4941_v52 }
 0x456   : > { %v9913_v55 = vpop.eup %9912  ;;  %v4823_v14 = vsel %vm11764_vm9, %v4822_v13, %v4818_v28  ;;  %5880 = vmatpush.bf16.msrb.mxu1 %v8301_v60  ;;  %5894 = vmatpush.bf16.msrb.mxu2 %v8365_v11  ;;  %v8233_v7 = vor.u32 %v11809_v41, %v8230_v34  ;;  %9918 = vpow2.f32 %v7976_v32  ;;  %vm4830_vm0 = vweird.f32 %v11801_v62  ;;  %v8022_v41 = vld [vmem:[#allocation15 + $0x58] sm:$0xf0] }
 0x457   : > { %v4934_v3 = vadd.f32 %v11781_v53, %v4933_v2  ;;  %v11832_v0 = vadd.f32 1.0, %v9913_v55  ;;  %5908 = vmatpush.bf16.msrb.mxu3 %v8429_v25  ;;  %v4836_v15 = vand.u32 2147483648, %v11801_v62  ;;  %v4664_v13 = vmul.f32 %v4640_v4, %v4630_v26  ;;  %v9279_v2 = vld [vmem:[#allocation15 + $0x64] sm:$0xf] }
 0x458   : > { %5915 = vmatpush.bf16.msra.mxu0 %v8041_v56  ;;  %v4674_v44 = vperm.slane %v11520_v8, 5  ;;  %v5008_v37 = vmul.f32 %v4823_v14, %v11552_v10  ;;  %v4642_v38 = vperm.slane %v11515_v24, 7  ;;  %vm11847_vm7 = vcmp.eq.f32.partialorder %v4834_v9, 8.507059e+37 }
 0x459   : > { %v4938_v61 = vsel %vm11823_vm15, %v11781_v53, %v4934_v3  ;;  %9920 = vrcp.f32 %v11832_v0  ;;  %v4954_v24 = vand.u32 2147483647, %v11832_v0  ;;  %v4676_v53 = vperm.slane %v11520_v8, 7 }
 0x45a   : > { %5929 = vmatpush.bf16.msra.mxu1 %v8105_v45  ;;  %5943 = vmatpush.bf16.msra.mxu2 %v8169_v50  ;;  %v9915_v18 = vpop.eup %9914  ;;  %v4943_v57 = vsel %vm11805_vm14, %v4942_v17, %v4938_v61  ;;  %v11851_v4 = vadd.f32 %v4674_v44, %v4656_v63  ;;  %v11853_v30 = vadd.f32 %v4674_v44, %v4664_v13  ;;  %v4956_v52 = vand.u32 2147483648, %v11832_v0  ;;  %v8094_v13 = vld [vmem:[#allocation15 + $0xe8] sm:$0xf0] }
 0x45b   : > { %v9917_v22 = vpop.eup %9916  ;;  %v5016_v10 = vmul.f32 %v4943_v57, %v11555_v12  ;;  %v4826_v33 = vmul.f32 %v9915_v18, %v11801_v62  ;;  %vm4831_vm1 = vweird.f32 %v9915_v18  ;;  %v4658_v58 = vmul.f32 %v4642_v38, %v4624_v16  ;;  %v8158_v16 = vld [vmem:[#allocation15 + $0x168] sm:$0xf0] }
 0x45c   : > { %v11860_v43 = vadd.f32 1.0, %v9917_v22  ;;  %v7967_v19 = vmul.f32 -1.442695, %v11851_v4  ;;  %v9919_v5 = vpop.eup %9918  ;;  %v7975_v12 = vmul.f32 -1.442695, %v11853_v30  ;;  %v4666_v11 = vmul.f32 %v4642_v38, %v4632_v46  ;;  %vm11877_vm2 = vmor %vm4830_vm0, %vm4831_vm1 }
 0x45d   : > { %v11863_v29 = vpack.c.bf16 %v5016_v10, %v5008_v37  ;;  %v4827_v35 = vsub.f32 1.0, %v4826_v33  ;;  %v11866_v60 = vadd.f32 1.0, %v9919_v5  ;;  %v11872_v56 = vadd.f32 %v4676_v53, %v4658_v58 }
 0x45e   : > { %9922 = vrcp.f32 %v11860_v43  ;;  %v4864_v8 = vand.u32 2147483647, %v11860_v43  ;;  %v4866_v47 = vand.u32 2147483648, %v11860_v43  ;;  %v4837_v49 = vor.u32 1.1754944e-38, %v4836_v15  ;;  %v9295_v15 = vld [vmem:[#allocation15 + $0xe4] sm:$0xf] }
 0x45f   : > { %v9921_v31 = vpop.eup %9920  ;;  %5853 = vmatmul.bf16.vlgmr.msra.gmra.mxu3 %v11863_v29  ;;  %v4828_v51 = vmul.f32 %v9915_v18, %v4827_v35  ;;  %9924 = vpow2.f32 %v7967_v19  ;;  %vm4950_vm4 = vweird.f32 %v11832_v0  ;;  %vm11884_vm3 = vcmp.eq.f32.partialorder %v4954_v24, 8.507059e+37 }
 0x460   : > { %5957 = vmatpush.bf16.msra.mxu3 %v8233_v7  ;;  %v4946_v54 = vmul.f32 %v9921_v31, %v11832_v0  ;;  %9926 = vrcp.f32 %v11866_v60  ;;  %v4957_v48 = vor.u32 1.1754944e-38, %v4956_v52  ;;  %vm4860_vm5 = vweird.f32 %v11860_v43 }
 0x461   : > { %v4829_v50 = vadd.f32 %v9915_v18, %v4828_v51  ;;  %vm4951_vm6 = vweird.f32 %v9921_v31  ;;  %9928 = vpow2.f32 %v7975_v12  ;;  %v11889_v21 = vadd.f32 %v4676_v53, %v4666_v11 }
 0x462   : > { %v4947_v62 = vsub.f32 1.0, %v4946_v54  ;;  %vm11893_vm8 = vcmp.eq.f32.partialorder %v4864_v8, 8.507059e+37  ;;  %v11897_v34 = vor.u32 1.1754944e-38, %v4866_v47  ;;  %v7969_v28 = vmul.f32 -1.442695, %v11872_v56  ;;  %vm11910_vm10 = vmor %vm4950_vm4, %vm4951_vm6 }
 0x463   : > { %v4833_v25 = vsel %vm11877_vm2, %v9915_v18, %v4829_v50  ;;  %vm4980_vm9 = vweird.f32 %v11866_v60  ;;  %v4984_v55 = vand.u32 2147483647, %v11866_v60  ;;  %v7977_v14 = vmul.f32 -1.442695, %v11889_v21 }
 0x464   : > { %v11900_v32 = vpop.eup %9922  ;;  %v4948_v26 = vmul.f32 %v9921_v31, %v4947_v62  ;;  %v4838_v9 = vsel %vm11847_vm7, %v4837_v49, %v4833_v25  ;;  %v4986_v7 = vand.u32 2147483648, %v11866_v60  ;;  %9930 = vpow2.f32 %v7969_v28 }
 0x465   : > { %v9925_v17 = vpop.eup %9924  ;;  %v4856_v3 = vmul.f32 %v11900_v32, %v11860_v43  ;;  %9932 = vpow2.f32 %v7977_v14  ;;  %v8033_v38 = vor.u32 %v9279_v2, %v8030_v20  ;;  %vm4861_vm11 = vweird.f32 %v11900_v32  ;;  %v8222_v43 = vld [vmem:[#allocation15 + $0x1e8] sm:$0xf0]  ;;  %v9277_v20 = vld [vmem:[#allocation15 + $0x54] sm:$0xf] }
 0x466   : > { %v9927_v44 = vpop.eup %9926  ;;  %v4949_v61 = vadd.f32 %v9921_v31, %v4948_v26  ;;  %v11917_v37 = vadd.f32 1.0, %v9925_v17  ;;  %v8097_v57 = vor.u32 %v9295_v15, %v8094_v13  ;;  %v5009_v33 = vmul.f32 %v4838_v9, %v11563_v23  ;;  %vm11935_vm13 = vmor %vm4860_vm5, %vm4861_vm11  ;;  %v8086_v17 = vld [vmem:[#allocation15 + $0xd8] sm:$0xf0]  ;;  %v9325_v15 = vld [vmem:[#allocation15 + $0x1d4] sm:$0xf] }
 0x467   : > { %v4857_v18 = vsub.f32 1.0, %v4856_v3  ;;  %v4976_v0 = vmul.f32 %v9927_v44, %v11866_v60  ;;  %v9929_v22 = vpop.eup %9928  ;;  %vm4981_vm12 = vweird.f32 %v9927_v44  ;;  %5916 = vmatpush.bf16.msra.mxu0 %v8033_v38  ;;  %vm11939_vm14 = vcmp.eq.f32.partialorder %v4984_v55, 8.507059e+37  ;;  %v8214_v13 = vld [vmem:[#allocation15 + $0x1d8] sm:$0xf0] }
 0x468   : > { %v4953_v10 = vsel %vm11910_vm10, %v9921_v31, %v4949_v61  ;;  %9934 = vrcp.f32 %v11917_v37  ;;  %v11928_v52 = vadd.f32 1.0, %v9929_v22  ;;  %5930 = vmatpush.bf16.msra.mxu1 %v8097_v57  ;;  %v4849_v35 = vand.u32 2147483647, %v11917_v37  ;;  %v9327_v31 = vld [vmem:[#allocation15 + $0x1e4] sm:$0xf]  ;;  %vm11951_vm15 = vmor %vm4980_vm9, %vm4981_vm12 }
 0x469   : > { %v4958_v24 = vsel %vm11884_vm3, %v4957_v48, %v4953_v10  ;;  %v4858_v46 = vmul.f32 %v11900_v32, %v4857_v18  ;;  %v4977_v53 = vsub.f32 1.0, %v4976_v0  ;;  %v8161_v12 = vor.u32 %v9311_v1, %v8158_v16  ;;  %v9275_v18 = vld [vmem:[#allocation15 + $0x44] sm:$0xf]  ;;  %v8014_v0 = vld [vmem:[#allocation15 + $0x48] sm:$0xf0] }
 0x46a   : > { %v5017_v19 = vmul.f32 %v4958_v24, %v11566_v6  ;;  %v9931_v58 = vpop.eup %9930  ;;  %v4987_v6 = vor.u32 1.1754944e-38, %v4986_v7  ;;  %9936 = vrcp.f32 %v11928_v52  ;;  %vm4845_vm0 = vweird.f32 %v11917_v37  ;;  %v8150_v7 = vld [vmem:[#allocation15 + $0x158] sm:$0xf0]  ;;  %v9291_v57 = vld [vmem:[#allocation15 + $0xc4] sm:$0xf] }
 0x46b   : > { %v4859_v8 = vadd.f32 %v11900_v32, %v4858_v46  ;;  %v4978_v11 = vmul.f32 %v9927_v44, %v4977_v53  ;;  %v9933_v51 = vpop.eup %9932  ;;  %v4851_v49 = vand.u32 2147483648, %v11917_v37  ;;  %v4969_v54 = vand.u32 2147483647, %v11928_v52  ;;  %5944 = vmatpush.bf16.msra.mxu2 %v8161_v12  ;;  %v8078_v10 = vld [vmem:[#allocation15 + $0xc8] sm:$0xf0] }
 0x46c   : > { %v11946_v47 = vpack.c.bf16 %v5017_v19, %v5009_v33  ;;  %v11961_v48 = vadd.f32 1.0, %v9931_v58  ;;  %v11963_v62 = vadd.f32 1.0, %v9933_v51  ;;  %vm11971_vm7 = vcmp.eq.f32.partialorder %v4849_v35, 8.507059e+37  ;;  %v9307_v46 = vld [vmem:[#allocation15 + $0x144] sm:$0xf] }
 0x46d   : > { %v4863_v50 = vsel %vm11935_vm13, %v11900_v32, %v4859_v8  ;;  %v4979_v27 = vadd.f32 %v9927_v44, %v4978_v11  ;;  %v4971_v2 = vand.u32 2147483648, %v11928_v52  ;;  %v8225_v32 = vor.u32 %v9327_v31, %v8222_v43  ;;  %v8142_v53 = vld [vmem:[#allocation15 + $0x148] sm:$0xf0]  ;;  %v9323_v12 = vld [vmem:[#allocation15 + $0x1c4] sm:$0xf] }
 0x46e   : > { %v11965_v60 = vpop.eup %9934  ;;  %5867 = vmatmul.bf16.vlgmr.msrb.gmra.mxu0 %v11946_v47  ;;  %v4868_v25 = vsel %vm11893_vm8, %v11897_v34, %v4863_v50  ;;  %vm4965_vm1 = vweird.f32 %v11928_v52  ;;  %v9293_v34 = vld [vmem:[#allocation15 + $0xd4] sm:$0xf]  ;;  %v4852_v63 = vor.u32 1.1754944e-38, %v4851_v49  ;;  %vm11984_vm2 = vcmp.eq.f32.partialorder %v4969_v54, 8.507059e+37  ;;  %v8206_v58 = vld [vmem:[#allocation15 + $0x1c8] sm:$0xf0] }
 0x46f   : > { %v4983_v26 = vsel %vm11951_vm15, %v9927_v44, %v4979_v27  ;;  %v5011_v55 = vmul.f32 %v4868_v25, %v11745_v39  ;;  %v4841_v14 = vmul.f32 %v11965_v60, %v11917_v37  ;;  %9938 = vrcp.f32 %v11961_v48  ;;  %5958 = vmatpush.bf16.msra.mxu3 %v8225_v32  ;;  %v9309_v39 = vld [vmem:[#allocation15 + $0x154] sm:$0xf]  ;;  %v8006_v43 = vld [vmem:[#allocation15 + $0x38] sm:$0xf0]  ;;  %v9343_v19 = vld [vmem:[#allocation15 + $0x264] sm:$0xf] }
 0x470   : > { %v4988_v9 = vsel %vm11939_vm14, %v4987_v6, %v4983_v26  ;;  %v11989_v44 = vpop.eup %9936  ;;  %vm4846_vm4 = vweird.f32 %v11965_v60  ;;  %9940 = vrcp.f32 %v11963_v62  ;;  %v11996_v16 = vor.u32 1.1754944e-38, %v4971_v2  ;;  %v9273_v37 = vld [vmem:[#allocation15 + $0x34] sm:$0xf]  ;;  %v8070_v25 = vld [vmem:[#allocation15 + $0xb8] sm:$0xf0] }
 0x471   : > { %v5019_v61 = vmul.f32 %v4988_v9, %v11750_v42  ;;  %v4842_v38 = vsub.f32 1.0, %v4841_v14  ;;  %v4961_v1 = vmul.f32 %v11989_v44, %v11928_v52  ;;  %vm4875_vm3 = vweird.f32 %v11961_v48  ;;  %vm12009_vm6 = vmor %vm4845_vm0, %vm4846_vm4  ;;  %v9289_v27 = vld [vmem:[#allocation15 + $0xb4] sm:$0xf]  ;;  %v8198_v9 = vld [vmem:[#allocation15 + $0x1b8] sm:$0xf0] }
 0x472   : > { %v4879_v22 = vand.u32 2147483647, %v11961_v48  ;;  %vm4966_vm5 = vweird.f32 %v11989_v44  ;;  %v4881_v24 = vand.u32 2147483648, %v11961_v48  ;;  %vm4995_vm8 = vweird.f32 %v11963_v62  ;;  %v9317_v26 = vld [vmem:[#allocation15 + $0x194] sm:$0xf] }
 0x473   : > { %v12000_v33 = vpack.c.bf16 %v5019_v61, %v5011_v55  ;;  %v4843_v42 = vmul.f32 %v11965_v60, %v4842_v38  ;;  %v4962_v23 = vsub.f32 1.0, %v4961_v1  ;;  %v8025_v5 = vor.u32 %v9277_v20, %v8022_v41  ;;  %vm12030_vm9 = vmor %vm4965_vm1, %vm4966_vm5  ;;  %v9305_v20 = vld [vmem:[#allocation15 + $0x134] sm:$0xf]  ;;  %v8134_v41 = vld [vmem:[#allocation15 + $0x138] sm:$0xf0] }
 0x474   : > { %v8089_v35 = vor.u32 %v9293_v34, %v8086_v17  ;;  %v4999_v11 = vand.u32 2147483647, %v11963_v62  ;;  %v8153_v6 = vor.u32 %v9309_v39, %v8150_v7  ;;  %v8217_v31 = vor.u32 %v9325_v15, %v8214_v13  ;;  %v9321_v17 = vld [vmem:[#allocation15 + $0x1b4] sm:$0xf]  ;;  %v9271_v61 = vld [vmem:[#allocation15 + $0x24] sm:$0xf] }
 0x475   : > { %5895 = vmatmul.bf16.vlgmr.msrb.gmra.mxu2 %v12000_v33  ;;  %v4844_v8 = vadd.f32 %v11965_v60, %v4843_v42  ;;  %v12017_v51 = vpop.eup %9938  ;;  %v4963_v45 = vmul.f32 %v11989_v44, %v4962_v23  ;;  %v5001_v49 = vand.u32 2147483648, %v11963_v62  ;;  %5917 = vmatpush.bf16.msra.mxu0 %v8025_v5  ;;  %v8017_v54 = vor.u32 %v9275_v18, %v8014_v0  ;;  %v7998_v0 = vld [vmem:[#allocation15 + $0x28] sm:$0xf0]  ;;  %v9319_v23 = vld [vmem:[#allocation15 + $0x1a4] sm:$0xf] }
 0x476   : > { %5931 = vmatpush.bf16.msra.mxu1 %v8089_v35  ;;  %v8081_v50 = vor.u32 %v9291_v57, %v8078_v10  ;;  %v12021_v2 = vpop.eup %9940  ;;  %v4871_v55 = vmul.f32 %v12017_v51, %v11961_v48  ;;  %vm4876_vm10 = vweird.f32 %v12017_v51  ;;  %5945 = vmatpush.bf16.msra.mxu2 %v8153_v6  ;;  %v8145_v14 = vor.u32 %v9307_v46, %v8142_v53  ;;  %v9287_v57 = vld [vmem:[#allocation15 + $0xa4] sm:$0xf]  ;;  %v8062_v42 = vld [vmem:[#allocation15 + $0xa8] sm:$0xf0] }
 0x477   : > { %v4848_v32 = vsel %vm12009_vm6, %v11965_v60, %v4844_v8  ;;  %5959 = vmatpush.bf16.msra.mxu3 %v8217_v31  ;;  %v4964_v34 = vadd.f32 %v11989_v44, %v4963_v45  ;;  %v4991_v52 = vmul.f32 %v12021_v2, %v11963_v62  ;;  %vm4996_vm11 = vweird.f32 %v12021_v2  ;;  %v9303_v46 = vld [vmem:[#allocation15 + $0x124] sm:$0xf]  ;;  %v8126_v53 = vld [vmem:[#allocation15 + $0x128] sm:$0xf0]  ;;  %vm12056_vm12 = vmor %vm4875_vm3, %vm4876_vm10 }
 0x478   : > { %v4853_v60 = vsel %vm11971_vm7, %v4852_v63, %v4848_v32  ;;  %v4872_v7 = vsub.f32 1.0, %v4871_v55  ;;  %v8209_v15 = vor.u32 %v9323_v12, %v8206_v58  ;;  %v8009_v13 = vor.u32 %v9273_v37, %v8006_v43  ;;  %v8190_v5 = vld [vmem:[#allocation15 + $0x1a8] sm:$0xf0]  ;;  %vm12074_vm14 = vmor %vm4995_vm8, %vm4996_vm11  ;;  %v9269_v45 = vld [vmem:[#allocation15 + $0x14] sm:$0xf] }
 0x479   : > { %v5010_v39 = vmul.f32 %v4853_v60, %v11851_v4  ;;  %v4968_v28 = vsel %vm12030_vm9, %v11989_v44, %v4964_v34  ;;  %v4992_v63 = vsub.f32 1.0, %v4991_v52  ;;  %5918 = vmatpush.bf16.msra.mxu0 %v8017_v54  ;;  %v8073_v38 = vor.u32 %v9289_v27, %v8070_v25  ;;  %v9285_v54 = vld [vmem:[#allocation15 + $0x94] sm:$0xf]  ;;  %v8118_v25 = vld [vmem:[#allocation15 + $0x118] sm:$0xf0] }
 0x47a   : > { %5932 = vmatpush.bf16.msra.mxu1 %v8081_v50  ;;  %v8137_v18 = vor.u32 %v9305_v20, %v8134_v41  ;;  %v4973_v1 = vsel %vm11984_vm2, %v11996_v16, %v4968_v28  ;;  %v4873_v4 = vmul.f32 %v12017_v51, %v4872_v7  ;;  %5946 = vmatpush.bf16.msra.mxu2 %v8145_v14  ;;  %v4882_v3 = vor.u32 1.1754944e-38, %v4881_v24  ;;  %v8054_v50 = vld [vmem:[#allocation15 + $0x98] sm:$0xf0]  ;;  %v9301_v27 = vld [vmem:[#allocation15 + $0x114] sm:$0xf] }
 0x47b   : > { %5960 = vmatpush.bf16.msra.mxu3 %v8209_v15  ;;  %v8201_v10 = vor.u32 %v9321_v17, %v8198_v9  ;;  %v5018_v44 = vmul.f32 %v4973_v1, %v11853_v30  ;;  %v4993_v16 = vmul.f32 %v12021_v2, %v4992_v63  ;;  %vm12066_vm13 = vcmp.eq.f32.partialorder %v4879_v22, 8.507059e+37  ;;  %v8182_v55 = vld [vmem:[#allocation15 + $0x198] sm:$0xf0]  ;;  %v9267_v41 = vld [vmem:[#allocation15 + $0x4] sm:$0xf] }
 0x47c   : > { %v4874_v35 = vadd.f32 %v12017_v51, %v4873_v4  ;;  %v5002_v24 = vor.u32 1.1754944e-38, %v5001_v49  ;;  %v8001_v58 = vor.u32 %v9271_v61, %v7998_v0  ;;  %vm12083_vm15 = vcmp.eq.f32.partialorder %v4999_v11, 8.507059e+37  ;;  %v7990_v49 = vld [vmem:[#allocation15 + $0x18] sm:$0xf0]  ;;  %v7982_v60 = vld [vmem:[#allocation15 + $0x8] sm:$0xf0] }
 0x47d   : > { %v12078_v8 = vpack.c.bf16 %v5018_v44, %v5010_v39  ;;  %v4994_v6 = vadd.f32 %v12021_v2, %v4993_v16  ;;  %5919 = vmatpush.bf16.msra.mxu0 %v8009_v13  ;;  %v8065_v22 = vor.u32 %v9287_v57, %v8062_v42  ;;  %v8129_v37 = vor.u32 %v9303_v46, %v8126_v53  ;;  %v9283_v52 = vld [vmem:[#allocation15 + $0x84] sm:$0xf]  ;;  %v8046_v17 = vld [vmem:[#allocation15 + $0x88] sm:$0xf0]  ;;  %v9345_v61 = vld [vmem:[#allocation15 + $0x274] sm:$0xf] }
 0x47e   : > { %5933 = vmatpush.bf16.msra.mxu1 %v8073_v38  ;;  %v4878_v31 = vsel %vm12056_vm12, %v12017_v51, %v4874_v35  ;;  %5947 = vmatpush.bf16.msra.mxu2 %v8137_v18  ;;  %v8193_v43 = vor.u32 %v9319_v23, %v8190_v5  ;;  %v7993_v20 = vor.u32 %v9269_v45, %v7990_v49  ;;  %v9299_v9 = vld [vmem:[#allocation15 + $0x104] sm:$0xf]  ;;  %v8174_v13 = vld [vmem:[#allocation15 + $0x188] sm:$0xf0]  ;;  %v9361_v28 = vld [vmem:[#allocation15 + $0x2f4] sm:$0xf] }
 0x47f   : > { %5961 = vmatpush.bf16.msra.mxu3 %v8201_v10  ;;  %5881 = vmatmul.bf16.vlgmr.msrb.gmra.mxu1 %v12078_v8  ;;  %v4883_v62 = vsel %vm12066_vm13, %v4882_v3, %v4878_v31  ;;  %v4998_v11 = vsel %vm12074_vm14, %v12021_v2, %v4994_v6  ;;  %v8057_v2 = vor.u32 %v9285_v54, %v8054_v50  ;;  %v9315_v15 = vld [vmem:[#allocation15 + $0x184] sm:$0xf]  ;;  %v8358_v38 = vld [vmem:[#allocation15 + $0x2f8] sm:$0xf0]  ;;  %v9377_v18 = vld [vmem:[#allocation15 + $0x374] sm:$0xf] }
 0x480   : > { %v5003_v51 = vsel %vm12083_vm15, %v5002_v24, %v4998_v11  ;;  %v5012_v32 = vmul.f32 %v4883_v62, %v11872_v56  ;;  %v8121_v34 = vor.u32 %v9301_v27, %v8118_v25  ;;  %v8185_v7 = vor.u32 %v9317_v26, %v8182_v55  ;;  %v8110_v56 = vld [vmem:[#allocation15 + $0x108] sm:$0xf0]  ;;  %v8422_v0 = vld [vmem:[#allocation15 + $0x378] sm:$0xf0]  ;;  %v9393_v4 = vld [vmem:[#allocation15 + $0x3f4] sm:$0xf] }
 0x481   : > { %v5020_v14 = vmul.f32 %v5003_v51, %v11889_v21  ;;  %5920 = vmatpush.bf16.msra.mxu0 %v8001_v58  ;;  %v8294_v21 = vld [vmem:[#allocation15 + $0x278] sm:$0xf0]  ;;  %v7985_v63 = vor.u32 %v9267_v41, %v7982_v60  ;;  %v8049_v57 = vor.u32 %v9283_v52, %v8046_v17  ;;  %v8113_v1 = vor.u32 %v9299_v9, %v8110_v56  ;;  %v8286_v3 = vld [vmem:[#allocation15 + $0x268] sm:$0xf0]  ;;  %v9359_v16 = vld [vmem:[#allocation15 + $0x2e4] sm:$0xf] }
 0x482   : > { %5934 = vmatpush.bf16.msra.mxu1 %v8065_v22  ;;  %5948 = vmatpush.bf16.msra.mxu2 %v8129_v37  ;;  %v8486_v10 = vld [vmem:[#allocation15 + $0x3f8] sm:$0xf0]  ;;  %v8177_v42 = vor.u32 %v9315_v15, %v8174_v13  ;;  %v8297_v46 = vor.u32 %v9345_v61, %v8294_v21  ;;  %v8361_v53 = vor.u32 %v9361_v28, %v8358_v38  ;;  %v8350_v5 = vld [vmem:[#allocation15 + $0x2e8] sm:$0xf0]  ;;  %v9375_v35 = vld [vmem:[#allocation15 + $0x364] sm:$0xf] }
 0x483   : > { %5962 = vmatpush.bf16.msra.mxu3 %v8193_v43  ;;  %v12100_v39 = vpack.c.bf16 %v5020_v14, %v5012_v32  ;;  %v8425_v44 = vor.u32 %v9377_v18, %v8422_v0  ;;  %v8489_v23 = vor.u32 %v9393_v4, %v8486_v10  ;;  %v8414_v30 = vld [vmem:[#allocation15 + $0x368] sm:$0xf0]  ;;  %v9391_v12 = vld [vmem:[#allocation15 + $0x3e4] sm:$0xf]  ;;  %v8289_v58 = vor.u32 %v9343_v19, %v8286_v3  ;;  %v9341_v22 = vld [vmem:[#allocation15 + $0x254] sm:$0xf] }
 0x484   : > { %v8478_v24 = vld [vmem:[#allocation15 + $0x3e8] sm:$0xf0]  ;;  %v8353_v6 = vor.u32 %v9359_v16, %v8350_v5  ;;  %v8417_v48 = vor.u32 %v9375_v35, %v8414_v30  ;;  %v8278_v31 = vld [vmem:[#allocation15 + $0x258] sm:$0xf0]  ;;  %v9357_v37 = vld [vmem:[#allocation15 + $0x2d4] sm:$0xf] }
 0x485   : > { %5909 = vmatmul.bf16.vlgmr.msrb.gmra.mxu3 %v12100_v39  ;;  %5921 = vmatpush.bf16.msra.mxu0 %v7993_v20  ;;  %v8481_v43 = vor.u32 %v9391_v12, %v8478_v24  ;;  %v8342_v45 = vld [vmem:[#allocation15 + $0x2d8] sm:$0xf0]  ;;  %v9373_v49 = vld [vmem:[#allocation15 + $0x354] sm:$0xf]  ;;  %v8281_v50 = vor.u32 %v9341_v22, %v8278_v31  ;;  %v9339_v51 = vld [vmem:[#allocation15 + $0x244] sm:$0xf] }
 0x486   : > { %5935 = vmatpush.bf16.msra.mxu1 %v8057_v2  ;;  %5949 = vmatpush.bf16.msra.mxu2 %v8121_v34  ;;  %v8406_v54 = vld [vmem:[#allocation15 + $0x358] sm:$0xf0]  ;;  %v9389_v62 = vld [vmem:[#allocation15 + $0x3d4] sm:$0xf]  ;;  %v8345_v27 = vor.u32 %v9357_v37, %v8342_v45  ;;  %v8270_v32 = vld [vmem:[#allocation15 + $0x248] sm:$0xf0] }
 0x487   : > { %5963 = vmatpush.bf16.msra.mxu3 %v8185_v7  ;;  %v8470_v11 = vld [vmem:[#allocation15 + $0x3d8] sm:$0xf0]  ;;  %v8409_v25 = vor.u32 %v9373_v49, %v8406_v54  ;;  %v9355_v26 = vld [vmem:[#allocation15 + $0x2c4] sm:$0xf]  ;;  %v8334_v55 = vld [vmem:[#allocation15 + $0x2c8] sm:$0xf0] }
 0x488   : > { %v9371_v14 = vld [vmem:[#allocation15 + $0x344] sm:$0xf]  ;;  %v8398_v20 = vld [vmem:[#allocation15 + $0x348] sm:$0xf0]  ;;  %v8337_v2 = vor.u32 %v9355_v26, %v8334_v55  ;;  %v9337_v34 = vld [vmem:[#allocation15 + $0x234] sm:$0xf] }
 0x489   : > { %5922 = vmatpush.bf16.msra.mxu0 %v7985_v63  ;;  %v9387_v41 = vld [vmem:[#allocation15 + $0x3c4] sm:$0xf]  ;;  %v8462_v60 = vld [vmem:[#allocation15 + $0x3c8] sm:$0xf0]  ;;  %v8262_v52 = vld [vmem:[#allocation15 + $0x238] sm:$0xf0] }
 0x48a   : > { %5936 = vmatpush.bf16.msra.mxu1 %v8049_v57  ;;  %5950 = vmatpush.bf16.msra.mxu2 %v8113_v1  ;;  %v9353_v17 = vld [vmem:[#allocation15 + $0x2b4] sm:$0xf]  ;;  %v8465_v9 = vor.u32 %v9387_v41, %v8462_v60  ;;  %v8326_v7 = vld [vmem:[#allocation15 + $0x2b8] sm:$0xf0]  ;;  %v8265_v21 = vor.u32 %v9337_v34, %v8262_v52  ;;  %v9335_v38 = vld [vmem:[#allocation15 + $0x224] sm:$0xf] }
 0x48b   : > { %5964 = vmatpush.bf16.msra.mxu3 %v8177_v42  ;;  %v9369_v56 = vld [vmem:[#allocation15 + $0x334] sm:$0xf]  ;;  %v8390_v15 = vld [vmem:[#allocation15 + $0x338] sm:$0xf0]  ;;  %v8329_v28 = vor.u32 %v9353_v17, %v8326_v7  ;;  %v8254_v18 = vld [vmem:[#allocation15 + $0x228] sm:$0xf0] }
 0x48c   : > { %5923 = vmatmul.bf16.vlgmr.msra.gmra.mxu0 %v11714_v59  ;;  %v8273_v59 = vor.u32 %v9339_v51, %v8270_v32  ;;  %v9385_v13 = vld [vmem:[#allocation15 + $0x3b4] sm:$0xf]  ;;  %v8454_v61 = vld [vmem:[#allocation15 + $0x3b8] sm:$0xf0]  ;;  %v8393_v63 = vor.u32 %v9369_v56, %v8390_v15  ;;  %v9351_v0 = vld [vmem:[#allocation15 + $0x2a4] sm:$0xf] }
 0x48d   : > { %5971 = vmatpush.bf16.msrb.mxu0 %v8297_v46  ;;  %5951 = vmatmul.bf16.vlgmr.msra.gmra.mxu2 %v11752_v40  ;;  %v8473_v40 = vor.u32 %v9389_v62, %v8470_v11  ;;  %v8457_v57 = vor.u32 %v9385_v13, %v8454_v61  ;;  %v8318_v1 = vld [vmem:[#allocation15 + $0x2a8] sm:$0xf0]  ;;  %v9367_v4 = vld [vmem:[#allocation15 + $0x324] sm:$0xf]  ;;  %v9333_v19 = vld [vmem:[#allocation15 + $0x214] sm:$0xf] }
 0x48e   : > { %5985 = vmatpush.bf16.msrb.mxu1 %v8361_v53  ;;  %5999 = vmatpush.bf16.msrb.mxu2 %v8425_v44  ;;  %v8382_v10 = vld [vmem:[#allocation15 + $0x328] sm:$0xf0]  ;;  %v9383_v42 = vld [vmem:[#allocation15 + $0x3a4] sm:$0xf]  ;;  %v8321_v53 = vor.u32 %v9351_v0, %v8318_v1  ;;  %v8246_v3 = vld [vmem:[#allocation15 + $0x218] sm:$0xf0] }
 0x48f   : > { %6013 = vmatpush.bf16.msrb.mxu3 %v8489_v23  ;;  %5937 = vmatmul.bf16.vlgmr.msra.gmra.mxu1 %v11778_v36  ;;  %v8401_v36 = vor.u32 %v9371_v14, %v8398_v20  ;;  %v8446_v46 = vld [vmem:[#allocation15 + $0x3a8] sm:$0xf0]  ;;  %v8385_v44 = vor.u32 %v9367_v4, %v8382_v10  ;;  %v9349_v16 = vld [vmem:[#allocation15 + $0x294] sm:$0xf]  ;;  %v8310_v5 = vld [vmem:[#allocation15 + $0x298] sm:$0xf0] }
 0x490   : > { %v8449_v23 = vor.u32 %v9383_v42, %v8446_v46  ;;  %v9365_v35 = vld [vmem:[#allocation15 + $0x314] sm:$0xf]  ;;  %v8374_v30 = vld [vmem:[#allocation15 + $0x318] sm:$0xf0]  ;;  %v8238_v31 = vld [vmem:[#allocation15 + $0x208] sm:$0xf0] }
 0x491   : > { %5972 = vmatpush.bf16.msrb.mxu0 %v8289_v58  ;;  %v9381_v12 = vld [vmem:[#allocation15 + $0x394] sm:$0xf]  ;;  %v8438_v24 = vld [vmem:[#allocation15 + $0x398] sm:$0xf0]  ;;  %v8249_v58 = vor.u32 %v9333_v19, %v8246_v3  ;;  %v8377_v22 = vor.u32 %v9365_v35, %v8374_v30  ;;  %v9347_v37 = vld [vmem:[#allocation15 + $0x284] sm:$0xf] }
 0x492   : > { %5986 = vmatpush.bf16.msrb.mxu1 %v8353_v6  ;;  %6000 = vmatpush.bf16.msrb.mxu2 %v8417_v48  ;;  %v9331_v6 = vld [vmem:[#allocation15 + $0x204] sm:$0xf]  ;;  %v8313_v48 = vor.u32 %v9349_v16, %v8310_v5  ;;  %v8441_v45 = vor.u32 %v9381_v12, %v8438_v24  ;;  %v8366_v54 = vld [vmem:[#allocation15 + $0x308] sm:$0xf0] }
 0x493   : > { %6014 = vmatpush.bf16.msrb.mxu3 %v8481_v43  ;;  %v8302_v43 = vld [vmem:[#allocation15 + $0x288] sm:$0xf0]  ;;  %v9363_v49 = vld [vmem:[#allocation15 + $0x304] sm:$0xf] }
 0x494   : > { %v9379_v62 = vld [vmem:[#allocation15 + $0x384] sm:$0xf]  ;;  %v8430_v11 = vld [vmem:[#allocation15 + $0x388] sm:$0xf0]  ;;  %v8305_v26 = vor.u32 %v9347_v37, %v8302_v43 }
 0x495   : > { %5973 = vmatpush.bf16.msrb.mxu0 %v8281_v50  ;;  %5965 = vmatmul.bf16.vlgmr.msra.gmra.mxu3 %v11863_v29  ;;  %v8257_v29 = vor.u32 %v9335_v38, %v8254_v18  ;;  %v8716_v50 = vld [vmem:[#allocation18 + $0x1c0] sm:$0xf]  ;;  %v9451_v51 = vld [vmem:[#allocation18 + $0x1c4] sm:$0xf]  ;;  %v8433_v55 = vor.u32 %v9379_v62, %v8430_v11  ;;  %v8692_v37 = vld [vmem:[#allocation18 + $0x188] sm:$0xf] }
 0x496   : > { %5987 = vmatpush.bf16.msrb.mxu1 %v8345_v27  ;;  %6001 = vmatpush.bf16.msrb.mxu2 %v8409_v25  ;;  %v9455_v27 = vld [vmem:[#allocation18 + $0x1dc] sm:$0xf0]  ;;  %v8241_v25 = vor.u32 %v9331_v6, %v8238_v31  ;;  %v8718_v32 = vld [vmem:[#allocation18 + $0x1e0] sm:$0xf0]  ;;  %v9456_v6 = vld [vmem:[#allocation18 + $0x1e4] sm:$0xf0] }
 0x497   : > { %6015 = vmatpush.bf16.msrb.mxu3 %v8473_v40  ;;  %v8369_v40 = vor.u32 %v9363_v49, %v8366_v54  ;;  %v8717_v14 = vor.u32 %v9455_v27, %v8716_v50  ;;  %v8721_v20 = vor.u32 %v9451_v51, %v8718_v32  ;;  %v8684_v41 = vld [vmem:[#allocation18 + $0x180] sm:$0xf]  ;;  %v8654_v7 = vld [vmem:[#allocation18 + $0x160] sm:$0xf0]  ;;  %v8726_v31 = vld [vmem:[#allocation18 + $0x1e8] sm:$0xf0] }
 0x498   : > { %v9447_v60 = vld [vmem:[#allocation18 + $0x19c] sm:$0xf0]  ;;  %v9419_v18 = vld [vmem:[#allocation18 + $0xc4] sm:$0xf]  ;;  %v9448_v43 = vld [vmem:[#allocation18 + $0x1a4] sm:$0xf0] }
 0x499   : > { %5974 = vmatpush.bf16.msrb.mxu0 %v8273_v59  ;;  %v9443_v59 = vld [vmem:[#allocation18 + $0x184] sm:$0xf]  ;;  %v8652_v52 = vld [vmem:[#allocation18 + $0x140] sm:$0xf]  ;;  %v9444_v49 = vld [vmem:[#allocation18 + $0x18c] sm:$0xf]  ;;  %v8693_v62 = vor.u32 %v9448_v43, %v8692_v37 }
 0x49a   : > { %5988 = vmatpush.bf16.msrb.mxu1 %v8337_v2  ;;  %6002 = vmatpush.bf16.msrb.mxu2 %v8401_v36  ;;  %v8686_v2 = vld [vmem:[#allocation18 + $0x1a0] sm:$0xf0]  ;;  %v8685_v36 = vor.u32 %v9447_v60, %v8684_v41  ;;  %v9439_v17 = vld [vmem:[#allocation18 + $0x15c] sm:$0xf0]  ;;  %v8694_v54 = vld [vmem:[#allocation18 + $0x1a8] sm:$0xf0] }
 0x49b   : > { %6016 = vmatpush.bf16.msrb.mxu3 %v8465_v9  ;;  %v8689_v34 = vor.u32 %v9443_v59, %v8686_v2  ;;  %v9435_v9 = vld [vmem:[#allocation18 + $0x144] sm:$0xf]  ;;  %v8653_v56 = vor.u32 %v9439_v17, %v8652_v52  ;;  %v8620_v13 = vld [vmem:[#allocation18 + $0x100] sm:$0xf]  ;;  %v8697_v11 = vor.u32 %v9444_v49, %v8694_v54  ;;  %v8660_v50 = vld [vmem:[#allocation18 + $0x148] sm:$0xf] }
 0x49c   : > { %v8657_v15 = vor.u32 %v9435_v9, %v8654_v7  ;;  %v9431_v61 = vld [vmem:[#allocation18 + $0x11c] sm:$0xf0]  ;;  %v9411_v4 = vld [vmem:[#allocation18 + $0x84] sm:$0xf]  ;;  %v9440_v27 = vld [vmem:[#allocation18 + $0x164] sm:$0xf0] }
 0x49d   : > { %5975 = vmatpush.bf16.msrb.mxu0 %v8265_v21  ;;  %v9427_v21 = vld [vmem:[#allocation18 + $0x104] sm:$0xf]  ;;  %v8588_v38 = vld [vmem:[#allocation18 + $0xc0] sm:$0xf]  ;;  %v8661_v51 = vor.u32 %v9440_v27, %v8660_v50  ;;  %v8662_v32 = vld [vmem:[#allocation18 + $0x168] sm:$0xf0] }
 0x49e   : > { %5989 = vmatpush.bf16.msrb.mxu1 %v8329_v28  ;;  %6003 = vmatpush.bf16.msrb.mxu2 %v8393_v63  ;;  %v8621_v28 = vor.u32 %v9431_v61, %v8620_v13  ;;  %v9415_v1 = vld [vmem:[#allocation18 + $0x9c] sm:$0xf0]  ;;  %v8558_v10 = vld [vmem:[#allocation18 + $0xa0] sm:$0xf0]  ;;  %v8630_v41 = vld [vmem:[#allocation18 + $0x128] sm:$0xf0] }
 0x49f   : > { %6017 = vmatpush.bf16.msrb.mxu3 %v8457_v57  ;;  %v8556_v57 = vld [vmem:[#allocation18 + $0x80] sm:$0xf]  ;;  %v8561_v46 = vor.u32 %v9411_v4, %v8558_v10  ;;  %v8526_v19 = vld [vmem:[#allocation18 + $0x60] sm:$0xf0]  ;;  %v8596_v59 = vld [vmem:[#allocation18 + $0xc8] sm:$0xf] }
 0x4a0   : > { %v8557_v42 = vor.u32 %v9415_v1, %v8556_v57  ;;  %v9399_v5 = vld [vmem:[#allocation18 + $0x1c] sm:$0xf0]  ;;  %v9395_v35 = vld [vmem:[#allocation18 + $0x4] sm:$0xf]  ;;  %v9424_v2 = vld [vmem:[#allocation18 + $0xe4] sm:$0xf0] }
 0x4a1   : > { %5976 = vmatpush.bf16.msrb.mxu0 %v8257_v29  ;;  %v8524_v29 = vld [vmem:[#allocation18 + $0x40] sm:$0xf]  ;;  %v8494_v30 = vld [vmem:[#allocation18 + $0x20] sm:$0xf0]  ;;  %v8597_v52 = vor.u32 %v9424_v2, %v8596_v59  ;;  %v8598_v17 = vld [vmem:[#allocation18 + $0xe8] sm:$0xf0] }
 0x4a2   : > { %5990 = vmatpush.bf16.msrb.mxu1 %v8321_v53  ;;  %6004 = vmatpush.bf16.msrb.mxu2 %v8385_v44  ;;  %v9407_v53 = vld [vmem:[#allocation18 + $0x5c] sm:$0xf0]  ;;  %v9403_v44 = vld [vmem:[#allocation18 + $0x44] sm:$0xf]  ;;  %v8497_v24 = vor.u32 %v9395_v35, %v8494_v30  ;;  %v8564_v7 = vld [vmem:[#allocation18 + $0x88] sm:$0xf] }
 0x4a3   : > { %6018 = vmatpush.bf16.msrb.mxu3 %v8449_v23  ;;  %v8525_v3 = vor.u32 %v9407_v53, %v8524_v29  ;;  %v8529_v16 = vor.u32 %v9403_v44, %v8526_v19  ;;  %v8492_v23 = vld [vmem:[#allocation18] sm:$0xf]  ;;  %v8500_v4 = vld [vmem:[#allocation18 + $0x8] sm:$0xf]  ;;  %v8502_v29 = vld [vmem:[#allocation18 + $0x28] sm:$0xf0] }
 0x4a4   : > { %v8493_v12 = vor.u32 %v9399_v5, %v8492_v23  ;;  %v9400_v10 = vld [vmem:[#allocation18 + $0x24] sm:$0xf0]  ;;  %v8972_v53 = vld [vmem:[#allocation18 + $0x3c0] sm:$0xf]  ;;  %v8974_v23 = vld [vmem:[#allocation18 + $0x3e0] sm:$0xf0] }
 0x4a5   : > { %5977 = vmatpush.bf16.msrb.mxu0 %v8249_v58  ;;  %v8724_v58 = vld [vmem:[#allocation18 + $0x1c8] sm:$0xf]  ;;  %v9519_v44 = vld [vmem:[#allocation18 + $0x3dc] sm:$0xf0]  ;;  %v8942_v37 = vld [vmem:[#allocation18 + $0x3a0] sm:$0xf0] }
 0x4a6   : > { %5991 = vmatpush.bf16.msrb.mxu1 %v8313_v48  ;;  %6005 = vmatpush.bf16.msrb.mxu2 %v8377_v22  ;;  %v9452_v48 = vld [vmem:[#allocation18 + $0x1cc] sm:$0xf]  ;;  %v8725_v22 = vor.u32 %v9456_v6, %v8724_v58  ;;  %v8940_v58 = vld [vmem:[#allocation18 + $0x380] sm:$0xf]  ;;  %v8878_v59 = vld [vmem:[#allocation18 + $0x320] sm:$0xf0] }
 0x4a7   : > { %6019 = vmatpush.bf16.msrb.mxu3 %v8441_v45  ;;  %v8729_v45 = vor.u32 %v9452_v48, %v8726_v31  ;;  %v9511_v6 = vld [vmem:[#allocation18 + $0x39c] sm:$0xf0]  ;;  %v9507_v48 = vld [vmem:[#allocation18 + $0x384] sm:$0xf] }
 0x4a8   : > { %v8941_v31 = vor.u32 %v9511_v6, %v8940_v58  ;;  %v8945_v43 = vor.u32 %v9507_v48, %v8942_v37  ;;  %v8908_v54 = vld [vmem:[#allocation18 + $0x340] sm:$0xf]  ;;  %v8734_v58 = vld [vmem:[#allocation18 + $0x1f0] sm:$0xf0]  ;;  %v8750_v48 = vld [vmem:[#allocation18 + $0x220] sm:$0xf0] }
 0x4a9   : > { %5978 = vmatpush.bf16.msrb.mxu0 %v8241_v25  ;;  %v9436_v25 = vld [vmem:[#allocation18 + $0x14c] sm:$0xf]  ;;  %v8980_v37 = vld [vmem:[#allocation18 + $0x3c8] sm:$0xf] }
 0x4aa   : > { %5992 = vmatpush.bf16.msrb.mxu1 %v8305_v26  ;;  %6006 = vmatpush.bf16.msrb.mxu2 %v8369_v40  ;;  %v8665_v26 = vor.u32 %v9436_v25, %v8662_v32  ;;  %v8628_v40 = vld [vmem:[#allocation18 + $0x108] sm:$0xf]  ;;  %v8910_v25 = vld [vmem:[#allocation18 + $0x360] sm:$0xf0] }
 0x4ab   : > { %6020 = vmatpush.bf16.msrb.mxu3 %v8433_v55  ;;  %v9432_v55 = vld [vmem:[#allocation18 + $0x124] sm:$0xf0] }
 0x4ac   : > { %5979 = vmatmul.bf16.vlgmr.msrb.gmra.mxu0 %v11946_v47  ;;  %v8622_v47 = vld [vmem:[#allocation18 + $0x120] sm:$0xf0] }
 0x4ad   : > { %6815 = vmatpush.bf16.msra.mxu0 %v8717_v14  ;;  %5993 = vmatmul.bf16.vlgmr.msrb.gmra.mxu1 %v12078_v8  ;;  %v8625_v63 = vor.u32 %v9427_v21, %v8622_v47  ;;  %v9423_v8 = vld [vmem:[#allocation18 + $0xdc] sm:$0xf0]  ;;  %v9428_v14 = vld [vmem:[#allocation18 + $0x10c] sm:$0xf] }
 0x4ae   : > { %6843 = vmatpush.bf16.msra.mxu2 %v8721_v20  ;;  %6021 = vmatmul.bf16.vlgmr.msrb.gmra.mxu3 %v12100_v39  ;;  %v8589_v0 = vor.u32 %v9423_v8, %v8588_v38  ;;  %v8629_v20 = vor.u32 %v9432_v55, %v8628_v40  ;;  %v8633_v60 = vor.u32 %v9428_v14, %v8630_v41  ;;  %v8566_v21 = vld [vmem:[#allocation18 + $0xa8] sm:$0xf0]  ;;  %v8532_v38 = vld [vmem:[#allocation18 + $0x48] sm:$0xf]  ;;  %v8876_v55 = vld [vmem:[#allocation18 + $0x300] sm:$0xf] }
 0x4af   : > { %6007 = vmatmul.bf16.vlgmr.msrb.gmra.mxu2 %v12000_v33  ;;  %v8590_v33 = vld [vmem:[#allocation18 + $0xe0] sm:$0xf0]  ;;  %v9408_v8 = vld [vmem:[#allocation18 + $0x64] sm:$0xf0]  ;;  %v9495_v14 = vld [vmem:[#allocation18 + $0x31c] sm:$0xf0] }
 0x4b0   : > { %v8593_v39 = vor.u32 %v9419_v18, %v8590_v33  ;;  %v9404_v18 = vld [vmem:[#allocation18 + $0x4c] sm:$0xf]  ;;  %v8533_v33 = vor.u32 %v9408_v8, %v8532_v38  ;;  %v9475_v38 = vld [vmem:[#allocation18 + $0x284] sm:$0xf] }
 0x4b1   : > { %6816 = vmatpush.bf16.msra.mxu0 %v8685_v36  ;;  %v9420_v36 = vld [vmem:[#allocation18 + $0xcc] sm:$0xf] }
 0x4b2   : > { %6844 = vmatpush.bf16.msra.mxu2 %v8689_v34  ;;  %v8601_v9 = vor.u32 %v9420_v36, %v8598_v17  ;;  %v9487_v17 = vld [vmem:[#allocation18 + $0x2dc] sm:$0xf0] }
 0x4b5   : > { %6817 = vmatpush.bf16.msra.mxu0 %v8653_v56  ;;  %v9416_v56 = vld [vmem:[#allocation18 + $0xa4] sm:$0xf0] }
 0x4b6   : > { %6845 = vmatpush.bf16.msra.mxu2 %v8657_v15  ;;  %v9412_v15 = vld [vmem:[#allocation18 + $0x8c] sm:$0xf]  ;;  %v8565_v61 = vor.u32 %v9416_v56, %v8564_v7  ;;  %v9483_v56 = vld [vmem:[#allocation18 + $0x2c4] sm:$0xf] }
 0x4b7   : > { %v8569_v47 = vor.u32 %v9412_v15, %v8566_v21  ;;  %v8846_v15 = vld [vmem:[#allocation18 + $0x2e0] sm:$0xf0] }
 0x4b9   : > { %6818 = vmatpush.bf16.msra.mxu0 %v8621_v28  ;;  %v12111_v28 = vld [vmem:[#allocation17] sm:$0x3] }
 0x4ba   : > { %6846 = vmatpush.bf16.msra.mxu2 %v8625_v63  ;;  %v5159_v57 = vperm.slane %v12111_v28, 0 }
 0x4bd   : > { %6819 = vmatpush.bf16.msra.mxu0 %v8589_v0  ;;  %v8534_v0 = vld [vmem:[#allocation18 + $0x68] sm:$0xf0] }
 0x4be   : > { %6847 = vmatpush.bf16.msra.mxu2 %v8593_v39  ;;  %v8537_v39 = vor.u32 %v9404_v18, %v8534_v0 }
 0x4c1   : > { %6820 = vmatpush.bf16.msra.mxu0 %v8557_v42  ;;  %v9396_v42 = vld [vmem:[#allocation18 + $0xc] sm:$0xf] }
 0x4c2   : > { %6848 = vmatpush.bf16.msra.mxu2 %v8561_v46  ;;  %v8501_v46 = vor.u32 %v9400_v10, %v8500_v4  ;;  %v8505_v19 = vor.u32 %v9396_v42, %v8502_v29  ;;  %v8780_v10 = vld [vmem:[#allocation18 + $0x240] sm:$0xf] }
 0x4c3   : > { %v9471_v42 = vld [vmem:[#allocation18 + $0x25c] sm:$0xf0] }
 0x4c5   : > { %6821 = vmatpush.bf16.msra.mxu0 %v8525_v3  ;;  %v8973_v3 = vor.u32 %v9519_v44, %v8972_v53  ;;  %v8781_v53 = vor.u32 %v9471_v42, %v8780_v10  ;;  %v8782_v44 = vld [vmem:[#allocation18 + $0x260] sm:$0xf0]  ;;  %v9492_v10 = vld [vmem:[#allocation18 + $0x30c] sm:$0xf] }
 0x4c6   : > { %6849 = vmatpush.bf16.msra.mxu2 %v8529_v16  ;;  %v5812_v34 = vpop.f32.mrf.mxu0  ;;  %v9515_v16 = vld [vmem:[#allocation18 + $0x3c4] sm:$0xf] }
 0x4c7   : > { %v8977_v30 = vor.u32 %v9515_v16, %v8974_v23  ;;  %6829 = vmatpush.bf16.msra.mxu1 %v8973_v3  ;;  %v8732_v23 = vld [vmem:[#allocation18 + $0x1d0] sm:$0xf] }
 0x4c9   : > { %6822 = vmatpush.bf16.msra.mxu0 %v8493_v12  ;;  %v5813_v12 = vadd.f32 %v5812_v34, %v5159_v57  ;;  %6857 = vmatpush.bf16.msra.mxu3 %v8977_v30  ;;  %v9463_v30 = vld [vmem:[#allocation18 + $0x21c] sm:$0xf0] }
 0x4ca   : > { %6850 = vmatpush.bf16.msra.mxu2 %v8497_v24 }
 0x4cb   : > { %6830 = vmatpush.bf16.msra.mxu1 %v8941_v31 }
 0x4cd   : > { %6871 = vmatpush.bf16.msrb.mxu0 %v8725_v22  ;;  %6858 = vmatpush.bf16.msra.mxu3 %v8945_v43 }
 0x4ce   : > { %6899 = vmatpush.bf16.msrb.mxu2 %v8729_v45  ;;  %v5826_v13 = vpop.f32.mrf.mxu1  ;;  %v5814_v1 = vpop.f32.mrf.mxu0 }
 0x4cf   : > { %v5815_v22 = vadd.f32 %v5814_v1, %v5159_v57  ;;  %v5827_v45 = vadd.f32 %v5826_v13, %v5813_v12  ;;  %v9459_v12 = vld [vmem:[#allocation18 + $0x204] sm:$0xf] }
 0x4d0   : > { %v5840_v63 = vpop.f32.mrf.mxu2  ;;  %v8753_v31 = vor.u32 %v9459_v12, %v8750_v48 }
 0x4d1   : > { %6872 = vmatpush.bf16.msrb.mxu0 %v8693_v62  ;;  %v9503_v62 = vld [vmem:[#allocation18 + $0x35c] sm:$0xf0]  ;;  %v5841_v32 = vadd.f32 %v5840_v63, %v5827_v45 }
 0x4d2   : > { %6900 = vmatpush.bf16.msrb.mxu2 %v8697_v11  ;;  %v9499_v11 = vld [vmem:[#allocation18 + $0x344] sm:$0xf]  ;;  %v8909_v27 = vor.u32 %v9503_v62, %v8908_v54  ;;  %v9479_v63 = vld [vmem:[#allocation18 + $0x29c] sm:$0xf0]  ;;  %v9516_v54 = vld [vmem:[#allocation18 + $0x3cc] sm:$0xf] }
 0x4d3   : > { %v8982_v62 = vld [vmem:[#allocation18 + $0x3e8] sm:$0xf0] }
 0x4d4   : > { %6831 = vmatpush.bf16.msra.mxu1 %v8909_v27  ;;  %v8700_v27 = vld [vmem:[#allocation18 + $0x190] sm:$0xf] }
 0x4d5   : > { %6873 = vmatpush.bf16.msrb.mxu0 %v8661_v51  ;;  %v8913_v51 = vor.u32 %v9499_v11, %v8910_v25 }
 0x4d6   : > { %6901 = vmatpush.bf16.msrb.mxu2 %v8665_v26  ;;  %v5828_v35 = vpop.f32.mrf.mxu1 }
 0x4d7   : > { %v5829_v50 = vadd.f32 %v5828_v35, %v5815_v22  ;;  %6859 = vmatpush.bf16.msra.mxu3 %v8913_v51  ;;  %v8748_v35 = vld [vmem:[#allocation18 + $0x200] sm:$0xf]  ;;  %v8985_v51 = vor.u32 %v9516_v54, %v8982_v62  ;;  %v9413_v54 = vld [vmem:[#allocation18 + $0x94] sm:$0xf] }
 0x4d8   : > { %v5842_v24 = vpop.f32.mrf.mxu2  ;;  %v8749_v6 = vor.u32 %v9463_v30, %v8748_v35  ;;  %v9421_v35 = vld [vmem:[#allocation18 + $0xd4] sm:$0xf] }
 0x4d9   : > { %6874 = vmatpush.bf16.msrb.mxu0 %v8629_v20  ;;  %v9491_v20 = vld [vmem:[#allocation18 + $0x304] sm:$0xf]  ;;  %v5843_v41 = vadd.f32 %v5842_v24, %v5829_v50  ;;  %v9453_v24 = vld [vmem:[#allocation18 + $0x1d4] sm:$0xf] }
 0x4da   : > { %6902 = vmatpush.bf16.msrb.mxu2 %v8633_v60  ;;  %v8877_v60 = vor.u32 %v9495_v14, %v8876_v55  ;;  %v8881_v36 = vor.u32 %v9491_v20, %v8878_v59  ;;  %v8737_v50 = vor.u32 %v9453_v24, %v8734_v58  ;;  %v8702_v55 = vld [vmem:[#allocation18 + $0x1b0] sm:$0xf0]  ;;  %v8948_v14 = vld [vmem:[#allocation18 + $0x388] sm:$0xf] }
 0x4db   : > { %v9512_v20 = vld [vmem:[#allocation18 + $0x3a4] sm:$0xf0]  ;;  %v8606_v30 = vld [vmem:[#allocation18 + $0xf0] sm:$0xf0] }
 0x4dc   : > { %6832 = vmatpush.bf16.msra.mxu1 %v8877_v60  ;;  %6860 = vmatpush.bf16.msra.mxu3 %v8881_v36  ;;  %v8668_v60 = vld [vmem:[#allocation18 + $0x150] sm:$0xf]  ;;  %v8950_v36 = vld [vmem:[#allocation18 + $0x3a8] sm:$0xf0]  ;;  %v8852_v24 = vld [vmem:[#allocation18 + $0x2c8] sm:$0xf] }
 0x4dd   : > { %6875 = vmatpush.bf16.msrb.mxu0 %v8597_v52  ;;  %v8844_v52 = vld [vmem:[#allocation18 + $0x2c0] sm:$0xf]  ;;  %v9488_v58 = vld [vmem:[#allocation18 + $0x2e4] sm:$0xf0]  ;;  %v8574_v62 = vld [vmem:[#allocation18 + $0xb0] sm:$0xf0] }
 0x4de   : > { %6903 = vmatpush.bf16.msrb.mxu2 %v8601_v9  ;;  %v8845_v7 = vor.u32 %v9487_v17, %v8844_v52  ;;  %v9441_v17 = vld [vmem:[#allocation18 + $0x16c] sm:$0xf0]  ;;  %v8853_v48 = vor.u32 %v9488_v58, %v8852_v24 }
 0x4e0   : > { %6833 = vmatpush.bf16.msra.mxu1 %v8845_v7  ;;  %v8670_v7 = vld [vmem:[#allocation18 + $0x170] sm:$0xf0] }
 0x4e1   : > { %6876 = vmatpush.bf16.msrb.mxu0 %v8565_v61  ;;  %v8849_v61 = vor.u32 %v9483_v56, %v8846_v15  ;;  %v8916_v15 = vld [vmem:[#allocation18 + $0x348] sm:$0xf] }
 0x4e2   : > { %6904 = vmatpush.bf16.msrb.mxu2 %v8569_v47  ;;  %v5854_v5 = vpop.f32.mrf.mxu3  ;;  %v8812_v47 = vld [vmem:[#allocation18 + $0x280] sm:$0xf] }
 0x4e3   : > { %v5855_v34 = vadd.f32 %v5854_v5, %v5841_v32  ;;  %6861 = vmatpush.bf16.msra.mxu3 %v8849_v61  ;;  %v8813_v18 = vor.u32 %v9479_v63, %v8812_v47  ;;  %v9457_v5 = vld [vmem:[#allocation18 + $0x1ec] sm:$0xf0]  ;;  %v9500_v61 = vld [vmem:[#allocation18 + $0x34c] sm:$0xf] }
 0x4e4   : > { %v8733_v11 = vor.u32 %v9457_v5, %v8732_v23  ;;  %v8918_v63 = vld [vmem:[#allocation18 + $0x368] sm:$0xf0]  ;;  %v9425_v5 = vld [vmem:[#allocation18 + $0xec] sm:$0xf0] }
 0x4e5   : > { %6877 = vmatpush.bf16.msrb.mxu0 %v8533_v33  ;;  %v8814_v33 = vld [vmem:[#allocation18 + $0x2a0] sm:$0xf0]  ;;  %6834 = vmatpush.bf16.msra.mxu1 %v8813_v18  ;;  %v8669_v18 = vor.u32 %v9441_v17, %v8668_v60  ;;  %v8577_v60 = vor.u32 %v9413_v54, %v8574_v62  ;;  %v8676_v62 = vld [vmem:[#allocation18 + $0x158] sm:$0xf] }
 0x4e6   : > { %6905 = vmatpush.bf16.msrb.mxu2 %v8537_v39  ;;  %v8817_v57 = vor.u32 %v9475_v38, %v8814_v33  ;;  %v8636_v38 = vld [vmem:[#allocation18 + $0x110] sm:$0xf] }
 0x4e8   : > { %6862 = vmatpush.bf16.msra.mxu3 %v8817_v57  ;;  %v8638_v57 = vld [vmem:[#allocation18 + $0x130] sm:$0xf0] }
 0x4e9   : > { %6878 = vmatpush.bf16.msrb.mxu0 %v8501_v46  ;;  %v9467_v46 = vld [vmem:[#allocation18 + $0x244] sm:$0xf]  ;;  %6835 = vmatpush.bf16.msra.mxu1 %v8781_v53  ;;  %v5160_v53 = vperm.slane %v12111_v28, 1 }
 0x4ea   : > { %6906 = vmatpush.bf16.msrb.mxu2 %v8505_v19  ;;  %v5856_v26 = vpop.f32.mrf.mxu3  ;;  %v8785_v19 = vor.u32 %v9467_v46, %v8782_v44  ;;  %v8604_v44 = vld [vmem:[#allocation18 + $0xd0] sm:$0xf] }
 0x4eb   : > { %v5868_v49 = vpop.f32.mrf.mxu0  ;;  %v5857_v9 = vadd.f32 %v5856_v26, %v5843_v41  ;;  %v9449_v26 = vld [vmem:[#allocation18 + $0x1ac] sm:$0xf0]  ;;  %v9508_v41 = vld [vmem:[#allocation18 + $0x38c] sm:$0xf] }
 0x4ec   : > { %v5869_v21 = vadd.f32 %v5868_v49, %v5855_v34  ;;  %6863 = vmatpush.bf16.msra.mxu3 %v8785_v19  ;;  %v9520_v49 = vld [vmem:[#allocation18 + $0x3e4] sm:$0xf0]  ;;  %v8701_v34 = vor.u32 %v9449_v26, %v8700_v27  ;;  %v8953_v56 = vor.u32 %v9508_v41, %v8950_v36  ;;  %v8542_v36 = vld [vmem:[#allocation18 + $0x70] sm:$0xf0] }
 0x4ed   : > { %6836 = vmatpush.bf16.msra.mxu1 %v8749_v6  ;;  %v8981_v25 = vor.u32 %v9520_v49, %v8980_v37  ;;  %v9484_v6 = vld [vmem:[#allocation18 + $0x2cc] sm:$0xf]  ;;  %v9417_v49 = vld [vmem:[#allocation18 + $0xac] sm:$0xf0]  ;;  %v8820_v27 = vld [vmem:[#allocation18 + $0x288] sm:$0xf] }
 0x4f0   : > { %6864 = vmatpush.bf16.msra.mxu3 %v8753_v31  ;;  %v8572_v31 = vld [vmem:[#allocation18 + $0x90] sm:$0xf] }
 0x4f1   : > { %6885 = vmatpush.bf16.msrb.mxu1 %v8981_v25  ;;  %v9480_v25 = vld [vmem:[#allocation18 + $0x2a4] sm:$0xf0]  ;;  %v8573_v41 = vor.u32 %v9417_v49, %v8572_v31  ;;  %v9450_v31 = vld [vmem:[#allocation18 + $0x1b4] sm:$0xf0] }
 0x4f2   : > { %v8821_v26 = vor.u32 %v9480_v25, %v8820_v27  ;;  %v8678_v27 = vld [vmem:[#allocation18 + $0x178] sm:$0xf0] }
 0x4f3   : > { %v5870_v13 = vpop.f32.mrf.mxu0 }
 0x4f4   : > { %v5871_v8 = vadd.f32 %v5870_v13, %v5857_v9  ;;  %6913 = vmatpush.bf16.msrb.mxu3 %v8985_v51  ;;  %v9437_v9 = vld [vmem:[#allocation18 + $0x154] sm:$0xf]  ;;  %v9504_v13 = vld [vmem:[#allocation18 + $0x364] sm:$0xf0]  ;;  %v9476_v51 = vld [vmem:[#allocation18 + $0x28c] sm:$0xf] }
 0x4f5   : > { %v8917_v47 = vor.u32 %v9504_v13, %v8916_v15  ;;  %v8673_v33 = vor.u32 %v9437_v9, %v8670_v7  ;;  %v8788_v7 = vld [vmem:[#allocation18 + $0x248] sm:$0xf]  ;;  %v9468_v15 = vld [vmem:[#allocation18 + $0x24c] sm:$0xf] }
 0x4f8   : > { %v5896_v2 = vpop.f32.mrf.mxu2  ;;  %6914 = vmatpush.bf16.msrb.mxu3 %v8953_v56  ;;  %v9472_v56 = vld [vmem:[#allocation18 + $0x264] sm:$0xf0] }
 0x4f9   : > { %v8789_v13 = vor.u32 %v9472_v56, %v8788_v7 }
 0x4fc   : > { %v5882_v40 = vpop.f32.mrf.mxu1 }
 0x4fd   : > { %v5883_v1 = vadd.f32 %v5882_v40, %v5869_v21  ;;  %v9445_v40 = vld [vmem:[#allocation18 + $0x194] sm:$0xf] }
 0x4fe   : > { %v8705_v52 = vor.u32 %v9445_v40, %v8702_v55  ;;  %v8822_v40 = vld [vmem:[#allocation18 + $0x2a8] sm:$0xf0] }
 0x4ff   : > { %v5897_v3 = vadd.f32 %v5896_v2, %v5883_v1  ;;  %v8949_v2 = vor.u32 %v9512_v20, %v8948_v14  ;;  %v8884_v1 = vld [vmem:[#allocation18 + $0x308] sm:$0xf]  ;;  %v8540_v14 = vld [vmem:[#allocation18 + $0x50] sm:$0xf]  ;;  %v8825_v20 = vor.u32 %v9476_v51, %v8822_v40  ;;  %v8644_v40 = vld [vmem:[#allocation18 + $0x118] sm:$0xf] }
 0x500   : > { %v5898_v4 = vpop.f32.mrf.mxu2 }
 0x501   : > { %6886 = vmatpush.bf16.msrb.mxu1 %v8949_v2  ;;  %v9405_v2 = vld [vmem:[#allocation18 + $0x54] sm:$0xf] }
 0x504   : > { %v5884_v39 = vpop.f32.mrf.mxu1 }
 0x505   : > { %v5885_v29 = vadd.f32 %v5884_v39, %v5871_v8  ;;  %v8921_v8 = vor.u32 %v9500_v61, %v8918_v63  ;;  %v9429_v39 = vld [vmem:[#allocation18 + $0x114] sm:$0xf]  ;;  %6887 = vmatpush.bf16.msrb.mxu1 %v8917_v47  ;;  %v8790_v61 = vld [vmem:[#allocation18 + $0x268] sm:$0xf0]  ;;  %v8508_v47 = vld [vmem:[#allocation18 + $0x10] sm:$0xf] }
 0x506   : > { %v8641_v23 = vor.u32 %v9429_v39, %v8638_v57  ;;  %v9401_v63 = vld [vmem:[#allocation18 + $0x2c] sm:$0xf0]  ;;  %v8740_v39 = vld [vmem:[#allocation18 + $0x1d8] sm:$0xf] }
 0x507   : > { %v5899_v16 = vadd.f32 %v5898_v4, %v5885_v29  ;;  %v9496_v4 = vld [vmem:[#allocation18 + $0x324] sm:$0xf0]  ;;  %6915 = vmatpush.bf16.msrb.mxu3 %v8921_v8  ;;  %v8886_v29 = vld [vmem:[#allocation18 + $0x328] sm:$0xf0]  ;;  %v8793_v8 = vor.u32 %v9468_v15, %v8790_v61  ;;  %v9458_v57 = vld [vmem:[#allocation18 + $0x1f4] sm:$0xf0] }
 0x508   : > { %v5910_v0 = vpop.f32.mrf.mxu3  ;;  %v8885_v46 = vor.u32 %v9496_v4, %v8884_v1  ;;  %v8741_v24 = vor.u32 %v9458_v57, %v8740_v39  ;;  %v8612_v15 = vld [vmem:[#allocation18 + $0xd8] sm:$0xf]  ;;  %v9422_v39 = vld [vmem:[#allocation18 + $0xdc] sm:$0xf] }
 0x509   : > { %v5911_v43 = vadd.f32 %v5910_v0, %v5897_v3  ;;  %v5924_v59 = vpop.f32.mrf.mxu0  ;;  %v9433_v0 = vld [vmem:[#allocation18 + $0x12c] sm:$0xf0]  ;;  %v8889_v3 = vor.u32 %v9492_v10, %v8886_v29  ;;  %v8756_v10 = vld [vmem:[#allocation18 + $0x208] sm:$0xf]  ;;  %v9460_v29 = vld [vmem:[#allocation18 + $0x20c] sm:$0xf] }
 0x50a   : > { %6888 = vmatpush.bf16.msrb.mxu1 %v8885_v46  ;;  %v5925_v28 = vadd.f32 %v5924_v59, %v5160_v53  ;;  %v9409_v59 = vld [vmem:[#allocation18 + $0x6c] sm:$0xf0]  ;;  %v9464_v46 = vld [vmem:[#allocation18 + $0x224] sm:$0xf0]  ;;  %v8614_v57 = vld [vmem:[#allocation18 + $0xf8] sm:$0xf0] }
 0x50b   : > { %6916 = vmatpush.bf16.msrb.mxu3 %v8889_v3  ;;  %v8758_v3 = vld [vmem:[#allocation18 + $0x228] sm:$0xf0] }
 0x50c   : > { %v5938_v21 = vpop.f32.mrf.mxu1 }
 0x50d   : > { %v5939_v55 = vadd.f32 %v5938_v21, %v5925_v28 }
 0x50e   : > { %6889 = vmatpush.bf16.msrb.mxu1 %v8853_v48 }
 0x510   : > { %v5912_v22 = vpop.f32.mrf.mxu3  ;;  %v12118_v42 = vpop.f32.mrf.mxu2 }
 0x511   : > { %v5913_v45 = vadd.f32 %v5912_v22, %v5899_v16  ;;  %v8637_v16 = vor.u32 %v9433_v0, %v8636_v38  ;;  %v5926_v12 = vpop.f32.mrf.mxu0  ;;  %v8854_v22 = vld [vmem:[#allocation18 + $0x2e8] sm:$0xf0]  ;;  %v5953_v21 = vadd.f32 %v12118_v42, %v5939_v55  ;;  %v9397_v38 = vld [vmem:[#allocation18 + $0x14] sm:$0xf]  ;;  %v8757_v42 = vor.u32 %v9464_v46, %v8756_v10  ;;  %v8924_v46 = vld [vmem:[#allocation18 + $0x350] sm:$0xf] }
 0x512   : > { %v8857_v37 = vor.u32 %v9484_v6, %v8854_v22  ;;  %6890 = vmatpush.bf16.msrb.mxu1 %v8821_v26  ;;  %v8510_v0 = vld [vmem:[#allocation18 + $0x30] sm:$0xf0]  ;;  %v8708_v6 = vld [vmem:[#allocation18 + $0x198] sm:$0xf] }
 0x513   : > { %v12114_v32 = vpack.c.bf16 %v5913_v45, %v5911_v43  ;;  %v8605_v43 = vor.u32 %v9425_v5, %v8604_v44  ;;  %v8609_v45 = vor.u32 %v9421_v35, %v8606_v30  ;;  %v8742_v44 = vld [vmem:[#allocation18 + $0x1f8] sm:$0xf0]  ;;  %v8509_v5 = vor.u32 %v9401_v63, %v8508_v47 }
 0x514   : > { %6917 = vmatpush.bf16.msrb.mxu3 %v8857_v37  ;;  %v8513_v35 = vor.u32 %v9397_v38, %v8510_v0  ;;  %v9446_v37 = vld [vmem:[#allocation18 + $0x19c] sm:$0xf]  ;;  %v9426_v0 = vld [vmem:[#allocation18 + $0xf4] sm:$0xf0] }
 0x515   : > { %6823 = vmatmul.bf16.vlgmr.msra.gmra.mxu0 %v12114_v32  ;;  %6851 = vmatmul.bf16.vlgmr.msra.gmra.mxu2 %v12114_v32 }
 0x516   : > { %6927 = vmatpush.bf16.msra.mxu0 %v8733_v11  ;;  %6955 = vmatpush.bf16.msra.mxu2 %v8737_v50  ;;  %v5940_v11 = vpop.f32.mrf.mxu1  ;;  %v5927_v50 = vadd.f32 %v5926_v12, %v5160_v53  ;;  %v9454_v53 = vld [vmem:[#allocation18 + $0x1dc] sm:$0xf] }
 0x517   : > { %6891 = vmatpush.bf16.msrb.mxu1 %v8789_v13  ;;  %v8745_v58 = vor.u32 %v9454_v53, %v8742_v44  ;;  %v8617_v53 = vor.u32 %v9422_v39, %v8614_v57  ;;  %v9505_v44 = vld [vmem:[#allocation18 + $0x36c] sm:$0xf0] }
 0x518   : > { %v12121_v19 = vpop.f32.mrf.mxu3  ;;  %6918 = vmatpush.bf16.msrb.mxu3 %v8825_v20 }
 0x51a   : > { %6928 = vmatpush.bf16.msra.mxu0 %v8701_v34  ;;  %6956 = vmatpush.bf16.msra.mxu2 %v8705_v52  ;;  %v5954_v34 = vpop.f32.mrf.mxu2  ;;  %v5941_v52 = vadd.f32 %v5940_v11, %v5927_v50  ;;  %v9442_v11 = vld [vmem:[#allocation18 + $0x174] sm:$0xf0]  ;;  %v9438_v50 = vld [vmem:[#allocation18 + $0x15c] sm:$0xf] }
 0x51b   : > { %6892 = vmatpush.bf16.msrb.mxu1 %v8757_v42  ;;  %v8677_v20 = vor.u32 %v9442_v11, %v8676_v62  ;;  %v9501_v42 = vld [vmem:[#allocation18 + $0x354] sm:$0xf] }
 0x51c   : > { %v5955_v4 = vadd.f32 %v5954_v34, %v5941_v52  ;;  %6919 = vmatpush.bf16.msrb.mxu3 %v8793_v8  ;;  %v9434_v34 = vld [vmem:[#allocation18 + $0x134] sm:$0xf0]  ;;  %v9430_v52 = vld [vmem:[#allocation18 + $0x11c] sm:$0xf]  ;;  %v9513_v8 = vld [vmem:[#allocation18 + $0x3ac] sm:$0xf0] }
 0x51d   : > { %v8645_v47 = vor.u32 %v9434_v34, %v8644_v40  ;;  %v8518_v40 = vld [vmem:[#allocation18 + $0x38] sm:$0xf0] }
 0x51e   : > { %6929 = vmatpush.bf16.msra.mxu0 %v8669_v18  ;;  %6957 = vmatpush.bf16.msra.mxu2 %v8673_v33  ;;  %v8541_v18 = vor.u32 %v9409_v59, %v8540_v14  ;;  %v8545_v33 = vor.u32 %v9405_v2, %v8542_v36  ;;  %v8988_v14 = vld [vmem:[#allocation18 + $0x3d0] sm:$0xf]  ;;  %v9517_v2 = vld [vmem:[#allocation18 + $0x3d4] sm:$0xf] }
 0x51f   : > { %v9521_v59 = vld [vmem:[#allocation18 + $0x3ec] sm:$0xf0]  ;;  %v8990_v36 = vld [vmem:[#allocation18 + $0x3f0] sm:$0xf0] }
 0x520   : > { %v5968_v17 = vpop.f32.mrf.mxu3  ;;  %v8989_v13 = vor.u32 %v9521_v59, %v8988_v14  ;;  %v8993_v61 = vor.u32 %v9517_v2, %v8990_v36  ;;  %v9481_v59 = vld [vmem:[#allocation18 + $0x2ac] sm:$0xf0]  ;;  %v9477_v2 = vld [vmem:[#allocation18 + $0x294] sm:$0xf] }
 0x521   : > { %v5969_v12 = vadd.f32 %v5968_v17, %v5955_v4  ;;  %v8646_v17 = vld [vmem:[#allocation18 + $0x138] sm:$0xf0]  ;;  %v8830_v36 = vld [vmem:[#allocation18 + $0x2b0] sm:$0xf0] }
 0x522   : > { %6930 = vmatpush.bf16.msra.mxu0 %v8637_v16  ;;  %6958 = vmatpush.bf16.msra.mxu2 %v8641_v23  ;;  %v5967_v16 = vadd.f32 %v12121_v19, %v5953_v21  ;;  %v8761_v23 = vor.u32 %v9460_v29, %v8758_v3  ;;  %v8709_v19 = vor.u32 %v9450_v31, %v8708_v6  ;;  %v8956_v21 = vld [vmem:[#allocation18 + $0x390] sm:$0xf]  ;;  %v8926_v3 = vld [vmem:[#allocation18 + $0x370] sm:$0xf0]  ;;  %v9410_v31 = vld [vmem:[#allocation18 + $0x74] sm:$0xf0] }
 0x523   : > { %v8649_v63 = vor.u32 %v9430_v52, %v8646_v17  ;;  %v8957_v4 = vor.u32 %v9513_v8, %v8956_v21  ;;  %v8613_v29 = vor.u32 %v9426_v0, %v8612_v15  ;;  %v8833_v52 = vor.u32 %v9477_v2, %v8830_v36  ;;  %v8796_v17 = vld [vmem:[#allocation18 + $0x250] sm:$0xf]  ;;  %v8996_v8 = vld [vmem:[#allocation18 + $0x3d8] sm:$0xf]  ;;  %v8998_v0 = vld [vmem:[#allocation18 + $0x3f8] sm:$0xf0] }
 0x524   : > { %6920 = vmatpush.bf16.msrb.mxu3 %v8761_v23  ;;  %v9414_v23 = vld [vmem:[#allocation18 + $0x9c] sm:$0xf]  ;;  %v9465_v21 = vld [vmem:[#allocation18 + $0x22c] sm:$0xf0]  ;;  %v9530_v36 = vld [vmem:[#allocation21 + $0x38] sm:$0xff] }
 0x525   : > { %6879 = vmatmul.bf16.vlgmr.msrb.gmra.mxu0 %v12114_v32  ;;  %6907 = vmatmul.bf16.vlgmr.msrb.gmra.mxu2 %v12114_v32 }
 0x526   : > { %6931 = vmatpush.bf16.msra.mxu0 %v8605_v43  ;;  %6959 = vmatpush.bf16.msra.mxu2 %v8609_v45  ;;  %v8710_v43 = vld [vmem:[#allocation18 + $0x1b8] sm:$0xf0] }
 0x527   : > { %v8713_v49 = vor.u32 %v9446_v37, %v8710_v43  ;;  %v9406_v37 = vld [vmem:[#allocation18 + $0x5c] sm:$0xf] }
 0x528   : > { %v8550_v43 = vld [vmem:[#allocation18 + $0x78] sm:$0xf0] }
 0x529   : > { %v5980_v9 = vpop.f32.mrf.mxu0  ;;  %v8553_v11 = vor.u32 %v9406_v37, %v8550_v43  ;;  %v8870_v37 = vld [vmem:[#allocation18 + $0x2f8] sm:$0xf0] }
 0x52a   : > { %6932 = vmatpush.bf16.msra.mxu0 %v8573_v41  ;;  %6960 = vmatpush.bf16.msra.mxu2 %v8577_v60  ;;  %v5994_v1 = vpop.f32.mrf.mxu1  ;;  %v5981_v48 = vadd.f32 %v5980_v9, %v5967_v16  ;;  %v8681_v41 = vor.u32 %v9438_v50, %v8678_v27  ;;  %v9418_v16 = vld [vmem:[#allocation18 + $0xb4] sm:$0xf0]  ;;  %v9489_v50 = vld [vmem:[#allocation18 + $0x2ec] sm:$0xf0]  ;;  %v9485_v27 = vld [vmem:[#allocation18 + $0x2d4] sm:$0xf] }
 0x52c   : > { %v5995_v54 = vadd.f32 %v5994_v1, %v5981_v48  ;;  %v8580_v1 = vld [vmem:[#allocation18 + $0x98] sm:$0xf]  ;;  %v9497_v48 = vld [vmem:[#allocation18 + $0x32c] sm:$0xf0] }
 0x52e   : > { %6933 = vmatpush.bf16.msra.mxu0 %v8541_v18  ;;  %6961 = vmatpush.bf16.msra.mxu2 %v8545_v33  ;;  %v9509_v18 = vld [vmem:[#allocation18 + $0x394] sm:$0xf] }
 0x52f   : > { %v8958_v33 = vld [vmem:[#allocation18 + $0x3b0] sm:$0xf0] }
 0x530   : > { %v8961_v10 = vor.u32 %v9509_v18, %v8958_v33  ;;  %v9522_v18 = vld [vmem:[#allocation18 + $0x3f4] sm:$0xf0]  ;;  %v9518_v33 = vld [vmem:[#allocation18 + $0x3dc] sm:$0xf] }
 0x531   : > { %v6022_v22 = vpop.f32.mrf.mxu3  ;;  %v5982_v28 = vpop.f32.mrf.mxu0 }
 0x532   : > { %v6008_v30 = vpop.f32.mrf.mxu2  ;;  %v5983_v45 = vadd.f32 %v5982_v28, %v5969_v12  ;;  %6934 = vmatpush.bf16.msra.mxu0 %v8509_v5  ;;  %6962 = vmatpush.bf16.msra.mxu2 %v8513_v35  ;;  %v5996_v25 = vpop.f32.mrf.mxu1  ;;  %v8582_v5 = vld [vmem:[#allocation18 + $0xb8] sm:$0xf0]  ;;  %v8548_v35 = vld [vmem:[#allocation18 + $0x58] sm:$0xf]  ;;  %v8929_v12 = vor.u32 %v9501_v42, %v8926_v3  ;;  %v8894_v28 = vld [vmem:[#allocation18 + $0x330] sm:$0xf0] }
 0x533   : > { %v6009_v51 = vadd.f32 %v6008_v30, %v5995_v54  ;;  %v8925_v30 = vor.u32 %v9505_v44, %v8924_v46  ;;  %v8585_v6 = vor.u32 %v9414_v23, %v8582_v5  ;;  %v8860_v54 = vld [vmem:[#allocation18 + $0x2d0] sm:$0xf]  ;;  %v8549_v62 = vor.u32 %v9410_v31, %v8548_v35  ;;  %v9510_v46 = vld [vmem:[#allocation18 + $0x39c] sm:$0xf]  ;;  %v8932_v42 = vld [vmem:[#allocation18 + $0x358] sm:$0xf] }
 0x534   : > { %v5997_v26 = vadd.f32 %v5996_v25, %v5983_v45  ;;  %v8516_v45 = vld [vmem:[#allocation18 + $0x18] sm:$0xf]  ;;  %v8862_v25 = vld [vmem:[#allocation18 + $0x2f0] sm:$0xf0]  ;;  %v8934_v23 = vld [vmem:[#allocation18 + $0x378] sm:$0xf0] }
 0x535   : > { %6935 = vmatmul.bf16.vlgmr.msra.gmra.mxu0 %v12114_v32  ;;  %6963 = vmatmul.bf16.vlgmr.msra.gmra.mxu2 %v12114_v32  ;;  %v6023_v7 = vadd.f32 %v6022_v22, %v6009_v51  ;;  %v9493_v22 = vld [vmem:[#allocation18 + $0x314] sm:$0xf]  ;;  %v9402_v51 = vld [vmem:[#allocation18 + $0x34] sm:$0xf0]  ;;  %v8865_v14 = vor.u32 %v9485_v27, %v8862_v25  ;;  %v9486_v31 = vld [vmem:[#allocation18 + $0x2dc] sm:$0xf] }
 0x536   : > { %6983 = vmatpush.bf16.msrb.mxu0 %v8741_v24  ;;  %7011 = vmatpush.bf16.msrb.mxu2 %v8745_v58  ;;  %v8892_v24 = vld [vmem:[#allocation18 + $0x310] sm:$0xf]  ;;  %v8581_v58 = vor.u32 %v9418_v16, %v8580_v1  ;;  %v8997_v1 = vor.u32 %v9522_v18, %v8996_v8  ;;  %v9506_v3 = vld [vmem:[#allocation18 + $0x374] sm:$0xf0]  ;;  %v9502_v16 = vld [vmem:[#allocation18 + $0x35c] sm:$0xf] }
 0x537   : > { %v8933_v5 = vor.u32 %v9506_v3, %v8932_v42  ;;  %v8937_v35 = vor.u32 %v9502_v16, %v8934_v23  ;;  %v8804_v27 = vld [vmem:[#allocation18 + $0x258] sm:$0xf]  ;;  %v9554_v8 = vld [vmem:[#allocation21 + $0xf8] sm:$0xff]  ;;  %v9531_v23 = vld [vmem:[#allocation21 + $0x40] sm:$0xff] }
 0x538   : > { %v9474_v25 = vld [vmem:[#allocation18 + $0x274] sm:$0xf0]  ;;  %v9542_v42 = vld [vmem:[#allocation21 + $0x98] sm:$0xff] }
 0x539   : > { %v6024_v9 = vpop.f32.mrf.mxu3  ;;  %v9562_v3 = vld [vmem:[#allocation21 + $0x138] sm:$0xff] }
 0x53a   : > { %v6010_v55 = vpop.f32.mrf.mxu2  ;;  %6984 = vmatpush.bf16.msrb.mxu0 %v8709_v19  ;;  %7012 = vmatpush.bf16.msrb.mxu2 %v8713_v49  ;;  %v8893_v19 = vor.u32 %v9497_v48, %v8892_v24  ;;  %v8897_v49 = vor.u32 %v9493_v22, %v8894_v28  ;;  %v9494_v24 = vld [vmem:[#allocation18 + $0x31c] sm:$0xf]  ;;  %v8868_v22 = vld [vmem:[#allocation18 + $0x2d8] sm:$0xf] }
 0x53b   : > { %v6011_v60 = vadd.f32 %v6010_v55, %v5997_v26  ;;  %v9398_v26 = vld [vmem:[#allocation18 + $0x1c] sm:$0xf]  ;;  %v8861_v55 = vor.u32 %v9489_v50, %v8860_v54  ;;  %v9490_v28 = vld [vmem:[#allocation18 + $0x2f4] sm:$0xf0] }
 0x53c   : > { %v8869_v43 = vor.u32 %v9490_v28, %v8868_v22  ;;  %v9478_v54 = vld [vmem:[#allocation18 + $0x29c] sm:$0xf] }
 0x53d   : > { %v6025_v56 = vadd.f32 %v6024_v9, %v6011_v60  ;;  %v8828_v60 = vld [vmem:[#allocation18 + $0x290] sm:$0xf] }
 0x53e   : > { %6985 = vmatpush.bf16.msrb.mxu0 %v8677_v20  ;;  %7013 = vmatpush.bf16.msrb.mxu2 %v8681_v41  ;;  %v8517_v20 = vor.u32 %v9402_v51, %v8516_v45  ;;  %v8521_v41 = vor.u32 %v9398_v26, %v8518_v40  ;;  %v8829_v34 = vor.u32 %v9481_v59, %v8828_v60  ;;  %v9473_v9 = vld [vmem:[#allocation18 + $0x26c] sm:$0xf0]  ;;  %v9470_v51 = vld [vmem:[#allocation18 + $0x25c] sm:$0xf] }
 0x53f   : > { %v12129_v38 = vpack.c.bf16 %v6025_v56, %v6023_v7  ;;  %v9469_v7 = vld [vmem:[#allocation18 + $0x254] sm:$0xf]  ;;  %v8797_v15 = vor.u32 %v9473_v9, %v8796_v17  ;;  %v8873_v45 = vor.u32 %v9486_v31, %v8870_v37  ;;  %v8806_v26 = vld [vmem:[#allocation18 + $0x278] sm:$0xf0]  ;;  %v8805_v40 = vor.u32 %v9474_v25, %v8804_v27  ;;  %v9539_v27 = vld [vmem:[#allocation21 + $0x80] sm:$0xff] }
 0x540   : > { %v8798_v56 = vld [vmem:[#allocation18 + $0x270] sm:$0xf0]  ;;  %v8774_v60 = vld [vmem:[#allocation18 + $0x238] sm:$0xf0]  ;;  %v9559_v25 = vld [vmem:[#allocation21 + $0x120] sm:$0xff] }
 0x541   : > { %6837 = vmatmul.bf16.vlgmr.msra.gmra.mxu1 %v12129_v38  ;;  %6865 = vmatmul.bf16.vlgmr.msra.gmra.mxu3 %v12129_v38  ;;  %v9528_v17 = vld [vmem:[#allocation21 + $0x28] sm:$0xff]  ;;  %v9537_v9 = vld [vmem:[#allocation21 + $0x70] sm:$0xff] }
 0x542   : > { %6941 = vmatpush.bf16.msra.mxu1 %v8989_v13  ;;  %6969 = vmatpush.bf16.msra.mxu3 %v8993_v61  ;;  %v8801_v13 = vor.u32 %v9469_v7, %v8798_v56  ;;  %v8764_v61 = vld [vmem:[#allocation18 + $0x210] sm:$0xf]  ;;  %v9546_v7 = vld [vmem:[#allocation21 + $0xb8] sm:$0xff]  ;;  %v9527_v56 = vld [vmem:[#allocation21 + $0x20] sm:$0xff] }
 0x543   : > { %6986 = vmatpush.bf16.msrb.mxu0 %v8645_v47  ;;  %7014 = vmatpush.bf16.msrb.mxu2 %v8649_v63  ;;  %v9461_v47 = vld [vmem:[#allocation18 + $0x214] sm:$0xf]  ;;  %v8765_v39 = vor.u32 %v9465_v21, %v8764_v61  ;;  %v9525_v21 = vld [vmem:[#allocation21 + $0x10] sm:$0xff] }
 0x544   : > { %v8766_v63 = vld [vmem:[#allocation18 + $0x230] sm:$0xf0] }
 0x545   : > { %v8769_v57 = vor.u32 %v9461_v47, %v8766_v63  ;;  %v9545_v47 = vld [vmem:[#allocation21 + $0xb0] sm:$0xff]  ;;  %v9534_v63 = vld [vmem:[#allocation21 + $0x58] sm:$0xff]  ;;  %v9540_v37 = vld [vmem:[#allocation21 + $0x88] sm:$0xff] }
 0x546   : > { %6942 = vmatpush.bf16.msra.mxu1 %v8957_v4  ;;  %6970 = vmatpush.bf16.msra.mxu3 %v8961_v10  ;;  %v9001_v4 = vor.u32 %v9518_v33, %v8998_v0  ;;  %v8964_v10 = vld [vmem:[#allocation18 + $0x398] sm:$0xf]  ;;  %v9524_v33 = vld [vmem:[#allocation21 + $0x8] sm:$0xff] }
 0x547   : > { %6987 = vmatpush.bf16.msrb.mxu0 %v8613_v29  ;;  %7015 = vmatpush.bf16.msrb.mxu2 %v8617_v53  ;;  %v8966_v29 = vld [vmem:[#allocation18 + $0x3b8] sm:$0xf0]  ;;  %v9544_v0 = vld [vmem:[#allocation21 + $0xa8] sm:$0xff] }
 0x548   : > { %v8969_v44 = vor.u32 %v9510_v46, %v8966_v29  ;;  %v9532_v46 = vld [vmem:[#allocation21 + $0x48] sm:$0xff] }
 0x549   : > { %v9552_v29 = vld [vmem:[#allocation21 + $0xe8] sm:$0xff] }
 0x54a   : > { %6943 = vmatpush.bf16.msra.mxu1 %v8925_v30  ;;  %6971 = vmatpush.bf16.msra.mxu3 %v8929_v12  ;;  %v8900_v30 = vld [vmem:[#allocation18 + $0x318] sm:$0xf] }
 0x54b   : > { %6988 = vmatpush.bf16.msrb.mxu0 %v8581_v58  ;;  %7016 = vmatpush.bf16.msrb.mxu2 %v8585_v6  ;;  %v9498_v12 = vld [vmem:[#allocation18 + $0x334] sm:$0xf0]  ;;  %v8902_v58 = vld [vmem:[#allocation18 + $0x338] sm:$0xf0] }
 0x54c   : > { %v8901_v6 = vor.u32 %v9498_v12, %v8900_v30  ;;  %v8905_v48 = vor.u32 %v9494_v24, %v8902_v58  ;;  %v9561_v30 = vld [vmem:[#allocation21 + $0x130] sm:$0xff]  ;;  %v9550_v24 = vld [vmem:[#allocation21 + $0xd8] sm:$0xff] }
 0x54d   : > { %v9570_v58 = vld [vmem:[#allocation21 + $0x178] sm:$0xff] }
 0x54e   : > { %6944 = vmatpush.bf16.msra.mxu1 %v8893_v19  ;;  %6972 = vmatpush.bf16.msra.mxu3 %v8897_v49  ;;  %v8836_v19 = vld [vmem:[#allocation18 + $0x298] sm:$0xf] }
 0x54f   : > { %6989 = vmatpush.bf16.msrb.mxu0 %v8549_v62  ;;  %7017 = vmatpush.bf16.msrb.mxu2 %v8553_v11  ;;  %v9482_v49 = vld [vmem:[#allocation18 + $0x2b4] sm:$0xf0]  ;;  %v8838_v62 = vld [vmem:[#allocation18 + $0x2b8] sm:$0xf0] }
 0x550   : > { %v8837_v11 = vor.u32 %v9482_v49, %v8836_v19  ;;  %v8841_v50 = vor.u32 %v9478_v54, %v8838_v62  ;;  %v9569_v19 = vld [vmem:[#allocation21 + $0x170] sm:$0xff] }
 0x551   : > { %6893 = vmatmul.bf16.vlgmr.msrb.gmra.mxu1 %v12129_v38  ;;  %6921 = vmatmul.bf16.vlgmr.msrb.gmra.mxu3 %v12129_v38  ;;  %v9549_v54 = vld [vmem:[#allocation21 + $0xd0] sm:$0xff] }
 0x552   : > { %6945 = vmatpush.bf16.msra.mxu1 %v8861_v55  ;;  %6973 = vmatpush.bf16.msra.mxu3 %v8865_v14  ;;  %v8809_v55 = vor.u32 %v9470_v51, %v8806_v26  ;;  %v8772_v14 = vld [vmem:[#allocation18 + $0x218] sm:$0xf]  ;;  %v9568_v51 = vld [vmem:[#allocation21 + $0x168] sm:$0xff] }
 0x553   : > { %6990 = vmatpush.bf16.msrb.mxu0 %v8517_v20  ;;  %7018 = vmatpush.bf16.msrb.mxu2 %v8521_v41  ;;  %v9466_v20 = vld [vmem:[#allocation18 + $0x234] sm:$0xf0]  ;;  %v9462_v41 = vld [vmem:[#allocation18 + $0x21c] sm:$0xf] }
 0x554   : > { %v8773_v59 = vor.u32 %v9466_v20, %v8772_v14  ;;  %v8777_v2 = vor.u32 %v9462_v41, %v8774_v60  ;;  %v9548_v20 = vld [vmem:[#allocation21 + $0xc8] sm:$0xff] }
 0x556   : > { %6991 = vmatmul.bf16.vlgmr.msrb.gmra.mxu0 %v12114_v32  ;;  %7019 = vmatmul.bf16.vlgmr.msrb.gmra.mxu2 %v12114_v32  ;;  %v9514_v32 = vld [vmem:[#allocation18 + $0x3b4] sm:$0xf0] }
 0x557   : > { %6946 = vmatpush.bf16.msra.mxu1 %v8829_v34  ;;  %6974 = vmatpush.bf16.msra.mxu3 %v8833_v52  ;;  %v8965_v53 = vor.u32 %v9514_v32, %v8964_v10  ;;  %v9529_v34 = vld [vmem:[#allocation21 + $0x30] sm:$0xff]  ;;  %v9538_v52 = vld [vmem:[#allocation21 + $0x78] sm:$0xff]  ;;  %v9543_v10 = vld [vmem:[#allocation21 + $0xa0] sm:$0xff] }
 0x558   : > { %7283 = vmatpush.bf16.msra.mxu0 %v9530_v36  ;;  %7412 = vmatpush.bf16.msra.mxu2 %v9546_v7  ;;  %v12141_v32 = vld [vmem:[#allocation20] sm:$0xff] }
 0x559   : > { %v9558_v36 = vld [vmem:[#allocation21 + $0x118] sm:$0xff] }
 0x55b   : > { %6947 = vmatpush.bf16.msra.mxu1 %v8797_v15  ;;  %6975 = vmatpush.bf16.msra.mxu3 %v8801_v13  ;;  %v9536_v15 = vld [vmem:[#allocation21 + $0x68] sm:$0xff]  ;;  %v9526_v13 = vld [vmem:[#allocation21 + $0x18] sm:$0xff] }
 0x55c   : > { %7284 = vmatpush.bf16.msra.mxu0 %v9529_v34  ;;  %7413 = vmatpush.bf16.msra.mxu2 %v9545_v47  ;;  %v9567_v34 = vld [vmem:[#allocation21 + $0x160] sm:$0xff]  ;;  %v9586_v47 = vld [vmem:[#allocation21 + $0x1f8] sm:$0xff] }
 0x55f   : > { %6948 = vmatpush.bf16.msra.mxu1 %v8765_v39  ;;  %6976 = vmatpush.bf16.msra.mxu3 %v8769_v57  ;;  %v9533_v39 = vld [vmem:[#allocation21 + $0x50] sm:$0xff] }
 0x560   : > { %7285 = vmatpush.bf16.msra.mxu0 %v9528_v17  ;;  %7414 = vmatpush.bf16.msra.mxu2 %v9544_v0  ;;  %v9553_v57 = vld [vmem:[#allocation21 + $0xf0] sm:$0xff] }
 0x562   : > { %6949 = vmatmul.bf16.vlgmr.msra.gmra.mxu1 %v12129_v38  ;;  %6977 = vmatmul.bf16.vlgmr.msra.gmra.mxu3 %v12129_v38 }
 0x563   : > { %6997 = vmatpush.bf16.msrb.mxu1 %v8997_v1  ;;  %7025 = vmatpush.bf16.msrb.mxu3 %v9001_v4  ;;  %v9523_v4 = vld [vmem:[#allocation21] sm:$0xff] }
 0x564   : > { %7286 = vmatpush.bf16.msra.mxu0 %v9527_v56  ;;  %7415 = vmatpush.bf16.msra.mxu2 %v9543_v10  ;;  %v9547_v56 = vld [vmem:[#allocation21 + $0xc0] sm:$0xff]  ;;  %v9565_v10 = vld [vmem:[#allocation21 + $0x150] sm:$0xff] }
 0x567   : > { %6998 = vmatpush.bf16.msrb.mxu1 %v8965_v53  ;;  %7026 = vmatpush.bf16.msrb.mxu3 %v8969_v44  ;;  %v6159_v44 = vperm.slane %v12141_v32, 0 }
 0x568   : > { %7287 = vmatpush.bf16.msra.mxu0 %v9526_v13  ;;  %7416 = vmatpush.bf16.msra.mxu2 %v9542_v42  ;;  %v9557_v13 = vld [vmem:[#allocation21 + $0x110] sm:$0xff] }
 0x56b   : > { %6999 = vmatpush.bf16.msrb.mxu1 %v8933_v5  ;;  %7027 = vmatpush.bf16.msrb.mxu3 %v8937_v35  ;;  %v9551_v5 = vld [vmem:[#allocation21 + $0xe0] sm:$0xff]  ;;  %v9541_v35 = vld [vmem:[#allocation21 + $0x90] sm:$0xff] }
 0x56c   : > { %7288 = vmatpush.bf16.msra.mxu0 %v9525_v21  ;;  %7417 = vmatpush.bf16.msra.mxu2 %v9541_v35 }
 0x56f   : > { %7000 = vmatpush.bf16.msrb.mxu1 %v8901_v6  ;;  %7028 = vmatpush.bf16.msrb.mxu3 %v8905_v48  ;;  %v6160_v48 = vperm.slane %v12141_v32, 1 }
 0x570   : > { %7289 = vmatpush.bf16.msra.mxu0 %v9524_v33  ;;  %7418 = vmatpush.bf16.msra.mxu2 %v9540_v37  ;;  %v9574_v37 = vld [vmem:[#allocation21 + $0x198] sm:$0xff] }
 0x573   : > { %7001 = vmatpush.bf16.msrb.mxu1 %v8869_v43  ;;  %7029 = vmatpush.bf16.msrb.mxu3 %v8873_v45  ;;  %v9560_v43 = vld [vmem:[#allocation21 + $0x128] sm:$0xff] }
 0x574   : > { %7290 = vmatpush.bf16.msra.mxu0 %v9523_v4  ;;  %7419 = vmatpush.bf16.msra.mxu2 %v9539_v27  ;;  %v9556_v4 = vld [vmem:[#allocation21 + $0x108] sm:$0xff]  ;;  %v6164_v27 = vperm.slane %v12141_v32, 5 }
 0x577   : > { %7002 = vmatpush.bf16.msrb.mxu1 %v8837_v11  ;;  %7030 = vmatpush.bf16.msrb.mxu3 %v8841_v50 }
 0x578   : > { %7541 = vmatpush.bf16.msrb.mxu0 %v9562_v3 }
 0x57b   : > { %7003 = vmatpush.bf16.msrb.mxu1 %v8805_v40  ;;  %7031 = vmatpush.bf16.msrb.mxu3 %v8809_v55 }
 0x57c   : > { %7542 = vmatpush.bf16.msrb.mxu0 %v9561_v30 }
 0x57f   : > { %7004 = vmatpush.bf16.msrb.mxu1 %v8773_v59  ;;  %7032 = vmatpush.bf16.msrb.mxu3 %v8777_v2  ;;  %v9578_v59 = vld [vmem:[#allocation21 + $0x1b8] sm:$0xff] }
 0x580   : > { %7543 = vmatpush.bf16.msrb.mxu0 %v9560_v43  ;;  %7670 = vmatpush.bf16.msrb.mxu2 %v9578_v59  ;;  %v9583_v43 = vld [vmem:[#allocation21 + $0x1e0] sm:$0xff] }
 0x582   : > { %7005 = vmatmul.bf16.vlgmr.msrb.gmra.mxu1 %v12129_v38  ;;  %7033 = vmatmul.bf16.vlgmr.msrb.gmra.mxu3 %v12129_v38  ;;  %v9535_v38 = vld [vmem:[#allocation21 + $0x60] sm:$0xff] }
 0x583   : > { %7297 = vmatpush.bf16.msra.mxu1 %v9538_v52  ;;  %7426 = vmatpush.bf16.msra.mxu3 %v9554_v8  ;;  %v6161_v52 = vperm.slane %v12141_v32, 2  ;;  %v9576_v8 = vld [vmem:[#allocation21 + $0x1a8] sm:$0xff] }
 0x584   : > { %7544 = vmatpush.bf16.msrb.mxu0 %v9559_v25 }
 0x587   : > { %7298 = vmatpush.bf16.msra.mxu1 %v9537_v9  ;;  %7427 = vmatpush.bf16.msra.mxu3 %v9553_v57  ;;  %v9585_v57 = vld [vmem:[#allocation21 + $0x1f0] sm:$0xff] }
 0x588   : > { %7545 = vmatpush.bf16.msrb.mxu0 %v9558_v36 }
 0x58b   : > { %7299 = vmatpush.bf16.msra.mxu1 %v9536_v15  ;;  %7428 = vmatpush.bf16.msra.mxu3 %v9552_v29  ;;  %v9575_v29 = vld [vmem:[#allocation21 + $0x1a0] sm:$0xff] }
 0x58c   : > { %7546 = vmatpush.bf16.msrb.mxu0 %v9557_v13  ;;  %v9579_v13 = vld [vmem:[#allocation21 + $0x1c0] sm:$0xff] }
 0x58f   : > { %7300 = vmatpush.bf16.msra.mxu1 %v9535_v38  ;;  %7429 = vmatpush.bf16.msra.mxu3 %v9551_v5  ;;  %v9577_v38 = vld [vmem:[#allocation21 + $0x1b0] sm:$0xff]  ;;  %v9564_v5 = vld [vmem:[#allocation21 + $0x148] sm:$0xff] }
 0x590   : > { %7671 = vmatpush.bf16.msrb.mxu2 %v9577_v38  ;;  %7547 = vmatpush.bf16.msrb.mxu0 %v9556_v4 }
 0x592   : > { %v6824_v61 = vpop.f32.mrf.mxu0 }
 0x593   : > { %7301 = vmatpush.bf16.msra.mxu1 %v9534_v63  ;;  %v6825_v12 = vadd.f32 %v6824_v61, %v6159_v44  ;;  %7430 = vmatpush.bf16.msra.mxu3 %v9550_v24  ;;  %v9566_v61 = vld [vmem:[#allocation21 + $0x158] sm:$0xff] }
 0x594   : > { %7672 = vmatpush.bf16.msrb.mxu2 %v9576_v8 }
 0x597   : > { %7302 = vmatpush.bf16.msra.mxu1 %v9533_v39  ;;  %7431 = vmatpush.bf16.msra.mxu3 %v9549_v54 }
 0x598   : > { %v6852_v18 = vpop.f32.mrf.mxu2  ;;  %7673 = vmatpush.bf16.msrb.mxu2 %v9575_v29 }
 0x599   : > { %v6853_v62 = vadd.f32 %v6852_v18, %v6160_v48  ;;  %v6162_v18 = vperm.slane %v12141_v32, 3 }
 0x59a   : > { %v6826_v1 = vpop.f32.mrf.mxu0 }
 0x59b   : > { %7303 = vmatpush.bf16.msra.mxu1 %v9532_v46  ;;  %v6827_v22 = vadd.f32 %v6826_v1, %v6159_v44  ;;  %7432 = vmatpush.bf16.msra.mxu3 %v9548_v20  ;;  %v9581_v20 = vld [vmem:[#allocation21 + $0x1d0] sm:$0xff] }
 0x59c   : > { %7674 = vmatpush.bf16.msrb.mxu2 %v9574_v37 }
 0x59f   : > { %7304 = vmatpush.bf16.msra.mxu1 %v9531_v23  ;;  %7433 = vmatpush.bf16.msra.mxu3 %v9547_v56  ;;  %v9555_v23 = vld [vmem:[#allocation21 + $0x100] sm:$0xff] }
 0x5a0   : > { %v6854_v16 = vpop.f32.mrf.mxu2  ;;  %7548 = vmatpush.bf16.msrb.mxu0 %v9555_v23 }
 0x5a1   : > { %v6855_v26 = vadd.f32 %v6854_v16, %v6160_v48  ;;  %v9584_v16 = vld [vmem:[#allocation21 + $0x1e8] sm:$0xff] }
 0x5a2   : > { %v6880_v28 = vpop.f32.mrf.mxu0 }
 0x5a3   : > { %7555 = vmatpush.bf16.msrb.mxu1 %v9570_v58  ;;  %v6881_v21 = vadd.f32 %v6880_v28, %v6161_v52  ;;  %7684 = vmatpush.bf16.msrb.mxu3 %v9586_v47 }
 0x5a7   : > { %7556 = vmatpush.bf16.msrb.mxu1 %v9569_v19  ;;  %7685 = vmatpush.bf16.msrb.mxu3 %v9585_v57 }
 0x5a8   : > { %v6908_v40 = vpop.f32.mrf.mxu2 }
 0x5aa   : > { %v6882_v17 = vpop.f32.mrf.mxu0 }
 0x5ab   : > { %7557 = vmatpush.bf16.msrb.mxu1 %v9568_v51  ;;  %v6883_v33 = vadd.f32 %v6882_v17, %v6161_v52  ;;  %7686 = vmatpush.bf16.msrb.mxu3 %v9584_v16 }
 0x5af   : > { %7558 = vmatpush.bf16.msrb.mxu1 %v9567_v34  ;;  %7687 = vmatpush.bf16.msrb.mxu3 %v9583_v43 }
 0x5b0   : > { %v6910_v0 = vpop.f32.mrf.mxu2 }
 0x5b1   : > { %v6911_v35 = vadd.f32 %v6910_v0, %v6162_v18  ;;  %v6166_v0 = vperm.slane %v12141_v32, 7 }
 0x5b2   : > { %v6936_v44 = vpop.f32.mrf.mxu0 }
 0x5b3   : > { %7559 = vmatpush.bf16.msrb.mxu1 %v9566_v61 }
 0x5b7   : > { %7560 = vmatpush.bf16.msrb.mxu1 %v9565_v10 }
 0x5b8   : > { %v6964_v48 = vpop.f32.mrf.mxu2 }
 0x5ba   : > { %v6938_v54 = vpop.f32.mrf.mxu0 }
 0x5bb   : > { %7561 = vmatpush.bf16.msrb.mxu1 %v9564_v5 }
 0x5be   : > { %v6838_v53 = vpop.f32.mrf.mxu1 }
 0x5bf   : > { %v6839_v31 = vadd.f32 %v6838_v53, %v6825_v12  ;;  %v6909_v53 = vadd.f32 %v6908_v40, %v6162_v18 }
 0x5c1   : > { %v7039_v11 = vmax.f32 %v6839_v31, 0.0 }
 0x5c4   : > { %v6866_v6 = vpop.f32.mrf.mxu3 }
 0x5c5   : > { %v6867_v55 = vadd.f32 %v6866_v6, %v6853_v62  ;;  %v9563_v6 = vld [vmem:[#allocation21 + $0x140] sm:$0xff] }
 0x5c6   : > { %v6840_v45 = vpop.f32.mrf.mxu1  ;;  %7562 = vmatpush.bf16.msrb.mxu1 %v9563_v6 }
 0x5c7   : > { %v6841_v49 = vadd.f32 %v6840_v45, %v6827_v22  ;;  %v7040_v9 = vmax.f32 %v6867_v55, 0.0  ;;  %v6163_v45 = vperm.slane %v12141_v32, 4  ;;  %v6966_v55 = vpop.f32.mrf.mxu2 }
 0x5c8   : > { %v6967_v36 = vadd.f32 %v6966_v55, %v6164_v27 }
 0x5c9   : > { %v7047_v50 = vmax.f32 %v6841_v49, 0.0  ;;  %v9573_v49 = vld [vmem:[#allocation21 + $0x190] sm:$0xff]  ;;  %v6937_v62 = vadd.f32 %v6936_v44, %v6163_v45  ;;  %v6939_v25 = vadd.f32 %v6938_v54, %v6163_v45 }
 0x5ca   : > { %7675 = vmatpush.bf16.msrb.mxu2 %v9573_v49 }
 0x5cb   : > { %v7184_v14 = vpack.c.bf16 %v7047_v50, %v7039_v11  ;;  %v9582_v50 = vld [vmem:[#allocation21 + $0x1d8] sm:$0xff] }
 0x5cc   : > { %v6868_v41 = vpop.f32.mrf.mxu3  ;;  %7688 = vmatpush.bf16.msrb.mxu3 %v9582_v50 }
 0x5cd   : > { %v6869_v60 = vadd.f32 %v6868_v41, %v6855_v26  ;;  %7291 = vmatmul.bf16.vlgmr.msra.gmra.mxu0 %v7184_v14  ;;  %v9572_v14 = vld [vmem:[#allocation21 + $0x188] sm:$0xff]  ;;  %v6965_v41 = vadd.f32 %v6964_v48, %v6164_v27 }
 0x5ce   : > { %v6894_v2 = vpop.f32.mrf.mxu1  ;;  %7676 = vmatpush.bf16.msrb.mxu2 %v9572_v14 }
 0x5cf   : > { %v7048_v7 = vmax.f32 %v6869_v60, 0.0  ;;  %v6895_v39 = vadd.f32 %v6894_v2, %v6881_v21  ;;  %v9571_v2 = vld [vmem:[#allocation21 + $0x180] sm:$0xff] }
 0x5d0   : > { %7689 = vmatpush.bf16.msrb.mxu3 %v9581_v20 }
 0x5d1   : > { %v7185_v15 = vpack.c.bf16 %v7048_v7, %v7040_v9  ;;  %v7041_v42 = vmax.f32 %v6895_v39, 0.0  ;;  %v9580_v7 = vld [vmem:[#allocation21 + $0x1c8] sm:$0xff] }
 0x5d2   : > { %7677 = vmatpush.bf16.msrb.mxu2 %v9571_v2 }
 0x5d3   : > { %7305 = vmatmul.bf16.vlgmr.msra.gmra.mxu1 %v7185_v15  ;;  %v6992_v38 = vpop.f32.mrf.mxu0 }
 0x5d4   : > { %v6922_v63 = vpop.f32.mrf.mxu3  ;;  %7690 = vmatpush.bf16.msrb.mxu3 %v9580_v7 }
 0x5d5   : > { %v6923_v30 = vadd.f32 %v6922_v63, %v6909_v53  ;;  %v6165_v63 = vperm.slane %v12141_v32, 6 }
 0x5d6   : > { %v6896_v1 = vpop.f32.mrf.mxu1 }
 0x5d7   : > { %v6897_v46 = vadd.f32 %v6896_v1, %v6883_v33  ;;  %v7042_v22 = vmax.f32 %v6923_v30, 0.0  ;;  %v6993_v18 = vadd.f32 %v6992_v38, %v6165_v63 }
 0x5d8   : > { %7691 = vmatpush.bf16.msrb.mxu3 %v9579_v13 }
 0x5d9   : > { %v7049_v3 = vmax.f32 %v6897_v46, 0.0  ;;  %v7020_v21 = vpop.f32.mrf.mxu2 }
 0x5da   : > { %v7021_v46 = vadd.f32 %v7020_v21, %v6166_v0 }
 0x5db   : > { %v7313_v12 = vpack.c.bf16 %v7049_v3, %v7041_v42  ;;  %v6994_v8 = vpop.f32.mrf.mxu0 }
 0x5dc   : > { %v6924_v24 = vpop.f32.mrf.mxu3  ;;  %v6995_v39 = vadd.f32 %v6994_v8, %v6165_v63 }
 0x5dd   : > { %v6925_v58 = vadd.f32 %v6924_v24, %v6911_v35  ;;  %7420 = vmatmul.bf16.vlgmr.msra.gmra.mxu2 %v7313_v12  ;;  %v7183_v12 = vld [vmem:[#allocation23] sm:$0xf] }
 0x5de   : > { %v7186_v24 = vperm.slane %v7183_v12, 0  ;;  %v7315_v45 = vperm.slane %v7183_v12, 1  ;;  %v7444_v50 = vperm.slane %v7183_v12, 2  ;;  %v7573_v2 = vperm.slane %v7183_v12, 3 }
 0x5df   : > { %v7050_v28 = vmax.f32 %v6925_v58, 0.0  ;;  %v6950_v31 = vpop.f32.mrf.mxu1 }
 0x5e0   : > { %v6951_v51 = vadd.f32 %v6950_v31, %v6937_v62 }
 0x5e1   : > { %v7314_v19 = vpack.c.bf16 %v7050_v28, %v7042_v22  ;;  %v7022_v10 = vpop.f32.mrf.mxu2 }
 0x5e2   : > { %v7043_v60 = vmax.f32 %v6951_v51, 0.0  ;;  %v7023_v44 = vadd.f32 %v7022_v10, %v6166_v0 }
 0x5e3   : > { %7434 = vmatmul.bf16.vlgmr.msra.gmra.mxu3 %v7314_v19 }
 0x5e5   : > { %v6978_v11 = vpop.f32.mrf.mxu3 }
 0x5e6   : > { %v6979_v34 = vadd.f32 %v6978_v11, %v6965_v41 }
 0x5e7   : > { %v6952_v26 = vpop.f32.mrf.mxu1 }
 0x5e8   : > { %v6953_v40 = vadd.f32 %v6952_v26, %v6939_v25  ;;  %v7044_v56 = vmax.f32 %v6979_v34, 0.0 }
 0x5ea   : > { %v7051_v59 = vmax.f32 %v6953_v40, 0.0 }
 0x5ec   : > { %v7442_v52 = vpack.c.bf16 %v7051_v59, %v7043_v60 }
 0x5ed   : > { %v6980_v17 = vpop.f32.mrf.mxu3 }
 0x5ee   : > { %v6981_v9 = vadd.f32 %v6980_v17, %v6967_v36  ;;  %7549 = vmatmul.bf16.vlgmr.msrb.gmra.mxu0 %v7442_v52 }
 0x5f0   : > { %v7052_v15 = vmax.f32 %v6981_v9, 0.0 }
 0x5f2   : > { %v7443_v61 = vpack.c.bf16 %v7052_v15, %v7044_v56 }
 0x5f4   : > { %7563 = vmatmul.bf16.vlgmr.msrb.gmra.mxu1 %v7443_v61 }
 0x5ff   : > { %v7006_v47 = vpop.f32.mrf.mxu1 }
 0x600   : > { %v7007_v57 = vadd.f32 %v7006_v47, %v6993_v18 }
 0x602   : > { %v7045_v29 = vmax.f32 %v7007_v57, 0.0 }
 0x605   : > { %v7034_v33 = vpop.f32.mrf.mxu3 }
 0x606   : > { %v7035_v42 = vadd.f32 %v7034_v33, %v7021_v46 }
 0x607   : > { %v7008_v1 = vpop.f32.mrf.mxu1 }
 0x608   : > { %v7009_v4 = vadd.f32 %v7008_v1, %v6995_v39  ;;  %v7046_v5 = vmax.f32 %v7035_v42, 0.0 }
 0x60a   : > { %v7053_v53 = vmax.f32 %v7009_v4, 0.0 }
 0x60c   : > { %v7571_v3 = vpack.c.bf16 %v7053_v53, %v7045_v29 }
 0x60d   : > { %v7036_v16 = vpop.f32.mrf.mxu3 }
 0x60e   : > { %v7037_v23 = vadd.f32 %v7036_v16, %v7023_v44  ;;  %7678 = vmatmul.bf16.vlgmr.msrb.gmra.mxu2 %v7571_v3 }
 0x610   : > { %v7054_v35 = vmax.f32 %v7037_v23, 0.0 }
 0x612   : > { %v7572_v30 = vpack.c.bf16 %v7054_v35, %v7046_v5 }
 0x614   : > { %7692 = vmatmul.bf16.vlgmr.msrb.gmra.mxu3 %v7572_v30 }
 0x64a   : > { %v7292_v32 = vpop.f32.mrf.mxu0 }
 0x64b   : > { %v7293_v58 = vadd.f32 %v7292_v32, %v7186_v24 }
 0x650   : > { %v7306_v6 = vpop.f32.mrf.mxu1 }
 0x651   : > { %v7307_v48 = vadd.f32 %v7306_v6, %v7293_v58 }
 0x652   : > { %v7294_v22 = vpop.f32.mrf.mxu0 }
 0x653   : > { %7311 = vst [vmem:[#allocation24] sm:$0xff] %v7307_v48  ;;  %v7295_v28 = vadd.f32 %v7294_v22, %v7186_v24 }
 0x658   : > { %v7308_v31 = vpop.f32.mrf.mxu1 }
 0x659   : > { %v7309_v37 = vadd.f32 %v7308_v31, %v7295_v28 }
 0x65b   : > { %7312 = vst [vmem:[#allocation24 + $0x20] sm:$0xff] %v7309_v37 }
 0x660   : > { %v7421_v43 = vpop.f32.mrf.mxu2 }
 0x661   : > { %v7422_v19 = vadd.f32 %v7421_v43, %v7315_v45 }
 0x666   : > { %v7435_v49 = vpop.f32.mrf.mxu3 }
 0x667   : > { %v7436_v54 = vadd.f32 %v7435_v49, %v7422_v19 }
 0x668   : > { %v7423_v62 = vpop.f32.mrf.mxu2 }
 0x669   : > { %7440 = vst [vmem:[#allocation24 + $0x8] sm:$0xff] %v7436_v54  ;;  %v7424_v27 = vadd.f32 %v7423_v62, %v7315_v45 }
 0x66b   : > { %v7550_v11 = vpop.f32.mrf.mxu0 }
 0x66c   : > { %v7551_v26 = vadd.f32 %v7550_v11, %v7444_v50 }
 0x66e   : > { %v7437_v25 = vpop.f32.mrf.mxu3 }
 0x66f   : > { %v7438_v51 = vadd.f32 %v7437_v25, %v7424_v27 }
 0x671   : > { %7441 = vst [vmem:[#allocation24 + $0x28] sm:$0xff] %v7438_v51  ;;  %v7564_v40 = vpop.f32.mrf.mxu1 }
 0x672   : > { %v7565_v55 = vadd.f32 %v7564_v40, %v7551_v26 }
 0x673   : > { %v7552_v14 = vpop.f32.mrf.mxu0 }
 0x674   : > { %7569 = vst [vmem:[#allocation24 + $0x10] sm:$0xff] %v7565_v55  ;;  %v7553_v20 = vadd.f32 %v7552_v14, %v7444_v50 }
 0x679   : > { %v7566_v41 = vpop.f32.mrf.mxu1 }
 0x67a   : > { %v7567_v60 = vadd.f32 %v7566_v41, %v7553_v20 }
 0x67c   : > { %7570 = vst [vmem:[#allocation24 + $0x30] sm:$0xff] %v7567_v60 }
 0x691   : > { %v7679_v59 = vpop.f32.mrf.mxu2 }
 0x692   : > { %v7680_v36 = vadd.f32 %v7679_v59, %v7573_v2 }
 0x697   : > { %v7693_v34 = vpop.f32.mrf.mxu3 }
 0x698   : > { %v7694_v52 = vadd.f32 %v7693_v34, %v7680_v36 }
 0x699   : > { %v7681_v17 = vpop.f32.mrf.mxu2 }
 0x69a   : > { %7698 = vst [vmem:[#allocation24 + $0x18] sm:$0xff] %v7694_v52  ;;  %v7682_v9 = vadd.f32 %v7681_v17, %v7573_v2 }
 0x69f   : > { %v7695_v7 = vpop.f32.mrf.mxu3 }
 0x6a0   : > { %v7696_v56 = vadd.f32 %v7695_v7, %v7682_v9 }
 0x6a2   : > { %7699 = vst [vmem:[#allocation24 + $0x38] sm:$0xff] %v7696_v56 }
 0x6a3 PF: > { %s12333_s23 = sld [smem:[#allocation37_spill]]  ;;  %s10470_s25 = smov [#allocation24]  }
 0x6a4   : > { %s12334_s15 = sld [smem:[#allocation44_spill]]  ;;  %s7709_s14 = sshll.u32 %s10470_s25, 4  ;;  %s7710_s14 = int_to_ptr.vmem [resolvable:$true] %s7709_s14 }
 0x6a5   : > { %s10471_s13 = smov 512   ;;  %s10472_s2 = smov 32  }
 0x6a9   : > { %p9707_p3 = scmp.eq.s32.totalorder %s12333_s23, 2 }
 0x6aa   : > { %s7711_s24 = sshll.u32 %s12334_s15, 4  ;;  %s7712_s24 = int_to_ptr.hbm [resolvable:$true] %s7711_s24 }
 0x6ab   : > { %9638 = dma.vmem_to_hbm [thread:$0]  (%p9707_p3), %s7710_s14, 1024, %s7712_s24, [#allocation6], %s10471_s13, %s10471_s13, %s10472_s2  }
 0x6ac   : > { %10421 = dma.done.wait (%p9707_p3), [#allocation6], 1024  }
 0x6ad   : > { %10423 = vsyncadd (%p9707_p3), [#allocation6], 4294966272 }
 0x6ae PF: > { %s30_s30 = sadd.s32 1, %s10446_s30   ;;  %s12335_s25 = smov %s10430_s26 }
 0x6af   : > { %p27_p4 = scmp.ge.s32.totalorder %s30_s30, 5   ;;  %s12336_s26 = smov %s10434_s27 }
 0x6b0   : > { %s12337_s27 = smov %s10678_s19  ;;  %s12338_s28 = smov %s10442_s29 }
 0x6b1   : > { %s12339_s29 = smov %s12341_s16  ;;  %29 = sbr.rel (!%p27_p4) target bundleno = 16 (0x10), region = 169 }
 0x6b6   :  { %7728 = vsyncpa [#allocation5], 1 }
 0x6b7   :  { %7730 = vsyncpa [#allocation5 + $0x1], 1 }
 0x6b8   :  { %7731 = vsyncpa [#allocation8], 1 }
 0x6b9   :  { %7732 = vsyncpa [#allocation11], 1 }
 0x6ba   :  { %7733 = vsyncpa [#allocation16], 1 }
 0x6bb   :  { %7734 = vsyncpa [#allocation19], 1 }
 0x6bc   :  { %7735 = vsyncpa [#allocation22], 1 }
 0x6bd   :  { %7736 = vsyncpa [#allocation6], 1 }
 0x6be   :  { %7738 = vsyncpa [#allocation6 + $0x1], 1 }

</bundles_post_ra>
